<compile_context>
chip_gen: v7x
topology: tpu7x:2x2x1
jax: 0.10.0
libtpu: 0.0.40
codegen_flags: <defaults>
</compile_context>

<pallas_src>
import functools

import jax
import jax.numpy as jnp
from jax import lax
from jax.experimental import pallas as pl
from jax.experimental.pallas import tpu as pltpu

_K = 5                      # all three convs are 5x5
_C1, _C2, _C3 = 6, 16, 32   # conv channel widths


def _pair_select(n_in, n_out):
    """(n_in, n_out) f32 matrix S with S[2m, m] = 1: given adjacent-pair maxima
    pm[:, p] = max(row[:, p], row[:, p+1]), pm @ S keeps columns 0,2,4,... --
    a width-2 / stride-2 max pool along the lane axis via a single MXU dot."""
    p = lax.broadcasted_iota(jnp.int32, (n_in, n_out), 0)
    m = lax.broadcasted_iota(jnp.int32, (n_in, n_out), 1)
    return (p == 2 * m).astype(jnp.float32)


def _convnet_kernel(x_ref, w1_ref, b1_ref, w2_ref, b2_ref, w3_ref, b3_ref,
                    fw1_ref, fb1_ref, fw2_ref, fb2_ref, fw3_ref, fb3_ref,
                    out_ref, feat_ref, *, H, W):
    f32 = jnp.float32
    Ho1, Wo1 = H - _K + 1, W - _K + 1
    P1h, P1w = Ho1 // 2, Wo1 // 2
    Ho2, Wo2 = P1h - _K + 1, P1w - _K + 1
    P2h, P2w = Ho2 // 2, Wo2 // 2

    # Grid-invariant weights: loaded from VMEM once per grid step, reused for
    # every image in the block and for the batched fc GEMMs.
    w1f = w1_ref[...]            # (6, 25)    K-order (j, i)
    b1c = b1_ref[...]            # (6, 1)
    w2f = w2_ref[...]            # (16, 150)  K-order (j, i, ci)
    b2c = b2_ref[...]            # (16, 1)
    w3f = w3_ref[...]            # (32, 400)  K-order (j, i, ci)
    b3c = b3_ref[...]            # (32, 1)

    sel1 = _pair_select(Wo1 - 1, P1w)
    sel2 = _pair_select(Wo2 - 1, P2w)
    eye3 = (lax.broadcasted_iota(jnp.int32, (_C3, _C3), 0)
            == lax.broadcasted_iota(jnp.int32, (_C3, _C3), 1)).astype(f32)

    bblk = feat_ref.shape[0]

    def per_image(b, carry):
        x_img = x_ref[b]                                          # (H, W)

        # ---- stage 1: conv1 as ONE (6,25)@(25,Ho1*Wo1) dot + ReLU + 2x2 pool
        xc = [x_img[:, j:j + Wo1] for j in range(_K)]             # hoisted col shifts
        strips = []
        for r in range(Ho1):                                      # fully unrolled
            strips.append(jnp.concatenate(
                [xc[j][r:r + _K, :] for j in range(_K)], axis=0))  # (25, Wo1)
        col1 = jnp.concatenate(strips, axis=1)                    # (25, Ho1*Wo1)
        y1 = jnp.dot(w1f, col1, preferred_element_type=f32)       # (6, Ho1*Wo1)
        y1 = jnp.maximum(y1 + b1c, 0.0)
        rows1 = []
        for k in range(P1h):                                      # pool over H
            pair = y1[:, 2 * k * Wo1:(2 * k + 2) * Wo1]           # rows 2k, 2k+1
            rows1.append(jnp.maximum(pair[:, :Wo1], pair[:, Wo1:]))
        m1 = jnp.concatenate(rows1, axis=0)                       # (P1h*6, Wo1), row = r*6+c
        pm1 = jnp.maximum(m1[:, :Wo1 - 1], m1[:, 1:])
        s1 = jnp.dot(pm1, sel1, preferred_element_type=f32)       # (P1h*6, P1w)

        # ---- stage 2: conv2 as ONE (16,150)@(150,Ho2*Wo2) dot + ReLU + pool
        sc = [s1[:, j:j + Wo2] for j in range(_K)]                # hoisted col shifts
        strips2 = []
        for r in range(Ho2):
            strips2.append(jnp.concatenate(
                [sc[j][r * _C1:(r + _K) * _C1, :] for j in range(_K)],
                axis=0))                                           # (150, Wo2)
        col2 = jnp.concatenate(strips2, axis=1)                    # (150, Ho2*Wo2)
        y2 = jnp.dot(w2f, col2, preferred_element_type=f32)        # (16, Ho2*Wo2)
        y2 = jnp.maximum(y2 + b2c, 0.0)
        rows2 = []
        for k in range(P2h):
            pair = y2[:, 2 * k * Wo2:(2 * k + 2) * Wo2]
            rows2.append(jnp.maximum(pair[:, :Wo2], pair[:, Wo2:]))
        m2 = jnp.concatenate(rows2, axis=0)                        # (P2h*16, Wo2)
        pm2 = jnp.maximum(m2[:, :Wo2 - 1], m2[:, 1:])
        s2 = jnp.dot(pm2, sel2, preferred_element_type=f32)        # (P2h*16, P2w)

        # ---- stage 3: conv3 as ONE (32,400)@(400,4) dot + ReLU + 2x2 pool ---
        sc3 = [s2[:, j:j + 2] for j in range(_K)]
        strips3 = []
        for r in range(2):
            strips3.append(jnp.concatenate(
                [sc3[j][r * _C2:(r + _K) * _C2, :] for j in range(_K)],
                axis=0))                                           # (400, 2)
        col3 = jnp.concatenate(strips3, axis=1)                    # (400, 4)
        y3 = jnp.dot(w3f, col3, preferred_element_type=f32)        # (32, 4)
        y3 = jnp.maximum(y3 + b3c, 0.0)
        fcol = jnp.max(y3, axis=1, keepdims=True)                  # (32, 1) pooled
        # (32,1) column -> (1,32) row without a vector transpose.
        feat_ref[b] = jnp.sum(fcol * eye3, axis=0, keepdims=True)  # (1, 32)
        return carry

    lax.fori_loop(0, bblk, per_image, 0)

    # ---- fc1 -> fc2 -> fc3 as batched GEMMs over the whole block -----------
    feats = feat_ref[...][:, 0, :]                                 # (bblk, 32)
    h = jnp.dot(feats, fw1_ref[...], preferred_element_type=f32) + fb1_ref[...]
    h = jnp.maximum(h, 0.0)                                        # (bblk, 2000)
    h = jnp.dot(h, fw2_ref[...], preferred_element_type=f32) + fb2_ref[...]
    h = jnp.maximum(h, 0.0)                                        # (bblk, 320)
    out_ref[...] = (jnp.dot(h, fw3_ref[...], preferred_element_type=f32)
                    + fb3_ref[...])                                # (bblk, 3)


def _round_up(x, m):
    return (x + m - 1) // m * m


def convnet_forward(x_nchw, params, *, block_batch=128):
    N, cin, H, W = x_nchw.shape
    assert cin == 1, "ConvNet takes single-channel input"
    Ho1, Wo1 = H - 4, W - 4
    P1h, P1w = Ho1 // 2, Wo1 // 2
    Ho2, Wo2 = P1h - 4, P1w - 4
    P2h, P2w = Ho2 // 2, Wo2 // 2
    Ho3, Wo3 = P2h - 4, P2w - 4
    P3h, P3w = Ho3 // 2, Wo3 // 2
    # TODO(synk): general (c,h,w)-ordered flatten for pooled maps larger than 1x1.
    assert P3h == 1 and P3w == 1, "fused kernel assumes the final pooled map is 1x1"
    fc1_in = _C3 * P3h * P3w

    # Batch block: multiple of 8 (sublane-aligned output block) and >= 2 grid
    # blocks whenever the batch allows it (keeps both v7x TensorCores busy).
    bblk = min(block_batch, _round_up(max(N // 2, 1), 8))
    n_pad = _round_up(N, bblk)

    x = x_nchw[:, 0, :, :].astype(jnp.float32)                    # (N, H, W)
    if n_pad != N:
        x = jnp.concatenate(
            [x, jnp.zeros((n_pad - N, H, W), jnp.float32)], axis=0)

    # ---- host-side WEIGHT repacking only (tiny; no activation inflation) ----
    # conv weights (Cout, Cin, KH, KW) -> (Cout, KW*KH*Cin) matching the
    # in-kernel im2col row order (j, i, ci).
    w1 = jnp.transpose(params["w1"], (0, 1, 3, 2)).reshape(_C1, 25).astype(jnp.float32)
    w2 = jnp.transpose(params["w2"], (0, 3, 2, 1)).reshape(_C2, 25 * _C1).astype(jnp.float32)
    w3 = jnp.transpose(params["w3"], (0, 3, 2, 1)).reshape(_C3, 25 * _C2).astype(jnp.float32)
    b1 = params["b1"].reshape(_C1, 1).astype(jnp.float32)
    b2 = params["b2"].reshape(_C2, 1).astype(jnp.float32)
    b3 = params["b3"].reshape(_C3, 1).astype(jnp.float32)
    # PyTorch nn.Linear stores (out, in); kernel computes y = x @ W, so transpose.
    fw1 = params["fc1_w"].T.astype(jnp.float32)                   # (32, 2000)
    fw2 = params["fc2_w"].T.astype(jnp.float32)                   # (2000, 320)
    fw3 = params["fc3_w"].T.astype(jnp.float32)                   # (320, 3)
    fb1 = params["fc1_b"].reshape(1, -1).astype(jnp.float32)
    fb2 = params["fc2_b"].reshape(1, -1).astype(jnp.float32)
    fb3 = params["fc3_b"].reshape(1, -1).astype(jnp.float32)
    n_fc1, n_fc2, n_fc3 = fw1.shape[1], fw2.shape[1], fw3.shape[1]
    assert fw1.shape[0] == fc1_in

    flops = 2 * N * (Ho1 * Wo1 * 25 * 1 * _C1
                     + Ho2 * Wo2 * 25 * _C1 * _C2
                     + 4 * 25 * _C2 * _C3
                     + fc1_in * n_fc1 + n_fc1 * n_fc2 + n_fc2 * n_fc3)
    param_bytes = 4 * sum(int(p.size) for p in
                          (w1, b1, w2, b2, w3, b3, fw1, fb1, fw2, fb2, fw3, fb3))
    bytes_accessed = param_bytes + 4 * (n_pad * H * W + n_pad * n_fc3)

    grid_spec = pltpu.PrefetchScalarGridSpec(
        num_scalar_prefetch=0,
        grid=(n_pad // bblk,),
        in_specs=[
            pl.BlockSpec((bblk, H, W), lambda b: (b, 0, 0)),      # batch block
            pl.BlockSpec(w1.shape, lambda b: (0, 0)),             # weights: grid-
            pl.BlockSpec(b1.shape, lambda b: (0, 0)),             # invariant blocks
            pl.BlockSpec(w2.shape, lambda b: (0, 0)),             # (DMA'd once,
            pl.BlockSpec(b2.shape, lambda b: (0, 0)),             #  VMEM-resident)
            pl.BlockSpec(w3.shape, lambda b: (0, 0)),
            pl.BlockSpec(b3.shape, lambda b: (0, 0)),
            pl.BlockSpec(fw1.shape, lambda b: (0, 0)),
            pl.BlockSpec(fb1.shape, lambda b: (0, 0)),
            pl.BlockSpec(fw2.shape, lambda b: (0, 0)),
            pl.BlockSpec(fb2.shape, lambda b: (0, 0)),
            pl.BlockSpec(fw3.shape, lambda b: (0, 0)),
            pl.BlockSpec(fb3.shape, lambda b: (0, 0)),
        ],
        out_specs=pl.BlockSpec((bblk, n_fc3), lambda b: (b, 0)),
        scratch_shapes=[
            pltpu.VMEM((bblk, 1, fc1_in), jnp.float32),           # per-image features
        ],
    )

    out = pl.pallas_call(
        functools.partial(_convnet_kernel, H=H, W=W),
        out_shape=jax.ShapeDtypeStruct((n_pad, n_fc3), jnp.float32),
        grid_spec=grid_spec,
        compiler_params=pltpu.CompilerParams(
            dimension_semantics=("parallel",),
            vmem_limit_bytes=32 * 1024 * 1024,
        ),
        cost_estimate=pl.CostEstimate(
            flops=flops, transcendentals=0, bytes_accessed=bytes_accessed),
    )(x, w1, b1, w2, b2, w3, b3, fw1, fb1, fw2, fb2, fw3, fb3)

    return out[:N]


# ---------------------------------------------------------------------------
# Pure-JAX reference (PyTorch semantics) for a correctness spot-check.
# ---------------------------------------------------------------------------

def reference_forward(x_nchw, params):
    def conv(x, w, b):
        y = lax.conv_general_dilated(
            x, w, (1, 1), "VALID", dimension_numbers=("NCHW", "OIHW", "NCHW"))
        return jax.nn.relu(y + b.reshape(1, -1, 1, 1))

    def pool(x):
        return lax.reduce_window(x, -jnp.inf, lax.max,
                                 (1, 1, 2, 2), (1, 1, 2, 2), "VALID")

    h = pool(conv(x_nchw, params["w1"], params["b1"]))
    h = pool(conv(h, params["w2"], params["b2"]))
    h = pool(conv(h, params["w3"], params["b3"]))
    h = h.reshape(h.shape[0], -1)
    h = jax.nn.relu(h @ params["fc1_w"].T + params["fc1_b"])
    h = jax.nn.relu(h @ params["fc2_w"].T + params["fc2_b"])
    return h @ params["fc3_w"].T + params["fc3_b"]


# ---------------------------------------------------------------------------
# Deterministic parameter init (synthetic, shapes/layout match ConvNet.__init__)
# ---------------------------------------------------------------------------

def init_params(key, input_shape):
    h, w = input_shape
    fx = (((h - 4) // 2 - 4) // 2 - 4) // 2
    fy = (((w - 4) // 2 - 4) // 2 - 4) // 2
    fc1_in = 32 * fx * fy

    keys = jax.random.split(key, 12)

    def u(k, shape, fan_in):
        bound = 1.0 / jnp.sqrt(float(fan_in))
        return jax.random.uniform(k, shape, jnp.float32, -bound, bound)

    return {
        "w1": u(keys[0], (6, 1, 5, 5), 1 * 25),
        "b1": u(keys[1], (6,), 1 * 25),
        "w2": u(keys[2], (16, 6, 5, 5), 6 * 25),
        "b2": u(keys[3], (16,), 6 * 25),
        "w3": u(keys[4], (32, 16, 5, 5), 16 * 25),
        "b3": u(keys[5], (32,), 16 * 25),
        # PyTorch nn.Linear layout: (out_features, in_features)
        "fc1_w": u(keys[6], (2000, fc1_in), fc1_in),
        "fc1_b": u(keys[7], (2000,), fc1_in),
        "fc2_w": u(keys[8], (320, 2000), 2000),
        "fc2_b": u(keys[9], (320,), 2000),
        "fc3_w": u(keys[10], (3, 320), 320),
        "fc3_b": u(keys[11], (3,), 320),
    }


if __name__ == "__main__":
    key = jax.random.PRNGKey(0)
    k_in, k_par = jax.random.split(key)

    # Smallest spatial size where the three conv+pool stages stay valid:
    # (((36-4)//2 - 4)//2 - 4)//2 = 1  ->  fc1 input = 32*1*1 = 32
    batch, in_ch, H, W = 16, 1, 36, 36
    x = jax.random.normal(k_in, (batch, in_ch, H, W), jnp.float32)
    params = init_params(k_par, (H, W))

    fwd = jax.jit(convnet_forward)
    yhat = fwd(x, params)
    jax.block_until_ready(yhat)

    assert yhat.shape == (batch, 3), yhat.shape
    assert yhat.dtype == jnp.float32
    assert bool(jnp.all(jnp.isfinite(yhat)))

    yref = jax.jit(reference_forward)(x, params)
    jax.block_until_ready(yref)
    max_err = float(jnp.max(jnp.abs(yhat - yref)))
    assert jnp.allclose(yhat, yref, atol=2e-2, rtol=2e-2), (
        f"kernel/reference mismatch, max abs err = {max_err}")

    print("KERNEL_OK")
</pallas_src>

<mosaic_0001>
module attributes {stable_mosaic.version = 11 : i64} {
  func.func @_convnet_kernel(%arg0: i32, %arg1: memref<8x36x36xf32, #tpu.memory_space<vmem>>, %arg2: memref<6x25xf32, #tpu.memory_space<vmem>>, %arg3: memref<6x1xf32, #tpu.memory_space<vmem>>, %arg4: memref<16x150xf32, #tpu.memory_space<vmem>>, %arg5: memref<16x1xf32, #tpu.memory_space<vmem>>, %arg6: memref<32x400xf32, #tpu.memory_space<vmem>>, %arg7: memref<32x1xf32, #tpu.memory_space<vmem>>, %arg8: memref<32x2000xf32, #tpu.memory_space<vmem>>, %arg9: memref<1x2000xf32, #tpu.memory_space<vmem>>, %arg10: memref<2000x320xf32, #tpu.memory_space<vmem>>, %arg11: memref<1x320xf32, #tpu.memory_space<vmem>>, %arg12: memref<320x3xf32, #tpu.memory_space<vmem>>, %arg13: memref<1x3xf32, #tpu.memory_space<vmem>>, %arg14: memref<8x3xf32, #tpu.memory_space<vmem>>, %arg15: memref<8x1x32xf32, #tpu.memory_space<vmem>>) attributes {dimension_semantics = [#tpu.dimension_semantics<parallel>], iteration_bounds = array<i64: 2>, scalar_prefetch = 0 : i64, scratch_operands = 1 : i64, tpu.core_type = #tpu.core_type<tc>, window_params = [{transform_indices = @transform_0, window_bounds = array<i64: 8, 36, 36>}, {pipeline_mode = #tpu.pipeline_mode<synchronous>, transform_indices = @transform_1, window_bounds = array<i64: 6, 25>}, {pipeline_mode = #tpu.pipeline_mode<synchronous>, transform_indices = @transform_2, window_bounds = array<i64: 6, 1>}, {pipeline_mode = #tpu.pipeline_mode<synchronous>, transform_indices = @transform_3, window_bounds = array<i64: 16, 150>}, {pipeline_mode = #tpu.pipeline_mode<synchronous>, transform_indices = @transform_4, window_bounds = array<i64: 16, 1>}, {pipeline_mode = #tpu.pipeline_mode<synchronous>, transform_indices = @transform_5, window_bounds = array<i64: 32, 400>}, {pipeline_mode = #tpu.pipeline_mode<synchronous>, transform_indices = @transform_6, window_bounds = array<i64: 32, 1>}, {pipeline_mode = #tpu.pipeline_mode<synchronous>, transform_indices = @transform_7, window_bounds = array<i64: 32, 2000>}, {pipeline_mode = #tpu.pipeline_mode<synchronous>, transform_indices = @transform_8, window_bounds = array<i64: 1, 2000>}, {pipeline_mode = #tpu.pipeline_mode<synchronous>, transform_indices = @transform_9, window_bounds = array<i64: 2000, 320>}, {pipeline_mode = #tpu.pipeline_mode<synchronous>, transform_indices = @transform_10, window_bounds = array<i64: 1, 320>}, {pipeline_mode = #tpu.pipeline_mode<synchronous>, transform_indices = @transform_11, window_bounds = array<i64: 320, 3>}, {pipeline_mode = #tpu.pipeline_mode<synchronous>, transform_indices = @transform_12, window_bounds = array<i64: 1, 3>}, {transform_indices = @transform_13, window_bounds = array<i64: 8, 3>}]} {
    %c0 = arith.constant 0 : index
    %c0_0 = arith.constant 0 : index
    %0 = vector.load %arg2[%c0, %c0_0] : memref<6x25xf32, #tpu.memory_space<vmem>>, vector<6x25xf32>
    %c0_1 = arith.constant 0 : index
    %c0_2 = arith.constant 0 : index
    %1 = vector.load %arg3[%c0_1, %c0_2] : memref<6x1xf32, #tpu.memory_space<vmem>>, vector<6x1xf32>
    %c0_3 = arith.constant 0 : index
    %c0_4 = arith.constant 0 : index
    %2 = vector.load %arg4[%c0_3, %c0_4] : memref<16x150xf32, #tpu.memory_space<vmem>>, vector<16x150xf32>
    %c0_5 = arith.constant 0 : index
    %c0_6 = arith.constant 0 : index
    %3 = vector.load %arg5[%c0_5, %c0_6] : memref<16x1xf32, #tpu.memory_space<vmem>>, vector<16x1xf32>
    %c0_7 = arith.constant 0 : index
    %c0_8 = arith.constant 0 : index
    %4 = vector.load %arg6[%c0_7, %c0_8] : memref<32x400xf32, #tpu.memory_space<vmem>>, vector<32x400xf32>
    %c0_9 = arith.constant 0 : index
    %c0_10 = arith.constant 0 : index
    %5 = vector.load %arg7[%c0_9, %c0_10] : memref<32x1xf32, #tpu.memory_space<vmem>>, vector<32x1xf32>
    %6 = tpu.iota {dimensions = array<i32: 0>} : vector<31x16xi32>
    %7 = tpu.iota {dimensions = array<i32: 1>} : vector<31x16xi32>
    %c2_i32 = arith.constant 2 : i32
    %8 = vector.broadcast %c2_i32 : i32 to vector<31x16xi32>
    %9 = arith.muli %8, %7 : vector<31x16xi32>
    %10 = arith.cmpi eq, %6, %9 : vector<31x16xi32>
    %11 = arith.extui %10 : vector<31x16xi1> to vector<31x16xi32>
    %12 = arith.sitofp %11 : vector<31x16xi32> to vector<31x16xf32>
    %13 = tpu.iota {dimensions = array<i32: 0>} : vector<11x6xi32>
    %14 = tpu.iota {dimensions = array<i32: 1>} : vector<11x6xi32>
    %c2_i32_11 = arith.constant 2 : i32
    %15 = vector.broadcast %c2_i32_11 : i32 to vector<11x6xi32>
    %16 = arith.muli %15, %14 : vector<11x6xi32>
    %17 = arith.cmpi eq, %13, %16 : vector<11x6xi32>
    %18 = arith.extui %17 : vector<11x6xi1> to vector<11x6xi32>
    %19 = arith.sitofp %18 : vector<11x6xi32> to vector<11x6xf32>
    %20 = tpu.iota {dimensions = array<i32: 0>} : vector<32x32xi32>
    %21 = tpu.iota {dimensions = array<i32: 1>} : vector<32x32xi32>
    %22 = arith.cmpi eq, %20, %21 : vector<32x32xi32>
    %23 = arith.extui %22 : vector<32x32xi1> to vector<32x32xi32>
    %24 = arith.sitofp %23 : vector<32x32xi32> to vector<32x32xf32>
    %c0_i32 = arith.constant 0 : i32
    %c8_i32 = arith.constant 8 : i32
    %25 = arith.addi %c0_i32, %c8_i32 : i32
    %c1_i32 = arith.constant 1 : i32
    scf.for %arg16 = %c0_i32 to %25 step %c1_i32  : i32 {
      %48 = arith.index_cast %arg16 : i32 to index
      %c0_34 = arith.constant 0 : index
      %c0_35 = arith.constant 0 : index
      %49 = vector.load %arg1[%48, %c0_34, %c0_35] : memref<8x36x36xf32, #tpu.memory_space<vmem>>, vector<1x36x36xf32>
      %50 = vector.shape_cast %49 : vector<1x36x36xf32> to vector<36x36xf32>
      %51 = vector.extract_strided_slice %50 {offsets = [0, 0], sizes = [36, 32], strides = [1, 1]} : vector<36x36xf32> to vector<36x32xf32>
      %52 = vector.extract_strided_slice %50 {offsets = [0, 1], sizes = [36, 32], strides = [1, 1]} : vector<36x36xf32> to vector<36x32xf32>
      %53 = vector.extract_strided_slice %50 {offsets = [0, 2], sizes = [36, 32], strides = [1, 1]} : vector<36x36xf32> to vector<36x32xf32>
      %54 = vector.extract_strided_slice %50 {offsets = [0, 3], sizes = [36, 32], strides = [1, 1]} : vector<36x36xf32> to vector<36x32xf32>
      %55 = vector.extract_strided_slice %50 {offsets = [0, 4], sizes = [36, 32], strides = [1, 1]} : vector<36x36xf32> to vector<36x32xf32>
      %56 = vector.extract_strided_slice %51 {offsets = [0, 0], sizes = [5, 32], strides = [1, 1]} : vector<36x32xf32> to vector<5x32xf32>
      %57 = vector.extract_strided_slice %52 {offsets = [0, 0], sizes = [5, 32], strides = [1, 1]} : vector<36x32xf32> to vector<5x32xf32>
      %58 = vector.extract_strided_slice %53 {offsets = [0, 0], sizes = [5, 32], strides = [1, 1]} : vector<36x32xf32> to vector<5x32xf32>
      %59 = vector.extract_strided_slice %54 {offsets = [0, 0], sizes = [5, 32], strides = [1, 1]} : vector<36x32xf32> to vector<5x32xf32>
      %60 = vector.extract_strided_slice %55 {offsets = [0, 0], sizes = [5, 32], strides = [1, 1]} : vector<36x32xf32> to vector<5x32xf32>
      %61 = tpu.concatenate %56, %57, %58, %59, %60 in 0 : vector<5x32xf32>, vector<5x32xf32>, vector<5x32xf32>, vector<5x32xf32>, vector<5x32xf32> -> vector<25x32xf32>
      %62 = vector.extract_strided_slice %51 {offsets = [1, 0], sizes = [5, 32], strides = [1, 1]} : vector<36x32xf32> to vector<5x32xf32>
      %63 = vector.extract_strided_slice %52 {offsets = [1, 0], sizes = [5, 32], strides = [1, 1]} : vector<36x32xf32> to vector<5x32xf32>
      %64 = vector.extract_strided_slice %53 {offsets = [1, 0], sizes = [5, 32], strides = [1, 1]} : vector<36x32xf32> to vector<5x32xf32>
      %65 = vector.extract_strided_slice %54 {offsets = [1, 0], sizes = [5, 32], strides = [1, 1]} : vector<36x32xf32> to vector<5x32xf32>
      %66 = vector.extract_strided_slice %55 {offsets = [1, 0], sizes = [5, 32], strides = [1, 1]} : vector<36x32xf32> to vector<5x32xf32>
      %67 = tpu.concatenate %62, %63, %64, %65, %66 in 0 : vector<5x32xf32>, vector<5x32xf32>, vector<5x32xf32>, vector<5x32xf32>, vector<5x32xf32> -> vector<25x32xf32>
      %68 = vector.extract_strided_slice %51 {offsets = [2, 0], sizes = [5, 32], strides = [1, 1]} : vector<36x32xf32> to vector<5x32xf32>
      %69 = vector.extract_strided_slice %52 {offsets = [2, 0], sizes = [5, 32], strides = [1, 1]} : vector<36x32xf32> to vector<5x32xf32>
      %70 = vector.extract_strided_slice %53 {offsets = [2, 0], sizes = [5, 32], strides = [1, 1]} : vector<36x32xf32> to vector<5x32xf32>
      %71 = vector.extract_strided_slice %54 {offsets = [2, 0], sizes = [5, 32], strides = [1, 1]} : vector<36x32xf32> to vector<5x32xf32>
      %72 = vector.extract_strided_slice %55 {offsets = [2, 0], sizes = [5, 32], strides = [1, 1]} : vector<36x32xf32> to vector<5x32xf32>
      %73 = tpu.concatenate %68, %69, %70, %71, %72 in 0 : vector<5x32xf32>, vector<5x32xf32>, vector<5x32xf32>, vector<5x32xf32>, vector<5x32xf32> -> vector<25x32xf32>
      %74 = vector.extract_strided_slice %51 {offsets = [3, 0], sizes = [5, 32], strides = [1, 1]} : vector<36x32xf32> to vector<5x32xf32>
      %75 = vector.extract_strided_slice %52 {offsets = [3, 0], sizes = [5, 32], strides = [1, 1]} : vector<36x32xf32> to vector<5x32xf32>
      %76 = vector.extract_strided_slice %53 {offsets = [3, 0], sizes = [5, 32], strides = [1, 1]} : vector<36x32xf32> to vector<5x32xf32>
      %77 = vector.extract_strided_slice %54 {offsets = [3, 0], sizes = [5, 32], strides = [1, 1]} : vector<36x32xf32> to vector<5x32xf32>
      %78 = vector.extract_strided_slice %55 {offsets = [3, 0], sizes = [5, 32], strides = [1, 1]} : vector<36x32xf32> to vector<5x32xf32>
      %79 = tpu.concatenate %74, %75, %76, %77, %78 in 0 : vector<5x32xf32>, vector<5x32xf32>, vector<5x32xf32>, vector<5x32xf32>, vector<5x32xf32> -> vector<25x32xf32>
      %80 = vector.extract_strided_slice %51 {offsets = [4, 0], sizes = [5, 32], strides = [1, 1]} : vector<36x32xf32> to vector<5x32xf32>
      %81 = vector.extract_strided_slice %52 {offsets = [4, 0], sizes = [5, 32], strides = [1, 1]} : vector<36x32xf32> to vector<5x32xf32>
      %82 = vector.extract_strided_slice %53 {offsets = [4, 0], sizes = [5, 32], strides = [1, 1]} : vector<36x32xf32> to vector<5x32xf32>
      %83 = vector.extract_strided_slice %54 {offsets = [4, 0], sizes = [5, 32], strides = [1, 1]} : vector<36x32xf32> to vector<5x32xf32>
      %84 = vector.extract_strided_slice %55 {offsets = [4, 0], sizes = [5, 32], strides = [1, 1]} : vector<36x32xf32> to vector<5x32xf32>
      %85 = tpu.concatenate %80, %81, %82, %83, %84 in 0 : vector<5x32xf32>, vector<5x32xf32>, vector<5x32xf32>, vector<5x32xf32>, vector<5x32xf32> -> vector<25x32xf32>
      %86 = vector.extract_strided_slice %51 {offsets = [5, 0], sizes = [5, 32], strides = [1, 1]} : vector<36x32xf32> to vector<5x32xf32>
      %87 = vector.extract_strided_slice %52 {offsets = [5, 0], sizes = [5, 32], strides = [1, 1]} : vector<36x32xf32> to vector<5x32xf32>
      %88 = vector.extract_strided_slice %53 {offsets = [5, 0], sizes = [5, 32], strides = [1, 1]} : vector<36x32xf32> to vector<5x32xf32>
      %89 = vector.extract_strided_slice %54 {offsets = [5, 0], sizes = [5, 32], strides = [1, 1]} : vector<36x32xf32> to vector<5x32xf32>
      %90 = vector.extract_strided_slice %55 {offsets = [5, 0], sizes = [5, 32], strides = [1, 1]} : vector<36x32xf32> to vector<5x32xf32>
      %91 = tpu.concatenate %86, %87, %88, %89, %90 in 0 : vector<5x32xf32>, vector<5x32xf32>, vector<5x32xf32>, vector<5x32xf32>, vector<5x32xf32> -> vector<25x32xf32>
      %92 = vector.extract_strided_slice %51 {offsets = [6, 0], sizes = [5, 32], strides = [1, 1]} : vector<36x32xf32> to vector<5x32xf32>
      %93 = vector.extract_strided_slice %52 {offsets = [6, 0], sizes = [5, 32], strides = [1, 1]} : vector<36x32xf32> to vector<5x32xf32>
      %94 = vector.extract_strided_slice %53 {offsets = [6, 0], sizes = [5, 32], strides = [1, 1]} : vector<36x32xf32> to vector<5x32xf32>
      %95 = vector.extract_strided_slice %54 {offsets = [6, 0], sizes = [5, 32], strides = [1, 1]} : vector<36x32xf32> to vector<5x32xf32>
      %96 = vector.extract_strided_slice %55 {offsets = [6, 0], sizes = [5, 32], strides = [1, 1]} : vector<36x32xf32> to vector<5x32xf32>
      %97 = tpu.concatenate %92, %93, %94, %95, %96 in 0 : vector<5x32xf32>, vector<5x32xf32>, vector<5x32xf32>, vector<5x32xf32>, vector<5x32xf32> -> vector<25x32xf32>
      %98 = vector.extract_strided_slice %51 {offsets = [7, 0], sizes = [5, 32], strides = [1, 1]} : vector<36x32xf32> to vector<5x32xf32>
      %99 = vector.extract_strided_slice %52 {offsets = [7, 0], sizes = [5, 32], strides = [1, 1]} : vector<36x32xf32> to vector<5x32xf32>
      %100 = vector.extract_strided_slice %53 {offsets = [7, 0], sizes = [5, 32], strides = [1, 1]} : vector<36x32xf32> to vector<5x32xf32>
      %101 = vector.extract_strided_slice %54 {offsets = [7, 0], sizes = [5, 32], strides = [1, 1]} : vector<36x32xf32> to vector<5x32xf32>
      %102 = vector.extract_strided_slice %55 {offsets = [7, 0], sizes = [5, 32], strides = [1, 1]} : vector<36x32xf32> to vector<5x32xf32>
      %103 = tpu.concatenate %98, %99, %100, %101, %102 in 0 : vector<5x32xf32>, vector<5x32xf32>, vector<5x32xf32>, vector<5x32xf32>, vector<5x32xf32> -> vector<25x32xf32>
      %104 = vector.extract_strided_slice %51 {offsets = [8, 0], sizes = [5, 32], strides = [1, 1]} : vector<36x32xf32> to vector<5x32xf32>
      %105 = vector.extract_strided_slice %52 {offsets = [8, 0], sizes = [5, 32], strides = [1, 1]} : vector<36x32xf32> to vector<5x32xf32>
      %106 = vector.extract_strided_slice %53 {offsets = [8, 0], sizes = [5, 32], strides = [1, 1]} : vector<36x32xf32> to vector<5x32xf32>
      %107 = vector.extract_strided_slice %54 {offsets = [8, 0], sizes = [5, 32], strides = [1, 1]} : vector<36x32xf32> to vector<5x32xf32>
      %108 = vector.extract_strided_slice %55 {offsets = [8, 0], sizes = [5, 32], strides = [1, 1]} : vector<36x32xf32> to vector<5x32xf32>
      %109 = tpu.concatenate %104, %105, %106, %107, %108 in 0 : vector<5x32xf32>, vector<5x32xf32>, vector<5x32xf32>, vector<5x32xf32>, vector<5x32xf32> -> vector<25x32xf32>
      %110 = vector.extract_strided_slice %51 {offsets = [9, 0], sizes = [5, 32], strides = [1, 1]} : vector<36x32xf32> to vector<5x32xf32>
      %111 = vector.extract_strided_slice %52 {offsets = [9, 0], sizes = [5, 32], strides = [1, 1]} : vector<36x32xf32> to vector<5x32xf32>
      %112 = vector.extract_strided_slice %53 {offsets = [9, 0], sizes = [5, 32], strides = [1, 1]} : vector<36x32xf32> to vector<5x32xf32>
      %113 = vector.extract_strided_slice %54 {offsets = [9, 0], sizes = [5, 32], strides = [1, 1]} : vector<36x32xf32> to vector<5x32xf32>
      %114 = vector.extract_strided_slice %55 {offsets = [9, 0], sizes = [5, 32], strides = [1, 1]} : vector<36x32xf32> to vector<5x32xf32>
      %115 = tpu.concatenate %110, %111, %112, %113, %114 in 0 : vector<5x32xf32>, vector<5x32xf32>, vector<5x32xf32>, vector<5x32xf32>, vector<5x32xf32> -> vector<25x32xf32>
      %116 = vector.extract_strided_slice %51 {offsets = [10, 0], sizes = [5, 32], strides = [1, 1]} : vector<36x32xf32> to vector<5x32xf32>
      %117 = vector.extract_strided_slice %52 {offsets = [10, 0], sizes = [5, 32], strides = [1, 1]} : vector<36x32xf32> to vector<5x32xf32>
      %118 = vector.extract_strided_slice %53 {offsets = [10, 0], sizes = [5, 32], strides = [1, 1]} : vector<36x32xf32> to vector<5x32xf32>
      %119 = vector.extract_strided_slice %54 {offsets = [10, 0], sizes = [5, 32], strides = [1, 1]} : vector<36x32xf32> to vector<5x32xf32>
      %120 = vector.extract_strided_slice %55 {offsets = [10, 0], sizes = [5, 32], strides = [1, 1]} : vector<36x32xf32> to vector<5x32xf32>
      %121 = tpu.concatenate %116, %117, %118, %119, %120 in 0 : vector<5x32xf32>, vector<5x32xf32>, vector<5x32xf32>, vector<5x32xf32>, vector<5x32xf32> -> vector<25x32xf32>
      %122 = vector.extract_strided_slice %51 {offsets = [11, 0], sizes = [5, 32], strides = [1, 1]} : vector<36x32xf32> to vector<5x32xf32>
      %123 = vector.extract_strided_slice %52 {offsets = [11, 0], sizes = [5, 32], strides = [1, 1]} : vector<36x32xf32> to vector<5x32xf32>
      %124 = vector.extract_strided_slice %53 {offsets = [11, 0], sizes = [5, 32], strides = [1, 1]} : vector<36x32xf32> to vector<5x32xf32>
      %125 = vector.extract_strided_slice %54 {offsets = [11, 0], sizes = [5, 32], strides = [1, 1]} : vector<36x32xf32> to vector<5x32xf32>
      %126 = vector.extract_strided_slice %55 {offsets = [11, 0], sizes = [5, 32], strides = [1, 1]} : vector<36x32xf32> to vector<5x32xf32>
      %127 = tpu.concatenate %122, %123, %124, %125, %126 in 0 : vector<5x32xf32>, vector<5x32xf32>, vector<5x32xf32>, vector<5x32xf32>, vector<5x32xf32> -> vector<25x32xf32>
      %128 = vector.extract_strided_slice %51 {offsets = [12, 0], sizes = [5, 32], strides = [1, 1]} : vector<36x32xf32> to vector<5x32xf32>
      %129 = vector.extract_strided_slice %52 {offsets = [12, 0], sizes = [5, 32], strides = [1, 1]} : vector<36x32xf32> to vector<5x32xf32>
      %130 = vector.extract_strided_slice %53 {offsets = [12, 0], sizes = [5, 32], strides = [1, 1]} : vector<36x32xf32> to vector<5x32xf32>
      %131 = vector.extract_strided_slice %54 {offsets = [12, 0], sizes = [5, 32], strides = [1, 1]} : vector<36x32xf32> to vector<5x32xf32>
      %132 = vector.extract_strided_slice %55 {offsets = [12, 0], sizes = [5, 32], strides = [1, 1]} : vector<36x32xf32> to vector<5x32xf32>
      %133 = tpu.concatenate %128, %129, %130, %131, %132 in 0 : vector<5x32xf32>, vector<5x32xf32>, vector<5x32xf32>, vector<5x32xf32>, vector<5x32xf32> -> vector<25x32xf32>
      %134 = vector.extract_strided_slice %51 {offsets = [13, 0], sizes = [5, 32], strides = [1, 1]} : vector<36x32xf32> to vector<5x32xf32>
      %135 = vector.extract_strided_slice %52 {offsets = [13, 0], sizes = [5, 32], strides = [1, 1]} : vector<36x32xf32> to vector<5x32xf32>
      %136 = vector.extract_strided_slice %53 {offsets = [13, 0], sizes = [5, 32], strides = [1, 1]} : vector<36x32xf32> to vector<5x32xf32>
      %137 = vector.extract_strided_slice %54 {offsets = [13, 0], sizes = [5, 32], strides = [1, 1]} : vector<36x32xf32> to vector<5x32xf32>
      %138 = vector.extract_strided_slice %55 {offsets = [13, 0], sizes = [5, 32], strides = [1, 1]} : vector<36x32xf32> to vector<5x32xf32>
      %139 = tpu.concatenate %134, %135, %136, %137, %138 in 0 : vector<5x32xf32>, vector<5x32xf32>, vector<5x32xf32>, vector<5x32xf32>, vector<5x32xf32> -> vector<25x32xf32>
      %140 = vector.extract_strided_slice %51 {offsets = [14, 0], sizes = [5, 32], strides = [1, 1]} : vector<36x32xf32> to vector<5x32xf32>
      %141 = vector.extract_strided_slice %52 {offsets = [14, 0], sizes = [5, 32], strides = [1, 1]} : vector<36x32xf32> to vector<5x32xf32>
      %142 = vector.extract_strided_slice %53 {offsets = [14, 0], sizes = [5, 32], strides = [1, 1]} : vector<36x32xf32> to vector<5x32xf32>
      %143 = vector.extract_strided_slice %54 {offsets = [14, 0], sizes = [5, 32], strides = [1, 1]} : vector<36x32xf32> to vector<5x32xf32>
      %144 = vector.extract_strided_slice %55 {offsets = [14, 0], sizes = [5, 32], strides = [1, 1]} : vector<36x32xf32> to vector<5x32xf32>
      %145 = tpu.concatenate %140, %141, %142, %143, %144 in 0 : vector<5x32xf32>, vector<5x32xf32>, vector<5x32xf32>, vector<5x32xf32>, vector<5x32xf32> -> vector<25x32xf32>
      %146 = vector.extract_strided_slice %51 {offsets = [15, 0], sizes = [5, 32], strides = [1, 1]} : vector<36x32xf32> to vector<5x32xf32>
      %147 = vector.extract_strided_slice %52 {offsets = [15, 0], sizes = [5, 32], strides = [1, 1]} : vector<36x32xf32> to vector<5x32xf32>
      %148 = vector.extract_strided_slice %53 {offsets = [15, 0], sizes = [5, 32], strides = [1, 1]} : vector<36x32xf32> to vector<5x32xf32>
      %149 = vector.extract_strided_slice %54 {offsets = [15, 0], sizes = [5, 32], strides = [1, 1]} : vector<36x32xf32> to vector<5x32xf32>
      %150 = vector.extract_strided_slice %55 {offsets = [15, 0], sizes = [5, 32], strides = [1, 1]} : vector<36x32xf32> to vector<5x32xf32>
      %151 = tpu.concatenate %146, %147, %148, %149, %150 in 0 : vector<5x32xf32>, vector<5x32xf32>, vector<5x32xf32>, vector<5x32xf32>, vector<5x32xf32> -> vector<25x32xf32>
      %152 = vector.extract_strided_slice %51 {offsets = [16, 0], sizes = [5, 32], strides = [1, 1]} : vector<36x32xf32> to vector<5x32xf32>
      %153 = vector.extract_strided_slice %52 {offsets = [16, 0], sizes = [5, 32], strides = [1, 1]} : vector<36x32xf32> to vector<5x32xf32>
      %154 = vector.extract_strided_slice %53 {offsets = [16, 0], sizes = [5, 32], strides = [1, 1]} : vector<36x32xf32> to vector<5x32xf32>
      %155 = vector.extract_strided_slice %54 {offsets = [16, 0], sizes = [5, 32], strides = [1, 1]} : vector<36x32xf32> to vector<5x32xf32>
      %156 = vector.extract_strided_slice %55 {offsets = [16, 0], sizes = [5, 32], strides = [1, 1]} : vector<36x32xf32> to vector<5x32xf32>
      %157 = tpu.concatenate %152, %153, %154, %155, %156 in 0 : vector<5x32xf32>, vector<5x32xf32>, vector<5x32xf32>, vector<5x32xf32>, vector<5x32xf32> -> vector<25x32xf32>
      %158 = vector.extract_strided_slice %51 {offsets = [17, 0], sizes = [5, 32], strides = [1, 1]} : vector<36x32xf32> to vector<5x32xf32>
      %159 = vector.extract_strided_slice %52 {offsets = [17, 0], sizes = [5, 32], strides = [1, 1]} : vector<36x32xf32> to vector<5x32xf32>
      %160 = vector.extract_strided_slice %53 {offsets = [17, 0], sizes = [5, 32], strides = [1, 1]} : vector<36x32xf32> to vector<5x32xf32>
      %161 = vector.extract_strided_slice %54 {offsets = [17, 0], sizes = [5, 32], strides = [1, 1]} : vector<36x32xf32> to vector<5x32xf32>
      %162 = vector.extract_strided_slice %55 {offsets = [17, 0], sizes = [5, 32], strides = [1, 1]} : vector<36x32xf32> to vector<5x32xf32>
      %163 = tpu.concatenate %158, %159, %160, %161, %162 in 0 : vector<5x32xf32>, vector<5x32xf32>, vector<5x32xf32>, vector<5x32xf32>, vector<5x32xf32> -> vector<25x32xf32>
      %164 = vector.extract_strided_slice %51 {offsets = [18, 0], sizes = [5, 32], strides = [1, 1]} : vector<36x32xf32> to vector<5x32xf32>
      %165 = vector.extract_strided_slice %52 {offsets = [18, 0], sizes = [5, 32], strides = [1, 1]} : vector<36x32xf32> to vector<5x32xf32>
      %166 = vector.extract_strided_slice %53 {offsets = [18, 0], sizes = [5, 32], strides = [1, 1]} : vector<36x32xf32> to vector<5x32xf32>
      %167 = vector.extract_strided_slice %54 {offsets = [18, 0], sizes = [5, 32], strides = [1, 1]} : vector<36x32xf32> to vector<5x32xf32>
      %168 = vector.extract_strided_slice %55 {offsets = [18, 0], sizes = [5, 32], strides = [1, 1]} : vector<36x32xf32> to vector<5x32xf32>
      %169 = tpu.concatenate %164, %165, %166, %167, %168 in 0 : vector<5x32xf32>, vector<5x32xf32>, vector<5x32xf32>, vector<5x32xf32>, vector<5x32xf32> -> vector<25x32xf32>
      %170 = vector.extract_strided_slice %51 {offsets = [19, 0], sizes = [5, 32], strides = [1, 1]} : vector<36x32xf32> to vector<5x32xf32>
      %171 = vector.extract_strided_slice %52 {offsets = [19, 0], sizes = [5, 32], strides = [1, 1]} : vector<36x32xf32> to vector<5x32xf32>
      %172 = vector.extract_strided_slice %53 {offsets = [19, 0], sizes = [5, 32], strides = [1, 1]} : vector<36x32xf32> to vector<5x32xf32>
      %173 = vector.extract_strided_slice %54 {offsets = [19, 0], sizes = [5, 32], strides = [1, 1]} : vector<36x32xf32> to vector<5x32xf32>
      %174 = vector.extract_strided_slice %55 {offsets = [19, 0], sizes = [5, 32], strides = [1, 1]} : vector<36x32xf32> to vector<5x32xf32>
      %175 = tpu.concatenate %170, %171, %172, %173, %174 in 0 : vector<5x32xf32>, vector<5x32xf32>, vector<5x32xf32>, vector<5x32xf32>, vector<5x32xf32> -> vector<25x32xf32>
      %176 = vector.extract_strided_slice %51 {offsets = [20, 0], sizes = [5, 32], strides = [1, 1]} : vector<36x32xf32> to vector<5x32xf32>
      %177 = vector.extract_strided_slice %52 {offsets = [20, 0], sizes = [5, 32], strides = [1, 1]} : vector<36x32xf32> to vector<5x32xf32>
      %178 = vector.extract_strided_slice %53 {offsets = [20, 0], sizes = [5, 32], strides = [1, 1]} : vector<36x32xf32> to vector<5x32xf32>
      %179 = vector.extract_strided_slice %54 {offsets = [20, 0], sizes = [5, 32], strides = [1, 1]} : vector<36x32xf32> to vector<5x32xf32>
      %180 = vector.extract_strided_slice %55 {offsets = [20, 0], sizes = [5, 32], strides = [1, 1]} : vector<36x32xf32> to vector<5x32xf32>
      %181 = tpu.concatenate %176, %177, %178, %179, %180 in 0 : vector<5x32xf32>, vector<5x32xf32>, vector<5x32xf32>, vector<5x32xf32>, vector<5x32xf32> -> vector<25x32xf32>
      %182 = vector.extract_strided_slice %51 {offsets = [21, 0], sizes = [5, 32], strides = [1, 1]} : vector<36x32xf32> to vector<5x32xf32>
      %183 = vector.extract_strided_slice %52 {offsets = [21, 0], sizes = [5, 32], strides = [1, 1]} : vector<36x32xf32> to vector<5x32xf32>
      %184 = vector.extract_strided_slice %53 {offsets = [21, 0], sizes = [5, 32], strides = [1, 1]} : vector<36x32xf32> to vector<5x32xf32>
      %185 = vector.extract_strided_slice %54 {offsets = [21, 0], sizes = [5, 32], strides = [1, 1]} : vector<36x32xf32> to vector<5x32xf32>
      %186 = vector.extract_strided_slice %55 {offsets = [21, 0], sizes = [5, 32], strides = [1, 1]} : vector<36x32xf32> to vector<5x32xf32>
      %187 = tpu.concatenate %182, %183, %184, %185, %186 in 0 : vector<5x32xf32>, vector<5x32xf32>, vector<5x32xf32>, vector<5x32xf32>, vector<5x32xf32> -> vector<25x32xf32>
      %188 = vector.extract_strided_slice %51 {offsets = [22, 0], sizes = [5, 32], strides = [1, 1]} : vector<36x32xf32> to vector<5x32xf32>
      %189 = vector.extract_strided_slice %52 {offsets = [22, 0], sizes = [5, 32], strides = [1, 1]} : vector<36x32xf32> to vector<5x32xf32>
      %190 = vector.extract_strided_slice %53 {offsets = [22, 0], sizes = [5, 32], strides = [1, 1]} : vector<36x32xf32> to vector<5x32xf32>
      %191 = vector.extract_strided_slice %54 {offsets = [22, 0], sizes = [5, 32], strides = [1, 1]} : vector<36x32xf32> to vector<5x32xf32>
      %192 = vector.extract_strided_slice %55 {offsets = [22, 0], sizes = [5, 32], strides = [1, 1]} : vector<36x32xf32> to vector<5x32xf32>
      %193 = tpu.concatenate %188, %189, %190, %191, %192 in 0 : vector<5x32xf32>, vector<5x32xf32>, vector<5x32xf32>, vector<5x32xf32>, vector<5x32xf32> -> vector<25x32xf32>
      %194 = vector.extract_strided_slice %51 {offsets = [23, 0], sizes = [5, 32], strides = [1, 1]} : vector<36x32xf32> to vector<5x32xf32>
      %195 = vector.extract_strided_slice %52 {offsets = [23, 0], sizes = [5, 32], strides = [1, 1]} : vector<36x32xf32> to vector<5x32xf32>
      %196 = vector.extract_strided_slice %53 {offsets = [23, 0], sizes = [5, 32], strides = [1, 1]} : vector<36x32xf32> to vector<5x32xf32>
      %197 = vector.extract_strided_slice %54 {offsets = [23, 0], sizes = [5, 32], strides = [1, 1]} : vector<36x32xf32> to vector<5x32xf32>
      %198 = vector.extract_strided_slice %55 {offsets = [23, 0], sizes = [5, 32], strides = [1, 1]} : vector<36x32xf32> to vector<5x32xf32>
      %199 = tpu.concatenate %194, %195, %196, %197, %198 in 0 : vector<5x32xf32>, vector<5x32xf32>, vector<5x32xf32>, vector<5x32xf32>, vector<5x32xf32> -> vector<25x32xf32>
      %200 = vector.extract_strided_slice %51 {offsets = [24, 0], sizes = [5, 32], strides = [1, 1]} : vector<36x32xf32> to vector<5x32xf32>
      %201 = vector.extract_strided_slice %52 {offsets = [24, 0], sizes = [5, 32], strides = [1, 1]} : vector<36x32xf32> to vector<5x32xf32>
      %202 = vector.extract_strided_slice %53 {offsets = [24, 0], sizes = [5, 32], strides = [1, 1]} : vector<36x32xf32> to vector<5x32xf32>
      %203 = vector.extract_strided_slice %54 {offsets = [24, 0], sizes = [5, 32], strides = [1, 1]} : vector<36x32xf32> to vector<5x32xf32>
      %204 = vector.extract_strided_slice %55 {offsets = [24, 0], sizes = [5, 32], strides = [1, 1]} : vector<36x32xf32> to vector<5x32xf32>
      %205 = tpu.concatenate %200, %201, %202, %203, %204 in 0 : vector<5x32xf32>, vector<5x32xf32>, vector<5x32xf32>, vector<5x32xf32>, vector<5x32xf32> -> vector<25x32xf32>
      %206 = vector.extract_strided_slice %51 {offsets = [25, 0], sizes = [5, 32], strides = [1, 1]} : vector<36x32xf32> to vector<5x32xf32>
      %207 = vector.extract_strided_slice %52 {offsets = [25, 0], sizes = [5, 32], strides = [1, 1]} : vector<36x32xf32> to vector<5x32xf32>
      %208 = vector.extract_strided_slice %53 {offsets = [25, 0], sizes = [5, 32], strides = [1, 1]} : vector<36x32xf32> to vector<5x32xf32>
      %209 = vector.extract_strided_slice %54 {offsets = [25, 0], sizes = [5, 32], strides = [1, 1]} : vector<36x32xf32> to vector<5x32xf32>
      %210 = vector.extract_strided_slice %55 {offsets = [25, 0], sizes = [5, 32], strides = [1, 1]} : vector<36x32xf32> to vector<5x32xf32>
      %211 = tpu.concatenate %206, %207, %208, %209, %210 in 0 : vector<5x32xf32>, vector<5x32xf32>, vector<5x32xf32>, vector<5x32xf32>, vector<5x32xf32> -> vector<25x32xf32>
      %212 = vector.extract_strided_slice %51 {offsets = [26, 0], sizes = [5, 32], strides = [1, 1]} : vector<36x32xf32> to vector<5x32xf32>
      %213 = vector.extract_strided_slice %52 {offsets = [26, 0], sizes = [5, 32], strides = [1, 1]} : vector<36x32xf32> to vector<5x32xf32>
      %214 = vector.extract_strided_slice %53 {offsets = [26, 0], sizes = [5, 32], strides = [1, 1]} : vector<36x32xf32> to vector<5x32xf32>
      %215 = vector.extract_strided_slice %54 {offsets = [26, 0], sizes = [5, 32], strides = [1, 1]} : vector<36x32xf32> to vector<5x32xf32>
      %216 = vector.extract_strided_slice %55 {offsets = [26, 0], sizes = [5, 32], strides = [1, 1]} : vector<36x32xf32> to vector<5x32xf32>
      %217 = tpu.concatenate %212, %213, %214, %215, %216 in 0 : vector<5x32xf32>, vector<5x32xf32>, vector<5x32xf32>, vector<5x32xf32>, vector<5x32xf32> -> vector<25x32xf32>
      %218 = vector.extract_strided_slice %51 {offsets = [27, 0], sizes = [5, 32], strides = [1, 1]} : vector<36x32xf32> to vector<5x32xf32>
      %219 = vector.extract_strided_slice %52 {offsets = [27, 0], sizes = [5, 32], strides = [1, 1]} : vector<36x32xf32> to vector<5x32xf32>
      %220 = vector.extract_strided_slice %53 {offsets = [27, 0], sizes = [5, 32], strides = [1, 1]} : vector<36x32xf32> to vector<5x32xf32>
      %221 = vector.extract_strided_slice %54 {offsets = [27, 0], sizes = [5, 32], strides = [1, 1]} : vector<36x32xf32> to vector<5x32xf32>
      %222 = vector.extract_strided_slice %55 {offsets = [27, 0], sizes = [5, 32], strides = [1, 1]} : vector<36x32xf32> to vector<5x32xf32>
      %223 = tpu.concatenate %218, %219, %220, %221, %222 in 0 : vector<5x32xf32>, vector<5x32xf32>, vector<5x32xf32>, vector<5x32xf32>, vector<5x32xf32> -> vector<25x32xf32>
      %224 = vector.extract_strided_slice %51 {offsets = [28, 0], sizes = [5, 32], strides = [1, 1]} : vector<36x32xf32> to vector<5x32xf32>
      %225 = vector.extract_strided_slice %52 {offsets = [28, 0], sizes = [5, 32], strides = [1, 1]} : vector<36x32xf32> to vector<5x32xf32>
      %226 = vector.extract_strided_slice %53 {offsets = [28, 0], sizes = [5, 32], strides = [1, 1]} : vector<36x32xf32> to vector<5x32xf32>
      %227 = vector.extract_strided_slice %54 {offsets = [28, 0], sizes = [5, 32], strides = [1, 1]} : vector<36x32xf32> to vector<5x32xf32>
      %228 = vector.extract_strided_slice %55 {offsets = [28, 0], sizes = [5, 32], strides = [1, 1]} : vector<36x32xf32> to vector<5x32xf32>
      %229 = tpu.concatenate %224, %225, %226, %227, %228 in 0 : vector<5x32xf32>, vector<5x32xf32>, vector<5x32xf32>, vector<5x32xf32>, vector<5x32xf32> -> vector<25x32xf32>
      %230 = vector.extract_strided_slice %51 {offsets = [29, 0], sizes = [5, 32], strides = [1, 1]} : vector<36x32xf32> to vector<5x32xf32>
      %231 = vector.extract_strided_slice %52 {offsets = [29, 0], sizes = [5, 32], strides = [1, 1]} : vector<36x32xf32> to vector<5x32xf32>
      %232 = vector.extract_strided_slice %53 {offsets = [29, 0], sizes = [5, 32], strides = [1, 1]} : vector<36x32xf32> to vector<5x32xf32>
      %233 = vector.extract_strided_slice %54 {offsets = [29, 0], sizes = [5, 32], strides = [1, 1]} : vector<36x32xf32> to vector<5x32xf32>
      %234 = vector.extract_strided_slice %55 {offsets = [29, 0], sizes = [5, 32], strides = [1, 1]} : vector<36x32xf32> to vector<5x32xf32>
      %235 = tpu.concatenate %230, %231, %232, %233, %234 in 0 : vector<5x32xf32>, vector<5x32xf32>, vector<5x32xf32>, vector<5x32xf32>, vector<5x32xf32> -> vector<25x32xf32>
      %236 = vector.extract_strided_slice %51 {offsets = [30, 0], sizes = [5, 32], strides = [1, 1]} : vector<36x32xf32> to vector<5x32xf32>
      %237 = vector.extract_strided_slice %52 {offsets = [30, 0], sizes = [5, 32], strides = [1, 1]} : vector<36x32xf32> to vector<5x32xf32>
      %238 = vector.extract_strided_slice %53 {offsets = [30, 0], sizes = [5, 32], strides = [1, 1]} : vector<36x32xf32> to vector<5x32xf32>
      %239 = vector.extract_strided_slice %54 {offsets = [30, 0], sizes = [5, 32], strides = [1, 1]} : vector<36x32xf32> to vector<5x32xf32>
      %240 = vector.extract_strided_slice %55 {offsets = [30, 0], sizes = [5, 32], strides = [1, 1]} : vector<36x32xf32> to vector<5x32xf32>
      %241 = tpu.concatenate %236, %237, %238, %239, %240 in 0 : vector<5x32xf32>, vector<5x32xf32>, vector<5x32xf32>, vector<5x32xf32>, vector<5x32xf32> -> vector<25x32xf32>
      %242 = vector.extract_strided_slice %51 {offsets = [31, 0], sizes = [5, 32], strides = [1, 1]} : vector<36x32xf32> to vector<5x32xf32>
      %243 = vector.extract_strided_slice %52 {offsets = [31, 0], sizes = [5, 32], strides = [1, 1]} : vector<36x32xf32> to vector<5x32xf32>
      %244 = vector.extract_strided_slice %53 {offsets = [31, 0], sizes = [5, 32], strides = [1, 1]} : vector<36x32xf32> to vector<5x32xf32>
      %245 = vector.extract_strided_slice %54 {offsets = [31, 0], sizes = [5, 32], strides = [1, 1]} : vector<36x32xf32> to vector<5x32xf32>
      %246 = vector.extract_strided_slice %55 {offsets = [31, 0], sizes = [5, 32], strides = [1, 1]} : vector<36x32xf32> to vector<5x32xf32>
      %247 = tpu.concatenate %242, %243, %244, %245, %246 in 0 : vector<5x32xf32>, vector<5x32xf32>, vector<5x32xf32>, vector<5x32xf32>, vector<5x32xf32> -> vector<25x32xf32>
      %248 = tpu.concatenate %61, %67, %73, %79, %85, %91, %97, %103, %109, %115, %121, %127, %133, %139, %145, %151 in 1 : vector<25x32xf32>, vector<25x32xf32>, vector<25x32xf32>, vector<25x32xf32>, vector<25x32xf32>, vector<25x32xf32>, vector<25x32xf32>, vector<25x32xf32>, vector<25x32xf32>, vector<25x32xf32>, vector<25x32xf32>, vector<25x32xf32>, vector<25x32xf32>, vector<25x32xf32>, vector<25x32xf32>, vector<25x32xf32> -> vector<25x512xf32>
      %249 = tpu.concatenate %157, %163, %169, %175, %181, %187, %193, %199, %205, %211, %217, %223, %229, %235, %241, %247 in 1 : vector<25x32xf32>, vector<25x32xf32>, vector<25x32xf32>, vector<25x32xf32>, vector<25x32xf32>, vector<25x32xf32>, vector<25x32xf32>, vector<25x32xf32>, vector<25x32xf32>, vector<25x32xf32>, vector<25x32xf32>, vector<25x32xf32>, vector<25x32xf32>, vector<25x32xf32>, vector<25x32xf32>, vector<25x32xf32> -> vector<25x512xf32>
      %250 = tpu.concatenate %248, %249 in 1 : vector<25x512xf32>, vector<25x512xf32> -> vector<25x1024xf32>
      %cst_36 = arith.constant dense<0.000000e+00> : vector<6x1024xf32>
      %251 = tpu.matmul %0, %250, %cst_36 {dimension_numbers = #tpu.dot_dimension_numbers<[1], [0], [0], [1], [0, 0, 1, 1], [], []>} : vector<6x25xf32>, vector<25x1024xf32>, vector<6x1024xf32> -> vector<6x1024xf32>
      %252 = vector.broadcast %1 : vector<6x1xf32> to vector<6x1024xf32>
      %253 = arith.addf %251, %252 : vector<6x1024xf32>
      %cst_37 = arith.constant 0.000000e+00 : f32
      %254 = vector.broadcast %cst_37 : f32 to vector<6x1024xf32>
      %255 = arith.maximumf %253, %254 : vector<6x1024xf32>
      %256 = vector.extract_strided_slice %255 {offsets = [0, 0], sizes = [6, 64], strides = [1, 1]} : vector<6x1024xf32> to vector<6x64xf32>
      %257 = vector.extract_strided_slice %256 {offsets = [0, 0], sizes = [6, 32], strides = [1, 1]} : vector<6x64xf32> to vector<6x32xf32>
      %258 = vector.extract_strided_slice %256 {offsets = [0, 32], sizes = [6, 32], strides = [1, 1]} : vector<6x64xf32> to vector<6x32xf32>
      %259 = arith.maximumf %257, %258 : vector<6x32xf32>
      %260 = vector.extract_strided_slice %255 {offsets = [0, 64], sizes = [6, 64], strides = [1, 1]} : vector<6x1024xf32> to vector<6x64xf32>
      %261 = vector.extract_strided_slice %260 {offsets = [0, 0], sizes = [6, 32], strides = [1, 1]} : vector<6x64xf32> to vector<6x32xf32>
      %262 = vector.extract_strided_slice %260 {offsets = [0, 32], sizes = [6, 32], strides = [1, 1]} : vector<6x64xf32> to vector<6x32xf32>
      %263 = arith.maximumf %261, %262 : vector<6x32xf32>
      %264 = vector.extract_strided_slice %255 {offsets = [0, 128], sizes = [6, 64], strides = [1, 1]} : vector<6x1024xf32> to vector<6x64xf32>
      %265 = vector.extract_strided_slice %264 {offsets = [0, 0], sizes = [6, 32], strides = [1, 1]} : vector<6x64xf32> to vector<6x32xf32>
      %266 = vector.extract_strided_slice %264 {offsets = [0, 32], sizes = [6, 32], strides = [1, 1]} : vector<6x64xf32> to vector<6x32xf32>
      %267 = arith.maximumf %265, %266 : vector<6x32xf32>
      %268 = vector.extract_strided_slice %255 {offsets = [0, 192], sizes = [6, 64], strides = [1, 1]} : vector<6x1024xf32> to vector<6x64xf32>
      %269 = vector.extract_strided_slice %268 {offsets = [0, 0], sizes = [6, 32], strides = [1, 1]} : vector<6x64xf32> to vector<6x32xf32>
      %270 = vector.extract_strided_slice %268 {offsets = [0, 32], sizes = [6, 32], strides = [1, 1]} : vector<6x64xf32> to vector<6x32xf32>
      %271 = arith.maximumf %269, %270 : vector<6x32xf32>
      %272 = vector.extract_strided_slice %255 {offsets = [0, 256], sizes = [6, 64], strides = [1, 1]} : vector<6x1024xf32> to vector<6x64xf32>
      %273 = vector.extract_strided_slice %272 {offsets = [0, 0], sizes = [6, 32], strides = [1, 1]} : vector<6x64xf32> to vector<6x32xf32>
      %274 = vector.extract_strided_slice %272 {offsets = [0, 32], sizes = [6, 32], strides = [1, 1]} : vector<6x64xf32> to vector<6x32xf32>
      %275 = arith.maximumf %273, %274 : vector<6x32xf32>
      %276 = vector.extract_strided_slice %255 {offsets = [0, 320], sizes = [6, 64], strides = [1, 1]} : vector<6x1024xf32> to vector<6x64xf32>
      %277 = vector.extract_strided_slice %276 {offsets = [0, 0], sizes = [6, 32], strides = [1, 1]} : vector<6x64xf32> to vector<6x32xf32>
      %278 = vector.extract_strided_slice %276 {offsets = [0, 32], sizes = [6, 32], strides = [1, 1]} : vector<6x64xf32> to vector<6x32xf32>
      %279 = arith.maximumf %277, %278 : vector<6x32xf32>
      %280 = vector.extract_strided_slice %255 {offsets = [0, 384], sizes = [6, 64], strides = [1, 1]} : vector<6x1024xf32> to vector<6x64xf32>
      %281 = vector.extract_strided_slice %280 {offsets = [0, 0], sizes = [6, 32], strides = [1, 1]} : vector<6x64xf32> to vector<6x32xf32>
      %282 = vector.extract_strided_slice %280 {offsets = [0, 32], sizes = [6, 32], strides = [1, 1]} : vector<6x64xf32> to vector<6x32xf32>
      %283 = arith.maximumf %281, %282 : vector<6x32xf32>
      %284 = vector.extract_strided_slice %255 {offsets = [0, 448], sizes = [6, 64], strides = [1, 1]} : vector<6x1024xf32> to vector<6x64xf32>
      %285 = vector.extract_strided_slice %284 {offsets = [0, 0], sizes = [6, 32], strides = [1, 1]} : vector<6x64xf32> to vector<6x32xf32>
      %286 = vector.extract_strided_slice %284 {offsets = [0, 32], sizes = [6, 32], strides = [1, 1]} : vector<6x64xf32> to vector<6x32xf32>
      %287 = arith.maximumf %285, %286 : vector<6x32xf32>
      %288 = vector.extract_strided_slice %255 {offsets = [0, 512], sizes = [6, 64], strides = [1, 1]} : vector<6x1024xf32> to vector<6x64xf32>
      %289 = vector.extract_strided_slice %288 {offsets = [0, 0], sizes = [6, 32], strides = [1, 1]} : vector<6x64xf32> to vector<6x32xf32>
      %290 = vector.extract_strided_slice %288 {offsets = [0, 32], sizes = [6, 32], strides = [1, 1]} : vector<6x64xf32> to vector<6x32xf32>
      %291 = arith.maximumf %289, %290 : vector<6x32xf32>
      %292 = vector.extract_strided_slice %255 {offsets = [0, 576], sizes = [6, 64], strides = [1, 1]} : vector<6x1024xf32> to vector<6x64xf32>
      %293 = vector.extract_strided_slice %292 {offsets = [0, 0], sizes = [6, 32], strides = [1, 1]} : vector<6x64xf32> to vector<6x32xf32>
      %294 = vector.extract_strided_slice %292 {offsets = [0, 32], sizes = [6, 32], strides = [1, 1]} : vector<6x64xf32> to vector<6x32xf32>
      %295 = arith.maximumf %293, %294 : vector<6x32xf32>
      %296 = vector.extract_strided_slice %255 {offsets = [0, 640], sizes = [6, 64], strides = [1, 1]} : vector<6x1024xf32> to vector<6x64xf32>
      %297 = vector.extract_strided_slice %296 {offsets = [0, 0], sizes = [6, 32], strides = [1, 1]} : vector<6x64xf32> to vector<6x32xf32>
      %298 = vector.extract_strided_slice %296 {offsets = [0, 32], sizes = [6, 32], strides = [1, 1]} : vector<6x64xf32> to vector<6x32xf32>
      %299 = arith.maximumf %297, %298 : vector<6x32xf32>
      %300 = vector.extract_strided_slice %255 {offsets = [0, 704], sizes = [6, 64], strides = [1, 1]} : vector<6x1024xf32> to vector<6x64xf32>
      %301 = vector.extract_strided_slice %300 {offsets = [0, 0], sizes = [6, 32], strides = [1, 1]} : vector<6x64xf32> to vector<6x32xf32>
      %302 = vector.extract_strided_slice %300 {offsets = [0, 32], sizes = [6, 32], strides = [1, 1]} : vector<6x64xf32> to vector<6x32xf32>
      %303 = arith.maximumf %301, %302 : vector<6x32xf32>
      %304 = vector.extract_strided_slice %255 {offsets = [0, 768], sizes = [6, 64], strides = [1, 1]} : vector<6x1024xf32> to vector<6x64xf32>
      %305 = vector.extract_strided_slice %304 {offsets = [0, 0], sizes = [6, 32], strides = [1, 1]} : vector<6x64xf32> to vector<6x32xf32>
      %306 = vector.extract_strided_slice %304 {offsets = [0, 32], sizes = [6, 32], strides = [1, 1]} : vector<6x64xf32> to vector<6x32xf32>
      %307 = arith.maximumf %305, %306 : vector<6x32xf32>
      %308 = vector.extract_strided_slice %255 {offsets = [0, 832], sizes = [6, 64], strides = [1, 1]} : vector<6x1024xf32> to vector<6x64xf32>
      %309 = vector.extract_strided_slice %308 {offsets = [0, 0], sizes = [6, 32], strides = [1, 1]} : vector<6x64xf32> to vector<6x32xf32>
      %310 = vector.extract_strided_slice %308 {offsets = [0, 32], sizes = [6, 32], strides = [1, 1]} : vector<6x64xf32> to vector<6x32xf32>
      %311 = arith.maximumf %309, %310 : vector<6x32xf32>
      %312 = vector.extract_strided_slice %255 {offsets = [0, 896], sizes = [6, 64], strides = [1, 1]} : vector<6x1024xf32> to vector<6x64xf32>
      %313 = vector.extract_strided_slice %312 {offsets = [0, 0], sizes = [6, 32], strides = [1, 1]} : vector<6x64xf32> to vector<6x32xf32>
      %314 = vector.extract_strided_slice %312 {offsets = [0, 32], sizes = [6, 32], strides = [1, 1]} : vector<6x64xf32> to vector<6x32xf32>
      %315 = arith.maximumf %313, %314 : vector<6x32xf32>
      %316 = vector.extract_strided_slice %255 {offsets = [0, 960], sizes = [6, 64], strides = [1, 1]} : vector<6x1024xf32> to vector<6x64xf32>
      %317 = vector.extract_strided_slice %316 {offsets = [0, 0], sizes = [6, 32], strides = [1, 1]} : vector<6x64xf32> to vector<6x32xf32>
      %318 = vector.extract_strided_slice %316 {offsets = [0, 32], sizes = [6, 32], strides = [1, 1]} : vector<6x64xf32> to vector<6x32xf32>
      %319 = arith.maximumf %317, %318 : vector<6x32xf32>
      %320 = tpu.concatenate %259, %263, %267, %271, %275, %279, %283, %287, %291, %295, %299, %303, %307, %311, %315, %319 in 0 : vector<6x32xf32>, vector<6x32xf32>, vector<6x32xf32>, vector<6x32xf32>, vector<6x32xf32>, vector<6x32xf32>, vector<6x32xf32>, vector<6x32xf32>, vector<6x32xf32>, vector<6x32xf32>, vector<6x32xf32>, vector<6x32xf32>, vector<6x32xf32>, vector<6x32xf32>, vector<6x32xf32>, vector<6x32xf32> -> vector<96x32xf32>
      %321 = vector.extract_strided_slice %320 {offsets = [0, 0], sizes = [96, 31], strides = [1, 1]} : vector<96x32xf32> to vector<96x31xf32>
      %322 = vector.extract_strided_slice %320 {offsets = [0, 1], sizes = [96, 31], strides = [1, 1]} : vector<96x32xf32> to vector<96x31xf32>
      %323 = arith.maximumf %321, %322 : vector<96x31xf32>
      %cst_38 = arith.constant dense<0.000000e+00> : vector<96x16xf32>
      %324 = tpu.matmul %323, %12, %cst_38 {dimension_numbers = #tpu.dot_dimension_numbers<[1], [0], [0], [1], [0, 0, 1, 1], [], []>} : vector<96x31xf32>, vector<31x16xf32>, vector<96x16xf32> -> vector<96x16xf32>
      %325 = vector.extract_strided_slice %324 {offsets = [0, 0], sizes = [96, 12], strides = [1, 1]} : vector<96x16xf32> to vector<96x12xf32>
      %326 = vector.extract_strided_slice %324 {offsets = [0, 1], sizes = [96, 12], strides = [1, 1]} : vector<96x16xf32> to vector<96x12xf32>
      %327 = vector.extract_strided_slice %324 {offsets = [0, 2], sizes = [96, 12], strides = [1, 1]} : vector<96x16xf32> to vector<96x12xf32>
      %328 = vector.extract_strided_slice %324 {offsets = [0, 3], sizes = [96, 12], strides = [1, 1]} : vector<96x16xf32> to vector<96x12xf32>
      %329 = vector.extract_strided_slice %324 {offsets = [0, 4], sizes = [96, 12], strides = [1, 1]} : vector<96x16xf32> to vector<96x12xf32>
      %330 = vector.extract_strided_slice %325 {offsets = [0, 0], sizes = [30, 12], strides = [1, 1]} : vector<96x12xf32> to vector<30x12xf32>
      %331 = vector.extract_strided_slice %326 {offsets = [0, 0], sizes = [30, 12], strides = [1, 1]} : vector<96x12xf32> to vector<30x12xf32>
      %332 = vector.extract_strided_slice %327 {offsets = [0, 0], sizes = [30, 12], strides = [1, 1]} : vector<96x12xf32> to vector<30x12xf32>
      %333 = vector.extract_strided_slice %328 {offsets = [0, 0], sizes = [30, 12], strides = [1, 1]} : vector<96x12xf32> to vector<30x12xf32>
      %334 = vector.extract_strided_slice %329 {offsets = [0, 0], sizes = [30, 12], strides = [1, 1]} : vector<96x12xf32> to vector<30x12xf32>
      %335 = tpu.concatenate %330, %331, %332, %333, %334 in 0 : vector<30x12xf32>, vector<30x12xf32>, vector<30x12xf32>, vector<30x12xf32>, vector<30x12xf32> -> vector<150x12xf32>
      %336 = vector.extract_strided_slice %325 {offsets = [6, 0], sizes = [30, 12], strides = [1, 1]} : vector<96x12xf32> to vector<30x12xf32>
      %337 = vector.extract_strided_slice %326 {offsets = [6, 0], sizes = [30, 12], strides = [1, 1]} : vector<96x12xf32> to vector<30x12xf32>
      %338 = vector.extract_strided_slice %327 {offsets = [6, 0], sizes = [30, 12], strides = [1, 1]} : vector<96x12xf32> to vector<30x12xf32>
      %339 = vector.extract_strided_slice %328 {offsets = [6, 0], sizes = [30, 12], strides = [1, 1]} : vector<96x12xf32> to vector<30x12xf32>
      %340 = vector.extract_strided_slice %329 {offsets = [6, 0], sizes = [30, 12], strides = [1, 1]} : vector<96x12xf32> to vector<30x12xf32>
      %341 = tpu.concatenate %336, %337, %338, %339, %340 in 0 : vector<30x12xf32>, vector<30x12xf32>, vector<30x12xf32>, vector<30x12xf32>, vector<30x12xf32> -> vector<150x12xf32>
      %342 = vector.extract_strided_slice %325 {offsets = [12, 0], sizes = [30, 12], strides = [1, 1]} : vector<96x12xf32> to vector<30x12xf32>
      %343 = vector.extract_strided_slice %326 {offsets = [12, 0], sizes = [30, 12], strides = [1, 1]} : vector<96x12xf32> to vector<30x12xf32>
      %344 = vector.extract_strided_slice %327 {offsets = [12, 0], sizes = [30, 12], strides = [1, 1]} : vector<96x12xf32> to vector<30x12xf32>
      %345 = vector.extract_strided_slice %328 {offsets = [12, 0], sizes = [30, 12], strides = [1, 1]} : vector<96x12xf32> to vector<30x12xf32>
      %346 = vector.extract_strided_slice %329 {offsets = [12, 0], sizes = [30, 12], strides = [1, 1]} : vector<96x12xf32> to vector<30x12xf32>
      %347 = tpu.concatenate %342, %343, %344, %345, %346 in 0 : vector<30x12xf32>, vector<30x12xf32>, vector<30x12xf32>, vector<30x12xf32>, vector<30x12xf32> -> vector<150x12xf32>
      %348 = vector.extract_strided_slice %325 {offsets = [18, 0], sizes = [30, 12], strides = [1, 1]} : vector<96x12xf32> to vector<30x12xf32>
      %349 = vector.extract_strided_slice %326 {offsets = [18, 0], sizes = [30, 12], strides = [1, 1]} : vector<96x12xf32> to vector<30x12xf32>
      %350 = vector.extract_strided_slice %327 {offsets = [18, 0], sizes = [30, 12], strides = [1, 1]} : vector<96x12xf32> to vector<30x12xf32>
      %351 = vector.extract_strided_slice %328 {offsets = [18, 0], sizes = [30, 12], strides = [1, 1]} : vector<96x12xf32> to vector<30x12xf32>
      %352 = vector.extract_strided_slice %329 {offsets = [18, 0], sizes = [30, 12], strides = [1, 1]} : vector<96x12xf32> to vector<30x12xf32>
      %353 = tpu.concatenate %348, %349, %350, %351, %352 in 0 : vector<30x12xf32>, vector<30x12xf32>, vector<30x12xf32>, vector<30x12xf32>, vector<30x12xf32> -> vector<150x12xf32>
      %354 = vector.extract_strided_slice %325 {offsets = [24, 0], sizes = [30, 12], strides = [1, 1]} : vector<96x12xf32> to vector<30x12xf32>
      %355 = vector.extract_strided_slice %326 {offsets = [24, 0], sizes = [30, 12], strides = [1, 1]} : vector<96x12xf32> to vector<30x12xf32>
      %356 = vector.extract_strided_slice %327 {offsets = [24, 0], sizes = [30, 12], strides = [1, 1]} : vector<96x12xf32> to vector<30x12xf32>
      %357 = vector.extract_strided_slice %328 {offsets = [24, 0], sizes = [30, 12], strides = [1, 1]} : vector<96x12xf32> to vector<30x12xf32>
      %358 = vector.extract_strided_slice %329 {offsets = [24, 0], sizes = [30, 12], strides = [1, 1]} : vector<96x12xf32> to vector<30x12xf32>
      %359 = tpu.concatenate %354, %355, %356, %357, %358 in 0 : vector<30x12xf32>, vector<30x12xf32>, vector<30x12xf32>, vector<30x12xf32>, vector<30x12xf32> -> vector<150x12xf32>
      %360 = vector.extract_strided_slice %325 {offsets = [30, 0], sizes = [30, 12], strides = [1, 1]} : vector<96x12xf32> to vector<30x12xf32>
      %361 = vector.extract_strided_slice %326 {offsets = [30, 0], sizes = [30, 12], strides = [1, 1]} : vector<96x12xf32> to vector<30x12xf32>
      %362 = vector.extract_strided_slice %327 {offsets = [30, 0], sizes = [30, 12], strides = [1, 1]} : vector<96x12xf32> to vector<30x12xf32>
      %363 = vector.extract_strided_slice %328 {offsets = [30, 0], sizes = [30, 12], strides = [1, 1]} : vector<96x12xf32> to vector<30x12xf32>
      %364 = vector.extract_strided_slice %329 {offsets = [30, 0], sizes = [30, 12], strides = [1, 1]} : vector<96x12xf32> to vector<30x12xf32>
      %365 = tpu.concatenate %360, %361, %362, %363, %364 in 0 : vector<30x12xf32>, vector<30x12xf32>, vector<30x12xf32>, vector<30x12xf32>, vector<30x12xf32> -> vector<150x12xf32>
      %366 = vector.extract_strided_slice %325 {offsets = [36, 0], sizes = [30, 12], strides = [1, 1]} : vector<96x12xf32> to vector<30x12xf32>
      %367 = vector.extract_strided_slice %326 {offsets = [36, 0], sizes = [30, 12], strides = [1, 1]} : vector<96x12xf32> to vector<30x12xf32>
      %368 = vector.extract_strided_slice %327 {offsets = [36, 0], sizes = [30, 12], strides = [1, 1]} : vector<96x12xf32> to vector<30x12xf32>
      %369 = vector.extract_strided_slice %328 {offsets = [36, 0], sizes = [30, 12], strides = [1, 1]} : vector<96x12xf32> to vector<30x12xf32>
      %370 = vector.extract_strided_slice %329 {offsets = [36, 0], sizes = [30, 12], strides = [1, 1]} : vector<96x12xf32> to vector<30x12xf32>
      %371 = tpu.concatenate %366, %367, %368, %369, %370 in 0 : vector<30x12xf32>, vector<30x12xf32>, vector<30x12xf32>, vector<30x12xf32>, vector<30x12xf32> -> vector<150x12xf32>
      %372 = vector.extract_strided_slice %325 {offsets = [42, 0], sizes = [30, 12], strides = [1, 1]} : vector<96x12xf32> to vector<30x12xf32>
      %373 = vector.extract_strided_slice %326 {offsets = [42, 0], sizes = [30, 12], strides = [1, 1]} : vector<96x12xf32> to vector<30x12xf32>
      %374 = vector.extract_strided_slice %327 {offsets = [42, 0], sizes = [30, 12], strides = [1, 1]} : vector<96x12xf32> to vector<30x12xf32>
      %375 = vector.extract_strided_slice %328 {offsets = [42, 0], sizes = [30, 12], strides = [1, 1]} : vector<96x12xf32> to vector<30x12xf32>
      %376 = vector.extract_strided_slice %329 {offsets = [42, 0], sizes = [30, 12], strides = [1, 1]} : vector<96x12xf32> to vector<30x12xf32>
      %377 = tpu.concatenate %372, %373, %374, %375, %376 in 0 : vector<30x12xf32>, vector<30x12xf32>, vector<30x12xf32>, vector<30x12xf32>, vector<30x12xf32> -> vector<150x12xf32>
      %378 = vector.extract_strided_slice %325 {offsets = [48, 0], sizes = [30, 12], strides = [1, 1]} : vector<96x12xf32> to vector<30x12xf32>
      %379 = vector.extract_strided_slice %326 {offsets = [48, 0], sizes = [30, 12], strides = [1, 1]} : vector<96x12xf32> to vector<30x12xf32>
      %380 = vector.extract_strided_slice %327 {offsets = [48, 0], sizes = [30, 12], strides = [1, 1]} : vector<96x12xf32> to vector<30x12xf32>
      %381 = vector.extract_strided_slice %328 {offsets = [48, 0], sizes = [30, 12], strides = [1, 1]} : vector<96x12xf32> to vector<30x12xf32>
      %382 = vector.extract_strided_slice %329 {offsets = [48, 0], sizes = [30, 12], strides = [1, 1]} : vector<96x12xf32> to vector<30x12xf32>
      %383 = tpu.concatenate %378, %379, %380, %381, %382 in 0 : vector<30x12xf32>, vector<30x12xf32>, vector<30x12xf32>, vector<30x12xf32>, vector<30x12xf32> -> vector<150x12xf32>
      %384 = vector.extract_strided_slice %325 {offsets = [54, 0], sizes = [30, 12], strides = [1, 1]} : vector<96x12xf32> to vector<30x12xf32>
      %385 = vector.extract_strided_slice %326 {offsets = [54, 0], sizes = [30, 12], strides = [1, 1]} : vector<96x12xf32> to vector<30x12xf32>
      %386 = vector.extract_strided_slice %327 {offsets = [54, 0], sizes = [30, 12], strides = [1, 1]} : vector<96x12xf32> to vector<30x12xf32>
      %387 = vector.extract_strided_slice %328 {offsets = [54, 0], sizes = [30, 12], strides = [1, 1]} : vector<96x12xf32> to vector<30x12xf32>
      %388 = vector.extract_strided_slice %329 {offsets = [54, 0], sizes = [30, 12], strides = [1, 1]} : vector<96x12xf32> to vector<30x12xf32>
      %389 = tpu.concatenate %384, %385, %386, %387, %388 in 0 : vector<30x12xf32>, vector<30x12xf32>, vector<30x12xf32>, vector<30x12xf32>, vector<30x12xf32> -> vector<150x12xf32>
      %390 = vector.extract_strided_slice %325 {offsets = [60, 0], sizes = [30, 12], strides = [1, 1]} : vector<96x12xf32> to vector<30x12xf32>
      %391 = vector.extract_strided_slice %326 {offsets = [60, 0], sizes = [30, 12], strides = [1, 1]} : vector<96x12xf32> to vector<30x12xf32>
      %392 = vector.extract_strided_slice %327 {offsets = [60, 0], sizes = [30, 12], strides = [1, 1]} : vector<96x12xf32> to vector<30x12xf32>
      %393 = vector.extract_strided_slice %328 {offsets = [60, 0], sizes = [30, 12], strides = [1, 1]} : vector<96x12xf32> to vector<30x12xf32>
      %394 = vector.extract_strided_slice %329 {offsets = [60, 0], sizes = [30, 12], strides = [1, 1]} : vector<96x12xf32> to vector<30x12xf32>
      %395 = tpu.concatenate %390, %391, %392, %393, %394 in 0 : vector<30x12xf32>, vector<30x12xf32>, vector<30x12xf32>, vector<30x12xf32>, vector<30x12xf32> -> vector<150x12xf32>
      %396 = vector.extract_strided_slice %325 {offsets = [66, 0], sizes = [30, 12], strides = [1, 1]} : vector<96x12xf32> to vector<30x12xf32>
      %397 = vector.extract_strided_slice %326 {offsets = [66, 0], sizes = [30, 12], strides = [1, 1]} : vector<96x12xf32> to vector<30x12xf32>
      %398 = vector.extract_strided_slice %327 {offsets = [66, 0], sizes = [30, 12], strides = [1, 1]} : vector<96x12xf32> to vector<30x12xf32>
      %399 = vector.extract_strided_slice %328 {offsets = [66, 0], sizes = [30, 12], strides = [1, 1]} : vector<96x12xf32> to vector<30x12xf32>
      %400 = vector.extract_strided_slice %329 {offsets = [66, 0], sizes = [30, 12], strides = [1, 1]} : vector<96x12xf32> to vector<30x12xf32>
      %401 = tpu.concatenate %396, %397, %398, %399, %400 in 0 : vector<30x12xf32>, vector<30x12xf32>, vector<30x12xf32>, vector<30x12xf32>, vector<30x12xf32> -> vector<150x12xf32>
      %402 = tpu.concatenate %335, %341, %347, %353, %359, %365, %371, %377, %383, %389, %395, %401 in 1 : vector<150x12xf32>, vector<150x12xf32>, vector<150x12xf32>, vector<150x12xf32>, vector<150x12xf32>, vector<150x12xf32>, vector<150x12xf32>, vector<150x12xf32>, vector<150x12xf32>, vector<150x12xf32>, vector<150x12xf32>, vector<150x12xf32> -> vector<150x144xf32>
      %cst_39 = arith.constant dense<0.000000e+00> : vector<16x144xf32>
      %403 = tpu.matmul %2, %402, %cst_39 {dimension_numbers = #tpu.dot_dimension_numbers<[1], [0], [0], [1], [0, 0, 1, 1], [], []>} : vector<16x150xf32>, vector<150x144xf32>, vector<16x144xf32> -> vector<16x144xf32>
      %404 = vector.broadcast %3 : vector<16x1xf32> to vector<16x144xf32>
      %405 = arith.addf %403, %404 : vector<16x144xf32>
      %cst_40 = arith.constant 0.000000e+00 : f32
      %406 = vector.broadcast %cst_40 : f32 to vector<16x144xf32>
      %407 = arith.maximumf %405, %406 : vector<16x144xf32>
      %408 = vector.extract_strided_slice %407 {offsets = [0, 0], sizes = [16, 24], strides = [1, 1]} : vector<16x144xf32> to vector<16x24xf32>
      %409 = vector.extract_strided_slice %408 {offsets = [0, 0], sizes = [16, 12], strides = [1, 1]} : vector<16x24xf32> to vector<16x12xf32>
      %410 = vector.extract_strided_slice %408 {offsets = [0, 12], sizes = [16, 12], strides = [1, 1]} : vector<16x24xf32> to vector<16x12xf32>
      %411 = arith.maximumf %409, %410 : vector<16x12xf32>
      %412 = vector.extract_strided_slice %407 {offsets = [0, 24], sizes = [16, 24], strides = [1, 1]} : vector<16x144xf32> to vector<16x24xf32>
      %413 = vector.extract_strided_slice %412 {offsets = [0, 0], sizes = [16, 12], strides = [1, 1]} : vector<16x24xf32> to vector<16x12xf32>
      %414 = vector.extract_strided_slice %412 {offsets = [0, 12], sizes = [16, 12], strides = [1, 1]} : vector<16x24xf32> to vector<16x12xf32>
      %415 = arith.maximumf %413, %414 : vector<16x12xf32>
      %416 = vector.extract_strided_slice %407 {offsets = [0, 48], sizes = [16, 24], strides = [1, 1]} : vector<16x144xf32> to vector<16x24xf32>
      %417 = vector.extract_strided_slice %416 {offsets = [0, 0], sizes = [16, 12], strides = [1, 1]} : vector<16x24xf32> to vector<16x12xf32>
      %418 = vector.extract_strided_slice %416 {offsets = [0, 12], sizes = [16, 12], strides = [1, 1]} : vector<16x24xf32> to vector<16x12xf32>
      %419 = arith.maximumf %417, %418 : vector<16x12xf32>
      %420 = vector.extract_strided_slice %407 {offsets = [0, 72], sizes = [16, 24], strides = [1, 1]} : vector<16x144xf32> to vector<16x24xf32>
      %421 = vector.extract_strided_slice %420 {offsets = [0, 0], sizes = [16, 12], strides = [1, 1]} : vector<16x24xf32> to vector<16x12xf32>
      %422 = vector.extract_strided_slice %420 {offsets = [0, 12], sizes = [16, 12], strides = [1, 1]} : vector<16x24xf32> to vector<16x12xf32>
      %423 = arith.maximumf %421, %422 : vector<16x12xf32>
      %424 = vector.extract_strided_slice %407 {offsets = [0, 96], sizes = [16, 24], strides = [1, 1]} : vector<16x144xf32> to vector<16x24xf32>
      %425 = vector.extract_strided_slice %424 {offsets = [0, 0], sizes = [16, 12], strides = [1, 1]} : vector<16x24xf32> to vector<16x12xf32>
      %426 = vector.extract_strided_slice %424 {offsets = [0, 12], sizes = [16, 12], strides = [1, 1]} : vector<16x24xf32> to vector<16x12xf32>
      %427 = arith.maximumf %425, %426 : vector<16x12xf32>
      %428 = vector.extract_strided_slice %407 {offsets = [0, 120], sizes = [16, 24], strides = [1, 1]} : vector<16x144xf32> to vector<16x24xf32>
      %429 = vector.extract_strided_slice %428 {offsets = [0, 0], sizes = [16, 12], strides = [1, 1]} : vector<16x24xf32> to vector<16x12xf32>
      %430 = vector.extract_strided_slice %428 {offsets = [0, 12], sizes = [16, 12], strides = [1, 1]} : vector<16x24xf32> to vector<16x12xf32>
      %431 = arith.maximumf %429, %430 : vector<16x12xf32>
      %432 = tpu.concatenate %411, %415, %419, %423, %427, %431 in 0 : vector<16x12xf32>, vector<16x12xf32>, vector<16x12xf32>, vector<16x12xf32>, vector<16x12xf32>, vector<16x12xf32> -> vector<96x12xf32>
      %433 = vector.extract_strided_slice %432 {offsets = [0, 0], sizes = [96, 11], strides = [1, 1]} : vector<96x12xf32> to vector<96x11xf32>
      %434 = vector.extract_strided_slice %432 {offsets = [0, 1], sizes = [96, 11], strides = [1, 1]} : vector<96x12xf32> to vector<96x11xf32>
      %435 = arith.maximumf %433, %434 : vector<96x11xf32>
      %cst_41 = arith.constant dense<0.000000e+00> : vector<96x6xf32>
      %436 = tpu.matmul %435, %19, %cst_41 {dimension_numbers = #tpu.dot_dimension_numbers<[1], [0], [0], [1], [0, 0, 1, 1], [], []>} : vector<96x11xf32>, vector<11x6xf32>, vector<96x6xf32> -> vector<96x6xf32>
      %437 = vector.extract_strided_slice %436 {offsets = [0, 0], sizes = [96, 2], strides = [1, 1]} : vector<96x6xf32> to vector<96x2xf32>
      %438 = vector.extract_strided_slice %436 {offsets = [0, 1], sizes = [96, 2], strides = [1, 1]} : vector<96x6xf32> to vector<96x2xf32>
      %439 = vector.extract_strided_slice %436 {offsets = [0, 2], sizes = [96, 2], strides = [1, 1]} : vector<96x6xf32> to vector<96x2xf32>
      %440 = vector.extract_strided_slice %436 {offsets = [0, 3], sizes = [96, 2], strides = [1, 1]} : vector<96x6xf32> to vector<96x2xf32>
      %441 = vector.extract_strided_slice %436 {offsets = [0, 4], sizes = [96, 2], strides = [1, 1]} : vector<96x6xf32> to vector<96x2xf32>
      %442 = vector.extract_strided_slice %437 {offsets = [0, 0], sizes = [80, 2], strides = [1, 1]} : vector<96x2xf32> to vector<80x2xf32>
      %443 = vector.extract_strided_slice %438 {offsets = [0, 0], sizes = [80, 2], strides = [1, 1]} : vector<96x2xf32> to vector<80x2xf32>
      %444 = vector.extract_strided_slice %439 {offsets = [0, 0], sizes = [80, 2], strides = [1, 1]} : vector<96x2xf32> to vector<80x2xf32>
      %445 = vector.extract_strided_slice %440 {offsets = [0, 0], sizes = [80, 2], strides = [1, 1]} : vector<96x2xf32> to vector<80x2xf32>
      %446 = vector.extract_strided_slice %441 {offsets = [0, 0], sizes = [80, 2], strides = [1, 1]} : vector<96x2xf32> to vector<80x2xf32>
      %447 = tpu.concatenate %442, %443, %444, %445, %446 in 0 : vector<80x2xf32>, vector<80x2xf32>, vector<80x2xf32>, vector<80x2xf32>, vector<80x2xf32> -> vector<400x2xf32>
      %448 = vector.extract_strided_slice %437 {offsets = [16, 0], sizes = [80, 2], strides = [1, 1]} : vector<96x2xf32> to vector<80x2xf32>
      %449 = vector.extract_strided_slice %438 {offsets = [16, 0], sizes = [80, 2], strides = [1, 1]} : vector<96x2xf32> to vector<80x2xf32>
      %450 = vector.extract_strided_slice %439 {offsets = [16, 0], sizes = [80, 2], strides = [1, 1]} : vector<96x2xf32> to vector<80x2xf32>
      %451 = vector.extract_strided_slice %440 {offsets = [16, 0], sizes = [80, 2], strides = [1, 1]} : vector<96x2xf32> to vector<80x2xf32>
      %452 = vector.extract_strided_slice %441 {offsets = [16, 0], sizes = [80, 2], strides = [1, 1]} : vector<96x2xf32> to vector<80x2xf32>
      %453 = tpu.concatenate %448, %449, %450, %451, %452 in 0 : vector<80x2xf32>, vector<80x2xf32>, vector<80x2xf32>, vector<80x2xf32>, vector<80x2xf32> -> vector<400x2xf32>
      %454 = tpu.concatenate %447, %453 in 1 : vector<400x2xf32>, vector<400x2xf32> -> vector<400x4xf32>
      %cst_42 = arith.constant dense<0.000000e+00> : vector<32x4xf32>
      %455 = tpu.matmul %4, %454, %cst_42 {dimension_numbers = #tpu.dot_dimension_numbers<[1], [0], [0], [1], [0, 0, 1, 1], [], []>} : vector<32x400xf32>, vector<400x4xf32>, vector<32x4xf32> -> vector<32x4xf32>
      %456 = vector.broadcast %5 : vector<32x1xf32> to vector<32x4xf32>
      %457 = arith.addf %455, %456 : vector<32x4xf32>
      %cst_43 = arith.constant 0.000000e+00 : f32
      %458 = vector.broadcast %cst_43 : f32 to vector<32x4xf32>
      %459 = arith.maximumf %457, %458 : vector<32x4xf32>
      %cst_44 = arith.constant dense<0xFF800000> : vector<32xf32>
      %460 = vector.multi_reduction <maximumf>, %459, %cst_44 [1] : vector<32x4xf32> to vector<32xf32>
      %461 = vector.shape_cast %460 : vector<32xf32> to vector<32x1xf32>
      %462 = vector.broadcast %461 : vector<32x1xf32> to vector<32x32xf32>
      %463 = arith.mulf %462, %24 : vector<32x32xf32>
      %cst_45 = arith.constant dense<0.000000e+00> : vector<32xf32>
      %464 = vector.multi_reduction <add>, %463, %cst_45 [0] : vector<32x32xf32> to vector<32xf32>
      %465 = vector.shape_cast %464 : vector<32xf32> to vector<1x32xf32>
      %466 = arith.index_cast %arg16 : i32 to index
      %c0_46 = arith.constant 0 : index
      %c0_47 = arith.constant 0 : index
      %467 = vector.load %arg15[%466, %c0_46, %c0_47] : memref<8x1x32xf32, #tpu.memory_space<vmem>>, vector<1x1x32xf32>
      %468 = vector.shape_cast %467 : vector<1x1x32xf32> to vector<1x32xf32>
      %469 = vector.shape_cast %465 : vector<1x32xf32> to vector<1x1x32xf32>
      tpu.vector_store %arg15[%466, %c0_46, %c0_47], %469 {strides = array<i32>} : memref<8x1x32xf32, #tpu.memory_space<vmem>>, vector<1x1x32xf32>,
    }
    %c8_i32_12 = arith.constant 8 : i32
    %c0_13 = arith.constant 0 : index
    %c0_14 = arith.constant 0 : index
    %c0_15 = arith.constant 0 : index
    %26 = vector.load %arg15[%c0_13, %c0_14, %c0_15] : memref<8x1x32xf32, #tpu.memory_space<vmem>>, vector<8x1x32xf32>
    %27 = vector.shape_cast %26 : vector<8x1x32xf32> to vector<8x32xf32>
    %c0_16 = arith.constant 0 : index
    %c0_17 = arith.constant 0 : index
    %28 = vector.load %arg8[%c0_16, %c0_17] : memref<32x2000xf32, #tpu.memory_space<vmem>>, vector<32x2000xf32>
    %cst = arith.constant dense<0.000000e+00> : vector<8x2000xf32>
    %29 = tpu.matmul %27, %28, %cst {dimension_numbers = #tpu.dot_dimension_numbers<[1], [0], [0], [1], [0, 0, 1, 1], [], []>} : vector<8x32xf32>, vector<32x2000xf32>, vector<8x2000xf32> -> vector<8x2000xf32>
    %c0_18 = arith.constant 0 : index
    %c0_19 = arith.constant 0 : index
    %30 = vector.load %arg9[%c0_18, %c0_19] : memref<1x2000xf32, #tpu.memory_space<vmem>>, vector<1x2000xf32>
    %31 = vector.broadcast %30 : vector<1x2000xf32> to vector<8x2000xf32>
    %32 = arith.addf %29, %31 : vector<8x2000xf32>
    %cst_20 = arith.constant 0.000000e+00 : f32
    %33 = vector.broadcast %cst_20 : f32 to vector<8x2000xf32>
    %34 = arith.maximumf %32, %33 : vector<8x2000xf32>
    %c0_21 = arith.constant 0 : index
    %c0_22 = arith.constant 0 : index
    %35 = vector.load %arg10[%c0_21, %c0_22] : memref<2000x320xf32, #tpu.memory_space<vmem>>, vector<2000x320xf32>
    %cst_23 = arith.constant dense<0.000000e+00> : vector<8x320xf32>
    %36 = tpu.matmul %34, %35, %cst_23 {dimension_numbers = #tpu.dot_dimension_numbers<[1], [0], [0], [1], [0, 0, 1, 1], [], []>} : vector<8x2000xf32>, vector<2000x320xf32>, vector<8x320xf32> -> vector<8x320xf32>
    %c0_24 = arith.constant 0 : index
    %c0_25 = arith.constant 0 : index
    %37 = vector.load %arg11[%c0_24, %c0_25] : memref<1x320xf32, #tpu.memory_space<vmem>>, vector<1x320xf32>
    %38 = vector.broadcast %37 : vector<1x320xf32> to vector<8x320xf32>
    %39 = arith.addf %36, %38 : vector<8x320xf32>
    %cst_26 = arith.constant 0.000000e+00 : f32
    %40 = vector.broadcast %cst_26 : f32 to vector<8x320xf32>
    %41 = arith.maximumf %39, %40 : vector<8x320xf32>
    %c0_27 = arith.constant 0 : index
    %c0_28 = arith.constant 0 : index
    %42 = vector.load %arg12[%c0_27, %c0_28] : memref<320x3xf32, #tpu.memory_space<vmem>>, vector<320x3xf32>
    %cst_29 = arith.constant dense<0.000000e+00> : vector<8x3xf32>
    %43 = tpu.matmul %41, %42, %cst_29 {dimension_numbers = #tpu.dot_dimension_numbers<[1], [0], [0], [1], [0, 0, 1, 1], [], []>} : vector<8x320xf32>, vector<320x3xf32>, vector<8x3xf32> -> vector<8x3xf32>
    %c0_30 = arith.constant 0 : index
    %c0_31 = arith.constant 0 : index
    %44 = vector.load %arg13[%c0_30, %c0_31] : memref<1x3xf32, #tpu.memory_space<vmem>>, vector<1x3xf32>
    %45 = vector.broadcast %44 : vector<1x3xf32> to vector<8x3xf32>
    %46 = arith.addf %43, %45 : vector<8x3xf32>
    %c0_32 = arith.constant 0 : index
    %c0_33 = arith.constant 0 : index
    %47 = vector.load %arg14[%c0_32, %c0_33] : memref<8x3xf32, #tpu.memory_space<vmem>>, vector<8x3xf32>
    tpu.vector_store %arg14[%c0_32, %c0_33], %46 {strides = array<i32>} : memref<8x3xf32, #tpu.memory_space<vmem>>, vector<8x3xf32>,
    return
  }
  func.func @transform_0(%arg0: i32) -> (i32, i32, i32) {
    %c0_i32 = arith.constant 0 : i32
    %c0_i32_0 = arith.constant 0 : i32
    %c0_i32_1 = arith.constant 0 : i32
    return %arg0, %c0_i32, %c0_i32_0 : i32, i32, i32
  }
  func.func @transform_1(%arg0: i32) -> (i32, i32) {
    %c0_i32 = arith.constant 0 : i32
    %c0_i32_0 = arith.constant 0 : i32
    %c0_i32_1 = arith.constant 0 : i32
    return %c0_i32, %c0_i32_0 : i32, i32
  }
  func.func @transform_2(%arg0: i32) -> (i32, i32) {
    %c0_i32 = arith.constant 0 : i32
    %c0_i32_0 = arith.constant 0 : i32
    %c0_i32_1 = arith.constant 0 : i32
    return %c0_i32, %c0_i32_0 : i32, i32
  }
  func.func @transform_3(%arg0: i32) -> (i32, i32) {
    %c0_i32 = arith.constant 0 : i32
    %c0_i32_0 = arith.constant 0 : i32
    %c0_i32_1 = arith.constant 0 : i32
    return %c0_i32, %c0_i32_0 : i32, i32
  }
  func.func @transform_4(%arg0: i32) -> (i32, i32) {
    %c0_i32 = arith.constant 0 : i32
    %c0_i32_0 = arith.constant 0 : i32
    %c0_i32_1 = arith.constant 0 : i32
    return %c0_i32, %c0_i32_0 : i32, i32
  }
  func.func @transform_5(%arg0: i32) -> (i32, i32) {
    %c0_i32 = arith.constant 0 : i32
    %c0_i32_0 = arith.constant 0 : i32
    %c0_i32_1 = arith.constant 0 : i32
    return %c0_i32, %c0_i32_0 : i32, i32
  }
  func.func @transform_6(%arg0: i32) -> (i32, i32) {
    %c0_i32 = arith.constant 0 : i32
    %c0_i32_0 = arith.constant 0 : i32
    %c0_i32_1 = arith.constant 0 : i32
    return %c0_i32, %c0_i32_0 : i32, i32
  }
  func.func @transform_7(%arg0: i32) -> (i32, i32) {
    %c0_i32 = arith.constant 0 : i32
    %c0_i32_0 = arith.constant 0 : i32
    %c0_i32_1 = arith.constant 0 : i32
    return %c0_i32, %c0_i32_0 : i32, i32
  }
  func.func @transform_8(%arg0: i32) -> (i32, i32) {
    %c0_i32 = arith.constant 0 : i32
    %c0_i32_0 = arith.constant 0 : i32
    %c0_i32_1 = arith.constant 0 : i32
    return %c0_i32, %c0_i32_0 : i32, i32
  }
  func.func @transform_9(%arg0: i32) -> (i32, i32) {
    %c0_i32 = arith.constant 0 : i32
    %c0_i32_0 = arith.constant 0 : i32
    %c0_i32_1 = arith.constant 0 : i32
    return %c0_i32, %c0_i32_0 : i32, i32
  }
  func.func @transform_10(%arg0: i32) -> (i32, i32) {
    %c0_i32 = arith.constant 0 : i32
    %c0_i32_0 = arith.constant 0 : i32
    %c0_i32_1 = arith.constant 0 : i32
    return %c0_i32, %c0_i32_0 : i32, i32
  }
  func.func @transform_11(%arg0: i32) -> (i32, i32) {
    %c0_i32 = arith.constant 0 : i32
    %c0_i32_0 = arith.constant 0 : i32
    %c0_i32_1 = arith.constant 0 : i32
    return %c0_i32, %c0_i32_0 : i32, i32
  }
  func.func @transform_12(%arg0: i32) -> (i32, i32) {
    %c0_i32 = arith.constant 0 : i32
    %c0_i32_0 = arith.constant 0 : i32
    %c0_i32_1 = arith.constant 0 : i32
    return %c0_i32, %c0_i32_0 : i32, i32
  }
  func.func @transform_13(%arg0: i32) -> (i32, i32) {
    %c0_i32 = arith.constant 0 : i32
    %c0_i32_0 = arith.constant 0 : i32
    return %arg0, %c0_i32 : i32, i32
  }
}

</mosaic_0001>

<bundles_post_ra>
// kernel: convnet_forward.1
= control target key start
LH: loop header
LB: loop body
LE: loop exit
PB: predicated region body
PF: predicated region fallthrough
CT: control target
= control target key end

     0   :  { %s11255_s25 = smov 0   ;;  %s17809_s0 = inlined_call_operand.vmem [shape: f32[16,36,36], index: 0, kind: input, shape index: {}]   ;;  %s17810_s1 = inlined_call_operand.vmem [shape: f32[6,25], index: 1, kind: input, shape index: {}]   ;;  %s17811_s2 = inlined_call_operand.vmem [shape: f32[6,1], index: 2, kind: input, shape index: {}]   ;;  %s17812_s3 = inlined_call_operand.vmem [shape: f32[16,150], index: 3, kind: input, shape index: {}]   ;;  %s17813_s4 = inlined_call_operand.vmem [shape: f32[16,1], index: 4, kind: input, shape index: {}]   ;;  %s17814_s5 = inlined_call_operand.vmem [shape: f32[32,400], index: 5, kind: input, shape index: {}]   ;;  %s17815_s6 = inlined_call_operand.vmem [shape: f32[32,1], index: 6, kind: input, shape index: {}]   ;;  %s17816_s7 = inlined_call_operand.vmem [shape: f32[32,2000], index: 7, kind: input, shape index: {}]   ;;  %s17817_s8 = inlined_call_operand.vmem [shape: f32[1,2000], index: 8, kind: input, shape index: {}]   ;;  %s17818_s9 = inlined_call_operand.vmem [shape: f32[2000,320], index: 9, kind: input, shape index: {}]   ;;  %s17819_s10 = inlined_call_operand.vmem [shape: f32[1,320], index: 10, kind: input, shape index: {}]   ;;  %s17820_s11 = inlined_call_operand.vmem [shape: f32[320,3], index: 11, kind: input, shape index: {}]   ;;  %s17821_s12 = inlined_call_operand.vmem [shape: f32[1,3], index: 12, kind: input, shape index: {}]   ;;  %s17822_s13 = inlined_call_operand.vmem [shape: f32[16,3], index: 13, kind: output, shape index: {}]  }
   0x1 LB: > { %s7710_s26 = sadd.s32 4294967295, %s11146_s25   ;;  %p7714_p0 = scmp.ge.s32.totalorder %s11146_s25, 1  ;;  %s11146_s25 = sphi %s11255_s25, %s23_s25  }
   0x2   : > { %p389_p1 = scmp.lt.s32.totalorder %s11146_s25, 3 }
   0x4   : > { %p390_p2 = pnand %p7714_p0, %p389_p1 }
   0x6   : > { %393 = sbr.rel (%p390_p2) target bundleno = 4292 (0x10c4), region = 72 }
   0xd   : > { %s7715_s27 = sshll.u32 %s7710_s26, 3  ;;  %p440_p3 = scmp.lt.s32.totalorder %s7710_s26, 1  ;;  %v11266_v0 = vld [vmem:[%s17810_s1] sm:$0x3f]  ;;  %v472_v2 = vlaneseq  ;;  %v11281_v4 = vld [vmem:[%s17812_s3 + $0x8] sm:$0xff]  ;;  %v11286_v5 = vld [vmem:[%s17812_s3 + $0x10] sm:$0xff] }
   0xe   : > { %17921 = vst [vmem:[#allocation3_spill] sm:$0xff] %v11266_v0  ;;  %v11271_v1 = vld [vmem:[%s17811_s2] sm:$0x3f]  ;;  %p434_p4 = scmp.lt.s32.totalorder %s7715_s27, 15  ;;  %17924 = vst [vmem:[#allocation6_spill] sm:$0xff] %v11281_v4  ;;  %v11291_v6 = vld [vmem:[%s17812_s3 + $0x18] sm:$0xff] }
   0xf   : > { %17922 = vst [vmem:[#allocation4_spill] sm:$0xff] %v11271_v1  ;;  %v11276_v3 = vld [vmem:[%s17812_s3] sm:$0xff]  ;;  %17925 = vst [vmem:[#allocation7_spill] sm:$0xff] %v11286_v5  ;;  %s18223_s26 = smov (!%p440_p3, %s7710_s26), 1  ;;  %v11301_v8 = vld [vmem:[%s17813_s4 + $0x8] sm:$0xff]  ;;  %v11303_v9 = vshrl.u32 %v472_v2, 7 }
  0x10   : > { %17923 = vst [vmem:[#allocation5_spill] sm:$0xff] %v11276_v3  ;;  %17926 = vst [vmem:[#allocation8_spill] sm:$0xff] %v11291_v6  ;;  %v11296_v7 = vld [vmem:[%s17813_s4] sm:$0xff]  ;;  %v478_v10 = vand.u32 127, %v472_v2  ;;  %s18225_s27 = smov (!%p434_p4, %s7715_s27), 15  ;;  %v11313_v12 = vld [vmem:[%s17814_s5 + $0x8] sm:$0xff] }
  0x11   : > { %17927 = vst [vmem:[#allocation9_spill] sm:$0xff] %v11296_v7  ;;  %17928 = vst [vmem:[#allocation10_spill] sm:$0xff] %v11301_v8  ;;  %v11308_v11 = vld [vmem:[%s17814_s5] sm:$0xff]  ;;  %v11318_v13 = vld [vmem:[%s17814_s5 + $0x10] sm:$0xff]  ;;  %s7717_s19 = sshll.u32 %s18223_s26, 3  ;;  %v11336_v17 = vadd.s32 8, %v11303_v9 }
  0x12   : > { %17929 = vst [vmem:[#allocation11_spill] sm:$0xff] %v11303_v9  ;;  %17930 = vst [vmem:[#allocation12_spill] sm:$0xff] %v11308_v11  ;;  %v11323_v14 = vld [vmem:[%s17814_s5 + $0x18] sm:$0xff]  ;;  %v11328_v15 = vld [vmem:[%s17814_s5 + $0x20] sm:$0xff]  ;;  %v11339_v18 = vadd.s32 16, %v11303_v9  ;;  %vm492_vm0 = vcmp.eq.s32.totalorder %v11303_v9, %v478_v10  ;;  %s9258_s26 = smul.u32 40, %s18225_s27  ;;  %s11345_s14 = scalar_lea.vmem %s17822_s13, %s7717_s19 }
  0x13   : > { %17931 = vst [vmem:[#allocation13_spill] sm:$0xff] %v11313_v12  ;;  %17932 = vst [vmem:[#allocation14_spill] sm:$0xff] %v11318_v13  ;;  %v11333_v16 = vld [vmem:[%s17814_s5 + $0x28] sm:$0xff]  ;;  %v11350_v19 = vld [vmem:[%s17814_s5 + $0x30] sm:$0xff]  ;;  %v476_v22 = vadd.s32 24, %v11303_v9  ;;  %v11363_v23 = vmul.u32 2, %v478_v10  ;;  %vm493_vm1 = vcmp.eq.s32.totalorder %v11336_v17, %v478_v10 }
  0x14   : > { %17933 = vst [vmem:[#allocation15_spill] sm:$0xff] %v11323_v14  ;;  %17934 = vst [vmem:[#allocation16_spill] sm:$0xff] %v11328_v15  ;;  %v11355_v20 = vld [vmem:[%s17814_s5 + $0x38] sm:$0xff]  ;;  %v11360_v21 = vld [vmem:[%s17814_s5 + $0x40] sm:$0xff]  ;;  %vm494_vm2 = vcmp.eq.s32.totalorder %v11339_v18, %v478_v10  ;;  %v17823_v27 = vmov 0.0   ;;  %s11388_s15 = scalar_lea.vmem %s17809_s0, %s9258_s26  ;;  %s11459_s18 = smov 0  }
  0x15   : > { %17935 = vst [vmem:[#allocation17_spill] sm:$0xff] %v11333_v16  ;;  %17936 = vst [vmem:[#allocation18_spill] sm:$0xff] %v11336_v17  ;;  %v11368_v24 = vld [vmem:[%s17814_s5 + $0x48] sm:$0xff]  ;;  %v11373_v25 = vld [vmem:[%s17814_s5 + $0x50] sm:$0xff]  ;;  %v11383_v28 = vsel %vm492_vm0, 1.0, %v17823_v27  ;;  %vm480_vm3 = vcmp.eq.s32.totalorder %v11303_v9, %v11363_v23  ;;  %vm17897_vm4 = vcmp.eq.s32.totalorder %v11336_v17, %v11363_v23  ;;  %vm483_vm6 = vcmp.eq.s32.totalorder %v476_v22, %v11363_v23 }
  0x16   : > { %17937 = vst [vmem:[#allocation19_spill] sm:$0xff] %v11339_v18  ;;  %17938 = vst [vmem:[#allocation20_spill] sm:$0xff] %v11350_v19  ;;  %v11378_v26 = vld [vmem:[%s17814_s5 + $0x58] sm:$0xff]  ;;  %v11393_v29 = vld [vmem:[%s17814_s5 + $0x60] sm:$0xff]  ;;  %v11431_v35 = vsel %vm17897_vm4, 1.0, %v17823_v27  ;;  %v11434_v36 = vsel %vm483_vm6, 1.0, %v17823_v27  ;;  %vm495_vm7 = vcmp.eq.s32.totalorder %v476_v22, %v478_v10 }
  0x17   : > { %17939 = vst [vmem:[#allocation21_spill] sm:$0xff] %v11355_v20  ;;  %17940 = vst [vmem:[#allocation22_spill] sm:$0xff] %v11360_v21  ;;  %v11398_v30 = vld [vmem:[%s17814_s5 + $0x68] sm:$0xff]  ;;  %v11403_v31 = vld [vmem:[%s17814_s5 + $0x70] sm:$0xff]  ;;  %v11439_v37 = vsel %vm493_vm1, 1.0, %v17823_v27  ;;  %v11454_v40 = vsel %vm494_vm2, 1.0, %v17823_v27 }
  0x18   : > { %17941 = vst [vmem:[#allocation23_spill] sm:$0xff] %v11363_v23  ;;  %17942 = vst [vmem:[#allocation24_spill] sm:$0xff] %v11368_v24  ;;  %v11415_v32 = vld [vmem:[%s17814_s5 + $0x78] sm:$0xff]  ;;  %v11420_v33 = vld [vmem:[%s17815_s6] sm:$0xff]  ;;  %v11457_v41 = vsel %vm495_vm7, 1.0, %v17823_v27 }
  0x19   : > { %17943 = vst [vmem:[#allocation25_spill] sm:$0xff] %v11373_v25  ;;  %17944 = vst [vmem:[#allocation26_spill] sm:$0xff] %v11378_v26  ;;  %v11425_v34 = vld [vmem:[%s17815_s6 + $0x8] sm:$0xff]  ;;  %v11444_v38 = vld [vmem:[%s17815_s6 + $0x10] sm:$0xff] }
  0x1a   : > { %17945 = vst [vmem:[#allocation27_spill] sm:$0xff] %v11383_v28  ;;  %17946 = vst [vmem:[#allocation28_spill] sm:$0xff] %v11393_v29  ;;  %v11449_v39 = vld [vmem:[%s17815_s6 + $0x18] sm:$0xff] }
  0x1b   : > { %17947 = vst [vmem:[#allocation29_spill] sm:$0xff] %v11398_v30  ;;  %17948 = vst [vmem:[#allocation30_spill] sm:$0xff] %v11403_v31 }
  0x1c   : > { %17949 = vst [vmem:[#allocation31_spill] sm:$0xff] %v11415_v32  ;;  %17950 = vst [vmem:[#allocation32_spill] sm:$0xff] %v11420_v33 }
  0x1d   : > { %17951 = vst [vmem:[#allocation33_spill] sm:$0xff] %v11425_v34  ;;  %17952 = vst [vmem:[#allocation34_spill] sm:$0xff] %v11431_v35 }
  0x1e   : > { %17953 = vst [vmem:[#allocation35_spill] sm:$0xff] %v11434_v36  ;;  %17954 = vst [vmem:[#allocation36_spill] sm:$0xff] %v11439_v37 }
  0x1f   : > { %17955 = vst [vmem:[#allocation37_spill] sm:$0xff] %v11444_v38  ;;  %17956 = vst [vmem:[#allocation38_spill] sm:$0xff] %v11449_v39 }
  0x20   : > { %17957 = vst [vmem:[#allocation39_spill] sm:$0xff] %v11454_v40  ;;  %17958 = vst [vmem:[#allocation40_spill] sm:$0xff] %v11457_v41 }
  0x21 LB: >> { %s510_s20 = smul.u32 40, %s11150_s18  ;;  %vm534_vm8 = vcmask 1044480   ;;  %vm538_vm9 = vcmask 1046528   ;;  %vm540_vm10 = vcmask 1043456   ;;  %s11153_s27 = smov 127   ;;  %vm609_vm11 = vcmask 1045504   ;;  %s11150_s18 = sphi %s11459_s18, %s509_s18  }
  0x22   : >> { %s17878_s26 = smov 125   ;;  %s11155_s19 = smov 126   ;;  %vm17907_vm12 = vcmask 1042432   ;;  %vm536_vm13 = vcmask 1041408   ;;  %vm600_vm14 = vcmask 1040384   ;;  %vm17906_vm15 = vcmask 261120  }
  0x23   : >> { %s11466_s21 = scalar_lea.vmem %s11388_s15, %s510_s20  ;;  %s11156_s22 = smov 124   ;;  %vm17900_vm0 = vcmask 523264   ;;  %vm1427_vm1 = vcmask 785408   ;;  %vm11162_vm2 = vmmov 1   ;;  %vm1701_vm7 = vcmask 203776  }
  0x24   : >> { %v512_v42 = vld [vmem:[%s11466_s21] sm:$0xff]  ;;  %v11470_v43 = vld [vmem:[%s11466_s21 + $0x8] sm:$0xff]  ;;  %v11653_v13 = vld [vmem:[%s11466_s21 + $0x18] sm:$0xff]  ;;  %s17861_s23 = smov 32   ;;  %s11158_s24 = smov 64  }
  0x25   : >> { %v11473_v44 = vrot.slane %v11470_v43, 1  ;;  %v530_v45 = vrot.slane %v512_v42, 4  ;;  %v11475_v46 = vrot.slane %v512_v42, 6  ;;  %v11477_v47 = vrot.slane %v512_v42, 2  ;;  %s17864_s28 = smov 96   ;;  %vm12327_vm6 = vmpackc.low %vm600_vm14, %vm11162_vm2  ;;  %s11165_s29 = smov 24  }
  0x26   : >> { %v11479_v48 = vrot.slane %v512_v42, 3  ;;  %v11481_v49 = vrot.slane %v512_v42, 7  ;;  %v11484_v50 = vrot.slane %v11470_v43, 3  ;;  %v11486_v51 = vrot.slane %v512_v42, 1  ;;  %s11166_s30 = smov 12   ;;  %s11167_s16 = smov 48  }
  0x27   : >> { %v9313_v52 = vpack.i.bf16 %v11473_v44, %v512_v42  ;;  %v9308_v53 = vpack.i.bf16 %v530_v45, %v11470_v43  ;;  %v11494_v55 = vrot.slane %v11470_v43, 4  ;;  %v9318_v56 = vpack.i.bf16 %v11477_v47, %v11475_v46  ;;  %s11168_s17 = smov 36   ;;  %s11169_s20 = smov 60  }
  0x28   : >> { %v642_v54 = vsel %vm534_vm8, %v11479_v48, %v11484_v50  ;;  %v11501_v58 = vrot.slane %v512_v42, 5  ;;  %v655_v59 = vsel %vm538_vm9, %v11486_v51, %v11473_v44  ;;  %v11515_v63 = vrot.slane %v11470_v43, 2 }
  0x29   : >> { %9314 = vrot.lane.b32.xlu1 %v9313_v52, %s11153_s27  ;;  %9309 = vrot.lane.b32.xlu0 %v9308_v53, %s11153_s27  ;;  %v9323_v57 = vpack.i.bf16 %v11481_v49, %v642_v54  ;;  %v11508_v60 = vsel %vm540_vm10, %v530_v45, %v11494_v55  ;;  %v11518_v2 = vrot.slane %v11470_v43, 5  ;;  %v9333_v22 = vpack.i.bf16 %v11479_v48, %v11481_v49  ;;  %v11527_v52 = vld [vmem:[%s11466_s21 + $0x10] sm:$0xff] }
  0x2a   : >> { %17959 = vst [vmem:[#allocation41_spill] sm:$0xff] %v11508_v60  ;;  %v9338_v61 = vpack.i.bf16 %v655_v59, %v11501_v58  ;;  %v9328_v62 = vpack.i.bf16 %v512_v42, %v11508_v60  ;;  %v9343_v10 = vpack.i.bf16 %v11475_v46, %v11515_v63  ;;  %v11532_v53 = vsel %vm609_vm11, %v11477_v47, %v11515_v63 }
  0x2b   : >> { %v11537_v54 = vsel %vm17907_vm12, %v11501_v58, %v11518_v2  ;;  %v9373_v28 = vpack.i.bf16 %v11532_v53, %v11473_v44  ;;  %v9368_v37 = vpack.i.bf16 %v11501_v58, %v655_v59  ;;  %v11571_v31 = vrot.slane %v11527_v52, 1 }
  0x2c   : >> { %v9348_v27 = vpack.i.bf16 %v11486_v51, %v11537_v54  ;;  %v11585_v59 = vrot.slane %v11527_v52, 2  ;;  %v11599_v25 = vrot.slane %v11527_v52, 4  ;;  %v11632_v30 = vrot.slane %v11527_v52, 7 }
  0x2d   : >> { %9319 = vrot.lane.b32.xlu1 %v9318_v56, %s17878_s26  ;;  %9324 = vrot.lane.b32.xlu0 %v9323_v57, %s11155_s19  ;;  %v11540_v56 = vrot.slane %v11470_v43, 7  ;;  %v11635_v20 = vrot.slane %v11527_v52, 6  ;;  %v9448_v24 = vpack.i.bf16 %v11571_v31, %v11518_v2  ;;  %v11685_v15 = vrot.slane %v11653_v13, 1 }
  0x2e   : >> { %v11712_v39 = vrot.slane %v11653_v13, 5  ;;  %v11734_v14 = vrot.slane %v11653_v13, 7  ;;  %v997_v12 = vrot.slane %v11653_v13, 6  ;;  %vm3565_vm2 = vcmask 97280  }
  0x2f   : >> { %v11552_v41 = vsel %vm600_vm14, %v11481_v49, %v11540_v56  ;;  %v9413_v29 = vpack.i.bf16 %v11540_v56, %v11515_v63  ;;  %17961 = vst [vmem:[#allocation43_spill] sm:$0xff] %v11685_v15  ;;  %v9478_v11 = vpack.i.bf16 %v11685_v15, %v11599_v25  ;;  %v1006_v38 = vsel %vm538_vm9, %v11571_v31, %v11685_v15 }
  0x30   : >> { %17964 = vst [vmem:[#allocation46_spill] sm:$0xff] %v11712_v39  ;;  %v11746_v35 = vsel %vm600_vm14, %v11632_v30, %v11734_v14  ;;  %v11750_v5 = vsel %vm536_vm13, %v11635_v20, %v997_v12 }
  0x31   : >> { %9339 = vrot.lane.b32.xlu1 %v9338_v61, %s11153_s27  ;;  %9329 = vrot.lane.b32.xlu0 %v9328_v62, %s11155_s19  ;;  %v646_v61 = vrot.slane %v11470_v43, 6  ;;  %v9353_v62 = vpack.i.bf16 %v11527_v52, %v11532_v53 }
  0x33   : >> { %v11556_v40 = vsel %vm536_vm13, %v11475_v46, %v646_v61  ;;  %v9423_v19 = vpack.i.bf16 %v646_v61, %v11585_v59  ;;  %v11650_v21 = vsel %vm536_vm13, %v646_v61, %v11635_v20 }
  0x35   : >> { %9344 = vrot.lane.b32.xlu1 %v9343_v10, %s11153_s27  ;;  %9334 = vrot.lane.b32.xlu0 %v9333_v22, %s17878_s26  ;;  %v9363_v10 = vpack.i.bf16 %v11552_v41, %v11556_v40  ;;  %v11562_v22 = vpack.i.bf16 %v530_v45, %v512_v42  ;;  %v9378_v42 = vpack.i.bf16 %v11515_v63, %v11475_v46 }
  0x36   : >> { %v832_v45 = vsel %vm538_vm9, %v11473_v44, %v11571_v31 }
  0x39   : >> { %9354 = vrot.lane.b32.xlu1 %v9353_v62, %s11153_s27  ;;  %9349 = vrot.lane.b32.xlu0 %v9348_v27, %s11155_s19  ;;  %v9383_v27 = vpack.i.bf16 %v646_v61, %v11470_v43  ;;  %v11582_v62 = vrot.slane %v11527_v52, 3 }
  0x3b   : >> { %v819_v32 = vsel %vm534_vm8, %v11484_v50, %v11582_v62 }
  0x3d   : >> { %9364 = vrot.lane.b32.xlu1 %v9363_v10, %s17878_s26  ;;  %9359 = vrot.lane.b32.xlu0 %v11562_v22, %s17878_s26  ;;  %v795_v10 = vsel %vm609_vm11, %v11515_v63, %v11585_v59 }
  0x3e   : >> { %v11601_v26 = vpack.i.bf16 %v646_v61, %v795_v10  ;;  %v11665_v61 = vrot.slane %v11653_v13, 3 }
  0x41   : >> { %9374 = vrot.lane.b32.xlu1 %v9373_v28, %s11156_s22  ;;  %9369 = vrot.lane.b32.xlu0 %v9368_v37, %s11156_s22  ;;  %v9393_v37 = vpack.i.bf16 %v832_v45, %v11484_v50  ;;  %v11611_v28 = vsel %vm540_vm10, %v11494_v55, %v11599_v25 }
  0x42   : >> { %17960 = vst [vmem:[#allocation42_spill] sm:$0xff] %v11611_v28 }
  0x45   : >> { %9384 = vrot.lane.b32.xlu1 %v9383_v27, %s17878_s26  ;;  %9379 = vrot.lane.b32.xlu0 %v9378_v42, %s11156_s22  ;;  %v9403_v27 = vpack.i.bf16 %v11571_v31, %v11494_v55  ;;  %v9398_v42 = vpack.i.bf16 %v11540_v56, %v819_v32 }
  0x49   : >> { %9394 = vrot.lane.b32.xlu1 %v9393_v37, %s11156_s22  ;;  %9389 = vrot.lane.b32.xlu0 %v9323_v57, %s11156_s22  ;;  %v9408_v57 = vpack.i.bf16 %v11470_v43, %v11611_v28  ;;  %v11620_v37 = vrot.slane %v11527_v52, 5 }
  0x4b   : >> { %v11722_v33 = vsel %vm17907_vm12, %v11620_v37, %v11712_v39 }
  0x4c   : >> { %v9503_v34 = vpack.i.bf16 %v11571_v31, %v11722_v33 }
  0x4d   : >> { %9404 = vrot.lane.b32.xlu1 %v9403_v27, %s11153_s27  ;;  %9399 = vrot.lane.b32.xlu0 %v9398_v42, %s11155_s19  ;;  %v9418_v27 = vpack.i.bf16 %v832_v45, %v11518_v2  ;;  %v11629_v42 = vsel %vm17907_vm12, %v11518_v2, %v11620_v37 }
  0x4e   : >> { %v9428_v45 = vpack.i.bf16 %v11473_v44, %v11629_v42 }
  0x51   : >> { %9414 = vrot.lane.b32.xlu1 %v9413_v29, %s17878_s26  ;;  %9409 = vrot.lane.b32.xlu0 %v9408_v57, %s11155_s19  ;;  %v9433_v29 = vpack.i.bf16 %v11494_v55, %v11484_v50  ;;  %v11646_v57 = vsel %vm600_vm14, %v11540_v56, %v11632_v30 }
  0x55   : >> { %9424 = vrot.lane.b32.xlu1 %v9423_v19, %s11153_s27  ;;  %9419 = vrot.lane.b32.xlu0 %v9418_v27, %s11153_s27  ;;  %v9443_v19 = vpack.i.bf16 %v11646_v57, %v11650_v21  ;;  %v9438_v27 = vpack.i.bf16 %v11653_v13, %v795_v10  ;;  %v9458_v10 = vpack.i.bf16 %v819_v32, %v11585_v59  ;;  %v11688_v32 = vrot.slane %v11653_v13, 2 }
  0x57   : >> { %17962 = vst [vmem:[#allocation44_spill] sm:$0xff] %v11688_v32 }
  0x59   : >> { %9434 = vrot.lane.b32.xlu1 %v9433_v29, %s17878_s26  ;;  %9429 = vrot.lane.b32.xlu0 %v9428_v45, %s11155_s19  ;;  %v9463_v29 = vpack.i.bf16 %v11635_v20, %v11527_v52  ;;  %v993_v45 = vsel %vm534_vm8, %v11582_v62, %v11665_v61 }
  0x5d   : >> { %9444 = vrot.lane.b32.xlu1 %v9443_v19, %s17878_s26  ;;  %9439 = vrot.lane.b32.xlu0 %v9438_v27, %s11153_s27  ;;  %v11677_v19 = vrot.slane %v11653_v13, 4  ;;  %v9473_v27 = vpack.i.bf16 %v11632_v30, %v993_v45 }
  0x5f   : >> { %v11693_v16 = vsel %vm540_vm10, %v11599_v25, %v11677_v19 }
  0x60   : >> { %17963 = vst [vmem:[#allocation45_spill] sm:$0xff] %v11693_v16  ;;  %v9483_v45 = vpack.i.bf16 %v11527_v52, %v11693_v16 }
  0x61   : >> { %9454 = vrot.lane.b32.xlu1 %v11601_v26, %s11156_s22  ;;  %9449 = vrot.lane.b32.xlu0 %v9448_v24, %s11156_s22  ;;  %v9468_v24 = vpack.i.bf16 %v11582_v62, %v11540_v56 }
  0x65   : >> { %9464 = vrot.lane.b32.xlu1 %v9463_v29, %s17878_s26  ;;  %9459 = vrot.lane.b32.xlu0 %v9458_v10, %s11156_s22  ;;  %v11698_v29 = vsel %vm609_vm11, %v11585_v59, %v11688_v32  ;;  %v9493_v10 = vpack.i.bf16 %v1006_v38, %v11620_v37 }
  0x66   : >> { %v9533_v8 = vpack.i.bf16 %v11698_v29, %v11685_v15 }
  0x69   : >> { %9474 = vrot.lane.b32.xlu1 %v9473_v27, %s11155_s19  ;;  %9469 = vrot.lane.b32.xlu0 %v9468_v24, %s11156_s22  ;;  %v9488_v24 = vpack.i.bf16 %v11632_v30, %v11585_v59 }
  0x6d   : >> { %9484 = vrot.lane.b32.xlu1 %v9483_v45, %s11155_s19  ;;  %9479 = vrot.lane.b32.xlu0 %v9478_v11, %s11153_s27  ;;  %v9498_v11 = vpack.i.bf16 %v11635_v20, %v11688_v32  ;;  %v11731_v45 = vld [vmem:[%s11466_s21 + $0x20] sm:$0xf] }
  0x6e   : >> { %17965 = vst [vmem:[#allocation47_spill] sm:$0xff] %v11731_v45  ;;  %v1166_v6 = vrot.slane %v11731_v45, 3  ;;  %v1171_v23 = vrot.slane %v11731_v45, 6 }
  0x70   : >> { %v1167_v3 = vsel %vm534_vm8, %v11665_v61, %v1166_v6 }
  0x71   : >> { %9494 = vrot.lane.b32.xlu1 %v9493_v10, %s11153_s27  ;;  %9489 = vrot.lane.b32.xlu0 %v9488_v24, %s17878_s26  ;;  %v9513_v10 = vpack.i.bf16 %v11731_v45, %v11698_v29  ;;  %v9508_v24 = vpack.i.bf16 %v11599_v25, %v11582_v62  ;;  %v9528_v4 = vpack.i.bf16 %v11734_v14, %v1167_v3 }
  0x75   : >> { %9504 = vrot.lane.b32.xlu1 %v9503_v34, %s11155_s19  ;;  %9499 = vrot.lane.b32.xlu0 %v9498_v11, %s11153_s27  ;;  %v9523_v34 = vpack.i.bf16 %v11620_v37, %v1006_v38  ;;  %v9518_v11 = vpack.i.bf16 %v11746_v35, %v11750_v5  ;;  %v9543_v38 = vpack.i.bf16 %v11653_v13, %v997_v12 }
  0x79   : >> { %9514 = vrot.lane.b32.xlu1 %v9513_v10, %s11153_s27  ;;  %9509 = vrot.lane.b32.xlu0 %v9508_v24, %s17878_s26  ;;  %v1179_v10 = vrot.slane %v11731_v45, 1  ;;  %v1131_v24 = vrot.slane %v11731_v45, 4 }
  0x7b   : >> { %v9538_v7 = vpack.i.bf16 %v1179_v10, %v11677_v19 }
  0x7d   : >> { %9524 = vrot.lane.b32.xlu1 %v9523_v34, %s11156_s22  ;;  %9519 = vrot.lane.b32.xlu0 %v9518_v11, %s17878_s26  ;;  %v11773_v34 = vsel %vm540_vm10, %v11677_v19, %v1131_v24  ;;  %v9553_v11 = vpack.i.bf16 %v11688_v32, %v11635_v20  ;;  %v1142_v24 = vrot.slane %v11731_v45, 2 }
  0x7e   : >> { %17966 = vst [vmem:[#allocation48_spill] sm:$0xff] %v11773_v34 }
  0x7f   : >> { %v9573_v36 = vpack.i.bf16 %v997_v12, %v1142_v24 }
  0x81   : >> { %9534 = vrot.lane.b32.xlu1 %v9533_v8, %s11156_s22  ;;  %9529 = vrot.lane.b32.xlu0 %v9528_v4, %s11155_s19  ;;  %v9548_v8 = vpack.i.bf16 %v11653_v13, %v11773_v34  ;;  %v9563_v4 = vpack.i.bf16 %v11734_v14, %v11688_v32 }
  0x85   : >> { %9544 = vrot.lane.b32.xlu1 %v9543_v38, %s17878_s26  ;;  %9539 = vrot.lane.b32.xlu0 %v9538_v7, %s11153_s27  ;;  %v1180_v38 = vsel %vm538_vm9, %v11685_v15, %v1179_v10  ;;  %v1147_v7 = vrot.slane %v11731_v45, 5 }
  0x86   : >> { %v9568_v18 = vpack.i.bf16 %v1180_v38, %v11712_v39 }
  0x89   : >> { %9554 = vrot.lane.b32.xlu1 %v9553_v11, %s11156_s22  ;;  %9549 = vrot.lane.b32.xlu0 %v9548_v8, %s11155_s19  ;;  %v11794_v11 = vsel %vm17907_vm12, %v11712_v39, %v1147_v7  ;;  %v9583_v8 = vpack.i.bf16 %v1180_v38, %v11665_v61  ;;  %v11815_v7 = vsel %vm536_vm13, %v997_v12, %v1171_v23  ;;  %vm3794_vm12 = vcmask 179200  }
  0x8a   : >> { %17967 = vst [vmem:[#allocation49_spill] sm:$0xff] %v11794_v11  ;;  %v9578_v17 = vpack.i.bf16 %v11685_v15, %v11794_v11  ;;  %17968 = vst [vmem:[#allocation50_spill] sm:$0xff] %v11815_v7 }
  0x8d   : >> { %9564 = vrot.lane.b32.xlu1 %v9563_v4, %s17878_s26  ;;  %9559 = vrot.lane.b32.xlu0 %v9473_v27, %s11156_s22  ;;  %v1143_v4 = vsel %vm609_vm11, %v11688_v32, %v1142_v24  ;;  %v1134_v27 = vrot.slane %v11731_v45, 7 }
  0x8e   : >> { %v11826_v16 = vpack.i.bf16 %v997_v12, %v1143_v4 }
  0x8f   : >> { %v11812_v38 = vsel %vm600_vm14, %v11734_v14, %v1134_v27  ;;  %v9613_v27 = vpack.i.bf16 %v1167_v3, %v1142_v24 }
  0x91   : >> { %9574 = vrot.lane.b32.xlu1 %v9573_v36, %s11153_s27  ;;  %9569 = vrot.lane.b32.xlu0 %v9568_v18, %s11153_s27  ;;  %v9593_v36 = vpack.i.bf16 %v11552_v41, %v1143_v4  ;;  %v9588_v18 = vpack.i.bf16 %v11677_v19, %v11665_v61 }
  0x95   : >> { %9584 = vrot.lane.b32.xlu1 %v9583_v8, %s11156_s22  ;;  %9579 = vrot.lane.b32.xlu0 %v9578_v17, %s11155_s19  ;;  %v9603_v8 = vpack.i.bf16 %v1179_v10, %v11712_v39  ;;  %v9598_v17 = vpack.i.bf16 %v11812_v38, %v11815_v7  ;;  %v9623_v10 = vpack.i.bf16 %v1166_v6, %v11734_v14 }
  0x99   : >> { %9594 = vrot.lane.b32.xlu1 %v9593_v36, %s11153_s27  ;;  %9589 = vrot.lane.b32.xlu0 %v9588_v18, %s17878_s26  ;;  %v9618_v18 = vpack.i.bf16 %v11501_v58, %v11731_v45 }
  0x9b   : >> { %v9315_v9 = vpop.permute.xlu1 %9314  ;;  %v11822_v34 = vpop.permute.xlu0 %9309 }
  0x9c   : >> { %v9312_v4 = vunpack.i.h.bf16 %v11822_v34  ;;  %v9316_v58 = vunpack.i.l.bf16 %v9315_v9  ;;  %v9317_v7 = vunpack.i.h.bf16 %v9315_v9 }
  0x9d   : >> { %9604 = vrot.lane.b32.xlu1 %v9603_v8, %s11156_s22  ;;  %9599 = vrot.lane.b32.xlu0 %v9598_v17, %s17878_s26  ;;  %v17840_v8 = vunpack.i.l.bf16 %v11822_v34 }
  0x9f   : >> { %v11828_v23 = vpop.permute.xlu1 %9319  ;;  %v9325_v36 = vpop.permute.xlu0 %9324 }
  0xa0   : >> { %v9326_v0 = vunpack.i.l.bf16 %v9325_v36  ;;  %v9327_v17 = vunpack.i.h.bf16 %v9325_v36  ;;  %v9321_v24 = vunpack.i.l.bf16 %v11828_v23  ;;  %v9322_v36 = vunpack.i.h.bf16 %v11828_v23 }
  0xa1   : >> { %9614 = vrot.lane.b32.xlu1 %v9613_v27, %s11156_s22  ;;  %9609 = vrot.lane.b32.xlu0 %v11826_v16, %s11156_s22  ;;  %v9633_v27 = vpack.i.bf16 %v11481_v49, %v11479_v48  ;;  %v9638_v49 = vpack.i.bf16 %v11537_v54, %v11486_v51  ;;  %v9698_v23 = vpack.i.bf16 %v11484_v50, %v11646_v57 }
  0xa2   : >> { %v662_v6 = vsel %vm536_vm13, %v17840_v8, %v9326_v0  ;;  %v559_v60 = vsel %vm536_vm13, %v9312_v4, %v9327_v17  ;;  %v17969_v0 = vpack.i.bf16 %v11475_v46, %v11532_v53  ;;  %v661_v8 = vsel %vm534_vm8, %v11537_v54, %v9316_v58 }
  0xa3   : >> { %v9340_v3 = vpop.permute.xlu1 %9339  ;;  %v9330_v12 = vpop.permute.xlu0 %9329  ;;  %v560_v17 = vsel %vm538_vm9, %v559_v60, %v9322_v36  ;;  %v558_v60 = vsel %vm534_vm8, %v11486_v51, %v9312_v4 }
  0xa4   : >> { %v9331_v28 = vunpack.i.l.bf16 %v9330_v12  ;;  %v9342_v32 = vunpack.i.h.bf16 %v9340_v3  ;;  %v9341_v11 = vunpack.i.l.bf16 %v9340_v3 }
  0xa5   : >> { %9624 = vrot.lane.b32.xlu1 %v9623_v10, %s11156_s22  ;;  %9619 = vrot.lane.b32.xlu0 %v9618_v18, %s17878_s26  ;;  %v663_v18 = vsel %vm538_vm9, %v662_v6, %v9321_v24  ;;  %v9332_v24 = vunpack.i.h.bf16 %v9330_v12 }
  0xa6   : >> { %v9643_v6 = vpack.i.bf16 %v663_v18, %v661_v8  ;;  %v687_v15 = vsel %vm536_vm13, %v9317_v7, %v9331_v28  ;;  %v9648_v28 = vpack.i.bf16 %v560_v17, %v558_v60  ;;  %v575_v7 = vsel %vm534_vm8, %v11477_v47, %v9341_v11 }
  0xa7   : >> { %v9345_v1 = vpop.permute.xlu1 %9344  ;;  %v11847_v45 = vpop.permute.xlu0 %9334 }
  0xa8   : >> { %v9336_v10 = vunpack.i.l.bf16 %v11847_v45  ;;  %v9337_v46 = vunpack.i.h.bf16 %v11847_v45  ;;  %v9346_v58 = vunpack.i.l.bf16 %v9345_v1  ;;  %v9347_v8 = vunpack.i.h.bf16 %v9345_v1 }
  0xa9   : >> { %9634 = vrot.lane.b32.xlu1 %v9633_v27, %s11153_s27  ;;  %9629 = vrot.lane.b32.xlu0 %v17969_v0, %s11155_s19  ;;  %v686_v0 = vsel %vm534_vm8, %v11556_v40, %v9342_v32  ;;  %v576_v32 = vsel %vm536_vm13, %v9341_v11, %v9332_v24 }
  0xaa   : >> { %v688_v54 = vsel %vm538_vm9, %v687_v15, %v9336_v10  ;;  %v577_v51 = vsel %vm538_vm9, %v576_v32, %v9337_v46 }
  0xab   : >> { %v11864_v9 = vpop.permute.xlu1 %9354  ;;  %v9350_v27 = vpop.permute.xlu0 %9349  ;;  %v9653_v15 = vpack.i.bf16 %v688_v54, %v686_v0  ;;  %v9658_v17 = vpack.i.bf16 %v577_v51, %v575_v7 }
  0xac   : >> { %v9356_v53 = vunpack.i.l.bf16 %v11864_v9  ;;  %v9351_v39 = vunpack.i.l.bf16 %v9350_v27  ;;  %v9352_v3 = vunpack.i.h.bf16 %v9350_v27 }
  0xad   : >> { %9639 = vrot.lane.b32.xlu0 %v9638_v49, %s17878_s26  ;;  %9644 = vrot.lane.b32.xlu1 %v9643_v6, %s17861_s23 }
  0xae   : >> { %v711_v4 = vsel %vm534_vm8, %v11552_v41, %v9356_v53  ;;  %v712_v1 = vsel %vm536_vm13, %v9346_v58, %v9351_v39  ;;  %v593_v27 = vsel %vm536_vm13, %v9347_v8, %v9352_v3  ;;  %v592_v39 = vsel %vm534_vm8, %v11479_v48, %v9347_v8 }
  0xaf   : >> { %v9365_v12 = vpop.permute.xlu1 %9364  ;;  %v11878_v40 = vpop.permute.xlu0 %9359  ;;  %v9678_v3 = vpack.i.bf16 %v11494_v55, %v11470_v43 }
  0xb0   : >> { %v9362_v10 = vunpack.i.h.bf16 %v11878_v40  ;;  %v9361_v18 = vunpack.i.l.bf16 %v11878_v40  ;;  %v9366_v6 = vunpack.i.l.bf16 %v9365_v12  ;;  %v17970_v40 = vunpack.i.l.bf16 %v11822_v34 }
  0xb1   : >> { %9649 = vrot.lane.b32.xlu0 %v9648_v28, %s17861_s23  ;;  %9654 = vrot.lane.b32.xlu1 %v9653_v15, %s11158_s24  ;;  %v9367_v15 = vunpack.i.h.bf16 %v9365_v12 }
  0xb2   : >> { %v713_v47 = vsel %vm538_vm9, %v712_v1, %v9361_v18  ;;  %v594_v41 = vsel %vm538_vm9, %v593_v27, %v9362_v10 }
  0xb3   : >> { %v9375_v11 = vpop.permute.xlu1 %9374  ;;  %v9370_v49 = vpop.permute.xlu0 %9369  ;;  %v9663_v24 = vpack.i.bf16 %v713_v47, %v711_v4  ;;  %v9673_v60 = vpack.i.bf16 %v594_v41, %v592_v39  ;;  %v9357_v41 = vunpack.i.h.bf16 %v11864_v9 }
  0xb4   : >> { %v9371_v0 = vunpack.i.l.bf16 %v9370_v49  ;;  %v9376_v53 = vunpack.i.l.bf16 %v9375_v11  ;;  %v9372_v28 = vunpack.i.h.bf16 %v9370_v49  ;;  %v9377_v32 = vunpack.i.h.bf16 %v9375_v11 }
  0xb5   : >> { %9659 = vrot.lane.b32.xlu0 %v9658_v17, %s11158_s24  ;;  %9664 = vrot.lane.b32.xlu1 %v9663_v24, %s17864_s28 }
  0xb6   : >> { %v664_v7 = vsel %vm540_vm10, %v9366_v6, %v9371_v0  ;;  %v561_v4 = vsel %vm540_vm10, %v9322_v36, %v9372_v28 }
  0xb7   : >> { %v11900_v54 = vpop.permute.xlu1 %9384  ;;  %v9380_v58 = vpop.permute.xlu0 %9379  ;;  %v9683_v51 = vpack.i.bf16 %v9376_v53, %v664_v7  ;;  %v9688_v43 = vpack.i.bf16 %v9372_v28, %v561_v4  ;;  %v9723_v7 = vpack.i.bf16 %v11473_v44, %v11518_v2 }
  0xb8   : >> { %v9382_v18 = vunpack.i.h.bf16 %v9380_v58  ;;  %v9386_v12 = vunpack.i.l.bf16 %v11900_v54  ;;  %v9381_v11 = vunpack.i.l.bf16 %v9380_v58 }
  0xb9   : >> { %9669 = vrot.lane.b32.xlu0 %v11562_v22, %s11156_s22  ;;  %9674 = vrot.lane.b32.xlu1 %v9673_v60, %s17864_s28  ;;  %v689_v22 = vsel %vm540_vm10, %v9367_v15, %v9377_v32 }
  0xba   : >> { %v9693_v55 = vpack.i.bf16 %v9382_v18, %v689_v22  ;;  %v578_v6 = vsel %vm540_vm10, %v9337_v46, %v9381_v11  ;;  %v9387_v46 = vunpack.i.h.bf16 %v11900_v54 }
  0xbb   : >> { %v11908_v48 = vpop.permute.xlu1 %9394  ;;  %v9390_v8 = vpop.permute.xlu0 %9389  ;;  %v9708_v60 = vpack.i.bf16 %v9381_v11, %v578_v6 }
  0xbc   : >> { %v9391_v49 = vunpack.i.l.bf16 %v9390_v8  ;;  %v9396_v36 = vunpack.i.l.bf16 %v11908_v48  ;;  %v9392_v39 = vunpack.i.h.bf16 %v9390_v8 }
  0xbd   : >> { %9679 = vrot.lane.b32.xlu0 %v9678_v3, %s11156_s22  ;;  %9684 = vrot.lane.b32.xlu1 %v9683_v51, %s17861_s23 }
  0xbe   : >> { %v714_v0 = vsel %vm540_vm10, %v9386_v12, %v9391_v49  ;;  %v595_v32 = vsel %vm540_vm10, %v9362_v10, %v9392_v39  ;;  %v838_v10 = vsel %vm534_vm8, %v11629_v42, %v17970_v40 }
  0xbf   : >> { %v9405_v1 = vpop.permute.xlu1 %9404  ;;  %v9400_v47 = vpop.permute.xlu0 %9399  ;;  %v9713_v28 = vpack.i.bf16 %v9396_v36, %v714_v0  ;;  %v9728_v2 = vpack.i.bf16 %v9392_v39, %v595_v32 }
  0xc0   : >> { %v9401_v27 = vunpack.i.l.bf16 %v9400_v47  ;;  %v9406_v3 = vunpack.i.l.bf16 %v9405_v1  ;;  %v9402_v15 = vunpack.i.h.bf16 %v9400_v47  ;;  %v9407_v18 = vunpack.i.h.bf16 %v9405_v1 }
  0xc1   : >> { %9689 = vrot.lane.b32.xlu0 %v9688_v43, %s17861_s23  ;;  %9694 = vrot.lane.b32.xlu1 %v9693_v55, %s11158_s24 }
  0xc2   : >> { %v839_v45 = vsel %vm536_vm13, %v9357_v41, %v9401_v27  ;;  %v744_v11 = vsel %vm534_vm8, %v11473_v44, %v9406_v3  ;;  %v745_v49 = vsel %vm536_vm13, %v9406_v3, %v9402_v15 }
  0xc3   : >> { %v11922_v17 = vpop.permute.xlu1 %9414  ;;  %v9410_v24 = vpop.permute.xlu0 %9409  ;;  %v840_v22 = vsel %vm538_vm9, %v839_v45, %v9387_v46 }
  0xc4   : >> { %v9411_v8 = vunpack.i.l.bf16 %v9410_v24  ;;  %v9416_v43 = vunpack.i.l.bf16 %v11922_v17  ;;  %v9417_v1 = vunpack.i.h.bf16 %v11922_v17  ;;  %v9733_v47 = vpack.i.bf16 %v840_v22, %v838_v10 }
  0xc5   : >> { %9699 = vrot.lane.b32.xlu0 %v9698_v23, %s11153_s27  ;;  %9704 = vrot.lane.b32.xlu1 %v11601_v26, %s11155_s19  ;;  %v9718_v26 = vpack.i.bf16 %v11746_v35, %v11540_v56  ;;  %v11160_v56 = vmov 0.0   ;;  %v9412_v45 = vunpack.i.h.bf16 %v9410_v24 }
  0xc6   : >> { %1793 = vmatprep.mubr.f32.mxu0 %v11160_v56  ;;  %2006 = vmatprep.mubr.f32.mxu1 %v11160_v56  ;;  %v864_v34 = vsel %vm536_vm13, %v9407_v18, %v9411_v8 }
  0xc7   : >> { %v11934_v53 = vpop.permute.xlu1 %9424  ;;  %v9420_v58 = vpop.permute.xlu0 %9419 }
  0xc8   : >> { %v9422_v55 = vunpack.i.h.bf16 %v9420_v58  ;;  %v9426_v23 = vunpack.i.l.bf16 %v11934_v53  ;;  %v9421_v36 = vunpack.i.l.bf16 %v9420_v58  ;;  %v9427_v58 = vunpack.i.h.bf16 %v11934_v53 }
  0xc9   : >> { %9709 = vrot.lane.b32.xlu0 %v9708_v60, %s11158_s24  ;;  %9714 = vrot.lane.b32.xlu1 %v9713_v28, %s17864_s28  ;;  %v746_v28 = vsel %vm538_vm9, %v745_v49, %v9416_v43 }
  0xca   : >> { %v863_v44 = vsel %vm534_vm8, %v11650_v21, %v9422_v55  ;;  %v9738_v15 = vpack.i.bf16 %v746_v28, %v744_v11  ;;  %v762_v18 = vsel %vm536_vm13, %v9421_v36, %v9412_v45  ;;  %v761_v22 = vsel %vm534_vm8, %v11515_v63, %v9421_v36 }
  0xcb   : >> { %v11949_v51 = vpop.permute.xlu1 %9434  ;;  %v9430_v4 = vpop.permute.xlu0 %9429  ;;  %v778_v63 = vsel %vm534_vm8, %v11484_v50, %v9427_v58 }
  0xcc   : >> { %v9431_v27 = vunpack.i.l.bf16 %v9430_v4  ;;  %v9436_v39 = vunpack.i.l.bf16 %v11949_v51  ;;  %v9432_v46 = vunpack.i.h.bf16 %v9430_v4  ;;  %v9437_v21 = vunpack.i.h.bf16 %v11949_v51 }
  0xcd   : >> { %9719 = vrot.lane.b32.xlu0 %v9718_v26, %s11153_s27  ;;  %9724 = vrot.lane.b32.xlu1 %v9723_v7, %s17878_s26  ;;  %v865_v26 = vsel %vm538_vm9, %v864_v34, %v9417_v1  ;;  %v9758_v1 = vpack.i.bf16 %v11620_v37, %v11629_v42 }
  0xce   : >> { %v9743_v32 = vpack.i.bf16 %v865_v26, %v863_v44  ;;  %v886_v8 = vsel %vm536_vm13, %v9426_v23, %v9431_v27  ;;  %v763_v24 = vsel %vm538_vm9, %v762_v18, %v9436_v39  ;;  %v779_v4 = vsel %vm536_vm13, %v9427_v58, %v9432_v46 }
  0xcf   : >> { %v9445_v6 = vpop.permute.xlu1 %9444  ;;  %v11966_v0 = vpop.permute.xlu0 %9439  ;;  %v887_v55 = vsel %vm538_vm9, %v886_v8, %v9386_v12  ;;  %v9748_v40 = vpack.i.bf16 %v763_v24, %v761_v22  ;;  %v9397_v23 = vunpack.i.h.bf16 %v11908_v48  ;;  %v9768_v27 = vpack.i.bf16 %v11599_v25, %v11527_v52 }
  0xd0   : >> { %v9441_v60 = vunpack.i.l.bf16 %v11966_v0  ;;  %v9447_v34 = vunpack.i.h.bf16 %v9445_v6  ;;  %v17971_v24 = vpack.i.bf16 %v11635_v20, %v11698_v29 }
  0xd1   : >> { %9729 = vrot.lane.b32.xlu0 %v9728_v2, %s17864_s28  ;;  %9734 = vrot.lane.b32.xlu1 %v9733_v47, %s17861_s23  ;;  %v9446_v47 = vunpack.i.l.bf16 %v9445_v6 }
  0xd2   : >> { %v885_v53 = vsel %vm534_vm8, %v11646_v57, %v9441_v60  ;;  %v780_v57 = vsel %vm538_vm9, %v779_v4, %v9437_v21 }
  0xd3   : >> { %v9455_v7 = vpop.permute.xlu1 %9454  ;;  %v9450_v3 = vpop.permute.xlu0 %9449  ;;  %v9753_v10 = vpack.i.bf16 %v887_v55, %v885_v53  ;;  %v9763_v49 = vpack.i.bf16 %v780_v57, %v778_v63  ;;  %v841_v42 = vsel %vm540_vm10, %v9446_v47, %v9397_v23  ;;  %v9442_v53 = vunpack.i.h.bf16 %v11966_v0 }
  0xd4   : >> { %v9452_v54 = vunpack.i.h.bf16 %v9450_v3  ;;  %v9451_v36 = vunpack.i.l.bf16 %v9450_v3  ;;  %v9456_v37 = vunpack.i.l.bf16 %v9455_v7  ;;  %v9457_v45 = vunpack.i.h.bf16 %v9455_v7 }
  0xd5   : >> { %9739 = vrot.lane.b32.xlu0 %v9738_v15, %s17861_s23  ;;  %9744 = vrot.lane.b32.xlu1 %v9743_v32, %s11158_s24 }
  0xd6   : >> { %v9773_v44 = vpack.i.bf16 %v9452_v54, %v841_v42  ;;  %v747_v48 = vsel %vm540_vm10, %v9416_v43, %v9451_v36  ;;  %v866_v58 = vsel %vm540_vm10, %v9447_v34, %v9456_v37  ;;  %v764_v26 = vsel %vm540_vm10, %v9436_v39, %v9457_v45 }
  0xd7   : >> { %v11994_v2 = vpop.permute.xlu1 %9464  ;;  %v9460_v51 = vpop.permute.xlu0 %9459  ;;  %v9778_v6 = vpack.i.bf16 %v9451_v36, %v747_v48  ;;  %v9793_v18 = vpack.i.bf16 %v9457_v45, %v764_v26  ;;  %v9803_v39 = vpack.i.bf16 %v11632_v30, %v11582_v62 }
  0xd8   : >> { %v9461_v60 = vunpack.i.l.bf16 %v9460_v51  ;;  %v9466_v17 = vunpack.i.l.bf16 %v11994_v2  ;;  %v9462_v43 = vunpack.i.h.bf16 %v9460_v51  ;;  %v9467_v57 = vunpack.i.h.bf16 %v11994_v2 }
  0xd9   : >> { %9749 = vrot.lane.b32.xlu0 %v9748_v40, %s11158_s24  ;;  %9754 = vrot.lane.b32.xlu1 %v9753_v10, %s17864_s28 }
  0xda   : >> { %v9783_v46 = vpack.i.bf16 %v9461_v60, %v866_v58  ;;  %v888_v4 = vsel %vm540_vm10, %v9466_v17, %v9462_v43  ;;  %v1012_v60 = vsel %vm534_vm8, %v11722_v33, %v9357_v41 }
  0xdb   : >> { %v9475_v12 = vpop.permute.xlu1 %9474  ;;  %v9470_v11 = vpop.permute.xlu0 %9469 }
  0xdc   : >> { %v9472_v7 = vunpack.i.h.bf16 %v9470_v11  ;;  %v9471_v3 = vunpack.i.l.bf16 %v9470_v11  ;;  %v9476_v8 = vunpack.i.l.bf16 %v9475_v12  ;;  %v9477_v22 = vunpack.i.h.bf16 %v9475_v12 }
  0xdd   : >> { %9759 = vrot.lane.b32.xlu0 %v9758_v1, %s17878_s26  ;;  %9764 = vrot.lane.b32.xlu1 %v9763_v49, %s17864_s28 }
  0xde   : >> { %v781_v55 = vsel %vm540_vm10, %v9437_v21, %v9471_v3  ;;  %v9798_v51 = vpack.i.bf16 %v9472_v7, %v888_v4  ;;  %v1013_v29 = vsel %vm536_vm13, %v9442_v53, %v9476_v8  ;;  %v9813_v21 = vpack.i.bf16 %v11722_v33, %v11571_v31 }
  0xdf   : >> { %v9485_v50 = vpop.permute.xlu1 %9484  ;;  %v9480_v28 = vpop.permute.xlu0 %9479  ;;  %v9808_v1 = vpack.i.bf16 %v9471_v3, %v781_v55  ;;  %v1014_v36 = vsel %vm538_vm9, %v1013_v29, %v9467_v57  ;;  %v9858_v57 = vpack.i.bf16 %v11677_v19, %v11653_v13 }
  0xe0   : >> { %v9481_v40 = vunpack.i.l.bf16 %v9480_v28  ;;  %v9486_v47 = vunpack.i.l.bf16 %v9485_v50  ;;  %v9482_v63 = vunpack.i.h.bf16 %v9480_v28  ;;  %v9487_v54 = vunpack.i.h.bf16 %v9485_v50 }
  0xe1   : >> { %9769 = vrot.lane.b32.xlu0 %v9768_v27, %s11156_s22  ;;  %9774 = vrot.lane.b32.xlu1 %v9773_v44, %s17861_s23  ;;  %v9818_v44 = vpack.i.bf16 %v1014_v36, %v1012_v60 }
  0xe2   : >> { %v919_v12 = vsel %vm536_vm13, %v9481_v40, %v9477_v22  ;;  %v1038_v50 = vsel %vm536_vm13, %v9482_v63, %v9486_v47  ;;  %v918_v28 = vsel %vm534_vm8, %v11571_v31, %v9481_v40 }
  0xe3   : >> { %v12015_v25 = vpop.permute.xlu1 %9494  ;;  %v12017_v52 = vpop.permute.xlu0 %9489 }
  0xe4   : >> { %v9491_v30 = vunpack.i.l.bf16 %v12017_v52  ;;  %v9496_v11 = vunpack.i.l.bf16 %v12015_v25  ;;  %v9497_v27 = vunpack.i.h.bf16 %v12015_v25  ;;  %v9492_v34 = vunpack.i.h.bf16 %v12017_v52 }
  0xe5   : >> { %9779 = vrot.lane.b32.xlu0 %v9778_v6, %s17861_s23  ;;  %9784 = vrot.lane.b32.xlu1 %v9783_v46, %s11158_s24 }
  0xe6   : >> { %v920_v37 = vsel %vm538_vm9, %v919_v12, %v9491_v30  ;;  %v936_v45 = vsel %vm536_vm13, %v9496_v11, %v9487_v54  ;;  %v1037_v41 = vsel %vm534_vm8, %v11750_v5, %v9497_v27  ;;  %v1039_v6 = vsel %vm538_vm9, %v1038_v50, %v9492_v34  ;;  %v17973_v12 = vld [vmem:[#allocation43_spill] sm:$0xff] }
  0xe7   : >> { %v12023_v15 = vpop.permute.xlu1 %9504  ;;  %v12025_v32 = vpop.permute.xlu0 %9499  ;;  %v9823_v33 = vpack.i.bf16 %v920_v37, %v918_v28  ;;  %v935_v26 = vsel %vm534_vm8, %v11585_v59, %v9496_v11  ;;  %v9828_v8 = vpack.i.bf16 %v1039_v6, %v1037_v41  ;;  %v9843_v59 = vpack.i.bf16 %v11665_v61, %v11812_v38 }
  0xe8   : >> { %v9506_v48 = vunpack.i.l.bf16 %v12023_v15  ;;  %v9501_v58 = vunpack.i.l.bf16 %v12025_v32  ;;  %v9507_v43 = vunpack.i.h.bf16 %v12023_v15  ;;  %v9502_v7 = vunpack.i.h.bf16 %v12025_v32 }
  0xe9   : >> { %9789 = vrot.lane.b32.xlu0 %v17971_v24, %s11155_s19  ;;  %9794 = vrot.lane.b32.xlu1 %v9793_v18, %s11158_s24 }
  0xea   : >> { %v1060_v5 = vsel %vm536_vm13, %v9501_v58, %v9506_v48  ;;  %v953_v32 = vsel %vm536_vm13, %v9502_v7, %v9507_v43  ;;  %v952_v40 = vsel %vm534_vm8, %v11582_v62, %v9502_v7 }
  0xeb   : >> { %v12039_v10 = vpop.permute.xlu1 %9514  ;;  %v12041_v20 = vpop.permute.xlu0 %9509  ;;  %v1061_v15 = vsel %vm538_vm9, %v1060_v5, %v9466_v17 }
  0xec   : >> { %v9511_v42 = vunpack.i.l.bf16 %v12041_v20  ;;  %v9516_v46 = vunpack.i.l.bf16 %v12039_v10  ;;  %v9512_v4 = vunpack.i.h.bf16 %v12041_v20 }
  0xed   : >> { %9799 = vrot.lane.b32.xlu0 %v9798_v51, %s17864_s28  ;;  %9804 = vrot.lane.b32.xlu1 %v9803_v39, %s11153_s27 }
  0xee   : >> { %v937_v31 = vsel %vm538_vm9, %v936_v45, %v9511_v42  ;;  %v1059_v39 = vsel %vm534_vm8, %v11746_v35, %v9516_v46  ;;  %v954_v35 = vsel %vm538_vm9, %v953_v32, %v9512_v4  ;;  %v17974_v46 = vld [vmem:[#allocation49_spill] sm:$0xff] }
  0xef   : >> { %v12054_v49 = vpop.permute.xlu1 %9524  ;;  %v12056_v23 = vpop.permute.xlu0 %9519  ;;  %v9833_v24 = vpack.i.bf16 %v937_v31, %v935_v26  ;;  %v9838_v51 = vpack.i.bf16 %v1061_v15, %v1059_v39  ;;  %v9853_v29 = vpack.i.bf16 %v954_v35, %v952_v40  ;;  %v1186_v31 = vsel %vm534_vm8, %v17974_v46, %v9442_v53 }
  0xf0   : >> { %v9527_v54 = vunpack.i.h.bf16 %v12054_v49 }
  0xf1   : >> { %9809 = vrot.lane.b32.xlu0 %v9808_v1, %s17864_s28  ;;  %9814 = vrot.lane.b32.xlu1 %v9813_v21, %s17878_s26  ;;  %v9526_v21 = vunpack.i.l.bf16 %v12054_v49  ;;  %v9521_v1 = vunpack.i.l.bf16 %v12056_v23 }
  0xf2   : >> { %v921_v49 = vsel %vm540_vm10, %v9491_v30, %v9527_v54 }
  0xf3   : >> { %v12077_v9 = vpop.permute.xlu1 %9534  ;;  %v12079_v25 = vpop.permute.xlu0 %9529  ;;  %v1015_v11 = vsel %vm540_vm10, %v9521_v1, %v9526_v21  ;;  %v9873_v58 = vpack.i.bf16 %v9527_v54, %v921_v49  ;;  %v17975_v1 = vld [vmem:[#allocation50_spill] sm:$0xff] }
  0xf4   : >> { %v9536_v47 = vunpack.i.l.bf16 %v12077_v9  ;;  %v9537_v19 = vunpack.i.h.bf16 %v12077_v9  ;;  %v9531_v27 = vunpack.i.l.bf16 %v12079_v25 }
  0xf5   : >> { %9819 = vrot.lane.b32.xlu0 %v9818_v44, %s17861_s23  ;;  %9824 = vrot.lane.b32.xlu1 %v9823_v33, %s17861_s23  ;;  %v9517_v44 = vunpack.i.h.bf16 %v12039_v10  ;;  %v9532_v10 = vunpack.i.h.bf16 %v12079_v25 }
  0xf6   : >> { %v9868_v36 = vpack.i.bf16 %v9536_v47, %v1015_v11 }
  0xf7   : >> { %v12095_v3 = vpop.permute.xlu1 %9544  ;;  %v12097_v18 = vpop.permute.xlu0 %9539  ;;  %v1187_v52 = vsel %vm536_vm13, %v9517_v44, %v9531_v27 }
  0xf8   : >> { %v9546_v50 = vunpack.i.l.bf16 %v12095_v3  ;;  %v9541_v45 = vunpack.i.l.bf16 %v12097_v18  ;;  %v9547_v53 = vunpack.i.h.bf16 %v12095_v3 }
  0xf9   : >> { %9829 = vrot.lane.b32.xlu0 %v9828_v8, %s11158_s24  ;;  %9834 = vrot.lane.b32.xlu1 %v9833_v24, %s11158_s24 }
  0xfa   : >> { %v1188_v41 = vsel %vm538_vm9, %v1187_v52, %v9546_v50  ;;  %v1093_v26 = vsel %vm536_vm13, %v9541_v45, %v9532_v10  ;;  %v1092_v15 = vsel %vm534_vm8, %v17973_v12, %v9541_v45 }
  0xfb   : >> { %v9555_v22 = vpop.permute.xlu1 %9554  ;;  %v12110_v55 = vpop.permute.xlu0 %9549  ;;  %v9883_v0 = vpack.i.bf16 %v1188_v41, %v1186_v31 }
  0xfc   : >> { %v9557_v34 = vunpack.i.h.bf16 %v9555_v22  ;;  %v9556_v28 = vunpack.i.l.bf16 %v9555_v22  ;;  %v9551_v32 = vunpack.i.l.bf16 %v12110_v55  ;;  %v9552_v54 = vunpack.i.h.bf16 %v12110_v55 }
  0xfd   : >> { %9839 = vrot.lane.b32.xlu0 %v9838_v51, %s17864_s28  ;;  %9844 = vrot.lane.b32.xlu1 %v9843_v59, %s11153_s27  ;;  %v9542_v59 = vunpack.i.h.bf16 %v12097_v18 }
  0xfe   : >> { %v938_v6 = vsel %vm540_vm10, %v9511_v42, %v9556_v28 }
  0xff   : >> { %v12119_v2 = vpop.permute.xlu1 %9564  ;;  %v12121_v17 = vpop.permute.xlu0 %9559  ;;  %v9888_v7 = vpack.i.bf16 %v9556_v28, %v938_v6 }
 0x100   : >> { %v9566_v30 = vunpack.i.l.bf16 %v12119_v2  ;;  %v9562_v43 = vunpack.i.h.bf16 %v12121_v17  ;;  %v9561_v25 = vunpack.i.l.bf16 %v12121_v17  ;;  %v9567_v22 = vunpack.i.h.bf16 %v12119_v2 }
 0x101   : >> { %9849 = vrot.lane.b32.xlu0 %v11826_v16, %s11155_s19  ;;  %9854 = vrot.lane.b32.xlu1 %v9853_v29, %s17864_s28  ;;  %v17972_v16 = vld [vmem:[#allocation46_spill] sm:$0xff] }
 0x102   : >> { %v9863_v13 = vpack.i.bf16 %v17973_v12, %v17972_v16  ;;  %v1094_v42 = vsel %vm538_vm9, %v1093_v26, %v9566_v30  ;;  %v955_v51 = vsel %vm540_vm10, %v9512_v4, %v9562_v43  ;;  %v1062_v3 = vsel %vm540_vm10, %v9547_v53, %v9561_v25 }
 0x103   : >> { %v12131_v62 = vpop.permute.xlu1 %9574  ;;  %v12133_v63 = vpop.permute.xlu0 %9569  ;;  %v9898_v35 = vpack.i.bf16 %v1094_v42, %v1092_v15  ;;  %v1212_v16 = vsel %vm536_vm13, %v9542_v59, %v9551_v32  ;;  %v9908_v12 = vpack.i.bf16 %v9562_v43, %v955_v51 }
 0x104   : >> { %v9572_v39 = vunpack.i.h.bf16 %v12133_v63  ;;  %v9576_v18 = vunpack.i.l.bf16 %v12131_v62  ;;  %v9571_v40 = vunpack.i.l.bf16 %v12133_v63  ;;  %v1213_v63 = vsel %vm538_vm9, %v1212_v16, %v9567_v22 }
 0x105   : >> { %9859 = vrot.lane.b32.xlu0 %v9858_v57, %s11156_s22  ;;  %1136 = vrot.lane.b32.xlu1 %v11734_v14, %s11153_s27  ;;  %v9522_v14 = vunpack.i.h.bf16 %v12056_v23 }
 0x106   : >> { %v1211_v47 = vsel %vm534_vm8, %v17975_v1, %v9572_v39  ;;  %v11161_v39 = vmov 0  }
 0x107   : >> { %v12144_v37 = vpop.permute.xlu1 %9584  ;;  %v12146_v60 = vpop.permute.xlu0 %9579  ;;  %v1040_v48 = vsel %vm540_vm10, %v9522_v14, %v9537_v19  ;;  %v1110_v19 = vsel %vm536_vm13, %v9571_v40, %v9552_v54  ;;  %9958 = vset.pattern.permute.xlu1 %v11161_v39  ;;  %10884 = vset.pattern.permute.xlu0 %v11161_v39 }
 0x108   : >> { %v9878_v9 = vpack.i.bf16 %v9557_v34, %v1040_v48  ;;  %v9586_v5 = vunpack.i.l.bf16 %v12144_v37  ;;  %v9581_v29 = vunpack.i.l.bf16 %v12146_v60  ;;  %v9582_v11 = vunpack.i.h.bf16 %v12146_v60 }
 0x109   : >> { %9864 = vrot.lane.b32.xlu0 %v9863_v13, %s17878_s26  ;;  %9869 = vrot.lane.b32.xlu1 %v9868_v36, %s17861_s23  ;;  %v9577_v13 = vunpack.i.h.bf16 %v12131_v62  ;;  %v9903_v34 = vpack.i.bf16 %v1213_v63, %v1211_v47  ;;  %v17976_v62 = vld [vmem:[#allocation44_spill] sm:$0xff]  ;;  %v9587_v10 = vunpack.i.h.bf16 %v12144_v37  ;;  %v17978_v47 = vld [vmem:[#allocation47_spill] sm:$0xff] }
 0x10a   : >> { %v9893_v17 = vpack.i.bf16 %v9586_v5, %v1062_v3  ;;  %v1234_v36 = vsel %vm536_vm13, %v9576_v18, %v9581_v29  ;;  %v1109_v60 = vsel %vm534_vm8, %v17976_v62, %v9571_v40 }
 0x10b   : >> { %v12160_v23 = vpop.permute.xlu1 %9594  ;;  %v12162_v33 = vpop.permute.xlu0 %9589  ;;  %v1235_v28 = vsel %vm538_vm9, %v1234_v36, %v9547_v53  ;;  %v1127_v44 = vsel %vm536_vm13, %v9577_v13, %v9582_v11  ;;  %v1126_v31 = vsel %vm534_vm8, %v11665_v61, %v9577_v13 }
 0x10c   : >> { %v9596_v20 = vunpack.i.l.bf16 %v12160_v23  ;;  %v9591_v4 = vunpack.i.l.bf16 %v12162_v33  ;;  %v9592_v14 = vunpack.i.h.bf16 %v12162_v33  ;;  %v9597_v61 = vunpack.i.h.bf16 %v12160_v23 }
 0x10d   : >> { %9874 = vrot.lane.b32.xlu0 %v9873_v58, %s17861_s23  ;;  %9879 = vrot.lane.b32.xlu1 %v9878_v9, %s11158_s24 }
 0x10e   : >> { %v1233_v49 = vsel %vm534_vm8, %v11812_v38, %v9596_v20  ;;  %v1111_v50 = vsel %vm538_vm9, %v1110_v19, %v9591_v4  ;;  %v1128_v9 = vsel %vm538_vm9, %v1127_v44, %v9592_v14 }
 0x10f   : >> { %v12182_v8 = vpop.permute.xlu1 %9604  ;;  %v12184_v24 = vpop.permute.xlu0 %9599  ;;  %v9913_v58 = vpack.i.bf16 %v1111_v50, %v1109_v60  ;;  %v9918_v52 = vpack.i.bf16 %v1235_v28, %v1233_v49  ;;  %v9923_v5 = vpack.i.bf16 %v1128_v9, %v1126_v31 }
 0x110   : >> { %v9601_v45 = vunpack.i.l.bf16 %v12184_v24  ;;  %v9606_v41 = vunpack.i.l.bf16 %v12182_v8  ;;  %v9607_v26 = vunpack.i.h.bf16 %v12182_v8 }
 0x111   : >> { %9884 = vrot.lane.b32.xlu0 %v9883_v0, %s17861_s23  ;;  %9889 = vrot.lane.b32.xlu1 %v9888_v7, %s11158_s24  ;;  %v9602_v0 = vunpack.i.h.bf16 %v12184_v24 }
 0x112   : >> { %v1189_v25 = vsel %vm540_vm10, %v9601_v45, %v9587_v10  ;;  %v1095_v8 = vsel %vm540_vm10, %v9566_v30, %v9606_v41 }
 0x113   : >> { %v12202_v57 = vpop.permute.xlu1 %9614  ;;  %v12204_v21 = vpop.permute.xlu0 %9609  ;;  %v9928_v22 = vpack.i.bf16 %v9607_v26, %v1189_v25  ;;  %v9933_v18 = vpack.i.bf16 %v9606_v41, %v1095_v8 }
 0x114   : >> { %v9612_v6 = vunpack.i.h.bf16 %v12204_v21  ;;  %v9611_v43 = vunpack.i.l.bf16 %v12204_v21  ;;  %v9616_v59 = vunpack.i.l.bf16 %v12202_v57  ;;  %v9617_v24 = vunpack.i.h.bf16 %v12202_v57 }
 0x115   : >> { %9894 = vrot.lane.b32.xlu0 %v9893_v17, %s17864_s28  ;;  %9899 = vrot.lane.b32.xlu1 %v9898_v35, %s17861_s23  ;;  %v17977_v17 = vld [vmem:[#allocation41_spill] sm:$0xff] }
 0x116   : >> { %v1112_v15 = vsel %vm540_vm10, %v9591_v4, %v9612_v6  ;;  %v1214_v32 = vsel %vm540_vm10, %v9602_v0, %v9611_v43 }
 0x117   : >> { %v12219_v27 = vpop.permute.xlu1 %9624  ;;  %v12221_v55 = vpop.permute.xlu0 %9619  ;;  %v9943_v40 = vpack.i.bf16 %v9612_v6, %v1112_v15  ;;  %v9938_v20 = vpack.i.bf16 %v9616_v59, %v1214_v32  ;;  %v17979_v59 = vld [vmem:[#allocation4_spill] sm:$0xff] }
 0x118   : >> { %v9621_v23 = vunpack.i.l.bf16 %v12221_v55  ;;  %v9627_v57 = vunpack.i.h.bf16 %v12219_v27  ;;  %v9626_v4 = vunpack.i.l.bf16 %v12219_v27 }
 0x119   : >> { %9904 = vrot.lane.b32.xlu0 %v9903_v34, %s11158_s24  ;;  %9909 = vrot.lane.b32.xlu1 %v9908_v12, %s17864_s28 }
 0x11a   : >> { %v1236_v12 = vsel %vm540_vm10, %v9621_v23, %v9617_v24  ;;  %v1129_v45 = vsel %vm540_vm10, %v9592_v14, %v9626_v4 }
 0x11b   : >> { %v12234_v48 = vpop.permute.xlu1 %9634  ;;  %v12236_v38 = vpop.permute.xlu0 %9629  ;;  %v9948_v26 = vpack.i.bf16 %v9627_v57, %v1236_v12 }
 0x11c   : >> { %v9631_v7 = vunpack.i.l.bf16 %v12236_v38  ;;  %v9637_v53 = vunpack.i.h.bf16 %v12234_v48  ;;  %v9636_v54 = vunpack.i.l.bf16 %v12234_v48  ;;  %v9632_v16 = vunpack.i.h.bf16 %v12236_v38 }
 0x11d   : >> { %9914 = vrot.lane.b32.xlu0 %v9913_v58, %s11158_s24  ;;  %9919 = vrot.lane.b32.xlu1 %v9918_v52, %s17864_s28  ;;  %v11130_v52 = vld [vmem:[%s11466_s21] sm:$0xff] }
 0x11e   : >> { %v631_v2 = vsel %vm536_vm13, %v9597_v61, %v9631_v7  ;;  %v630_v29 = vsel %vm534_vm8, %v17977_v17, %v9637_v53  ;;  %v537_v48 = vsel %vm536_vm13, %v9636_v54, %v9632_v16  ;;  %v535_v9 = vsel %vm534_vm8, %v11130_v52, %v9636_v54 }
 0x11f   : >> { %v12252_v37 = vpop.permute.xlu0 %9639  ;;  %v9645_v42 = vpop.permute.xlu1 %9644  ;;  %v9953_v53 = vpack.i.bf16 %v9626_v4, %v1129_v45 }
 0x120   : >> { %v9647_v30 = vunpack.i.h.bf16 %v9645_v42  ;;  %v9646_v51 = vunpack.i.l.bf16 %v9645_v42  ;;  %v9641_v13 = vunpack.i.l.bf16 %v12252_v37 }
 0x121   : >> { %1151 = vrot.lane.b32.xlu0 %v17974_v46, %s17878_s26  ;;  %9924 = vrot.lane.b32.xlu1 %v9923_v5, %s17864_s28  ;;  %v9622_v46 = vunpack.i.h.bf16 %v12221_v55 }
 0x122   : >> { %v1432_v36 = vsel %vm17906_vm15, %v630_v29, %v9646_v51  ;;  %v539_v10 = vsel %vm538_vm9, %v537_v48, %v9641_v13 }
 0x123   : >> { %v9650_v3 = vpop.permute.xlu0 %9649  ;;  %v9655_v35 = vpop.permute.xlu1 %9654  ;;  %v632_v63 = vsel %vm538_vm9, %v631_v2, %v9622_v46 }
 0x124   : >> { %v9657_v21 = vunpack.i.h.bf16 %v9655_v35  ;;  %v9656_v1 = vunpack.i.l.bf16 %v9655_v35  ;;  %v1433_v55 = vsel %vm17906_vm15, %v632_v63, %v9647_v30  ;;  %v9652_v34 = vunpack.i.h.bf16 %v9650_v3 }
 0x125   : >> { %1155 = vrot.lane.b32.xlu0 %v17978_v47, %s11156_s22  ;;  %9929 = vrot.lane.b32.xlu1 %v9928_v22, %s17861_s23  ;;  %v9651_v49 = vunpack.i.l.bf16 %v9650_v3  ;;  %v9642_v3 = vunpack.i.h.bf16 %v12252_v37 }
 0x126   : >> { %v1436_v28 = vsel %vm17900_vm0, %v1432_v36, %v9656_v1  ;;  %v1437_v44 = vsel %vm17900_vm0, %v1433_v55, %v9657_v21  ;;  %v1419_v25 = vsel %vm17906_vm15, %v539_v10, %v9652_v34 }
 0x127   : >> { %v9660_v19 = vpop.permute.xlu0 %9659  ;;  %v9665_v11 = vpop.permute.xlu1 %9664  ;;  %v1418_v14 = vsel %vm17906_vm15, %v535_v9, %v9651_v49 }
 0x128   : >> { %v9667_v27 = vunpack.i.h.bf16 %v9665_v11  ;;  %v9666_v50 = vunpack.i.l.bf16 %v9665_v11  ;;  %v9662_v62 = vunpack.i.h.bf16 %v9660_v19  ;;  %v9661_v60 = vunpack.i.l.bf16 %v9660_v19 }
 0x129   : >> { %9934 = vrot.lane.b32.xlu0 %v9933_v18, %s17861_s23  ;;  %9939 = vrot.lane.b32.xlu1 %v9938_v20, %s11158_s24  ;;  %s11172_s23 = smov 108  }
 0x12a   : >> { %v1440_v38 = vsel %vm1427_vm1, %v1436_v28, %v9666_v50  ;;  %v1441_v58 = vsel %vm1427_vm1, %v1437_v44, %v9667_v27  ;;  %v1423_v7 = vsel %vm17900_vm0, %v1418_v14, %v9661_v60  ;;  %v1424_v42 = vsel %vm17900_vm0, %v1419_v25, %v9662_v62 }
 0x12b   : >> { %v9670_v41 = vpop.permute.xlu0 %9669  ;;  %v9675_v6 = vpop.permute.xlu1 %9674  ;;  %v8220_v31 = vpack.c.bf16 %v1441_v58, %v1440_v38 }
 0x12c   : >> { %v9677_v33 = vunpack.i.h.bf16 %v9675_v6  ;;  %v9676_v43 = vunpack.i.l.bf16 %v9675_v6  ;;  %v9671_v32 = vunpack.i.l.bf16 %v9670_v41  ;;  %v9672_v63 = vunpack.i.h.bf16 %v9670_v41 }
 0x12d   : >> { %9944 = vrot.lane.b32.xlu0 %v9943_v40, %s11158_s24  ;;  %8221 = vmatprep.subr.bf16.mxu0 %v8220_v31 }
 0x12e   : >> { %9949 = vrot.lane.b32.xlu1 %v9948_v26, %s17864_s28  ;;  %v1428_v5 = vsel %vm1427_vm1, %v1423_v7, %v9676_v43  ;;  %v1429_v0 = vsel %vm1427_vm1, %v1424_v42, %v9677_v33  ;;  %v633_v40 = vsel %vm540_vm10, %v9642_v3, %v9671_v32  ;;  %v541_v27 = vsel %vm540_vm10, %v9641_v13, %v9672_v63  ;;  %v17983_v3 = vld [vmem:[#allocation3_spill] sm:$0xff] }
 0x12f   : >> { %v12307_v39 = vpop.permute.xlu0 %9679  ;;  %v9685_v61 = vpop.permute.xlu1 %9684  ;;  %v8222_v8 = vpack.c.bf16 %v1429_v0, %v1428_v5  ;;  %v17982_v5 = vld [vmem:[#allocation42_spill] sm:$0xff] }
 0x130   : >> { %v9681_v2 = vunpack.i.l.bf16 %v12307_v39  ;;  %v9687_v30 = vunpack.i.h.bf16 %v9685_v61  ;;  %v9686_v51 = vunpack.i.l.bf16 %v9685_v61 }
 0x131   : >> { %9954 = vrot.lane.b32.xlu0 %v9953_v53, %s17864_s28  ;;  %8223 = vmatpush1.bf16.msra.mxu0 %v8222_v8 }
 0x132   : >> { %1698 = vperm.xlu1 %9958, %v17979_v59   ;;  %v1435_v29 = vsel %vm17906_vm15, %v9681_v2, %v9687_v30  ;;  %v1434_v57 = vsel %vm17906_vm15, %v633_v40, %v9686_v51 }
 0x133   : >> { %v9690_v15 = vpop.permute.xlu0 %9689  ;;  %v9695_v24 = vpop.permute.xlu1 %9694 }
 0x134   : >> { %v9697_v35 = vunpack.i.h.bf16 %v9695_v24  ;;  %v9696_v18 = vunpack.i.l.bf16 %v9695_v24  ;;  %v9692_v36 = vunpack.i.h.bf16 %v9690_v15  ;;  %v9691_v55 = vunpack.i.l.bf16 %v9690_v15 }
 0x136   : >> { %v1438_v47 = vsel %vm17900_vm0, %v1434_v57, %v9696_v18  ;;  %v1439_v20 = vsel %vm17900_vm0, %v1435_v29, %v9697_v35  ;;  %v1420_v60 = vsel %vm17906_vm15, %v541_v27, %v9691_v55  ;;  %v1421_v28 = vsel %vm17906_vm15, %v9672_v63, %v9692_v36  ;;  %v11131_v57 = vld [vmem:[%s11466_s21 + $0x8] sm:$0xff] }
 0x137   : >> { %v12311_v22 = vpop.permute.xlu0 %9699  ;;  %v12313_v23 = vpop.permute.xlu1 %9704 }
 0x138   : >> { %v9701_v48 = vunpack.i.l.bf16 %v12311_v22  ;;  %v9706_v38 = vunpack.i.l.bf16 %v12313_v23  ;;  %v9702_v7 = vunpack.i.h.bf16 %v12311_v22  ;;  %v9707_v42 = vunpack.i.h.bf16 %v12313_v23 }
 0x13a   : >> { %v811_v43 = vsel %vm536_vm13, %v9701_v48, %v9706_v38 }
 0x13b   : >> { %v9710_v46 = vpop.permute.xlu0 %9709  ;;  %v9715_v17 = vpop.permute.xlu1 %9714 }
 0x13c   : >> { %v9717_v21 = vunpack.i.h.bf16 %v9715_v17  ;;  %v9716_v1 = vunpack.i.l.bf16 %v9715_v17  ;;  %v9712_v34 = vunpack.i.h.bf16 %v9710_v46  ;;  %v9711_v49 = vunpack.i.l.bf16 %v9710_v46 }
 0x13d   : >> { %v728_v46 = vsel %vm536_vm13, %v9702_v7, %v9707_v42 }
 0x13e   : >> { %v1442_v4 = vsel %vm1427_vm1, %v1438_v47, %v9716_v1  ;;  %v1443_v54 = vsel %vm1427_vm1, %v1439_v20, %v9717_v21  ;;  %v1425_v58 = vsel %vm17900_vm0, %v1420_v60, %v9711_v49  ;;  %v1426_v52 = vsel %vm17900_vm0, %v1421_v28, %v9712_v34 }
 0x13f   : >> { %v12331_v12 = vpop.permute.xlu0 %9719  ;;  %v12333_v19 = vpop.permute.xlu1 %9724  ;;  %v8224_v11 = vpack.c.bf16 %v1443_v54, %v1442_v4  ;;  %v727_v21 = vsel %vm534_vm8, %v11131_v57, %v9702_v7 }
 0x140   : >> { %v9721_v37 = vunpack.i.l.bf16 %v12331_v12  ;;  %v9726_v13 = vunpack.i.l.bf16 %v12333_v19  ;;  %v9727_v61 = vunpack.i.h.bf16 %v12333_v19 }
 0x141   : >> { %8226 = vmatprep.subr.msk.bf16.mxu0 %vm12327_vm6, %v8224_v11 }
 0x142   : >> { %v810_v0 = vsel %vm534_vm8, %v17982_v5, %v9721_v37  ;;  %v812_v53 = vsel %vm538_vm9, %v811_v43, %v9726_v13  ;;  %v729_v1 = vsel %vm538_vm9, %v728_v46, %v9727_v61 }
 0x143   : >> { %v9730_v50 = vpop.permute.xlu0 %9729  ;;  %v9735_v62 = vpop.permute.xlu1 %9734 }
 0x144   : >> { %v9732_v44 = vunpack.i.h.bf16 %v9730_v50  ;;  %v9731_v45 = vunpack.i.l.bf16 %v9730_v50  ;;  %v9737_v41 = vunpack.i.h.bf16 %v9735_v62  ;;  %v9736_v6 = vunpack.i.l.bf16 %v9735_v62 }
 0x146   : >> { %v1430_v9 = vsel %vm1427_vm1, %v1425_v58, %v9731_v45  ;;  %v1431_v10 = vsel %vm1427_vm1, %v1426_v52, %v9732_v44  ;;  %v1456_v8 = vsel %vm17906_vm15, %v810_v0, %v9736_v6  ;;  %v1457_v59 = vsel %vm17906_vm15, %v812_v53, %v9737_v41 }
 0x147   : >> { %v9740_v31 = vpop.permute.xlu0 %9739  ;;  %v9745_v26 = vpop.permute.xlu1 %9744  ;;  %v8227_v33 = vpack.c.bf16 %v1431_v10, %v1430_v9  ;;  %v9682_v41 = vunpack.i.h.bf16 %v12307_v39 }
 0x148   : >> { %v9747_v14 = vunpack.i.h.bf16 %v9745_v26  ;;  %v9746_v25 = vunpack.i.l.bf16 %v9745_v26  ;;  %v9742_v32 = vunpack.i.h.bf16 %v9740_v31  ;;  %v9741_v30 = vunpack.i.l.bf16 %v9740_v31 }
 0x149   : >> { %8229 = vmatpush1.bf16.msk.msra.mxu0 %vm12327_vm6, %v8227_v33 }
 0x14a   : >> { %v1460_v18 = vsel %vm17900_vm0, %v1456_v8, %v9746_v25  ;;  %v1461_v40 = vsel %vm17900_vm0, %v1457_v59, %v9747_v14  ;;  %v1444_v54 = vsel %vm17906_vm15, %v727_v21, %v9741_v30  ;;  %v1445_v63 = vsel %vm17906_vm15, %v729_v1, %v9742_v32 }
 0x14b   : >> { %v9750_v15 = vpop.permute.xlu0 %9749  ;;  %v9755_v24 = vpop.permute.xlu1 %9754  ;;  %v730_v8 = vsel %vm540_vm10, %v9727_v61, %v9682_v41 }
 0x14c   : >> { %v9757_v51 = vunpack.i.h.bf16 %v9755_v24  ;;  %v9756_v22 = vunpack.i.l.bf16 %v9755_v24  ;;  %7728 = vmatmul.mubr.msk.f32.vlgmr.msra.gmra.mrb[0].mxu0 %vm1701_vm7, %v17983_v3  ;;  %v9752_v23 = vunpack.i.h.bf16 %v9750_v15  ;;  %v9751_v35 = vunpack.i.l.bf16 %v9750_v15 }
 0x14d   : >> { %1864 = vmatprep.mubr.f32.mxu0 %v11160_v56 }
 0x14e   : >> { %v1464_v17 = vsel %vm1427_vm1, %v1460_v18, %v9756_v22  ;;  %v1465_v29 = vsel %vm1427_vm1, %v1461_v40, %v9757_v51  ;;  %v1448_v55 = vsel %vm17900_vm0, %v1444_v54, %v9751_v35  ;;  %v1449_v34 = vsel %vm17900_vm0, %v1445_v63, %v9752_v23 }
 0x14f   : >> { %v12374_v47 = vpop.permute.xlu0 %9759  ;;  %v9765_v20 = vpop.permute.xlu1 %9764  ;;  %v8230_v4 = vpack.c.bf16 %v1465_v29, %v1464_v17  ;;  %v9722_v29 = vunpack.i.h.bf16 %v12331_v12 }
 0x150   : >> { %v9767_v11 = vunpack.i.h.bf16 %v9765_v20  ;;  %v9766_v36 = vunpack.i.l.bf16 %v9765_v20  ;;  %v9761_v45 = vunpack.i.l.bf16 %v12374_v47 }
 0x151   : >> { %8231 = vmatprep.subr.bf16.mxu0 %v8230_v4  ;;  %v9762_v4 = vunpack.i.h.bf16 %v12374_v47 }
 0x152   : >> { %v1452_v49 = vsel %vm1427_vm1, %v1448_v55, %v9766_v36  ;;  %v1453_v27 = vsel %vm1427_vm1, %v1449_v34, %v9767_v11  ;;  %v813_v10 = vsel %vm540_vm10, %v9761_v45, %v9681_v2 }
 0x153   : >> { %v12382_v50 = vpop.permute.xlu0 %9769  ;;  %v9775_v62 = vpop.permute.xlu1 %9774  ;;  %v8232_v60 = vpack.c.bf16 %v1453_v27, %v1452_v49  ;;  %v17984_v49 = vld [vmem:[#allocation45_spill] sm:$0xff] }
 0x154   : >> { %v9771_v48 = vunpack.i.l.bf16 %v12382_v50  ;;  %v9777_v38 = vunpack.i.h.bf16 %v9775_v62  ;;  %v9776_v58 = vunpack.i.l.bf16 %v9775_v62 }
 0x155   : >> { %8233 = vmatpush1.bf16.msra.mxu0 %v8232_v60 }
 0x156   : >> { %v1459_v6 = vsel %vm17906_vm15, %v9771_v48, %v9777_v38  ;;  %v1458_v31 = vsel %vm17906_vm15, %v813_v10, %v9776_v58 }
 0x157   : >> { %v9780_v28 = vpop.permute.xlu0 %9779  ;;  %v9785_v44 = vpop.permute.xlu1 %9784 }
 0x158   : >> { %v9787_v13 = vunpack.i.h.bf16 %v9785_v44  ;;  %v9786_v9 = vunpack.i.l.bf16 %v9785_v44  ;;  %v9782_v43 = vunpack.i.h.bf16 %v9780_v28  ;;  %v9781_v14 = vunpack.i.l.bf16 %v9780_v28 }
 0x15a   : >> { %v1462_v42 = vsel %vm17900_vm0, %v1458_v31, %v9786_v9  ;;  %v1463_v5 = vsel %vm17900_vm0, %v1459_v6, %v9787_v13  ;;  %v1446_v32 = vsel %vm17906_vm15, %v730_v8, %v9781_v14  ;;  %v1447_v30 = vsel %vm17906_vm15, %v9682_v41, %v9782_v43  ;;  %v11132_v31 = vld [vmem:[%s11466_s21 + $0x10] sm:$0xff] }
 0x15b   : >> { %v12386_v52 = vpop.permute.xlu0 %9789  ;;  %v9795_v37 = vpop.permute.xlu1 %9794 }
 0x15c   : >> { %v9797_v2 = vunpack.i.h.bf16 %v9795_v37  ;;  %v9796_v0 = vunpack.i.l.bf16 %v9795_v37  ;;  %v9791_v18 = vunpack.i.l.bf16 %v12386_v52  ;;  %v9792_v12 = vunpack.i.h.bf16 %v12386_v52 }
 0x15e   : >> { %v1451_v23 = vsel %vm17900_vm0, %v1447_v30, %v9797_v2  ;;  %v1450_v35 = vsel %vm17900_vm0, %v1446_v32, %v9796_v0  ;;  %v985_v57 = vsel %vm536_vm13, %v9722_v29, %v9791_v18 }
 0x15f   : >> { %v9800_v26 = vpop.permute.xlu0 %9799  ;;  %v12396_v33 = vpop.permute.xlu1 %9804  ;;  %v986_v34 = vsel %vm538_vm9, %v985_v57, %v9762_v4 }
 0x160   : >> { %v9802_v25 = vunpack.i.h.bf16 %v9800_v26  ;;  %v9801_v7 = vunpack.i.l.bf16 %v9800_v26  ;;  %v9807_v21 = vunpack.i.h.bf16 %v12396_v33  ;;  %v9806_v55 = vunpack.i.l.bf16 %v12396_v33 }
 0x162   : >> { %v1466_v39 = vsel %vm1427_vm1, %v1462_v42, %v9801_v7  ;;  %v1467_v53 = vsel %vm1427_vm1, %v1463_v5, %v9802_v25  ;;  %v984_v27 = vsel %vm534_vm8, %v17984_v49, %v9807_v21  ;;  %v902_v10 = vsel %vm536_vm13, %v9806_v55, %v9792_v12 }
 0x163   : >> { %v9810_v59 = vpop.permute.xlu0 %9809  ;;  %v12405_v15 = vpop.permute.xlu1 %9814  ;;  %v8234_v24 = vpack.c.bf16 %v1467_v53, %v1466_v39  ;;  %v901_v26 = vsel %vm534_vm8, %v11132_v31, %v9806_v55 }
 0x164   : >> { %v9812_v51 = vunpack.i.h.bf16 %v9810_v59  ;;  %v9811_v22 = vunpack.i.l.bf16 %v9810_v59  ;;  %v9816_v47 = vunpack.i.l.bf16 %v12405_v15 }
 0x165   : >> { %8236 = vmatprep.subr.msk.bf16.mxu0 %vm12327_vm6, %v8234_v24 }
 0x166   : >> { %v1454_v19 = vsel %vm1427_vm1, %v1450_v35, %v9811_v22  ;;  %v1455_v61 = vsel %vm1427_vm1, %v1451_v23, %v9812_v51  ;;  %v903_v33 = vsel %vm538_vm9, %v902_v10, %v9816_v47  ;;  %v9817_v35 = vunpack.i.h.bf16 %v12405_v15 }
 0x167   : >> { %v8237_v40 = vpack.c.bf16 %v1455_v61, %v1454_v19  ;;  %v9820_v46 = vpop.permute.xlu0 %9819  ;;  %v9825_v17 = vpop.permute.xlu1 %9824 }
 0x168   : >> { %v9822_v54 = vunpack.i.h.bf16 %v9820_v46  ;;  %v9821_v63 = vunpack.i.l.bf16 %v9820_v46  ;;  %v9827_v62 = vunpack.i.h.bf16 %v9825_v17  ;;  %v9826_v60 = vunpack.i.l.bf16 %v9825_v17 }
 0x169   : >> { %8239 = vmatpush1.bf16.msk.msra.mxu0 %vm12327_vm6, %v8237_v40  ;;  %v9772_v46 = vunpack.i.h.bf16 %v12382_v50  ;;  %v987_v21 = vsel %vm540_vm10, %v9817_v35, %v9771_v48 }
 0x16a   : >> { %v1660_v45 = vsel %vm17906_vm15, %v984_v27, %v9821_v63  ;;  %v1648_v7 = vsel %vm17906_vm15, %v901_v26, %v9826_v60  ;;  %v1649_v42 = vsel %vm17906_vm15, %v903_v33, %v9827_v62 }
 0x16b   : >> { %v9830_v1 = vpop.permute.xlu0 %9829  ;;  %v9835_v20 = vpop.permute.xlu1 %9834 }
 0x16c   : >> { %7731 = vmatmul.mubr.msk.f32.vlgmr.msra.gmra.mrb[2].mxu0 %vm1701_vm7, %v17983_v3  ;;  %v9832_v11 = vunpack.i.h.bf16 %v9830_v1  ;;  %v9831_v36 = vunpack.i.l.bf16 %v9830_v1  ;;  %v9837_v52 = vunpack.i.h.bf16 %v9835_v20  ;;  %v9836_v37 = vunpack.i.l.bf16 %v9835_v20 }
 0x16d   : >> { %1935 = vmatprep.mubr.f32.mxu0 %v11160_v56  ;;  %v1661_v56 = vsel %vm17906_vm15, %v986_v34, %v9822_v54  ;;  %v904_v1 = vsel %vm540_vm10, %v9816_v47, %v9772_v46 }
 0x16e   : >> { %v1664_v13 = vsel %vm17900_vm0, %v1660_v45, %v9831_v36  ;;  %v1665_v9 = vsel %vm17900_vm0, %v1661_v56, %v9832_v11  ;;  %v1652_v0 = vsel %vm17900_vm0, %v1648_v7, %v9836_v37  ;;  %v1653_v39 = vsel %vm17900_vm0, %v1649_v42, %v9837_v52 }
 0x16f   : >> { %v9840_v28 = vpop.permute.xlu0 %9839  ;;  %v12431_v44 = vpop.permute.xlu1 %9844 }
 0x170   : >> { %v9842_v38 = vunpack.i.h.bf16 %v9840_v28  ;;  %v9841_v58 = vunpack.i.l.bf16 %v9840_v28  ;;  %v9847_v20 = vunpack.i.h.bf16 %v12431_v44  ;;  %v9846_v15 = vunpack.i.l.bf16 %v12431_v44 }
 0x172   : >> { %v1668_v41 = vsel %vm1427_vm1, %v1664_v13, %v9841_v58  ;;  %v1669_v6 = vsel %vm1427_vm1, %v1665_v9, %v9842_v38 }
 0x173   : >> { %v12443_v43 = vpop.permute.xlu0 %9849  ;;  %v9855_v14 = vpop.permute.xlu1 %9854  ;;  %v8240_v25 = vpack.c.bf16 %v1669_v6, %v1668_v41 }
 0x174   : >> { %v9857_v5 = vunpack.i.h.bf16 %v9855_v14  ;;  %v9856_v2 = vunpack.i.l.bf16 %v9855_v14  ;;  %v9851_v4 = vunpack.i.l.bf16 %v12443_v43  ;;  %v9852_v62 = vunpack.i.h.bf16 %v12443_v43  ;;  %v17985_v43 = vld [vmem:[#allocation48_spill] sm:$0xff] }
 0x175   : >> { %8241 = vmatprep.subr.bf16.mxu0 %v8240_v25 }
 0x176   : >> { %v1656_v53 = vsel %vm1427_vm1, %v1652_v0, %v9856_v2  ;;  %v1657_v8 = vsel %vm1427_vm1, %v1653_v39, %v9857_v5  ;;  %v1159_v45 = vsel %vm536_vm13, %v9846_v15, %v9851_v4 }
 0x177   : >> { %v12451_v59 = vpop.permute.xlu0 %9859  ;;  %v1137_v24 = vpop.permute.xlu1 %1136  ;;  %v8242_v32 = vpack.c.bf16 %v1657_v8, %v1656_v53 }
 0x178   : >> { %v9861_v17 = vunpack.i.l.bf16 %v12451_v59  ;;  %v1158_v14 = vsel %vm534_vm8, %v17985_v43, %v1137_v24 }
 0x179   : >> { %8243 = vmatpush1.bf16.msra.mxu0 %v8242_v32 }
 0x17b   : >> { %v12453_v30 = vpop.permute.xlu0 %9864  ;;  %v9870_v51 = vpop.permute.xlu1 %9869 }
 0x17c   : >> { %v9872_v19 = vunpack.i.h.bf16 %v9870_v51  ;;  %v9871_v61 = vunpack.i.l.bf16 %v9870_v51  ;;  %v9866_v60 = vunpack.i.l.bf16 %v12453_v30  ;;  %v9867_v5 = vunpack.i.h.bf16 %v12453_v30 }
 0x17e   : >> { %v1663_v54 = vsel %vm17906_vm15, %v9861_v17, %v9872_v19  ;;  %v1662_v63 = vsel %vm17906_vm15, %v987_v21, %v9871_v61  ;;  %v1160_v42 = vsel %vm538_vm9, %v1159_v45, %v9866_v60  ;;  %v1076_v61 = vsel %vm536_vm13, %v9847_v20, %v9852_v62 }
 0x17f   : >> { %v9875_v22 = vpop.permute.xlu0 %9874  ;;  %v9880_v23 = vpop.permute.xlu1 %9879 }
 0x180   : >> { %v9882_v29 = vunpack.i.h.bf16 %v9880_v23  ;;  %v9881_v57 = vunpack.i.l.bf16 %v9880_v23  ;;  %v9877_v12 = vunpack.i.h.bf16 %v9875_v22  ;;  %v9876_v50 = vunpack.i.l.bf16 %v9875_v22 }
 0x182   : >> { %v1666_v34 = vsel %vm17900_vm0, %v1662_v63, %v9881_v57  ;;  %v1667_v49 = vsel %vm17900_vm0, %v1663_v54, %v9882_v29  ;;  %v1650_v13 = vsel %vm17906_vm15, %v904_v1, %v9876_v50  ;;  %v1651_v9 = vsel %vm17906_vm15, %v9772_v46, %v9877_v12  ;;  %v11133_v46 = vld [vmem:[%s11466_s21 + $0x18] sm:$0xff]  ;;  %s11170_s21 = smov 72  }
 0x183   : >> { %v9885_v18 = vpop.permute.xlu0 %9884  ;;  %v9890_v40 = vpop.permute.xlu1 %9889  ;;  %v1075_v29 = vsel %vm534_vm8, %v11133_v46, %v9847_v20  ;;  %v1077_v57 = vsel %vm538_vm9, %v1076_v61, %v9867_v5 }
 0x184   : >> { %v9892_v27 = vunpack.i.h.bf16 %v9890_v40  ;;  %v9891_v47 = vunpack.i.l.bf16 %v9890_v40  ;;  %v9887_v56 = vunpack.i.h.bf16 %v9885_v18  ;;  %v9886_v38 = vunpack.i.l.bf16 %v9885_v18 }
 0x186   : >> { %v1655_v6 = vsel %vm17900_vm0, %v1651_v9, %v9892_v27  ;;  %v1654_v31 = vsel %vm17900_vm0, %v1650_v13, %v9891_v47  ;;  %v1684_v53 = vsel %vm17906_vm15, %v1158_v14, %v9886_v38  ;;  %v1685_v8 = vsel %vm17906_vm15, %v1160_v42, %v9887_v56 }
 0x187   : >> { %v9895_v11 = vpop.permute.xlu0 %9894  ;;  %v9900_v36 = vpop.permute.xlu1 %9899  ;;  %v9862_v38 = vunpack.i.h.bf16 %v12451_v59 }
 0x188   : >> { %v9897_v55 = vunpack.i.h.bf16 %v9895_v11  ;;  %v9896_v48 = vunpack.i.l.bf16 %v9895_v11  ;;  %v9902_v32 = vunpack.i.h.bf16 %v9900_v36  ;;  %v9901_v51 = vunpack.i.l.bf16 %v9900_v36 }
 0x18a   : >> { %v1670_v28 = vsel %vm1427_vm1, %v1666_v34, %v9896_v48  ;;  %v1671_v44 = vsel %vm1427_vm1, %v1667_v49, %v9897_v55  ;;  %v1672_v63 = vsel %vm17906_vm15, %v1075_v29, %v9901_v51  ;;  %v1673_v11 = vsel %vm17906_vm15, %v1077_v57, %v9902_v32 }
 0x18b   : >> { %v9905_v58 = vpop.permute.xlu0 %9904  ;;  %v9910_v52 = vpop.permute.xlu1 %9909  ;;  %v8244_v37 = vpack.c.bf16 %v1671_v44, %v1670_v28 }
 0x18c   : >> { %v9912_v10 = vunpack.i.h.bf16 %v9910_v52  ;;  %v9911_v41 = vunpack.i.l.bf16 %v9910_v52  ;;  %v9907_v26 = vunpack.i.h.bf16 %v9905_v58  ;;  %v9906_v33 = vunpack.i.l.bf16 %v9905_v58 }
 0x18d   : >> { %8246 = vmatprep.subr.msk.bf16.mxu0 %vm12327_vm6, %v8244_v37 }
 0x18e   : >> { %v1658_v25 = vsel %vm1427_vm1, %v1654_v31, %v9911_v41  ;;  %v1659_v7 = vsel %vm1427_vm1, %v1655_v6, %v9912_v10  ;;  %v1688_v19 = vsel %vm17900_vm0, %v1684_v53, %v9906_v33  ;;  %v1689_v30 = vsel %vm17900_vm0, %v1685_v8, %v9907_v26 }
 0x18f   : >> { %v8247_v2 = vpack.c.bf16 %v1659_v7, %v1658_v25  ;;  %v9915_v0 = vpop.permute.xlu0 %9914  ;;  %v9920_v39 = vpop.permute.xlu1 %9919  ;;  %v1078_v31 = vsel %vm540_vm10, %v9867_v5, %v9862_v38 }
 0x190   : >> { %v9922_v22 = vunpack.i.h.bf16 %v9920_v39  ;;  %v9921_v24 = vunpack.i.l.bf16 %v9920_v39  ;;  %v9917_v23 = vunpack.i.h.bf16 %v9915_v0  ;;  %v9916_v35 = vunpack.i.l.bf16 %v9915_v0 }
 0x191   : >> { %8249 = vmatpush1.bf16.msk.msra.mxu0 %vm12327_vm6, %v8247_v2 }
 0x192   : >> { %v1692_v18 = vsel %vm1427_vm1, %v1688_v19, %v9921_v24  ;;  %v1693_v40 = vsel %vm1427_vm1, %v1689_v30, %v9922_v22  ;;  %v1676_v36 = vsel %vm17900_vm0, %v1672_v63, %v9916_v35  ;;  %v1677_v12 = vsel %vm17900_vm0, %v1673_v11, %v9917_v23 }
 0x193   : >> { %v1152_v21 = vpop.permute.xlu0 %1151  ;;  %v9925_v1 = vpop.permute.xlu1 %9924  ;;  %v8250_v15 = vpack.c.bf16 %v1693_v40, %v1692_v18 }
 0x194   : >> { %v9927_v4 = vunpack.i.h.bf16 %v9925_v1  ;;  %v9926_v54 = vunpack.i.l.bf16 %v9925_v1  ;;  %7734 = vmatmul.mubr.msk.f32.vlgmr.msra.gmra.mrb[4].mxu0 %vm1701_vm7, %v17983_v3  ;;  %v1161_v44 = vsel %vm540_vm10, %v1152_v21, %v9861_v17 }
 0x195   : >> { %8251 = vmatprep.subr.bf16.mxu1 %v8250_v15 }
 0x196   : >> { %v1680_v20 = vsel %vm1427_vm1, %v1676_v36, %v9926_v54  ;;  %v1681_v50 = vsel %vm1427_vm1, %v1677_v12, %v9927_v4 }
 0x197   : >> { %v1156_v55 = vpop.permute.xlu0 %1155  ;;  %v9930_v48 = vpop.permute.xlu1 %9929  ;;  %v8252_v34 = vpack.c.bf16 %v1681_v50, %v1680_v20 }
 0x198   : >> { %v9932_v47 = vunpack.i.h.bf16 %v9930_v48  ;;  %v9931_v62 = vunpack.i.l.bf16 %v9930_v48 }
 0x199   : >> { %8253 = vmatpush1.bf16.msra.mxu1 %v8252_v34 }
 0x19a   : >> { %v1687_v58 = vsel %vm17906_vm15, %v1156_v55, %v9932_v47  ;;  %v1686_v52 = vsel %vm17906_vm15, %v1161_v44, %v9931_v62 }
 0x19b   : >> { %v9935_v49 = vpop.permute.xlu0 %9934  ;;  %v9940_v27 = vpop.permute.xlu1 %9939 }
 0x19c   : >> { %v9942_v60 = vunpack.i.h.bf16 %v9940_v27  ;;  %v9941_v28 = vunpack.i.l.bf16 %v9940_v27  ;;  %v9936_v45 = vunpack.i.l.bf16 %v9935_v49  ;;  %v9937_v37 = vunpack.i.h.bf16 %v9935_v49 }
 0x19e   : >> { %v1690_v26 = vsel %vm17900_vm0, %v1686_v52, %v9941_v28  ;;  %v1691_v17 = vsel %vm17900_vm0, %v1687_v58, %v9942_v60  ;;  %v1674_v33 = vsel %vm17906_vm15, %v1078_v31, %v9936_v45  ;;  %v1675_v25 = vsel %vm17906_vm15, %v9862_v38, %v9937_v37 }
 0x19f   : >> { %v9945_v56 = vpop.permute.xlu0 %9944  ;;  %vm3764_vm15 = vcmask 31744  }
 0x1a0   : >> { %v9950_v13 = vpop.permute.xlu1 %9949  ;;  %v9947_v9 = vunpack.i.h.bf16 %v9945_v56  ;;  %v9946_v10 = vunpack.i.l.bf16 %v9945_v56 }
 0x1a1   : >> { %v9952_v41 = vunpack.i.h.bf16 %v9950_v13  ;;  %v9951_v6 = vunpack.i.l.bf16 %v9950_v13 }
 0x1a2   : >> { %v1678_v0 = vsel %vm17900_vm0, %v1674_v33, %v9946_v10  ;;  %v1679_v5 = vsel %vm17900_vm0, %v1675_v25, %v9947_v9  ;;  %v17987_v10 = vld [vmem:[#allocation23_spill] sm:$0xff]  ;;  %vm3744_vm0 = vcmask 982016  }
 0x1a3   : >> { %v1694_v59 = vsel %vm1427_vm1, %v1690_v26, %v9951_v6  ;;  %v1695_v43 = vsel %vm1427_vm1, %v1691_v17, %v9952_v41  ;;  %v9955_v14 = vpop.permute.xlu0 %9954  ;;  %v17988_v41 = vld [vmem:[#allocation18_spill] sm:$0xff]  ;;  %v11163_v6 = vmov 1.0|1.0  }
 0x1a4   : >> { %v9957_v7 = vunpack.i.h.bf16 %v9955_v14  ;;  %v9956_v42 = vunpack.i.l.bf16 %v9955_v14  ;;  %v8254_v2 = vpack.c.bf16 %v1695_v43, %v1694_v59  ;;  %vm17989_vm4 = vcmp.eq.s32.totalorder %v17988_v41, %v17987_v10  ;;  %v17990_v59 = vld [vmem:[#allocation19_spill] sm:$0xff] }
 0x1a5   : >> { %vm8260_vm8 = vmpackc.low %vm17989_vm4, %vm480_vm3  ;;  %vm17991_vm5 = vcmp.eq.s32.totalorder %v17990_v59, %v17987_v10  ;;  %v17846_v43 = vmov 1.0   ;;  %v17992_v14 = vld [vmem:[#allocation35_spill] sm:$0xff]  ;;  %vm3685_vm4 = vcmask 687104  }
 0x1a6   : >> { %v1682_v39 = vsel %vm1427_vm1, %v1678_v0, %v9956_v42  ;;  %v1683_v53 = vsel %vm1427_vm1, %v1679_v5, %v9957_v7  ;;  %8256 = vmatprep.subr.msk.bf16.mxu1 %vm12327_vm6, %v8254_v2  ;;  %8261 = vmatprep.subr.msk.bf16.mxu0 %vm8260_vm8, %v11163_v6  ;;  %vm8265_vm14 = vmpackc.low %vm538_vm9, %vm17991_vm5  ;;  %v8264_v25 = vpack.c.bf16 %v17992_v14, %v17846_v43  ;;  %vm2181_vm9 = vcmask 252928  }
 0x1a7   : >> { %v8257_v8 = vpack.c.bf16 %v1683_v53, %v1682_v39  ;;  %8263 = vmatpush3.bf16.msk.msra.mxu0 %vm8260_vm8, %v11163_v6  ;;  %vm3625_vm8 = vcmask 392192   ;;  %vm3724_vm5 = vcmask 883712  }
 0x1a8   : >> { %8266 = vmatprep.subr.msk.bf16.mxu0 %vm8265_vm14, %v8264_v25 }
 0x1a9   : >> { %8259 = vmatpush1.bf16.msk.msra.mxu1 %vm12327_vm6, %v8257_v8  ;;  %vm3585_vm6 = vcmask 195584  }
 0x1ab   : >> { %8269 = vmatpush3.bf16.msk.msra.mxu0 %vm8265_vm14, %v8264_v25  ;;  %vm3645_vm14 = vcmask 490496  }
 0x1ac   : >> { %7737 = vmatmul.mubr.msk.f32.vlgmr.msra.gmra.mrb[0].mxu1 %vm1701_vm7, %v17983_v3  ;;  %vm3605_vm7 = vcmask 293888  }
 0x1b1   : >> { %v1699_v32 = vpop.permute.xlu1 %1698 }
 0x21f   : >> { %v1795_v51 = vpop.f32.mrb[0].mxu0 }
 0x220   : >> { %v1796_v22 = vadd.f32 %v1795_v51, %v1699_v32  ;;  %v1797_v24 = vpop.f32.mrb[1].mxu0 }
 0x221   : >> { %v1798_v23 = vadd.f32 %v1797_v24, %v1699_v32 }
 0x222   : >> { %v2013_v35 = vmax.f32 %v1796_v22, 0.0 }
 0x223   : >> { %v2014_v19 = vmax.f32 %v1798_v23, 0.0 }
 0x224   : >> { %2022 = vrot.lane.b32.xlu0 %v2013_v35, %s17864_s28 }
 0x225   : >> { %2027 = vrot.lane.b32.xlu1 %v2014_v19, %s17864_s28 }
 0x23f   : >> { %v1866_v30 = vpop.f32.mrb[2].mxu0 }
 0x240   : >> { %v1867_v61 = vadd.f32 %v1866_v30, %v1699_v32  ;;  %v1868_v18 = vpop.f32.mrb[3].mxu0 }
 0x241   : >> { %v1869_v40 = vadd.f32 %v1868_v18, %v1699_v32 }
 0x242   : >> { %v2015_v16 = vmax.f32 %v1867_v61, 0.0 }
 0x243   : >> { %v2016_v46 = vmax.f32 %v1869_v40, 0.0 }
 0x244   : >> { %2032 = vrot.lane.b32.xlu0 %v2015_v16, %s17864_s28 }
 0x245   : >> { %2037 = vrot.lane.b32.xlu1 %v2016_v46, %s17864_s28 }
 0x267   : >> { %v1937_v29 = vpop.f32.mrb[4].mxu0 }
 0x268   : >> { %v1938_v57 = vadd.f32 %v1937_v29, %v1699_v32  ;;  %v1939_v21 = vpop.f32.mrb[5].mxu0 }
 0x269   : >> { %v1940_v1 = vadd.f32 %v1939_v21, %v1699_v32 }
 0x26a   : >> { %v2017_v15 = vmax.f32 %v1938_v57, 0.0 }
 0x26b   : >> { %v2018_v4 = vmax.f32 %v1940_v1, 0.0 }
 0x26c   : >> { %2042 = vrot.lane.b32.xlu0 %v2017_v15, %s17864_s28 }
 0x26d   : >> { %2047 = vrot.lane.b32.xlu1 %v2018_v4, %s17864_s28 }
 0x27f   : >> { %v2008_v54 = vpop.f32.mrb[0].mxu1 }
 0x280   : >> { %v2009_v63 = vadd.f32 %v2008_v54, %v1699_v32  ;;  %v2010_v11 = vpop.f32.mrb[1].mxu1 }
 0x281   : >> { %v2011_v36 = vadd.f32 %v2010_v11, %v1699_v32 }
 0x282   : >> { %v2019_v12 = vmax.f32 %v2009_v63, 0.0 }
 0x283   : >> { %v2020_v20 = vmax.f32 %v2011_v36, 0.0 }
 0x284   : >> { %2052 = vrot.lane.b32.xlu0 %v2019_v12, %s17864_s28 }
 0x285   : >> { %2057 = vrot.lane.b32.xlu1 %v2020_v20, %s17864_s28 }
 0x296   : >> { %v2023_v50 = vpop.permute.xlu0 %2022 }
 0x297   : >> { %v2025_v55 = vmax.f32 %v2013_v35, %v2023_v50  ;;  %v2028_v48 = vpop.permute.xlu1 %2027 }
 0x298   : >> { %v2030_v34 = vmax.f32 %v2014_v19, %v2028_v48 }
 0x299   : >> { %v2062_v49 = vrot.slane %v2025_v55, 2 }
 0x29a   : >> { %v2069_v27 = vrot.slane %v2030_v34, 6  ;;  %v2067_v2 = vrot.slane %v2030_v34, 4 }
 0x29b   : >> { %2063 = vrot.lane.b32.xlu0 %v2062_v49, %s11158_s24 }
 0x29c   : >> { %2070 = vrot.lane.b32.xlu1 %v2069_v27, %s11158_s24 }
 0x2b6   : >> { %v2033_v47 = vpop.permute.xlu0 %2032 }
 0x2b7   : >> { %v2038_v62 = vpop.permute.xlu1 %2037  ;;  %v2035_v58 = vmax.f32 %v2015_v16, %v2033_v47 }
 0x2b8   : >> { %v2040_v37 = vmax.f32 %v2016_v46, %v2038_v62 }
 0x2b9   : >> { %v2074_v31 = vrot.slane %v2035_v58, 2 }
 0x2ba   : >> { %v2081_v17 = vrot.slane %v2040_v37, 6  ;;  %v2079_v30 = vrot.slane %v2040_v37, 4 }
 0x2de   : >> { %v2043_v60 = vpop.permute.xlu0 %2042 }
 0x2df   : >> { %v2048_v28 = vpop.permute.xlu1 %2047  ;;  %v2045_v26 = vmax.f32 %v2017_v15, %v2043_v60 }
 0x2e0   : >> { %v2050_v33 = vmax.f32 %v2018_v4, %v2048_v28 }
 0x2e1   : >> { %v2086_v7 = vrot.slane %v2045_v26, 2 }
 0x2e2   : >> { %v2093_v42 = vrot.slane %v2050_v33, 6  ;;  %v2091_v21 = vrot.slane %v2050_v33, 4 }
 0x2f6   : >> { %v2053_v44 = vpop.permute.xlu0 %2052 }
 0x2f7   : >> { %v2055_v45 = vmax.f32 %v2019_v12, %v2053_v44  ;;  %v2058_v56 = vpop.permute.xlu1 %2057 }
 0x2f8   : >> { %v2060_v38 = vmax.f32 %v2020_v20, %v2058_v56 }
 0x2f9   : >> { %v2098_v52 = vrot.slane %v2055_v45, 2 }
 0x2fa   : >> { %v2105_v13 = vrot.slane %v2060_v38, 6  ;;  %v2103_v8 = vrot.slane %v2060_v38, 4 }
 0x2fb   : >> { %2099 = vrot.lane.b32.xlu0 %v2098_v52, %s11158_s24 }
 0x2fc   : >> { %2106 = vrot.lane.b32.xlu1 %v2105_v13, %s11158_s24 }
 0x2ff   : >> { %2075 = vrot.lane.b32.xlu0 %v2074_v31, %s11158_s24 }
 0x300   : >> { %2082 = vrot.lane.b32.xlu1 %v2081_v17, %s11158_s24 }
 0x303   : >> { %2087 = vrot.lane.b32.xlu0 %v2086_v7, %s11158_s24 }
 0x304   : >> { %2094 = vrot.lane.b32.xlu1 %v2093_v42, %s11158_s24  ;;  %s11171_s24 = smov 84  }
 0x30d   : >> { %v2064_v0 = vpop.permute.xlu0 %2063 }
 0x30e   : >> { %v2110_v5 = vsel %vm540_vm10, %v2064_v0, %v2067_v2  ;;  %v2109_v39 = vsel %vm609_vm11, %v2025_v55, %v2064_v0  ;;  %v2071_v53 = vpop.permute.xlu1 %2070 }
 0x30f   : >> { %2135 = vrot.lane.b32.xlu1 %v2110_v5, %s11153_s27  ;;  %2133 = vrot.lane.b32.xlu0 %v2109_v39, %s11153_s27  ;;  %v2111_v35 = vsel %vm536_vm13, %v2067_v2, %v2071_v53 }
 0x36d   : >> { %v2100_v32 = vpop.permute.xlu0 %2099 }
 0x36e   : >> { %v2119_v51 = vsel %vm540_vm10, %v2100_v32, %v2103_v8  ;;  %v2118_v22 = vsel %vm609_vm11, %v2055_v45, %v2100_v32  ;;  %v2107_v24 = vpop.permute.xlu1 %2106 }
 0x36f   : >> { %2153 = vrot.lane.b32.xlu0 %v2119_v51, %s11153_s27  ;;  %2151 = vrot.lane.b32.xlu1 %v2118_v22, %s11153_s27  ;;  %v2120_v19 = vsel %vm536_vm13, %v2103_v8, %v2107_v24 }
 0x371   : >> { %v2076_v23 = vpop.permute.xlu0 %2075 }
 0x372   : >> { %v2083_v61 = vpop.permute.xlu1 %2082  ;;  %v2113_v18 = vsel %vm540_vm10, %v2076_v23, %v2079_v30  ;;  %v2112_v40 = vsel %vm609_vm11, %v2035_v58, %v2076_v23 }
 0x373   : >> { %2137 = vrot.lane.b32.xlu0 %v2111_v35, %s11153_s27  ;;  %2155 = vrot.lane.b32.xlu1 %v2120_v19, %s11153_s27  ;;  %v2114_v46 = vsel %vm536_vm13, %v2079_v30, %v2083_v61 }
 0x375   : >> { %v2088_v16 = vpop.permute.xlu0 %2087 }
 0x376   : >> { %v2115_v29 = vsel %vm609_vm11, %v2045_v26, %v2088_v16  ;;  %v2095_v57 = vpop.permute.xlu1 %2094  ;;  %v2116_v15 = vsel %vm540_vm10, %v2088_v16, %v2091_v21 }
 0x377   : >> { %2141 = vrot.lane.b32.xlu0 %v2113_v18, %s11153_s27  ;;  %2139 = vrot.lane.b32.xlu1 %v2112_v40, %s11153_s27  ;;  %v2117_v1 = vsel %vm536_vm13, %v2091_v21, %v2095_v57 }
 0x37b   : >> { %2143 = vrot.lane.b32.xlu1 %v2114_v46, %s11153_s27  ;;  %2145 = vrot.lane.b32.xlu0 %v2115_v29, %s11153_s27 }
 0x37f   : >> { %2147 = vrot.lane.b32.xlu1 %v2116_v15, %s11153_s27  ;;  %2149 = vrot.lane.b32.xlu0 %v2117_v1, %s11153_s27 }
 0x381   : >> { %v2136_v4 = vpop.permute.xlu1 %2135  ;;  %v2134_v54 = vpop.permute.xlu0 %2133 }
 0x382   : >> { %v2170_v63 = vmax.f32 %v2110_v5, %v2136_v4  ;;  %v2169_v11 = vmax.f32 %v2109_v39, %v2134_v54 }
 0x384   : >> { %8161 = vmatprep.mubr.msk.f32.mxu0 %vm2181_vm9, %v2169_v11 }
 0x385   : >> { %8162 = vmatmul.mubr.msk.f32.vlgmr.msra.gmra.mrb[6].mxu0 %vm2181_vm9, %v2170_v63 }
 0x3e1   : >> { %v2152_v36 = vpop.permute.xlu1 %2151  ;;  %v2154_v12 = vpop.permute.xlu0 %2153 }
 0x3e2   : >> { %v2178_v58 = vmax.f32 %v2118_v22, %v2152_v36  ;;  %v2179_v52 = vmax.f32 %v2119_v51, %v2154_v12 }
 0x3e5   : >> { %v2156_v20 = vpop.permute.xlu1 %2155  ;;  %v2138_v50 = vpop.permute.xlu0 %2137 }
 0x3e6   : >> { %v2171_v55 = vmax.f32 %v2111_v35, %v2138_v50  ;;  %v2180_v37 = vmax.f32 %v2120_v19, %v2156_v20 }
 0x3e8   : >> { %8164 = vmatprep.mubr.msk.f32.mxu0 %vm2181_vm9, %v2171_v55 }
 0x3e9   : >> { %v2140_v48 = vpop.permute.xlu1 %2139  ;;  %v2142_v34 = vpop.permute.xlu0 %2141 }
 0x3ea   : >> { %v2172_v49 = vmax.f32 %v2112_v40, %v2140_v48  ;;  %v2173_v27 = vmax.f32 %v2113_v18, %v2142_v34 }
 0x3ec   : >> { %8165 = vmatmul.mubr.msk.f32.gmra.mrb[8].mxu0 %vm2181_vm9, %v2172_v49 }
 0x3ed   : >> { %v2144_v47 = vpop.permute.xlu1 %2143  ;;  %8167 = vmatprep.mubr.msk.f32.mxu0 %vm2181_vm9, %v2173_v27  ;;  %v2146_v62 = vpop.permute.xlu0 %2145 }
 0x3ee   : >> { %v2174_v60 = vmax.f32 %v2114_v46, %v2144_v47  ;;  %v2175_v28 = vmax.f32 %v2115_v29, %v2146_v62 }
 0x3f0   : >> { %8168 = vmatmul.mubr.msk.f32.gmra.mrb[10].mxu0 %vm2181_vm9, %v2174_v60 }
 0x3f1   : >> { %v2148_v44 = vpop.permute.xlu1 %2147  ;;  %8170 = vmatprep.mubr.msk.f32.mxu0 %vm2181_vm9, %v2175_v28  ;;  %v2150_v45 = vpop.permute.xlu0 %2149 }
 0x3f2   : >> { %v2176_v56 = vmax.f32 %v2116_v15, %v2148_v44  ;;  %v2177_v38 = vmax.f32 %v2117_v1, %v2150_v45 }
 0x3f4   : >> { %8171 = vmatmul.mubr.msk.f32.gmra.mrb[12].mxu0 %vm2181_vm9, %v2176_v56 }
 0x3f5   : >> { %8173 = vmatprep.mubr.msk.f32.mxu0 %vm2181_vm9, %v2177_v38 }
 0x3f8   : >> { %8174 = vmatmul.mubr.msk.f32.gmra.mrb[14].mxu0 %vm2181_vm9, %v2178_v58 }
 0x3f9   : >> { %8176 = vmatprep.mubr.msk.f32.mxu0 %vm2181_vm9, %v2179_v52 }
 0x3fc   : >> { %8177 = vmatmul.mubr.msk.f32.gmra.mrb[16].mxu0 %vm2181_vm9, %v2180_v37  ;;  %vm3665_vm9 = vcmask 588800  }
 0x458   : >> { %v12595_v13 = vpop.f32.mrb[6].mxu0 }
 0x459   : >> { %17993 = vst [vmem:[#allocation46_spill] sm:$0xff] %v12595_v13  ;;  %v12597_v41 = vpop.f32.mrb[7].mxu0  ;;  %v2395_v6 = vrot.slane %v12595_v13, 6  ;;  %v2351_v31 = vrot.slane %v12595_v13, 2  ;;  %v2373_v25 = vrot.slane %v12595_v13, 4 }
 0x45a   : >> { %17994 = vst [vmem:[#allocation43_spill] sm:$0xff] %v12597_v41  ;;  %v2350_v26 = vrot.slane %v12597_v41, 2  ;;  %v2372_v14 = vrot.slane %v12597_v41, 4  ;;  %v2394_v2 = vrot.slane %v12597_v41, 6 }
 0x45b   : >> { %v9959_v17 = vpack.i.bf16 %v2395_v6, %v12597_v41 }
 0x45c   : >> { %v2352_v33 = vsel %vm609_vm11, %v2350_v26, %v2351_v31  ;;  %v12610_v42 = vsel %vm540_vm10, %v2372_v14, %v2373_v25  ;;  %v12616_v5 = vsel %vm536_vm13, %v2394_v2, %v2395_v6 }
 0x45d   : >> { %9960 = vrot.lane.b32.xlu0 %v9959_v17, %s11153_s27  ;;  %v9964_v59 = vpack.i.bf16 %v12595_v13, %v2352_v33  ;;  %v9969_v7 = vpack.i.bf16 %v2352_v33, %v2350_v26  ;;  %v9974_v0 = vpack.i.bf16 %v12610_v42, %v2372_v14  ;;  %v9979_v39 = vpack.i.bf16 %v12616_v5, %v2394_v2 }
 0x461   : >> { %9965 = vrot.lane.b32.xlu0 %v9964_v59, %s11155_s19 }
 0x465   : >> { %9970 = vrot.lane.b32.xlu0 %v9969_v7, %s11153_s27 }
 0x469   : >> { %9975 = vrot.lane.b32.xlu0 %v9974_v0, %s11155_s19 }
 0x46d   : >> { %9980 = vrot.lane.b32.xlu0 %v9979_v39, %s17878_s26 }
 0x4bf   : >> { %v12621_v53 = vpop.f32.mrb[8].mxu0 }
 0x4c0   : >> { %17995 = vst [vmem:[#allocation49_spill] sm:$0xff] %v12621_v53  ;;  %2419 = vrot.lane.b32.xlu1 %v12621_v53, %s11156_s22  ;;  %v12625_v8 = vpop.f32.mrb[9].mxu0  ;;  %v9984_v32 = vpack.i.bf16 %v12595_v13, %v12621_v53  ;;  %v2355_v51 = vrot.slane %v12621_v53, 2  ;;  %v2399_v22 = vrot.slane %v12621_v53, 6  ;;  %v2377_v24 = vrot.slane %v12621_v53, 4 }
 0x4c1   : >> { %17996 = vst [vmem:[#allocation50_spill] sm:$0xff] %v12625_v8  ;;  %v9994_v23 = vpack.i.bf16 %v12625_v8, %v12595_v13  ;;  %v9989_v35 = vpack.i.bf16 %v12621_v53, %v12625_v8  ;;  %v2375_v19 = vrot.slane %v12625_v8, 4  ;;  %v2397_v30 = vrot.slane %v12625_v8, 6 }
 0x4c2   : >> { %9985 = vrot.lane.b32.xlu0 %v9984_v32, %s11153_s27  ;;  %v9999_v61 = vpack.i.bf16 %v2399_v22, %v12625_v8  ;;  %v2353_v18 = vrot.slane %v12625_v8, 2 }
 0x4c3   : >> { %v12641_v40 = vpop.f32.mrb[10].mxu0  ;;  %v10004_v16 = vpack.i.bf16 %v2355_v51, %v2375_v19  ;;  %v10009_v46 = vpack.i.bf16 %v2377_v24, %v2397_v30  ;;  %v12644_v29 = vsel %vm536_vm13, %v2395_v6, %v2397_v30  ;;  %v12647_v57 = vsel %vm536_vm13, %v2397_v30, %v2399_v22 }
 0x4c4   : >> { %v12650_v21 = vrot.slane %v12641_v40, 4  ;;  %9995 = vrot.lane.b32.xlu1 %v9994_v23, %s11156_s22  ;;  %v12653_v1 = vpop.f32.mrb[11].mxu0  ;;  %v12657_v15 = vpack.i.bf16 %v12647_v57, %v12644_v29  ;;  %v10024_v4 = vpack.i.bf16 %v12621_v53, %v12641_v40  ;;  %v12666_v11 = vsel %vm609_vm11, %v2351_v31, %v2353_v18 }
 0x4c5   : >> { %v12662_v54 = vrot.slane %v12653_v1, 6  ;;  %v2458_v63 = vrot.slane %v12653_v1, 4  ;;  %v12669_v36 = vsel %vm540_vm10, %v2373_v25, %v2375_v19  ;;  %v12673_v12 = vsel %vm540_vm10, %v2375_v19, %v2377_v24 }
 0x4c6   : >> { %9990 = vrot.lane.b32.xlu0 %v9989_v35, %s11155_s19  ;;  %v12676_v20 = vsel %vm609_vm11, %v2353_v18, %v2355_v51  ;;  %v12690_v34 = vpack.i.bf16 %v12673_v12, %v12669_v36  ;;  %v10039_v62 = vpack.i.bf16 %v12673_v12, %v12647_v57  ;;  %v12707_v44 = vrot.slane %v12653_v1, 2 }
 0x4c7   : >> { %v12678_v50 = vpop.f32.mrb[12].mxu0  ;;  %v12682_v55 = vsel %vm536_vm13, %v2399_v22, %v12662_v54  ;;  %v12686_v48 = vsel %vm540_vm10, %v2458_v63, %v12650_v21  ;;  %v10034_v49 = vpack.i.bf16 %v12644_v29, %v12676_v20  ;;  %v10054_v47 = vpack.i.bf16 %v12676_v20, %v12666_v11 }
 0x4c8   : >> { %10005 = vrot.lane.b32.xlu1 %v10004_v16, %s11153_s27  ;;  %v12695_v27 = vpop.f32.mrb[13].mxu0  ;;  %v12714_v38 = vrot.slane %v12641_v40, 6  ;;  %v12721_v37 = vsel %vm540_vm10, %v2377_v24, %v2458_v63  ;;  %v12734_v17 = vsel %vm609_vm11, %v2355_v51, %v12707_v44  ;;  %v12764_v51 = vrot.slane %v12678_v50, 6 }
 0x4c9   : >> { %v12724_v6 = vrot.slane %v12695_v27, 2  ;;  %v12727_v31 = vrot.slane %v12695_v27, 6  ;;  %v12747_v25 = vpack.i.bf16 %v12734_v17, %v12676_v20  ;;  %v10019_v30 = vpack.i.bf16 %v12666_v11, %v12610_v42 }
 0x4ca   : >> { %10000 = vrot.lane.b32.xlu0 %v9999_v61, %s17878_s26  ;;  %v12741_v59 = vsel %vm536_vm13, %v12662_v54, %v12714_v38  ;;  %v12780_v61 = vrot.slane %v12641_v40, 2  ;;  %v10029_v16 = vpack.i.bf16 %v12669_v36, %v12616_v5  ;;  %v12814_v43 = vrot.slane %v12678_v50, 2 }
 0x4cb   : >> { %v12716_v58 = vpop.f32.mrb[14].mxu0  ;;  %v12751_v7 = vpack.i.bf16 %v12741_v59, %v12682_v55  ;;  %v12785_v18 = vsel %vm536_vm13, %v12714_v38, %v12727_v31  ;;  %v2644_v35 = vrot.slane %v12678_v50, 4  ;;  %v17999_v13 = vpack.i.bf16 %v12653_v1, %v12676_v20 }
 0x4cc   : >> { %10010 = vrot.lane.b32.xlu1 %v10009_v46, %s11155_s19  ;;  %v12730_v26 = vpop.f32.mrb[15].mxu0  ;;  %v12791_v46 = vrot.slane %v12695_v27, 4  ;;  %v12796_v42 = vsel %vm609_vm11, %v12780_v61, %v12724_v6  ;;  %v12828_v32 = vsel %vm609_vm11, %v12724_v6, %v12814_v43  ;;  %v2764_v52 = vrot.slane %v12716_v58, 6 }
 0x4cd   : >> { %17997 = vst [vmem:[#allocation44_spill] sm:$0xff] %v12730_v26  ;;  %v12848_v2 = vrot.slane %v12730_v26, 6  ;;  %v12854_v23 = vrot.slane %v12730_v26, 2  ;;  %v12875_v0 = vrot.slane %v12716_v58, 2  ;;  %v12882_v56 = vrot.slane %v12716_v58, 4 }
 0x4ce   : >> { %10015 = vrot.lane.b32.xlu0 %v12657_v15, %s11153_s27  ;;  %v12807_v63 = vsel %vm540_vm10, %v12650_v21, %v12791_v46  ;;  %v12833_v39 = vsel %vm540_vm10, %v12791_v46, %v2644_v35 }
 0x4cf   : >> { %v12766_v22 = vpop.f32.mrb[16].mxu0  ;;  %v12863_v24 = vsel %vm536_vm13, %v12764_v51, %v12848_v2  ;;  %v12879_v33 = vsel %vm536_vm13, %v12848_v2, %v2764_v52 }
 0x4d0   : >> { %10025 = vrot.lane.b32.xlu1 %v10024_v4, %s17878_s26  ;;  %v12775_v19 = vpop.f32.mrb[17].mxu0  ;;  %v12801_v4 = vsel %vm536_vm13, %v12727_v31, %v12764_v51  ;;  %v2827_v45 = vrot.slane %v12766_v22, 4  ;;  %v2830_v28 = vrot.slane %v12766_v22, 6 }
 0x4d2   : >> { %10020 = vrot.lane.b32.xlu0 %v10019_v30, %s17878_s26  ;;  %v12811_v30 = vpack.i.bf16 %v12807_v63, %v12686_v48  ;;  %v12917_v41 = vpack.i.bf16 %v12716_v58, %v2827_v45 }
 0x4d4   : >> { %10030 = vrot.lane.b32.xlu1 %v10029_v16, %s11156_s22  ;;  %v10044_v16 = vpack.i.bf16 %v12644_v29, %v12616_v5  ;;  %v12889_v5 = vsel %vm609_vm11, %v12854_v23, %v12875_v0 }
 0x4d6   : >> { %10050 = vrot.lane.b32.xlu0 %v12690_v34, %s11165_s29 }
 0x4d8   : >> { %10035 = vrot.lane.b32.xlu1 %v10034_v49, %s11156_s22  ;;  %v12845_v49 = vrot.slane %v12730_v26, 4 }
 0x4da   : >> { %10055 = vrot.lane.b32.xlu0 %v10054_v47, %s11153_s27  ;;  %v12872_v47 = vsel %vm540_vm10, %v2644_v35, %v12845_v49  ;;  %v2808_v35 = vrot.slane %v12775_v19, 4  ;;  %v12898_v14 = vsel %vm540_vm10, %v12845_v49, %v12882_v56 }
 0x4dc   : >> { %10040 = vrot.lane.b32.xlu1 %v10039_v62, %s11156_s22  ;;  %v9961_v62 = vpop.permute.xlu0 %9960  ;;  %v12927_v9 = vsel %vm540_vm10, %v12882_v56, %v2808_v35 }
 0x4dd   : >> { %v9962_v29 = vunpack.i.l.bf16 %v9961_v62  ;;  %v9963_v60 = vunpack.i.h.bf16 %v9961_v62  ;;  %18000 = vst [vmem:[#allocation47_spill] sm:$0xff] %v12927_v9 }
 0x4de   : >> { %10060 = vrot.lane.b32.xlu0 %v12690_v34, %s11155_s19  ;;  %v12892_v34 = vrot.slane %v12775_v19, 2 }
 0x4df   : >> { %v12936_v20 = vsel %vm609_vm11, %v12686_v48, %v9963_v60  ;;  %v12955_v60 = vsel %vm540_vm10, %v2808_v35, %v2827_v45  ;;  %v18003_v45 = vpack.i.bf16 %v12666_v11, %v12734_v17  ;;  %v18005_v35 = vpack.i.bf16 %v12673_v12, %v12650_v21 }
 0x4e0   : >> { %10045 = vrot.lane.b32.xlu1 %v10044_v16, %s11166_s30  ;;  %17998 = vst [vmem:[#allocation41_spill] sm:$0xff] %v12892_v34  ;;  %v2785_v16 = vrot.slane %v12775_v19, 6  ;;  %v18006_v11 = vpack.i.bf16 %v12647_v57, %v12714_v38  ;;  %v18008_v21 = vpack.i.bf16 %v12734_v17, %v12653_v1  ;;  %v18010_v38 = vpack.i.bf16 %v12641_v40, %v12741_v59 }
 0x4e2   : >> { %10065 = vrot.lane.b32.xlu0 %v12657_v15, %s17878_s26  ;;  %v12921_v15 = vsel %vm609_vm11, %v12682_v55, %v9962_v29  ;;  %v2831_v10 = vsel %vm536_vm13, %v2785_v16, %v2830_v28  ;;  %v12952_v9 = vsel %vm536_vm13, %v2764_v52, %v2785_v16  ;;  %v18004_v52 = vpack.i.bf16 %v12653_v1, %v12621_v53 }
 0x4e3   : >> { %v12949_v3 = vpack.i.bf16 %v2831_v10, %v12775_v19  ;;  %v18007_v16 = vpack.i.bf16 %v12662_v54, %v12625_v8  ;;  %v18011_v54 = vpack.i.bf16 %v12721_v37, %v12707_v44 }
 0x4e4   : >> { %10070 = vrot.lane.b32.xlu1 %v17999_v13, %s11155_s19  ;;  %v12932_v13 = vsel %vm609_vm11, %v12875_v0, %v12892_v34  ;;  %v18002_v34 = vpack.i.bf16 %v12641_v40, %v12653_v1 }
 0x4e5   : >> { %18001 = vst [vmem:[#allocation42_spill] sm:$0xff] %v12932_v13  ;;  %v12941_v29 = vpack.i.bf16 %v12932_v13, %v2830_v28  ;;  %v12946_v62 = vpack.i.bf16 %v12932_v13, %v12889_v5  ;;  %v12966_v13 = vsel %vm609_vm11, %v12707_v44, %v12780_v61  ;;  %v18014_v44 = vpack.i.bf16 %v12669_v36, %v12721_v37 }
 0x4e6   : >> { %2572 = vrot.lane.b32.xlu0 %v12780_v61, %s11156_s22  ;;  %v10219_v36 = vpack.i.bf16 %v12807_v63, %v12801_v4 }
 0x4e8   : >> { %10075 = vrot.lane.b32.xlu1 %v18002_v34, %s11156_s22  ;;  %v10129_v34 = vpack.i.bf16 %v12966_v13, %v12673_v12  ;;  %v18009_v12 = vpack.i.bf16 %v12734_v17, %v12721_v37  ;;  %v10119_v17 = vpack.i.bf16 %v12966_v13, %v12641_v40 }
 0x4ea   : >> { %10110 = vrot.lane.b32.xlu0 %v18003_v45, %s11155_s19  ;;  %v18012_v45 = vpack.i.bf16 %v12724_v6, %v12721_v37  ;;  %v10159_v6 = vpack.i.bf16 %v12695_v27, %v12966_v13 }
 0x4ec   : >> { %10080 = vrot.lane.b32.xlu1 %v18004_v52, %s11167_s16  ;;  %v18013_v52 = vpack.i.bf16 %v12727_v31, %v12653_v1  ;;  %v10209_v1 = vpack.i.bf16 %v12695_v27, %v12796_v42  ;;  %v10224_v31 = vpack.i.bf16 %v12833_v39, %v12814_v43 }
 0x4ee   : >> { %10130 = vrot.lane.b32.xlu0 %v10129_v34, %s17878_s26  ;;  %v10184_v34 = vpack.i.bf16 %v12785_v18, %v12682_v55 }
 0x4f0   : >> { %10085 = vrot.lane.b32.xlu1 %v18005_v35, %s11153_s27  ;;  %v18016_v35 = vpack.i.bf16 %v12796_v42, %v12807_v63 }
 0x4f2   : >> { %10135 = vrot.lane.b32.xlu0 %v12747_v25, %s17878_s26 }
 0x4f4   : >> { %10090 = vrot.lane.b32.xlu1 %v18006_v11, %s11155_s19 }
 0x4f6   : >> { %10140 = vrot.lane.b32.xlu0 %v12751_v7, %s17878_s26 }
 0x4f8   : >> { %10095 = vrot.lane.b32.xlu1 %v18007_v16, %s11153_s27  ;;  %v18018_v16 = vpack.i.bf16 %v12791_v46, %v12682_v55  ;;  %v10244_v46 = vpack.i.bf16 %v12796_v42, %v12966_v13 }
 0x4fa   : >> { %2475 = vrot.lane.b32.xlu0 %v12682_v55, %s11156_s22  ;;  %v18021_v55 = vpack.i.bf16 %v12828_v32, %v12678_v50 }
 0x4fc   : >> { %10100 = vrot.lane.b32.xlu1 %v18008_v21, %s11153_s27  ;;  %v18019_v21 = vpack.i.bf16 %v12695_v27, %v12828_v32 }
 0x4fe   : >> { %10145 = vrot.lane.b32.xlu0 %v18009_v12, %s11156_s22  ;;  %v10194_v12 = vpack.i.bf16 %v12796_v42, %v12833_v39 }
 0x500   : >> { %10105 = vrot.lane.b32.xlu1 %v18010_v38, %s11153_s27  ;;  %v10239_v38 = vpack.i.bf16 %v12785_v18, %v12678_v50 }
 0x502   : >> { %2615 = vrot.lane.b32.xlu0 %v12695_v27, %s11156_s22 }
 0x504   : >> { %10115 = vrot.lane.b32.xlu1 %v18011_v54, %s11155_s19 }
 0x506   : >> { %10170 = vrot.lane.b32.xlu0 %v18012_v45, %s11153_s27 }
 0x508   : >> { %10120 = vrot.lane.b32.xlu1 %v10119_v17, %s11155_s19  ;;  %v18023_v17 = vpack.i.bf16 %v12828_v32, %v12686_v48 }
 0x50a   : >> { %10180 = vrot.lane.b32.xlu0 %v18013_v52, %s17878_s26  ;;  %v10249_v52 = vpack.i.bf16 %v12785_v18, %v12741_v59 }
 0x50c   : >> { %10125 = vrot.lane.b32.xlu1 %v18014_v44, %s17878_s26 }
 0x50e   : >> { %10185 = vrot.lane.b32.xlu0 %v10184_v34, %s11153_s27 }
 0x510   : >> { %2527 = vrot.lane.b32.xlu1 %v12686_v48, %s11156_s22 }
 0x512   : >> { %10190 = vrot.lane.b32.xlu0 %v12811_v30, %s11153_s27 }
 0x514   : >> { %10150 = vrot.lane.b32.xlu1 %v12747_v25, %s11168_s17  ;;  %v13054_v25 = vpop.permute.xlu0 %9965 }
 0x516   : >> { %10210 = vrot.lane.b32.xlu0 %v10209_v1, %s11155_s19 }
 0x518   : >> { %10155 = vrot.lane.b32.xlu1 %v12751_v7, %s11169_s20  ;;  %v18015_v7 = vpack.i.bf16 %v12678_v50, %v12695_v27  ;;  %v13065_v11 = vpop.permute.xlu0 %9970 }
 0x519   : >> { %18017 = vst [vmem:[#allocation45_spill] sm:$0xff] %v13065_v11 }
 0x51a   : >> { %10220 = vrot.lane.b32.xlu0 %v10219_v36, %s11155_s19  ;;  %v18026_v36 = vpack.i.bf16 %v12686_v48, %v12730_v26 }
 0x51c   : >> { %10160 = vrot.lane.b32.xlu1 %v10159_v6, %s11153_s27  ;;  %v13080_v54 = vpop.permute.xlu0 %9975 }
 0x51d   : >> { %18020 = vst [vmem:[#allocation48_spill] sm:$0xff] %v13080_v54 }
 0x51e   : >> { %10225 = vrot.lane.b32.xlu0 %v10224_v31, %s11155_s19  ;;  %v18028_v31 = vpack.i.bf16 %v12764_v51, %v12845_v49  ;;  %v18029_v51 = vpack.i.bf16 %v12848_v2, %v12678_v50 }
 0x520   : >> { %10165 = vrot.lane.b32.xlu1 %v18015_v7, %s17864_s28  ;;  %v13090_v45 = vpop.permute.xlu0 %9980  ;;  %v10254_v7 = vpack.i.bf16 %v12828_v32, %v12833_v39  ;;  %s11173_s28 = smov 120  }
 0x521   : >> { %18022 = vst [vmem:[#allocation51_spill] sm:$0xff] %v13090_v45 }
 0x522   : >> { %10230 = vrot.lane.b32.xlu0 %v18016_v35, %s17878_s26 }
 0x524   : >> { %10175 = vrot.lane.b32.xlu1 %v18018_v16, %s11155_s19 }
 0x526   : >> { %10235 = vrot.lane.b32.xlu0 %v18019_v21, %s17878_s26 }
 0x528   : >> { %10195 = vrot.lane.b32.xlu1 %v10194_v12, %s11153_s27 }
 0x52a   : >> { %10240 = vrot.lane.b32.xlu0 %v10239_v38, %s17878_s26 }
 0x52c   : >> { %10200 = vrot.lane.b32.xlu1 %v18021_v55, %s11153_s27 }
 0x52e   : >> { %10245 = vrot.lane.b32.xlu0 %v10244_v46, %s11156_s22 }
 0x530   : >> { %10205 = vrot.lane.b32.xlu1 %v18023_v17, %s11155_s19 }
 0x532   : >> { %v13098_v44 = vpop.permute.xlu1 %2419  ;;  %10250 = vrot.lane.b32.xlu0 %v10249_v52, %s11156_s22 }
 0x533   : >> { %18024 = vst [vmem:[#allocation52_spill] sm:$0xff] %v13098_v44 }
 0x534   : >> { %10215 = vrot.lane.b32.xlu1 %v10249_v52, %s11155_s19  ;;  %v13102_v34 = vpop.permute.xlu0 %9985 }
 0x536   : >> { %v13104_v1 = vpop.permute.xlu1 %9995  ;;  %10270 = vrot.lane.b32.xlu0 %v18026_v36, %s17878_s26  ;;  %v10304_v36 = vpack.i.bf16 %v12730_v26, %v12872_v47 }
 0x537   : >> { %18025 = vst [vmem:[#allocation53_spill] sm:$0xff] %v13104_v1 }
 0x538   : >> { %2657 = vrot.lane.b32.xlu1 %v12801_v4, %s11156_s22  ;;  %v13112_v6 = vpop.permute.xlu0 %9990 }
 0x53a   : >> { %v13114_v59 = vpop.permute.xlu1 %10005  ;;  %10275 = vrot.lane.b32.xlu0 %v18028_v31, %s11153_s27 }
 0x53b   : >> { %18027 = vst [vmem:[#allocation54_spill] sm:$0xff] %v13114_v59  ;;  %v17856_v35 = vunpack.i.h.bf16 %v13114_v59 }
 0x53c   : >> { %10255 = vrot.lane.b32.xlu1 %v10254_v7, %s11156_s22  ;;  %v13124_v48 = vpop.permute.xlu0 %10000 }
 0x53d   : >> { %v13130_v16 = vsel %vm609_vm11, %v12695_v27, %v17856_v35  ;;  %v13147_v27 = vsel %vm609_vm11, %v12814_v43, %v12854_v23  ;;  %v18031_v43 = vpack.i.bf16 %v12828_v32, %v12796_v42  ;;  %v10294_v32 = vpack.i.bf16 %v12872_v47, %v12801_v4 }
 0x53e   : >> { %v13132_v21 = vpop.permute.xlu1 %10010  ;;  %10280 = vrot.lane.b32.xlu0 %v18029_v51, %s11155_s19  ;;  %v10284_v55 = vpack.i.bf16 %v12863_v24, %v13147_v27  ;;  %v10309_v7 = vpack.i.bf16 %v12889_v5, %v13147_v27  ;;  %v10334_v35 = vpack.i.bf16 %v12898_v14, %v12872_v47 }
 0x540   : >> { %2779 = vrot.lane.b32.xlu1 %v12716_v58, %s11156_s22  ;;  %v13142_v12 = vpop.permute.xlu0 %10015 }
 0x542   : >> { %v13149_v38 = vpop.permute.xlu1 %10025  ;;  %2736 = vrot.lane.b32.xlu0 %v12854_v23, %s11156_s22 }
 0x543   : >> { %18030 = vst [vmem:[#allocation55_spill] sm:$0xff] %v13149_v38 }
 0x544   : >> { %10260 = vrot.lane.b32.xlu1 %v12811_v30, %s11170_s21  ;;  %v13155_v2 = vpop.permute.xlu0 %10020  ;;  %v10289_v30 = vpack.i.bf16 %v12879_v33, %v12730_v26 }
 0x546   : >> { %v13159_v46 = vpop.permute.xlu1 %10030  ;;  %10285 = vrot.lane.b32.xlu0 %v10284_v55, %s11153_s27  ;;  %v10299_v55 = vpack.i.bf16 %v12889_v5, %v12875_v0  ;;  %v10324_v0 = vpack.i.bf16 %v13147_v27, %v12833_v39 }
 0x548   : >> { %10265 = vrot.lane.b32.xlu1 %v18031_v43, %s11171_s24  ;;  %v13166_v17 = vpop.permute.xlu0 %10050 }
 0x54a   : >> { %v13170_v52 = vpop.permute.xlu1 %10035  ;;  %10290 = vrot.lane.b32.xlu0 %v10289_v30, %s11153_s27  ;;  %v18034_v30 = vpack.i.bf16 %v12898_v14, %v12882_v56  ;;  %v10329_v56 = vpack.i.bf16 %v12863_v24, %v12801_v4 }
 0x54c   : >> { %10305 = vrot.lane.b32.xlu1 %v10304_v36, %s11155_s19  ;;  %v13176_v31 = vpop.permute.xlu0 %10055 }
 0x54d   : >> { %18032 = vst [vmem:[#allocation56_spill] sm:$0xff] %v13176_v31  ;;  %v10344_v31 = vpack.i.bf16 %v12678_v50, %v13147_v27 }
 0x54e   : >> { %v13180_v42 = vpop.permute.xlu1 %10040  ;;  %10295 = vrot.lane.b32.xlu0 %v10294_v32, %s11153_s27  ;;  %v10314_v32 = vpack.i.bf16 %v12879_v33, %v12716_v58 }
 0x550   : >> { %10310 = vrot.lane.b32.xlu1 %v10309_v7, %s11155_s19  ;;  %v13186_v51 = vpop.permute.xlu0 %10060 }
 0x551   : >> { %18033 = vst [vmem:[#allocation57_spill] sm:$0xff] %v13186_v51  ;;  %v10354_v51 = vpack.i.bf16 %v12898_v14, %v12879_v33 }
 0x552   : >> { %v13190_v43 = vpop.permute.xlu1 %10045  ;;  %10300 = vrot.lane.b32.xlu0 %v10299_v55, %s11153_s27 }
 0x554   : >> { %10320 = vrot.lane.b32.xlu1 %v18034_v30, %s11155_s19  ;;  %v13197_v36 = vpop.permute.xlu0 %10065 }
 0x555   : >> { %18035 = vst [vmem:[#allocation58_spill] sm:$0xff] %v13197_v36  ;;  %v18040_v36 = vpack.i.bf16 %v12807_v63, %v12889_v5  ;;  %v18041_v5 = vpack.i.bf16 %v12775_v19, %v12716_v58  ;;  %v18046_v19 = vld [vmem:[#allocation47_spill] sm:$0xff] }
 0x556   : >> { %v13201_v7 = vpop.permute.xlu1 %10070  ;;  %10315 = vrot.lane.b32.xlu0 %v10314_v32, %s11155_s19 }
 0x557   : >> { %18036 = vst [vmem:[#allocation59_spill] sm:$0xff] %v13201_v7 }
 0x558   : >> { %10325 = vrot.lane.b32.xlu1 %v10324_v0, %s17878_s26  ;;  %v13207_v55 = vpop.permute.xlu0 %2572  ;;  %v18039_v0 = vpack.i.bf16 %v12863_v24, %v12730_v26 }
 0x559   : >> { %18037 = vst [vmem:[#allocation60_spill] sm:$0xff] %v13207_v55  ;;  %v18050_v55 = vld [vmem:[#allocation42_spill] sm:$0xff] }
 0x55a   : >> { %v13211_v30 = vpop.permute.xlu1 %10075  ;;  %10330 = vrot.lane.b32.xlu0 %v10329_v56, %s17878_s26 }
 0x55c   : >> { %10335 = vrot.lane.b32.xlu1 %v10334_v35, %s17878_s26  ;;  %v13217_v32 = vpop.permute.xlu0 %10110 }
 0x55e   : >> { %v13219_v49 = vpop.permute.xlu1 %10080  ;;  %2699 = vrot.lane.b32.xlu0 %v12872_v47, %s11156_s22 }
 0x55f   : >> { %18038 = vst [vmem:[#allocation61_spill] sm:$0xff] %v13219_v49 }
 0x560   : >> { %10350 = vrot.lane.b32.xlu1 %v18039_v0, %s11156_s22  ;;  %v13227_v10 = vpop.permute.xlu0 %10130 }
 0x562   : >> { %v13229_v28 = vpop.permute.xlu1 %10085  ;;  %10340 = vrot.lane.b32.xlu0 %v18040_v36, %s11156_s22 }
 0x564   : >> { %10355 = vrot.lane.b32.xlu1 %v10354_v51, %s11156_s22  ;;  %v13238_v1 = vpop.permute.xlu0 %10135 }
 0x566   : >> { %v13242_v0 = vpop.permute.xlu1 %10090  ;;  %10345 = vrot.lane.b32.xlu0 %v10344_v31, %s11156_s22  ;;  %v18043_v31 = vld [vmem:[#allocation41_spill] sm:$0xff] }
 0x567   : >> { %v18044_v36 = vpack.i.bf16 %v12766_v22, %v18043_v31 }
 0x568   : >> { %10360 = vrot.lane.b32.xlu1 %v10329_v56, %s11172_s23  ;;  %v13246_v45 = vpop.permute.xlu0 %10140 }
 0x56a   : >> { %v13248_v63 = vpop.permute.xlu1 %10095  ;;  %10365 = vrot.lane.b32.xlu0 %v10334_v35, %s11173_s28  ;;  %v13268_v35 = vrot.slane %v12766_v22, 2 }
 0x56c   : >> { %10370 = vrot.lane.b32.xlu1 %v18041_v5, %s17878_s26  ;;  %v13255_v50 = vpop.permute.xlu0 %2475  ;;  %18045 = vst [vmem:[#allocation41_spill] sm:$0xff] %v13268_v35  ;;  %v10384_v5 = vpack.i.bf16 %v18046_v19, %v12898_v14  ;;  %v10394_v14 = vpack.i.bf16 %v12955_v60, %v12952_v9  ;;  %v13335_v44 = vsel %vm609_vm11, %v18043_v31, %v13268_v35 }
 0x56d   : >> { %18042 = vst [vmem:[#allocation62_spill] sm:$0xff] %v13255_v50  ;;  %v10399_v50 = vpack.i.bf16 %v12863_v24, %v12952_v9  ;;  %v18052_v24 = vpack.i.bf16 %v12921_v15, %v12647_v57  ;;  %18053 = vst [vmem:[#allocation65_spill] sm:$0xff] %v13335_v44  ;;  %v18054_v57 = vpack.i.bf16 %v12936_v20, %v12721_v37  ;;  %v10007_v20 = vunpack.i.l.bf16 %v13114_v59 }
 0x56e   : >> { %v13257_v51 = vpop.permute.xlu1 %10100  ;;  %10375 = vrot.lane.b32.xlu0 %v12917_v41, %s11153_s27  ;;  %v10424_v15 = vpack.i.bf16 %v12766_v22, %v13335_v44 }
 0x570   : >> { %10380 = vrot.lane.b32.xlu1 %v18044_v36, %s11155_s19  ;;  %v13265_v56 = vpop.permute.xlu0 %10145 }
 0x572   : >> { %v13270_v54 = vpop.permute.xlu1 %10105  ;;  %2900 = vrot.lane.b32.xlu0 %v13268_v35, %s11156_s22 }
 0x574   : >> { %10385 = vrot.lane.b32.xlu1 %v10384_v5, %s11153_s27  ;;  %v13277_v41 = vpop.permute.xlu0 %2615 }
 0x575   : >> { %18047 = vst [vmem:[#allocation47_spill] sm:$0xff] %v13277_v41  ;;  %v10429_v41 = vpack.i.bf16 %v18050_v55, %v18046_v19 }
 0x576   : >> { %v13279_v8 = vpop.permute.xlu1 %10115  ;;  %10405 = vrot.lane.b32.xlu0 %v12941_v29, %s11155_s19 }
 0x578   : >> { %10390 = vrot.lane.b32.xlu1 %v12949_v3, %s11153_s27  ;;  %v13285_v36 = vpop.permute.xlu0 %10170 }
 0x579   : >> { %v17874_v53 = vunpack.i.h.bf16 %v13285_v36 }
 0x57a   : >> { %v13288_v11 = vpop.permute.xlu1 %10120  ;;  %10415 = vrot.lane.b32.xlu0 %v12946_v62, %s17878_s26 }
 0x57b   : >> { %v13298_v29 = vsel %vm609_vm11, %v12716_v58, %v17874_v53  ;;  %v17877_v53 = vunpack.i.l.bf16 %v13102_v34 }
 0x57c   : >> { %18048 = vst [vmem:[#allocation63_spill] sm:$0xff] %v13298_v29  ;;  %10395 = vrot.lane.b32.xlu1 %v10394_v14, %s11153_s27  ;;  %v13301_v5 = vpop.permute.xlu0 %10180 }
 0x57d   : >> { %18049 = vst [vmem:[#allocation64_spill] sm:$0xff] %v13301_v5 }
 0x57e   : >> { %v13307_v49 = vpop.permute.xlu1 %10125  ;;  %10430 = vrot.lane.b32.xlu0 %v10429_v41, %s11156_s22 }
 0x580   : >> { %10400 = vrot.lane.b32.xlu1 %v10399_v50, %s11155_s19  ;;  %v13313_v58 = vpop.permute.xlu0 %10185  ;;  %v10419_v50 = vpack.i.bf16 %v18046_v19, %v12879_v33 }
 0x582   : >> { %v13315_v14 = vpop.permute.xlu1 %2527  ;;  %2821 = vrot.lane.b32.xlu0 %v12952_v9, %s11156_s22 }
 0x583   : >> { %18051 = vst [vmem:[#allocation42_spill] sm:$0xff] %v13315_v14  ;;  %v2659_v14 = vsel %vm609_vm11, %v12801_v4, %v17877_v53  ;;  %v18056_v4 = vld [vmem:[#allocation43_spill] sm:$0xff] }
 0x584   : >> { %10410 = vrot.lane.b32.xlu1 %v12949_v3, %s11155_s19  ;;  %v13321_v55 = vpop.permute.xlu0 %10190  ;;  %v10434_v53 = vpack.i.bf16 %v18056_v4, %v13335_v44 }
 0x586   : >> { %v13324_v41 = vpop.permute.xlu1 %10150  ;;  %10445 = vrot.lane.b32.xlu0 %v18052_v24, %s11166_s30  ;;  %v10459_v24 = vpack.i.bf16 %v2659_v14, %v12785_v18  ;;  %v2574_v14 = vsel %vm609_vm11, %v12780_v61, %v10007_v20  ;;  %v10113_v61 = vunpack.i.h.bf16 %v13217_v32 }
 0x587   : >> { %v10474_v59 = vpack.i.bf16 %v2574_v14, %v12966_v13  ;;  %v10128_v13 = vunpack.i.h.bf16 %v13307_v49 }
 0x588   : >> { %10420 = vrot.lane.b32.xlu1 %v10419_v50, %s17878_s26  ;;  %v13338_v3 = vpop.permute.xlu0 %10210 }
 0x58a   : >> { %v13344_v26 = vpop.permute.xlu1 %10155  ;;  %10450 = vrot.lane.b32.xlu0 %v18054_v57, %s11165_s29  ;;  %v10097_v57 = vunpack.i.l.bf16 %v13248_v63 }
 0x58c   : >> { %10425 = vrot.lane.b32.xlu1 %v10424_v15, %s17878_s26  ;;  %v13353_v31 = vpop.permute.xlu0 %10220  ;;  %v18059_v15 = vpack.i.bf16 %v13130_v16, %v12641_v40  ;;  %s11174_s26 = smov 4   ;;  %v10042_v40 = vunpack.i.l.bf16 %v13180_v42  ;;  %v10072_v16 = vunpack.i.l.bf16 %v13201_v7 }
 0x58d   : >> { %18055 = vst [vmem:[#allocation66_spill] sm:$0xff] %v13353_v31 }
 0x58e   : >> { %v13356_v50 = vpop.permute.xlu1 %10160  ;;  %10460 = vrot.lane.b32.xlu0 %v10459_v24, %s11169_s20  ;;  %v9988_v24 = vunpack.i.h.bf16 %v13102_v34  ;;  %v10484_v35 = vpack.i.bf16 %v10072_v16, %v10113_v61  ;;  %v10037_v61 = vunpack.i.l.bf16 %v13170_v52  ;;  %v10102_v16 = vunpack.i.l.bf16 %v13257_v51 }
 0x590   : >> { %10435 = vrot.lane.b32.xlu1 %v10434_v53, %s11156_s22  ;;  %v13362_v37 = vpop.permute.xlu0 %10225  ;;  %v10454_v20 = vpack.i.bf16 %v10097_v57, %v9988_v24  ;;  %v10108_v24 = vunpack.i.h.bf16 %v13270_v54 }
 0x591   : >> { %18057 = vst [vmem:[#allocation43_spill] sm:$0xff] %v13362_v37 }
 0x592   : >> { %v13365_v22 = vpop.permute.xlu1 %10165  ;;  %10465 = vrot.lane.b32.xlu0 %v13112_v6, %s11165_s29 }
 0x594   : >> { %2863 = vrot.lane.b32.xlu1 %v12955_v60, %s11156_s22  ;;  %v13371_v18 = vpop.permute.xlu0 %10230 }
 0x595   : >> { %18058 = vst [vmem:[#allocation67_spill] sm:$0xff] %v13371_v18 }
 0x596   : >> { %v13376_v53 = vpop.permute.xlu1 %10175  ;;  %10470 = vrot.lane.b32.xlu0 %v18059_v15, %s11167_s16 }
 0x598   : >> { %10440 = vrot.lane.b32.xlu1 %v12946_v62, %s11174_s26  ;;  %v13385_v6 = vpop.permute.xlu0 %10235  ;;  %v10038_v62 = vunpack.i.h.bf16 %v13170_v52 }
 0x59a   : >> { %v13389_v44 = vpop.permute.xlu1 %10195  ;;  %10475 = vrot.lane.b32.xlu0 %v10474_v59, %s11168_s17  ;;  %v10499_v57 = vpack.i.bf16 %v10042_v40, %v10038_v62  ;;  %v10132_v59 = vunpack.i.l.bf16 %v13227_v10  ;;  %v17888_v40 = vunpack.i.l.bf16 %v13149_v38  ;;  %v10504_v62 = vpack.i.bf16 %v10108_v24, %v10102_v16 }
 0x59c   : >> { %v13394_v15 = vpop.permute.xlu0 %10240  ;;  %10455 = vrot.lane.b32.xlu1 %v10454_v20, %s11166_s30  ;;  %v17887_v20 = vunpack.i.l.bf16 %v13288_v11  ;;  %v10489_v18 = vpack.i.bf16 %v10132_v59, %v10128_v13  ;;  %v17891_v13 = vunpack.i.h.bf16 %v13201_v7 }
 0x59e   : >> { %v13399_v14 = vpop.permute.xlu1 %10200  ;;  %10480 = vrot.lane.b32.xlu0 %v13142_v12, %s11165_s29  ;;  %v10023_v12 = vunpack.i.h.bf16 %v13155_v2 }
 0x59f   : >> { %v18070_v7 = vunpack.i.l.bf16 %v13399_v14 }
 0x5a0   : >> { %v13405_v37 = vpop.permute.xlu0 %10245  ;;  %10485 = vrot.lane.b32.xlu1 %v10484_v35, %s11166_s30  ;;  %v2531_v52 = vsel %vm536_vm13, %v17887_v20, %v10023_v12  ;;  %v10494_v35 = vpack.i.bf16 %v10037_v61, %v17888_v40  ;;  %v9967_v12 = vunpack.i.l.bf16 %v13054_v25  ;;  %v10028_v20 = vunpack.i.h.bf16 %v13149_v38 }
 0x5a1   : >> { %v10087_v40 = vunpack.i.l.bf16 %v13229_v28 }
 0x5a2   : >> { %v13411_v29 = vpop.permute.xlu1 %10205  ;;  %10500 = vrot.lane.b32.xlu0 %v10499_v57, %s11166_s30  ;;  %v10182_v57 = vunpack.i.l.bf16 %v13301_v5  ;;  %v10172_v5 = vunpack.i.l.bf16 %v13285_v36 }
 0x5a4   : >> { %v13416_v31 = vpop.permute.xlu0 %10250  ;;  %10490 = vrot.lane.b32.xlu1 %v10489_v18, %s11166_s30  ;;  %v10509_v18 = vpack.i.bf16 %v2531_v52, %v17891_v13  ;;  %v10088_v52 = vunpack.i.h.bf16 %v13229_v28  ;;  %v10012_v28 = vunpack.i.l.bf16 %v13132_v21 }
 0x5a5   : >> { %18060 = vst [vmem:[#allocation68_spill] sm:$0xff] %v13416_v31  ;;  %v10514_v31 = vpack.i.bf16 %v10182_v57, %v10028_v20  ;;  %v10192_v57 = vunpack.i.l.bf16 %v13321_v55 }
 0x5a6   : >> { %v13425_v59 = vpop.permute.xlu1 %10215  ;;  %10505 = vrot.lane.b32.xlu0 %v10504_v62, %s11169_s20  ;;  %v2478_v62 = vsel %vm540_vm10, %v10102_v16, %v9967_v12  ;;  %v2738_v16 = vsel %vm609_vm11, %v12854_v23, %v10087_v40  ;;  %v10098_v12 = vunpack.i.h.bf16 %v13248_v63  ;;  %v10539_v20 = vpack.i.bf16 %v10172_v5, %v10088_v52 }
 0x5a7   : >> { %v2575_v63 = vsel %vm540_vm10, %v10087_v40, %v10012_v28  ;;  %v10162_v52 = vunpack.i.l.bf16 %v13356_v50  ;;  %v10103_v40 = vunpack.i.h.bf16 %v13257_v51 }
 0x5a8   : >> { %v13429_v24 = vpop.permute.xlu0 %10270  ;;  %10495 = vrot.lane.b32.xlu1 %v10494_v35, %s11168_s17  ;;  %v2701_v23 = vsel %vm609_vm11, %v12872_v47, %v10098_v12  ;;  %v10549_v5 = vpack.i.bf16 %v2575_v63, %v10192_v57  ;;  %v17893_v47 = vunpack.i.l.bf16 %v13242_v0  ;;  %v10217_v12 = vunpack.i.l.bf16 %v13425_v59 }
 0x5a9   : >> { %18061 = vst [vmem:[#allocation69_spill] sm:$0xff] %v13429_v24  ;;  %v10002_v57 = vunpack.i.l.bf16 %v13124_v48  ;;  %v10544_v28 = vpack.i.bf16 %v10162_v52, %v10103_v40 }
 0x5aa   : >> { %v13436_v61 = vpop.permute.xlu1 %2657  ;;  %10510 = vrot.lane.b32.xlu0 %v10509_v18, %s11165_s29  ;;  %v18063_v18 = vunpack.i.l.bf16 %v13102_v34  ;;  %v10529_v34 = vpack.i.bf16 %v2738_v16, %v13147_v27  ;;  %v10534_v27 = vpack.i.bf16 %v2701_v23, %v12833_v39  ;;  %v10117_v39 = vunpack.i.l.bf16 %v13279_v8 }
 0x5ab   : >> { %18062 = vst [vmem:[#allocation70_spill] sm:$0xff] %v13436_v61  ;;  %v2576_v51 = vsel %vm536_vm13, %v17893_v47, %v10002_v57  ;;  %v10118_v23 = vunpack.i.h.bf16 %v13279_v8  ;;  %v17894_v8 = vunpack.i.h.bf16 %v13227_v10  ;;  %v10033_v57 = vunpack.i.h.bf16 %v13159_v46 }
 0x5ac   : >> { %v13442_v24 = vpop.permute.xlu0 %10275  ;;  %10520 = vrot.lane.b32.xlu1 %v13211_v30, %s11167_s16  ;;  %v10524_v13 = vpack.i.bf16 %v2478_v62, %v18063_v18 }
 0x5ae   : >> { %v13447_v35 = vpop.permute.xlu1 %10255  ;;  %10515 = vrot.lane.b32.xlu0 %v10514_v31, %s11168_s17  ;;  %v10177_v31 = vunpack.i.l.bf16 %v13376_v53 }
 0x5b0   : >> { %v13456_v61 = vpop.permute.xlu0 %10280  ;;  %10525 = vrot.lane.b32.xlu1 %v10524_v13, %s11166_s30  ;;  %v10093_v13 = vunpack.i.h.bf16 %v13242_v0 }
 0x5b2   : >> { %v13460_v30 = vpop.permute.xlu1 %2779  ;;  %10540 = vrot.lane.b32.xlu0 %v10539_v20, %s11168_s17  ;;  %v10554_v16 = vpack.i.bf16 %v10177_v31, %v10093_v13  ;;  %v10022_v13 = vunpack.i.l.bf16 %v13155_v2 }
 0x5b3   : >> { %18064 = vst [vmem:[#allocation71_spill] sm:$0xff] %v13460_v30  ;;  %v10052_v30 = vunpack.i.l.bf16 %v13166_v17 }
 0x5b4   : >> { %v13468_v62 = vpop.permute.xlu0 %2736  ;;  %10530 = vrot.lane.b32.xlu1 %v10529_v34, %s11171_s24  ;;  %v10207_v34 = vunpack.i.l.bf16 %v13411_v29  ;;  %v2479_v40 = vsel %vm536_vm13, %v10117_v39, %v10022_v13  ;;  %v10589_v39 = vpack.i.bf16 %v10033_v57, %v17894_v8  ;;  %v10213_v8 = vunpack.i.h.bf16 %v13338_v3 }
 0x5b5   : >> { %18065 = vst [vmem:[#allocation72_spill] sm:$0xff] %v13468_v62 }
 0x5b6   : >> { %v13473_v18 = vpop.permute.xlu1 %10260  ;;  %10550 = vrot.lane.b32.xlu0 %v10549_v5, %s11168_s17  ;;  %v10569_v5 = vpack.i.bf16 %v2576_v51, %v10217_v12  ;;  %v10559_v52 = vpack.i.bf16 %v10207_v34, %v10118_v23  ;;  %v10147_v51 = vunpack.i.l.bf16 %v13265_v56 }
 0x5b8   : >> { %v13480_v20 = vpop.permute.xlu0 %10285  ;;  %10535 = vrot.lane.b32.xlu1 %v10534_v27, %s11170_s21 }
 0x5ba   : >> { %v13485_v63 = vpop.permute.xlu1 %10265  ;;  %10555 = vrot.lane.b32.xlu0 %v10554_v16, %s11168_s17  ;;  %v10112_v16 = vunpack.i.l.bf16 %v13217_v32  ;;  %v10032_v32 = vunpack.i.l.bf16 %v13159_v46  ;;  %v10048_v46 = vunpack.i.h.bf16 %v13190_v43 }
 0x5bc   : >> { %v13493_v31 = vpop.permute.xlu0 %10290  ;;  %10545 = vrot.lane.b32.xlu1 %v10544_v28, %s11167_s16  ;;  %v10564_v2 = vpack.i.bf16 %v2479_v40, %v10112_v16  ;;  %v17895_v28 = vunpack.i.l.bf16 %v13307_v49 }
 0x5be   : >> { %v13497_v27 = vpop.permute.xlu1 %10305  ;;  %10570 = vrot.lane.b32.xlu0 %v10569_v5, %s11168_s17  ;;  %v10584_v5 = vpack.i.bf16 %v10032_v32, %v17895_v28  ;;  %v10148_v32 = vunpack.i.h.bf16 %v13265_v56  ;;  %v10152_v56 = vunpack.i.l.bf16 %v13324_v41 }
 0x5c0   : >> { %v13502_v62 = vpop.permute.xlu0 %10295  ;;  %10560 = vrot.lane.b32.xlu1 %v10559_v52, %s11167_s16  ;;  %v10047_v52 = vunpack.i.l.bf16 %v13190_v43  ;;  %v10053_v43 = vunpack.i.h.bf16 %v13166_v17 }
 0x5c2   : >> { %v13506_v12 = vpop.permute.xlu1 %10310  ;;  %10575 = vrot.lane.b32.xlu0 %v13238_v1, %s11165_s29  ;;  %v10043_v1 = vunpack.i.h.bf16 %v13180_v42  ;;  %v9968_v42 = vunpack.i.h.bf16 %v13054_v25  ;;  %v3566_v25 = vsel %vm3565_vm2, %v18056_v4, %v10047_v52  ;;  %v10163_v4 = vunpack.i.h.bf16 %v13356_v50 }
 0x5c4   : >> { %v13512_v34 = vpop.permute.xlu0 %10300  ;;  %10565 = vrot.lane.b32.xlu1 %v10564_v2, %s11166_s30  ;;  %v10594_v40 = vpack.i.bf16 %v10147_v51, %v10043_v1  ;;  %v10247_v2 = vunpack.i.l.bf16 %v13405_v37  ;;  %v18066_v51 = vld [vmem:[#allocation46_spill] sm:$0xff] }
 0x5c5   : >> { %v3567_v1 = vsel %vm3565_vm2, %v18066_v51, %v10048_v46  ;;  %v18068_v46 = vunpack.i.l.bf16 %v13270_v54 }
 0x5c6   : >> { %v13519_v23 = vpop.permute.xlu1 %10320  ;;  %10580 = vrot.lane.b32.xlu0 %v13246_v45, %s11167_s16  ;;  %v10599_v28 = vpack.i.bf16 %v10247_v2, %v10148_v32  ;;  %v3586_v32 = vsel %vm3585_vm6, %v3566_v25, %v10052_v30  ;;  %v3587_v17 = vsel %vm3585_vm6, %v3567_v1, %v10053_v43  ;;  %v10242_v43 = vunpack.i.l.bf16 %v13394_v15 }
 0x5c7   : >> { %v2530_v51 = vsel %vm540_vm10, %v18068_v46, %v9968_v42  ;;  %v2660_v42 = vsel %vm540_vm10, %v18070_v7, %v10112_v16  ;;  %v10157_v7 = vunpack.i.l.bf16 %v13344_v26  ;;  %v2823_v16 = vsel %vm609_vm11, %v12952_v9, %v10163_v4 }
 0x5c8   : >> { %v13526_v13 = vpop.permute.xlu0 %10315  ;;  %10590 = vrot.lane.b32.xlu1 %v10589_v39, %s11165_s29  ;;  %v10187_v39 = vunpack.i.l.bf16 %v13313_v58  ;;  %v10263_v1 = vunpack.i.h.bf16 %v13473_v18  ;;  %v10262_v25 = vunpack.i.l.bf16 %v13473_v18 }
 0x5ca   : >> { %v13532_v57 = vpop.permute.xlu1 %10325  ;;  %10585 = vrot.lane.b32.xlu0 %v10584_v5, %s11166_s30  ;;  %v10153_v5 = vunpack.i.h.bf16 %v13324_v41  ;;  %v10604_v52 = vpack.i.bf16 %v2530_v51, %v10187_v39  ;;  %v18071_v41 = vld [vmem:[#allocation61_spill] sm:$0xff]  ;;  %v3606_v39 = vsel %vm3605_vm7, %v3586_v32, %v10152_v56  ;;  %v18072_v51 = vunpack.i.l.bf16 %v13288_v11 }
 0x5cb   : >> { %v10083_v46 = vunpack.i.h.bf16 %v18071_v41  ;;  %v10082_v50 = vunpack.i.l.bf16 %v18071_v41  ;;  %v10609_v56 = vpack.i.bf16 %v2660_v42, %v10163_v4  ;;  %v10267_v32 = vunpack.i.l.bf16 %v13485_v63 }
 0x5cc   : >> { %v13539_v47 = vpop.permute.xlu0 %10330  ;;  %10595 = vrot.lane.b32.xlu1 %v10594_v40, %s11165_s29  ;;  %v18067_v40 = vld [vmem:[#allocation62_spill] sm:$0xff]  ;;  %v3607_v30 = vsel %vm3605_vm7, %v3587_v17, %v10153_v5  ;;  %v10188_v5 = vunpack.i.h.bf16 %v13313_v58  ;;  %v10238_v41 = vunpack.i.h.bf16 %v13385_v6  ;;  %v10624_v4 = vpack.i.bf16 %v2823_v16, %v12879_v33 }
 0x5cd   : >> { %v3626_v9 = vsel %vm3625_vm8, %v3606_v39, %v10082_v50  ;;  %v3627_v17 = vsel %vm3625_vm8, %v3607_v30, %v10083_v46  ;;  %v18073_v30 = vunpack.i.l.bf16 %v13270_v54  ;;  %v10167_v16 = vunpack.i.l.bf16 %v13365_v22 }
 0x5ce   : >> { %v13550_v45 = vpop.permute.xlu1 %10335  ;;  %2944 = vrot.lane.b32.xlu0 %v18067_v40, %s11166_s30  ;;  %v3646_v58 = vsel %vm3645_vm14, %v3626_v9, %v10157_v7  ;;  %v10619_v42 = vpack.i.bf16 %v10242_v43, %v10238_v41  ;;  %v10168_v7 = vunpack.i.h.bf16 %v13365_v22  ;;  %v10197_v43 = vunpack.i.l.bf16 %v13389_v44  ;;  %s18076_s30 = smov 96  }
 0x5d0   : >> { %v13560_v2 = vpop.permute.xlu0 %2699  ;;  %10600 = vrot.lane.b32.xlu1 %v10599_v28, %s11168_s17  ;;  %v10158_v28 = vunpack.i.h.bf16 %v13344_v26  ;;  %v10268_v26 = vunpack.i.h.bf16 %v13485_v63 }
 0x5d1   : >> { %18069 = vst [vmem:[#allocation46_spill] sm:$0xff] %v13560_v2  ;;  %v10614_v2 = vpack.i.bf16 %v10213_v8, %v18072_v51  ;;  %v3666_v51 = vsel %vm3665_vm9, %v3646_v58, %v10262_v25 }
 0x5d2   : >> { %v13573_v38 = vpop.permute.xlu1 %10350  ;;  %10605 = vrot.lane.b32.xlu0 %v10604_v52, %s11165_s29  ;;  %v10278_v52 = vunpack.i.h.bf16 %v13442_v24  ;;  %v3686_v39 = vsel %vm3685_vm4, %v3666_v51, %v10267_v32  ;;  %v10198_v51 = vunpack.i.h.bf16 %v13389_v44  ;;  %v18080_v44 = vunpack.i.h.bf16 %v13285_v36 }
 0x5d3   : >> { %v10003_v36 = vunpack.i.h.bf16 %v13124_v48  ;;  %v18083_v48 = vld [vmem:[#allocation43_spill] sm:$0xff] }
 0x5d4   : >> { %v13584_v8 = vpop.permute.xlu0 %10340  ;;  %10615 = vrot.lane.b32.xlu1 %v10614_v2, %s11170_s21  ;;  %v3647_v2 = vsel %vm3645_vm14, %v3627_v17, %v10158_v28  ;;  %v2865_v46 = vsel %vm609_vm11, %v12955_v60, %v10278_v52  ;;  %v10639_v28 = vpack.i.bf16 %v10188_v5, %v18073_v30  ;;  %v10193_v60 = vunpack.i.h.bf16 %v13321_v55 }
 0x5d5   : >> { %v3667_v63 = vsel %vm3665_vm9, %v3647_v2, %v10263_v1  ;;  %v3705_v52 = vsel %vm1427_vm1, %v3686_v39, %v10167_v16  ;;  %v10629_v22 = vpack.i.bf16 %v2865_v46, %v18046_v19  ;;  %v10218_v55 = vunpack.i.h.bf16 %v13425_v59  ;;  %v18074_v2 = vld [vmem:[#allocation66_spill] sm:$0xff]  ;;  %v18078_v16 = vld [vmem:[#allocation44_spill] sm:$0xff] }
 0x5d6   : >> { %v13594_v18 = vpop.permute.xlu1 %10355  ;;  %10610 = vrot.lane.b32.xlu0 %v10609_v56, %s11169_s20  ;;  %v3687_v33 = vsel %vm3685_vm4, %v3667_v63, %v10268_v26  ;;  %v10644_v41 = vpack.i.bf16 %v10197_v43, %v10193_v60  ;;  %v17901_v46 = vunpack.i.h.bf16 %v13132_v21 }
 0x5d7   : >> { %v3706_v26 = vsel %vm1427_vm1, %v3687_v33, %v10168_v7  ;;  %v18075_v33 = vld [vmem:[#allocation69_spill] sm:$0xff]  ;;  %v18077_v7 = vld [vmem:[#allocation63_spill] sm:$0xff] }
 0x5d8   : >> { %v13602_v50 = vpop.permute.xlu0 %10345  ;;  %10625 = vrot.lane.b32.xlu1 %v10624_v4, %s11172_s23  ;;  %v10273_v30 = vunpack.i.h.bf16 %v18075_v33  ;;  %v18079_v43 = vpack.i.bf16 %v18077_v7, %v18078_v16  ;;  %v10227_v16 = vunpack.i.l.bf16 %v18083_v48 }
 0x5da   : >> { %v10361_v1 = vpop.permute.xlu1 %10360  ;;  %10620 = vrot.lane.b32.xlu0 %v10619_v42, %s11171_s24  ;;  %v10222_v42 = vunpack.i.l.bf16 %v18074_v2 }
 0x5db   : >> { %v10363_v25 = vunpack.i.h.bf16 %v10361_v1  ;;  %v10362_v56 = vunpack.i.l.bf16 %v10361_v1  ;;  %v2618_v1 = vsel %vm540_vm10, %v18080_v44, %v17901_v46 }
 0x5dc   : >> { %v13618_v54 = vpop.permute.xlu0 %10365  ;;  %10640 = vrot.lane.b32.xlu1 %v10639_v28, %s11170_s21  ;;  %v10659_v39 = vpack.i.bf16 %v10222_v42, %v10218_v55 }
 0x5dd   : >> { %v3725_v5 = vsel %vm3724_vm5, %v3705_v52, %v10362_v56  ;;  %v3726_v32 = vsel %vm3724_vm5, %v3706_v26, %v10363_v25  ;;  %v10368_v9 = vunpack.i.h.bf16 %v13618_v54  ;;  %v10367_v17 = vunpack.i.l.bf16 %v13618_v54  ;;  %v18081_v56 = vld [vmem:[#allocation67_spill] sm:$0xff] }
 0x5de   : >> { %v13627_v4 = vpop.permute.xlu1 %10370  ;;  %10630 = vrot.lane.b32.xlu0 %v10629_v22, %s11173_s28  ;;  %v10212_v25 = vunpack.i.l.bf16 %v13338_v3  ;;  %v10232_v60 = vunpack.i.l.bf16 %v18081_v56  ;;  %v10649_v52 = vpack.i.bf16 %v2618_v1, %v10198_v51  ;;  %v10178_v22 = vunpack.i.h.bf16 %v13376_v53 }
 0x5df   : >> { %v13633_v58 = vsel %vm3744_vm0, %v3725_v5, %v10367_v17  ;;  %v13638_v19 = vsel %vm3744_vm0, %v3726_v32, %v10368_v9  ;;  %v10123_v5 = vunpack.i.h.bf16 %v13288_v11  ;;  %v10243_v32 = vunpack.i.h.bf16 %v13394_v15 }
 0x5e0   : >> { %v13642_v63 = vpop.permute.xlu0 %10375  ;;  %10645 = vrot.lane.b32.xlu1 %v10644_v41, %s11171_s24  ;;  %v8272_v59 = vpack.c.bf16 %v13638_v19, %v13633_v58  ;;  %v10674_v41 = vpack.i.bf16 %v10232_v60, %v10273_v30  ;;  %v2619_v51 = vsel %vm536_vm13, %v10178_v22, %v10003_v36  ;;  %v10223_v11 = vunpack.i.h.bf16 %v18074_v2  ;;  %v18094_v19 = vld [vmem:[#allocation55_spill] sm:$0xff] }
 0x5e1   : >> { %v10654_v3 = vpack.i.bf16 %v10212_v25, %v10123_v5  ;;  %v10327_v30 = vunpack.i.l.bf16 %v13532_v57  ;;  %v18084_v60 = vunpack.i.l.bf16 %v13307_v49  ;;  %v10237_v5 = vunpack.i.l.bf16 %v13385_v6 }
 0x5e2   : >> { %v13649_v28 = vpop.permute.xlu1 %10380  ;;  %10635 = vrot.lane.b32.xlu0 %v18079_v43, %s18076_s30  ;;  %v17902_v43 = vunpack.i.h.bf16 %v13411_v29  ;;  %v10664_v1 = vpack.i.bf16 %v2619_v51, %v10223_v11  ;;  %v10233_v36 = vunpack.i.h.bf16 %v18081_v56  ;;  %v10257_v51 = vunpack.i.l.bf16 %v13447_v35 }
 0x5e3   : >> { %v10689_v2 = vpack.i.bf16 %v18067_v40, %v10327_v30  ;;  %v10343_v40 = vunpack.i.h.bf16 %v13584_v8  ;;  %v10317_v6 = vunpack.i.l.bf16 %v13526_v13  ;;  %v10308_v56 = vunpack.i.h.bf16 %v13497_v27 }
 0x5e4   : >> { %v13662_v26 = vpop.permute.xlu0 %2900  ;;  %10660 = vrot.lane.b32.xlu1 %v10659_v39, %s11171_s24  ;;  %v18082_v39 = vld [vmem:[#allocation52_spill] sm:$0xff]  ;;  %v10679_v49 = vpack.i.bf16 %v10237_v5, %v10233_v36  ;;  %v18086_v36 = vunpack.i.l.bf16 %v13399_v14  ;;  %v10298_v53 = vunpack.i.h.bf16 %v13502_v62  ;;  %v10283_v54 = vunpack.i.h.bf16 %v13456_v61 }
 0x5e5   : >> { %v10684_v15 = vpack.i.bf16 %v18082_v39, %v10243_v32 }
 0x5e6   : >> { %v13668_v55 = vpop.permute.xlu1 %10385  ;;  %10650 = vrot.lane.b32.xlu0 %v10649_v52, %s11167_s16  ;;  %v2661_v52 = vsel %vm536_vm13, %v10227_v16, %v18084_v60  ;;  %v10292_v16 = vunpack.i.l.bf16 %v13493_v31  ;;  %v17903_v60 = vunpack.i.l.bf16 %v18075_v33 }
 0x5e7   : >> { %v10669_v32 = vpack.i.bf16 %v2661_v52, %v17902_v43  ;;  %v10709_v52 = vpack.i.bf16 %v10317_v6, %v10308_v56 }
 0x5e8   : >> { %v13672_v42 = vpop.permute.xlu0 %10405  ;;  %10675 = vrot.lane.b32.xlu1 %v10674_v41, %s11169_s20 }
 0x5ea   : >> { %v13681_v7 = vpop.permute.xlu1 %10390  ;;  %10655 = vrot.lane.b32.xlu0 %v10654_v3, %s11169_s20 }
 0x5ec   : >> { %v13686_v44 = vpop.permute.xlu0 %10415  ;;  %10685 = vrot.lane.b32.xlu1 %v10684_v15, %s11167_s16  ;;  %v18085_v15 = vld [vmem:[#allocation68_spill] sm:$0xff] }
 0x5ee   : >> { %v13692_v25 = vpop.permute.xlu1 %10395  ;;  %10665 = vrot.lane.b32.xlu0 %v10664_v1, %s11167_s16  ;;  %v10699_v1 = vpack.i.bf16 %v10257_v51, %v10343_v40  ;;  %v10277_v40 = vunpack.i.l.bf16 %v13442_v24 }
 0x5f0   : >> { %v13701_v41 = vpop.permute.xlu0 %10430  ;;  %10690 = vrot.lane.b32.xlu1 %v10689_v2, %s11169_s20 }
 0x5f2   : >> { %v13706_v3 = vpop.permute.xlu1 %10400  ;;  %10670 = vrot.lane.b32.xlu0 %v10669_v32, %s11169_s20  ;;  %v10248_v32 = vunpack.i.h.bf16 %v13405_v37  ;;  %v10293_v37 = vunpack.i.h.bf16 %v13493_v31 }
 0x5f4   : >> { %v13711_v11 = vpop.permute.xlu0 %2821  ;;  %10695 = vrot.lane.b32.xlu1 %v18085_v15, %s11169_s20  ;;  %v10704_v15 = vpack.i.bf16 %v10292_v16, %v18086_v36  ;;  %v10714_v6 = vpack.i.bf16 %v10248_v32, %v17903_v60  ;;  %v10302_v36 = vunpack.i.l.bf16 %v13512_v34 }
 0x5f6   : >> { %v13717_v2 = vpop.permute.xlu1 %10410  ;;  %10680 = vrot.lane.b32.xlu0 %v10679_v49, %s11170_s21  ;;  %v18087_v49 = vunpack.i.h.bf16 %v13227_v10  ;;  %v2782_v43 = vsel %vm540_vm10, %v10302_v36, %v10178_v22  ;;  %v18090_v36 = vunpack.i.l.bf16 %v13242_v0 }
 0x5f8   : >> { %10700 = vrot.lane.b32.xlu1 %v10699_v1, %s11170_s21  ;;  %v13722_v5 = vpop.permute.xlu0 %10445  ;;  %v2703_v51 = vsel %vm536_vm13, %v10308_v56, %v18087_v49  ;;  %v17904_v1 = vunpack.i.l.bf16 %v13456_v61  ;;  %v18088_v56 = vld [vmem:[#allocation41_spill] sm:$0xff] }
 0x5f9   : >> { %v2902_v32 = vsel %vm609_vm11, %v18088_v56, %v10277_v40 }
 0x5fa   : >> { %v13727_v46 = vpop.permute.xlu1 %10420  ;;  %10710 = vrot.lane.b32.xlu0 %v10709_v52, %s11173_s28  ;;  %v17905_v52 = vunpack.i.h.bf16 %v13480_v20  ;;  %v10719_v10 = vpack.i.bf16 %v2703_v51, %v17904_v1  ;;  %v18089_v51 = vld [vmem:[#allocation65_spill] sm:$0xff] }
 0x5fb   : >> { %v10724_v56 = vpack.i.bf16 %v2902_v32, %v18089_v51  ;;  %v10328_v51 = vunpack.i.h.bf16 %v13532_v57 }
 0x5fc   : >> { %10705 = vrot.lane.b32.xlu1 %v10704_v15, %s11172_s23  ;;  %v13739_v16 = vpop.permute.xlu0 %10450  ;;  %v10734_v31 = vpack.i.bf16 %v10293_v37, %v17905_v52  ;;  %v10303_v15 = vunpack.i.h.bf16 %v13512_v34  ;;  %v10203_v37 = vunpack.i.h.bf16 %v13399_v14  ;;  %v2739_v14 = vsel %vm540_vm10, %v10277_v40, %v18090_v36 }
 0x5fd   : >> { %v10739_v32 = vpack.i.bf16 %v2739_v14, %v10298_v53  ;;  %v10422_v53 = vunpack.i.l.bf16 %v13727_v46  ;;  %v10322_v36 = vunpack.i.l.bf16 %v13519_v23  ;;  %v18092_v14 = vld [vmem:[#allocation47_spill] sm:$0xff] }
 0x5fe   : >> { %v13743_v24 = vpop.permute.xlu1 %10425  ;;  %10715 = vrot.lane.b32.xlu0 %v10714_v6, %s11171_s24  ;;  %v10287_v6 = vunpack.i.l.bf16 %v13480_v20  ;;  %v10744_v1 = vpack.i.bf16 %v2782_v43, %v10303_v15  ;;  %v10307_v43 = vunpack.i.l.bf16 %v13497_v27 }
 0x600   : >> { %10720 = vrot.lane.b32.xlu1 %v10719_v10, %s11170_s21  ;;  %v13754_v49 = vpop.permute.xlu0 %10460  ;;  %v10729_v10 = vpack.i.bf16 %v10287_v6, %v10203_v37  ;;  %v18091_v37 = vld [vmem:[#allocation42_spill] sm:$0xff] }
 0x602   : >> { %v13760_v60 = vpop.permute.xlu1 %10435  ;;  %10735 = vrot.lane.b32.xlu0 %v10734_v31, %s11173_s28 }
 0x604   : >> { %10725 = vrot.lane.b32.xlu1 %v10724_v56, %s11174_s26  ;;  %v13766_v34 = vpop.permute.xlu0 %10465 }
 0x606   : >> { %v13769_v52 = vpop.permute.xlu1 %2863  ;;  %10745 = vrot.lane.b32.xlu0 %v10744_v1, %s18076_s30  ;;  %v10228_v1 = vunpack.i.h.bf16 %v18083_v48 }
 0x608   : >> { %10730 = vrot.lane.b32.xlu1 %v10729_v10, %s18076_s30  ;;  %v13773_v22 = vpop.permute.xlu0 %10470  ;;  %v10779_v10 = vpack.i.bf16 %v18091_v37, %v10328_v51 }
 0x60a   : >> { %v10441_v31 = vpop.permute.xlu1 %10440  ;;  %10770 = vrot.lane.b32.xlu0 %v13539_v47, %s18076_s30  ;;  %v10749_v47 = vpack.i.bf16 %v10307_v43, %v10228_v1  ;;  %v10784_v43 = vpack.i.bf16 %v18092_v14, %v10422_v53  ;;  %v10323_v1 = vunpack.i.h.bf16 %v13519_v23  ;;  %v10382_v23 = vunpack.i.l.bf16 %v13649_v28 }
 0x60b   : >> { %v10443_v15 = vunpack.i.h.bf16 %v10441_v31  ;;  %v10442_v6 = vunpack.i.l.bf16 %v10441_v31 }
 0x60c   : >> { %10740 = vrot.lane.b32.xlu1 %v10739_v32, %s11171_s24  ;;  %v13784_v56 = vpop.permute.xlu0 %10475  ;;  %v10428_v32 = vunpack.i.h.bf16 %v13743_v24 }
 0x60d   : >> { %v3765_v0 = vsel %vm3764_vm15, %v10367_v17, %v10442_v6  ;;  %v3766_v27 = vsel %vm3764_vm15, %v10368_v9, %v10443_v15  ;;  %v18093_v15 = vld [vmem:[#allocation64_spill] sm:$0xff] }
 0x60e   : >> { %v13792_v40 = vpop.permute.xlu1 %10455  ;;  %10775 = vrot.lane.b32.xlu0 %v13550_v45, %s11172_s23  ;;  %v8270_v48 = vpack.c.bf16 %v3766_v27, %v3765_v0  ;;  %v10403_v45 = vunpack.i.h.bf16 %v13706_v3  ;;  %v10183_v58 = vunpack.i.h.bf16 %v18093_v15  ;;  %v10342_v0 = vunpack.i.l.bf16 %v13584_v8 }
 0x60f   : >> { %v10347_v15 = vunpack.i.l.bf16 %v13602_v50  ;;  %v10258_v8 = vunpack.i.h.bf16 %v13447_v35  ;;  %v10407_v35 = vunpack.i.l.bf16 %v13672_v42 }
 0x610   : >> { %8271 = vmatprep.subr.bf16.mxu1 %v8270_v48  ;;  %10750 = vrot.lane.b32.xlu1 %v10749_v47, %s18076_s30  ;;  %v13801_v17 = vpop.permute.xlu0 %10480  ;;  %v10789_v48 = vpack.i.bf16 %v10342_v0, %v10428_v32 }
 0x611   : >> { %8273 = vmatpush1.bf16.msra.mxu1 %v8272_v59  ;;  %v18095_v59 = vunpack.i.l.bf16 %v18094_v19  ;;  %v10794_v32 = vpack.i.bf16 %v10347_v15, %v10258_v8 }
 0x612   : >> { %v13808_v9 = vpop.permute.xlu1 %10485  ;;  %10780 = vrot.lane.b32.xlu0 %v10779_v10, %s11170_s21 }
 0x613   : >> { %v2740_v6 = vsel %vm536_vm13, %v10283_v54, %v18095_v59  ;;  %v2825_v59 = vsel %vm536_vm13, %v10382_v23, %v10327_v30  ;;  %v10412_v30 = vunpack.i.l.bf16 %v13717_v2  ;;  %v18099_v23 = vunpack.i.l.bf16 %v18075_v33 }
 0x614   : >> { %10755 = vrot.lane.b32.xlu1 %v13506_v12, %s11172_s23  ;;  %v13816_v31 = vpop.permute.xlu0 %10500  ;;  %v10759_v27 = vpack.i.bf16 %v2740_v6, %v10403_v45  ;;  %v2783_v12 = vsel %vm536_vm13, %v10322_v36, %v10183_v58  ;;  %v10408_v45 = vunpack.i.h.bf16 %v13672_v42  ;;  %v10392_v42 = vunpack.i.l.bf16 %v13681_v7 }
 0x615   : >> { %v10764_v53 = vpack.i.bf16 %v2783_v12, %v10323_v1  ;;  %v10413_v1 = vunpack.i.h.bf16 %v13717_v2  ;;  %v18098_v12 = vunpack.i.h.bf16 %v13480_v20  ;;  %v2904_v8 = vsel %vm536_vm13, %v10407_v35, %v18099_v23 }
 0x616   : >> { %v13826_v47 = vpop.permute.xlu1 %10490  ;;  %10785 = vrot.lane.b32.xlu0 %v10784_v43, %s18076_s30  ;;  %v10297_v43 = vunpack.i.l.bf16 %v13502_v62  ;;  %v10834_v6 = vpack.i.bf16 %v2825_v59, %v10408_v45  ;;  %v18096_v62 = vld [vmem:[#allocation59_spill] sm:$0xff]  ;;  %v10423_v20 = vunpack.i.h.bf16 %v13727_v46  ;;  %v10393_v33 = vunpack.i.h.bf16 %v13681_v7 }
 0x617   : >> { %v10839_v45 = vpack.i.bf16 %v2904_v8, %v10413_v1  ;;  %v18100_v59 = vunpack.i.h.bf16 %v13411_v29  ;;  %v10378_v46 = vunpack.i.h.bf16 %v13642_v63  ;;  %v18101_v1 = vld [vmem:[#allocation70_spill] sm:$0xff]  ;;  %v18102_v7 = vunpack.i.l.bf16 %v13456_v61 }
 0x618   : >> { %10760 = vrot.lane.b32.xlu1 %v10759_v27, %s11171_s24  ;;  %v13831_v10 = vpop.permute.xlu0 %10505  ;;  %v18097_v27 = vunpack.i.h.bf16 %v18096_v62  ;;  %v10849_v62 = vpack.i.bf16 %v18101_v1, %v10423_v20  ;;  %v10358_v61 = vunpack.i.h.bf16 %v13594_v18 }
 0x619   : >> { %v2824_v35 = vsel %vm540_vm10, %v10392_v42, %v18100_v59  ;;  %v2866_v29 = vsel %vm540_vm10, %v10393_v33, %v18102_v7  ;;  %v10357_v7 = vunpack.i.l.bf16 %v13594_v18  ;;  %v10437_v18 = vunpack.i.l.bf16 %v13760_v60 }
 0x61a   : >> { %v13834_v19 = vpop.permute.xlu1 %10495  ;;  %10790 = vrot.lane.b32.xlu0 %v10789_v48, %s11174_s26  ;;  %v2702_v48 = vsel %vm540_vm10, %v18098_v12, %v18097_v27  ;;  %v10814_v27 = vpack.i.bf16 %v2824_v35, %v10378_v46  ;;  %v10348_v35 = vunpack.i.h.bf16 %v13602_v50  ;;  %v18104_v46 = vld [vmem:[#allocation46_spill] sm:$0xff]  ;;  %v10353_v50 = vunpack.i.h.bf16 %v13573_v38 }
 0x61c   : >> { %10765 = vrot.lane.b32.xlu1 %v10764_v53, %s18076_s30  ;;  %v13841_v36 = vpop.permute.xlu0 %10510  ;;  %v10799_v53 = vpack.i.bf16 %v2702_v48, %v10297_v43 }
 0x61e   : >> { %v13844_v58 = vpop.permute.xlu1 %10520  ;;  %10810 = vrot.lane.b32.xlu0 %v13627_v4, %s11174_s26  ;;  %v10383_v4 = vunpack.i.h.bf16 %v13649_v28 }
 0x620   : >> { %10795 = vrot.lane.b32.xlu1 %v10794_v32, %s11171_s24  ;;  %v13854_v0 = vpop.permute.xlu0 %10515  ;;  %v2867_v28 = vsel %vm536_vm13, %v10383_v4, %v10328_v51  ;;  %v10377_v4 = vunpack.i.l.bf16 %v13642_v63  ;;  %v10318_v63 = vunpack.i.h.bf16 %v13526_v13  ;;  %v10427_v13 = vunpack.i.l.bf16 %v13743_v24 }
 0x621   : >> { %v10804_v2 = vpack.i.bf16 %v2867_v28, %v10412_v30  ;;  %v10352_v24 = vunpack.i.l.bf16 %v13573_v38  ;;  %v10453_v38 = vunpack.i.h.bf16 %v13739_v16 }
 0x622   : >> { %v13863_v15 = vpop.permute.xlu1 %10525  ;;  %10835 = vrot.lane.b32.xlu0 %v10834_v6, %s11172_s23  ;;  %v10397_v6 = vunpack.i.l.bf16 %v13692_v25  ;;  %v2903_v23 = vsel %vm540_vm10, %v10377_v4, %v10283_v54 }
 0x624   : >> { %10800 = vrot.lane.b32.xlu1 %v10799_v53, %s11170_s21  ;;  %v13872_v32 = vpop.permute.xlu0 %10540  ;;  %v10859_v12 = vpack.i.bf16 %v2866_v29, %v10397_v6  ;;  %v10398_v53 = vunpack.i.h.bf16 %v13692_v25  ;;  %v10432_v25 = vunpack.i.l.bf16 %v13701_v41  ;;  %v10854_v6 = vpack.i.bf16 %v18104_v46, %v10427_v13 }
 0x626   : >> { %v13877_v43 = vpop.permute.xlu1 %10530  ;;  %10840 = vrot.lane.b32.xlu0 %v10839_v45, %s11174_s26  ;;  %v10824_v8 = vpack.i.bf16 %v2903_v23, %v10398_v53  ;;  %v10402_v45 = vunpack.i.l.bf16 %v13706_v3  ;;  %v18103_v3 = vld [vmem:[#allocation60_spill] sm:$0xff]  ;;  %v10869_v53 = vpack.i.bf16 %v10357_v7, %v10353_v50  ;;  %v10448_v23 = vunpack.i.h.bf16 %v13722_v5 }
 0x628   : >> { %10805 = vrot.lane.b32.xlu1 %v10804_v2, %s11173_s28  ;;  %v13888_v57 = vpop.permute.xlu0 %10550  ;;  %v10829_v28 = vpack.i.bf16 %v10402_v45, %v10318_v63  ;;  %v10874_v2 = vpack.i.bf16 %v10432_v25, %v10358_v61  ;;  %v18107_v63 = vld [vmem:[#allocation71_spill] sm:$0xff]  ;;  %v10452_v25 = vunpack.i.l.bf16 %v13739_v16  ;;  %v10433_v61 = vunpack.i.h.bf16 %v13701_v41 }
 0x62a   : >> { %v13890_v51 = vpop.permute.xlu1 %10535  ;;  %10850 = vrot.lane.b32.xlu0 %v10849_v62, %s11172_s23 }
 0x62c   : >> { %10815 = vrot.lane.b32.xlu1 %v10814_v27, %s11172_s23  ;;  %v13897_v48 = vpop.permute.xlu0 %10555 }
 0x62e   : >> { %v13901_v30 = vpop.permute.xlu1 %10545  ;;  %10860 = vrot.lane.b32.xlu0 %v10859_v12, %s11173_s28 }
 0x630   : >> { %10820 = vrot.lane.b32.xlu1 %v13668_v55, %s11174_s26  ;;  %v13906_v42 = vpop.permute.xlu0 %10570 }
 0x632   : >> { %v13912_v20 = vpop.permute.xlu1 %10560  ;;  %3004 = vrot.lane.b32.xlu0 %v18091_v37, %s11165_s29  ;;  %s11178_s29 = smov 8  }
 0x634   : >> { %10825 = vrot.lane.b32.xlu1 %v10824_v8, %s11174_s26  ;;  %v13919_v55 = vpop.permute.xlu0 %10575  ;;  %v10447_v8 = vunpack.i.l.bf16 %v13722_v5 }
 0x636   : >> { %v13922_v54 = vpop.permute.xlu1 %10565  ;;  %3064 = vrot.lane.b32.xlu0 %v18103_v3, %s11168_s17  ;;  %v10477_v3 = vunpack.i.l.bf16 %v13784_v56  ;;  %s18164_s17 = smov 32  }
 0x638   : >> { %10830 = vrot.lane.b32.xlu1 %v10829_v28, %s11174_s26  ;;  %v13927_v37 = vpop.permute.xlu0 %10580  ;;  %v10478_v28 = vunpack.i.h.bf16 %v13784_v56 }
 0x63a   : >> { %v13930_v33 = vpop.permute.xlu1 %10590  ;;  %10875 = vrot.lane.b32.xlu0 %v10874_v2, %s11173_s28  ;;  %v18108_v2 = vld [vmem:[#allocation49_spill] sm:$0xff] }
 0x63c   : >> { %10845 = vrot.lane.b32.xlu1 %v13686_v44, %s11173_s28  ;;  %v13935_v59 = vpop.permute.xlu0 %10585  ;;  %v10864_v44 = vpack.i.bf16 %v10352_v24, %v10348_v35  ;;  %v10879_v24 = vpack.i.bf16 %v10437_v18, %v10433_v61  ;;  %v10462_v61 = vunpack.i.l.bf16 %v13754_v49 }
 0x63e   : >> { %v13939_v62 = vpop.permute.xlu1 %10595  ;;  %3124 = vrot.lane.b32.xlu0 %v18092_v14, %s11167_s16  ;;  %v18106_v14 = vld [vmem:[#allocation45_spill] sm:$0xff]  ;;  %s11179_s16 = smov 56  }
 0x63f   : >> { %v9972_v4 = vunpack.i.l.bf16 %v18106_v14 }
 0x640   : >> { %10855 = vrot.lane.b32.xlu1 %v10854_v6, %s11173_s28  ;;  %v13945_v27 = vpop.permute.xlu0 %2944 }
 0x641   : >> { %18105 = vst [vmem:[#allocation62_spill] sm:$0xff] %v13945_v27  ;;  %v2425_v13 = vsel %vm609_vm11, %v18108_v2, %v9972_v4  ;;  %v10473_v4 = vunpack.i.h.bf16 %v13773_v22  ;;  %v18125_v27 = vld [vmem:[#allocation57_spill] sm:$0xff] }
 0x642   : >> { %v13948_v29 = vpop.permute.xlu1 %10600  ;;  %3244 = vrot.lane.b32.xlu0 %v18104_v46, %s11170_s21  ;;  %v3569_v35 = vsel %vm3565_vm2, %v2425_v13, %v10448_v23  ;;  %v18109_v46 = vld [vmem:[#allocation50_spill] sm:$0xff]  ;;  %s11180_s21 = smov 2  }
 0x643   : >> { %v3568_v6 = vsel %vm3565_vm2, %v18109_v46, %v10447_v8  ;;  %v3589_v56 = vsel %vm3585_vm6, %v3569_v35, %v10453_v38  ;;  %v18110_v8 = vld [vmem:[#allocation9_spill] sm:$0xff]  ;;  %v10537_v38 = vunpack.i.l.bf16 %v13890_v51  ;;  %v18111_v35 = vld [vmem:[#allocation6_spill] sm:$0xff]  ;;  %v18112_v46 = vld [vmem:[#allocation72_spill] sm:$0xff] }
 0x644   : >> { %10865 = vrot.lane.b32.xlu1 %v10864_v44, %s18076_s30  ;;  %v13954_v12 = vpop.permute.xlu0 %10605  ;;  %v3588_v41 = vsel %vm3585_vm6, %v3568_v6, %v10452_v25  ;;  %v3609_v44 = vsel %vm3605_vm7, %v3589_v56, %v10478_v28  ;;  %v10463_v25 = vunpack.i.h.bf16 %v13754_v49  ;;  %7756 = vmatprep.mubr.msk.f32.mxu1 %vm3794_vm12, %v18111_v35  ;;  %v10533_v49 = vunpack.i.h.bf16 %v13877_v43 }
 0x645   : >> { %v3608_v7 = vsel %vm3605_vm7, %v3588_v41, %v10477_v3  ;;  %v3629_v18 = vsel %vm3625_vm8, %v3609_v44, %v10473_v4 }
 0x646   : >> { %v13960_v45 = vpop.permute.xlu1 %10615  ;;  %3364 = vrot.lane.b32.xlu0 %v18107_v63, %s18076_s30  ;;  %v10538_v63 = vunpack.i.h.bf16 %v13890_v51  ;;  %v3649_v3 = vsel %vm3645_vm14, %v3629_v18, %v10463_v25 }
 0x648   : >> { %10870 = vrot.lane.b32.xlu1 %v10869_v53, %s11172_s23  ;;  %v13970_v5 = vpop.permute.xlu0 %10610  ;;  %v10472_v53 = vunpack.i.l.bf16 %v13773_v22  ;;  %v3669_v51 = vsel %vm3665_vm9, %v3649_v3, %v10538_v63 }
 0x649   : >> { %v3689_v4 = vsel %vm3685_vm4, %v3669_v51, %v10533_v49  ;;  %v18114_v51 = vld [vmem:[#allocation10_spill] sm:$0xff] }
 0x64a   : >> { %v10626_v16 = vpop.permute.xlu1 %10625  ;;  %3484 = vrot.lane.b32.xlu0 %v13769_v52, %s11173_s28  ;;  %v3628_v52 = vsel %vm3625_vm8, %v3608_v7, %v10472_v53  ;;  %s11177_s28 = smov 80  }
 0x64b   : >> { %v3648_v28 = vsel %vm3645_vm14, %v3628_v52, %v10462_v61  ;;  %v10628_v56 = vunpack.i.h.bf16 %v10626_v16  ;;  %v10627_v7 = vunpack.i.l.bf16 %v10626_v16 }
 0x64c   : >> { %10880 = vrot.lane.b32.xlu1 %v10879_v24, %s11174_s26  ;;  %v13984_v50 = vpop.permute.xlu0 %10620  ;;  %v3668_v13 = vsel %vm3665_vm9, %v3648_v28, %v10537_v38 }
 0x64e   : >> { %v13988_v23 = vpop.permute.xlu1 %10640  ;;  %3786 = vperm.xlu0 %10884, %v18110_v8  }
 0x650   : >> { %3184 = vrot.lane.b32.xlu1 %v18101_v1, %s11169_s20  ;;  %v13999_v22 = vpop.permute.xlu0 %10630  ;;  %v10532_v1 = vunpack.i.l.bf16 %v13877_v43  ;;  %s18171_s20 = smov 125  }
 0x651   : >> { %v17908_v8 = vunpack.i.h.bf16 %v13999_v22  ;;  %v17909_v52 = vunpack.i.l.bf16 %v13999_v22 }
 0x652   : >> { %v14003_v2 = vpop.permute.xlu1 %10645  ;;  %v3688_v44 = vsel %vm3685_vm4, %v3668_v13, %v10532_v1 }
 0x654   : >> { %3304 = vrot.lane.b32.xlu1 %v18112_v46, %s11171_s24  ;;  %v10636_v6 = vpop.permute.xlu0 %10635 }
 0x655   : >> { %v10638_v24 = vunpack.i.h.bf16 %v10636_v6  ;;  %v10637_v41 = vunpack.i.l.bf16 %v10636_v6  ;;  %v10458_v6 = vunpack.i.h.bf16 %v13792_v40 }
 0x656   : >> { %v14015_v53 = vpop.permute.xlu1 %10660 }
 0x657   : >> { %v3707_v43 = vsel %vm1427_vm1, %v3688_v44, %v10637_v41  ;;  %v3708_v18 = vsel %vm1427_vm1, %v3689_v4, %v10638_v24  ;;  %v18120_v41 = vld [vmem:[#allocation48_spill] sm:$0xff]  ;;  %v10488_v44 = vunpack.i.h.bf16 %v13808_v9 }
 0x658   : >> { %v3727_v63 = vsel %vm3724_vm5, %v3707_v43, %v10627_v7  ;;  %v3728_v38 = vsel %vm3724_vm5, %v3708_v18, %v10628_v56  ;;  %3424 = vrot.lane.b32.xlu1 %v13711_v11, %s11172_s23  ;;  %v14025_v16 = vpop.permute.xlu0 %10650  ;;  %v9978_v56 = vunpack.i.h.bf16 %v18120_v41  ;;  %v10457_v7 = vunpack.i.l.bf16 %v13792_v40  ;;  %v18121_v43 = vld [vmem:[#allocation51_spill] sm:$0xff]  ;;  %s11176_s23 = smov 104  }
 0x659   : >> { %v14030_v25 = vsel %vm3744_vm0, %v3727_v63, %v17909_v52  ;;  %v14035_v61 = vsel %vm3744_vm0, %v3728_v38, %v17908_v8  ;;  %v9977_v4 = vunpack.i.l.bf16 %v18120_v41  ;;  %v9982_v18 = vunpack.i.l.bf16 %v18121_v43  ;;  %v18122_v63 = vld [vmem:[#allocation56_spill] sm:$0xff]  ;;  %v18124_v52 = vld [vmem:[#allocation53_spill] sm:$0xff] }
 0x65a   : >> { %v14037_v28 = vpop.permute.xlu1 %10675  ;;  %v10057_v38 = vunpack.i.l.bf16 %v18122_v63  ;;  %v9983_v8 = vunpack.i.h.bf16 %v18121_v43  ;;  %v9997_v39 = vunpack.i.l.bf16 %v18124_v52  ;;  %v10062_v40 = vunpack.i.l.bf16 %v18125_v27 }
 0x65c   : >> { %3544 = vrot.lane.b32.xlu1 %v13662_v26, %s11174_s26  ;;  %v14043_v11 = vpop.permute.xlu0 %10655  ;;  %v9973_v26 = vunpack.i.h.bf16 %v18106_v14  ;;  %v9998_v14 = vunpack.i.h.bf16 %v18124_v52  ;;  %v10482_v52 = vunpack.i.l.bf16 %v13801_v17  ;;  %s11175_s26 = smov 116  }
 0x65e   : >> { %v14045_v13 = vpop.permute.xlu1 %10685 }
 0x65f   : >> { %18113 = vst [vmem:[#allocation61_spill] sm:$0xff] %v14045_v13  ;;  %v3575_v13 = vsel %vm3565_vm2, %v10062_v40, %v10488_v44  ;;  %v18131_v44 = vld [vmem:[#allocation58_spill] sm:$0xff] }
 0x660   : >> { %3791 = vperm.xlu1 %9958, %v18114_v51   ;;  %v14048_v35 = vpop.permute.xlu0 %10665  ;;  %v10487_v51 = vunpack.i.l.bf16 %v13808_v9  ;;  %v3571_v9 = vsel %vm3565_vm2, %v10057_v38, %v10458_v6  ;;  %v10492_v6 = vunpack.i.l.bf16 %v13826_v47 }
 0x661   : >> { %18115 = vst [vmem:[#allocation66_spill] sm:$0xff] %v14048_v35  ;;  %v3570_v35 = vsel %vm3565_vm2, %v9973_v26, %v10457_v7  ;;  %v10467_v7 = vunpack.i.l.bf16 %v13766_v34 }
 0x662   : >> { %v14050_v49 = vpop.permute.xlu1 %10690 }
 0x663   : >> { %18116 = vst [vmem:[#allocation69_spill] sm:$0xff] %v14050_v49  ;;  %v18128_v49 = vunpack.i.h.bf16 %v13132_v21  ;;  %v10502_v21 = vunpack.i.l.bf16 %v13816_v31 }
 0x664   : >> { %v14052_v1 = vpop.permute.xlu0 %10670 }
 0x665   : >> { %18117 = vst [vmem:[#allocation63_spill] sm:$0xff] %v14052_v1 }
 0x666   : >> { %v14054_v46 = vpop.permute.xlu1 %10695 }
 0x667   : >> { %18118 = vst [vmem:[#allocation44_spill] sm:$0xff] %v14054_v46  ;;  %v18126_v46 = vld [vmem:[#allocation54_spill] sm:$0xff] }
 0x668   : >> { %v14057_v24 = vpop.permute.xlu0 %10680  ;;  %v18127_v1 = vunpack.i.h.bf16 %v18126_v46  ;;  %v10503_v46 = vunpack.i.h.bf16 %v13816_v31  ;;  %v14118_v31 = vsel %vm3565_vm2, %v9983_v8, %v10492_v6  ;;  %v10542_v8 = vunpack.i.l.bf16 %v13872_v32 }
 0x669   : >> { %18119 = vst [vmem:[#allocation67_spill] sm:$0xff] %v14057_v24  ;;  %v14079_v24 = vsel %vm536_vm13, %v18128_v49, %v9982_v18  ;;  %v10493_v49 = vunpack.i.h.bf16 %v13826_v47  ;;  %v10058_v18 = vunpack.i.h.bf16 %v18122_v63  ;;  %v3590_v47 = vsel %vm3585_vm6, %v3570_v35, %v10482_v52 }
 0x66a   : >> { %v14067_v3 = vpop.permute.xlu1 %10700  ;;  %v2426_v41 = vsel %vm540_vm10, %v18127_v1, %v9977_v4  ;;  %v3574_v1 = vsel %vm3565_vm2, %v9978_v56, %v10487_v51  ;;  %v10067_v56 = vunpack.i.l.bf16 %v18131_v44  ;;  %v14107_v63 = vsel %vm3565_vm2, %v9998_v14, %v10503_v46 }
 0x66b   : >> { %18123 = vst [vmem:[#allocation43_spill] sm:$0xff] %v14067_v3  ;;  %v10483_v3 = vunpack.i.h.bf16 %v13801_v17  ;;  %v10468_v17 = vunpack.i.h.bf16 %v13766_v34  ;;  %v3594_v26 = vsel %vm3585_vm6, %v3574_v1, %v10467_v7  ;;  %v14112_v34 = vsel %vm3565_vm2, %v9997_v39, %v10502_v21 }
 0x66c   : >> { %v14083_v43 = vpop.permute.xlu0 %10710  ;;  %v14115_v38 = vsel %vm3565_vm2, %v10067_v56, %v10493_v49  ;;  %v10508_v35 = vunpack.i.h.bf16 %v13831_v10  ;;  %v10507_v14 = vunpack.i.l.bf16 %v13831_v10  ;;  %v10527_v46 = vunpack.i.l.bf16 %v13863_v15 }
 0x66d   : >> { %18129 = vst [vmem:[#allocation68_spill] sm:$0xff] %v14083_v43  ;;  %v3591_v51 = vsel %vm3585_vm6, %v3571_v9, %v10483_v3  ;;  %v3595_v43 = vsel %vm3585_vm6, %v3575_v13, %v10468_v17  ;;  %v10528_v3 = vunpack.i.h.bf16 %v13863_v15  ;;  %v10543_v1 = vunpack.i.h.bf16 %v13872_v32 }
 0x66e   : >> { %v14093_v4 = vpop.permute.xlu1 %10705  ;;  %v10512_v49 = vunpack.i.l.bf16 %v13841_v36  ;;  %v10547_v17 = vunpack.i.l.bf16 %v13901_v30  ;;  %v10548_v52 = vunpack.i.h.bf16 %v13901_v30  ;;  %v10558_v13 = vunpack.i.h.bf16 %v13897_v48 }
 0x66f   : >> { %18130 = vst [vmem:[#allocation41_spill] sm:$0xff] %v14093_v4  ;;  %v14140_v15 = vsel %vm3565_vm2, %v2426_v41, %v10528_v3  ;;  %v10557_v39 = vunpack.i.l.bf16 %v13897_v48  ;;  %v14146_v10 = vsel %vm3565_vm2, %v10058_v18, %v10527_v46  ;;  %v3611_v7 = vsel %vm3605_vm7, %v3591_v51, %v10543_v1 }
 0x670   : >> { %v14103_v40 = vpop.permute.xlu0 %10715  ;;  %v10552_v30 = vunpack.i.l.bf16 %v13888_v57  ;;  %v18134_v4 = vunpack.i.l.bf16 %v13999_v22  ;;  %v10568_v51 = vunpack.i.h.bf16 %v13922_v54  ;;  %v10567_v46 = vunpack.i.l.bf16 %v13922_v54 }
 0x671   : >> { %18132 = vst [vmem:[#allocation65_spill] sm:$0xff] %v14103_v40  ;;  %v3610_v40 = vsel %vm3605_vm7, %v3590_v47, %v10542_v8  ;;  %v3631_v47 = vsel %vm3625_vm8, %v3611_v7, %v10548_v52  ;;  %v3614_v56 = vsel %vm3605_vm7, %v3594_v26, %v10557_v39  ;;  %v10578_v52 = vunpack.i.h.bf16 %v13919_v55 }
 0x672   : >> { %v14121_v9 = vpop.permute.xlu1 %10720  ;;  %v3630_v3 = vsel %vm3625_vm8, %v3610_v40, %v10547_v17  ;;  %v3615_v40 = vsel %vm3605_vm7, %v3595_v43, %v10558_v13  ;;  %v10588_v17 = vunpack.i.h.bf16 %v13935_v59  ;;  %v10563_v7 = vunpack.i.h.bf16 %v13912_v20 }
 0x673   : >> { %v10562_v26 = vunpack.i.l.bf16 %v13912_v20  ;;  %v14179_v43 = vsel %vm3645_vm14, %v3630_v3, %v10507_v14  ;;  %v18137_v13 = vunpack.i.h.bf16 %v18125_v27  ;;  %v10597_v20 = vunpack.i.l.bf16 %v13939_v62 }
 0x674   : >> { %v14131_v21 = vpop.permute.xlu0 %10735  ;;  %v10602_v27 = vunpack.i.l.bf16 %v13948_v29  ;;  %vm3948_vm10 = vcmask 64512   ;;  %vm4535_vm13 = vcmask 130048  }
 0x675   : >> { %18133 = vst [vmem:[#allocation42_spill] sm:$0xff] %v14131_v21  ;;  %v3576_v39 = vsel %vm3565_vm2, %v18137_v13, %v10567_v46 }
 0x676   : >> { %v10726_v32 = vpop.permute.xlu1 %10725 }
 0x677   : >> { %v10728_v21 = vunpack.i.h.bf16 %v10726_v32  ;;  %v10727_v6 = vunpack.i.l.bf16 %v10726_v32  ;;  %v18135_v32 = vunpack.i.h.bf16 %v13999_v22  ;;  %v10573_v22 = vunpack.i.h.bf16 %v13906_v42 }
 0x678   : >> { %v14151_v41 = vpop.permute.xlu0 %10745 }
 0x679   : >> { %v3767_v48 = vsel %vm3764_vm15, %v18134_v4, %v10727_v6  ;;  %v3768_v18 = vsel %vm3764_vm15, %v18135_v32, %v10728_v21  ;;  %v10587_v4 = vunpack.i.l.bf16 %v13935_v59  ;;  %v10572_v21 = vunpack.i.l.bf16 %v13906_v42 }
 0x67a   : >> { %v14164_v1 = vpop.permute.xlu1 %10730  ;;  %v8274_v8 = vpack.c.bf16 %v3768_v18, %v3767_v48  ;;  %v10577_v6 = vunpack.i.l.bf16 %v13919_v55  ;;  %v14182_v59 = vsel %vm3645_vm14, %v3631_v47, %v10508_v35  ;;  %v18136_v42 = vpack.c.bf16 %v14035_v61, %v14030_v25 }
 0x67b   : >> { %v3577_v55 = vsel %vm3565_vm2, %v14079_v24, %v10568_v51  ;;  %v10598_v48 = vunpack.i.h.bf16 %v13939_v62  ;;  %v18138_v35 = vunpack.i.h.bf16 %v13760_v60  ;;  %v18139_v25 = vunpack.i.h.bf16 %v18131_v44 }
 0x67c   : >> { %v14174_v54 = vpop.permute.xlu0 %10770  ;;  %8275 = vmatprep.subr.bf16.mxu1 %v8274_v8  ;;  %v10603_v24 = vunpack.i.h.bf16 %v13948_v29  ;;  %v3599_v32 = vsel %vm3585_vm6, %v14115_v38, %v10578_v52  ;;  %v3598_v62 = vsel %vm3585_vm6, %v14118_v31, %v10577_v6  ;;  %v10593_v18 = vunpack.i.h.bf16 %v13930_v33 }
 0x67d   : >> { %8277 = vmatpush1.bf16.msra.mxu1 %v18136_v42  ;;  %v3581_v3 = vsel %vm3565_vm2, %v18138_v35, %v10588_v17  ;;  %v3580_v61 = vsel %vm3565_vm2, %v18139_v25, %v10587_v4  ;;  %v10592_v60 = vunpack.i.l.bf16 %v13930_v33  ;;  %v3596_v44 = vsel %vm3585_vm6, %v3576_v39, %v10512_v49 }
 0x67e   : >> { %v14194_v14 = vpop.permute.xlu1 %10740  ;;  %v18140_v51 = vunpack.i.h.bf16 %v13841_v36  ;;  %v10583_v29 = vunpack.i.h.bf16 %v13927_v37  ;;  %v10582_v8 = vunpack.i.l.bf16 %v13927_v37  ;;  %v3601_v38 = vsel %vm3585_vm6, %v3581_v3, %v10593_v18 }
 0x67f   : >> { %v3600_v31 = vsel %vm3585_vm6, %v3580_v61, %v10592_v60  ;;  %v3602_v17 = vsel %vm3585_vm6, %v14112_v34, %v10597_v20  ;;  %v3603_v33 = vsel %vm3585_vm6, %v14107_v63, %v10598_v48  ;;  %v10608_v52 = vunpack.i.h.bf16 %v13954_v12 }
 0x680   : >> { %v14210_v47 = vpop.permute.xlu0 %10775  ;;  %v3597_v46 = vsel %vm3585_vm6, %v3577_v55, %v18140_v51  ;;  %v3622_v36 = vsel %vm3605_vm7, %v3602_v17, %v10602_v27  ;;  %v3623_v49 = vsel %vm3605_vm7, %v3603_v33, %v10603_v24  ;;  %v10607_v37 = vunpack.i.l.bf16 %v13954_v12 }
 0x681   : >> { %v3634_v6 = vsel %vm3625_vm8, %v3614_v56, %v10562_v26  ;;  %v3635_v42 = vsel %vm3625_vm8, %v3615_v40, %v10563_v7  ;;  %v18141_v55 = vunpack.i.l.bf16 %v13854_v0  ;;  %v18142_v63 = vunpack.i.h.bf16 %v13854_v0 }
 0x682   : >> { %v14224_v4 = vpop.permute.xlu1 %10750  ;;  %v14243_v12 = vsel %vm3605_vm7, %v3596_v44, %v10572_v21  ;;  %v14246_v56 = vsel %vm3605_vm7, %v3597_v46, %v10573_v22  ;;  %v18143_v40 = vunpack.i.l.bf16 %v13834_v19  ;;  %v18144_v0 = vunpack.i.h.bf16 %v13834_v19 }
 0x683   : >> { %v3618_v34 = vsel %vm3605_vm7, %v3598_v62, %v18141_v55  ;;  %v3619_v13 = vsel %vm3605_vm7, %v3599_v32, %v18142_v63  ;;  %v18145_v35 = vunpack.i.l.bf16 %v13844_v58  ;;  %v18146_v25 = vunpack.i.h.bf16 %v13844_v58  ;;  %v18148_v55 = vld [vmem:[#allocation61_spill] sm:$0xff] }
 0x684   : >> { %v14238_v39 = vpop.permute.xlu0 %10780  ;;  %v3638_v48 = vsel %vm3625_vm8, %v3618_v34, %v10582_v8  ;;  %v3639_v20 = vsel %vm3625_vm8, %v3619_v13, %v10583_v29  ;;  %v3620_v7 = vsel %vm3605_vm7, %v3600_v31, %v18143_v40  ;;  %v3621_v26 = vsel %vm3605_vm7, %v3601_v38, %v18144_v0 }
 0x685   : >> { %v14257_v3 = vsel %vm3625_vm8, %v3622_v36, %v18145_v35  ;;  %v14262_v21 = vsel %vm3625_vm8, %v3623_v49, %v18146_v25  ;;  %v3593_v61 = vsel %vm3585_vm6, %v14140_v15, %v10608_v52  ;;  %v3592_v19 = vsel %vm3585_vm6, %v14146_v10, %v10607_v37  ;;  %v18150_v25 = vld [vmem:[#allocation67_spill] sm:$0xff] }
 0x686   : >> { %v14264_v22 = vpop.permute.xlu1 %10755  ;;  %v10618_v24 = vunpack.i.h.bf16 %v13960_v45  ;;  %v10652_v27 = vunpack.i.l.bf16 %v14025_v16  ;;  %v10643_v32 = vunpack.i.h.bf16 %v13988_v23  ;;  %v10642_v62 = vunpack.i.l.bf16 %v13988_v23 }
 0x687   : >> { %v10653_v58 = vunpack.i.h.bf16 %v14025_v16  ;;  %v10657_v18 = vunpack.i.l.bf16 %v14043_v11  ;;  %v10617_v44 = vunpack.i.l.bf16 %v13960_v45  ;;  %v10648_v15 = vunpack.i.h.bf16 %v14003_v2 }
 0x688   : >> { %v14276_v60 = vpop.permute.xlu0 %10785  ;;  %v10647_v10 = vunpack.i.l.bf16 %v14003_v2  ;;  %v10658_v51 = vunpack.i.h.bf16 %v14043_v11  ;;  %v10613_v46 = vunpack.i.h.bf16 %v13970_v5  ;;  %v10612_v29 = vunpack.i.l.bf16 %v13970_v5 }
 0x689   : >> { %v3612_v23 = vsel %vm3605_vm7, %v3592_v19, %v10552_v30  ;;  %v18147_v16 = vunpack.i.h.bf16 %v13888_v57  ;;  %v10623_v45 = vunpack.i.h.bf16 %v13984_v50  ;;  %v10622_v2 = vunpack.i.l.bf16 %v13984_v50 }
 0x68a   : >> { %v14290_v38 = vpop.permute.xlu1 %10760  ;;  %v3632_v11 = vsel %vm3625_vm8, %v3612_v23, %v10652_v27  ;;  %v10677_v31 = vunpack.i.l.bf16 %v14037_v28  ;;  %v3670_v5 = vsel %vm3665_vm9, %v14179_v43, %v10642_v62  ;;  %v3671_v30 = vsel %vm3665_vm9, %v14182_v59, %v10643_v32  ;;  %v18151_v27 = vld [vmem:[#allocation69_spill] sm:$0xff]  ;;  %v18152_v62 = vld [vmem:[#allocation63_spill] sm:$0xff] }
 0x68b   : >> { %v3613_v8 = vsel %vm3605_vm7, %v3593_v61, %v18147_v16  ;;  %v3654_v17 = vsel %vm3645_vm14, %v3634_v6, %v10657_v18  ;;  %v3690_v36 = vsel %vm3685_vm4, %v3670_v5, %v10647_v10  ;;  %v3691_v50 = vsel %vm3685_vm4, %v3671_v30, %v10648_v15  ;;  %v18153_v10 = vld [vmem:[#allocation44_spill] sm:$0xff] }
 0x68c   : >> { %v3633_v57 = vsel %vm3625_vm8, %v3613_v8, %v10653_v58  ;;  %v14302_v33 = vpop.permute.xlu0 %10790  ;;  %v10663_v49 = vunpack.i.h.bf16 %v14015_v53  ;;  %v3655_v52 = vsel %vm3645_vm14, %v3635_v42, %v10658_v51  ;;  %v10662_v37 = vunpack.i.l.bf16 %v14015_v53  ;;  %v18149_v42 = vld [vmem:[#allocation66_spill] sm:$0xff] }
 0x68d   : >> { %v10678_v43 = vunpack.i.h.bf16 %v14037_v28  ;;  %v10687_v59 = vunpack.i.l.bf16 %v18148_v55  ;;  %v14314_v6 = vsel %vm3645_vm14, %v3632_v11, %v10612_v29  ;;  %v3658_v63 = vsel %vm3645_vm14, %v3638_v48, %v10677_v31 }
 0x68e   : >> { %v14311_v34 = vpop.permute.xlu1 %10765  ;;  %v3674_v13 = vsel %vm3665_vm9, %v3654_v17, %v10617_v44  ;;  %v10688_v40 = vunpack.i.h.bf16 %v18148_v55  ;;  %v14320_v0 = vsel %vm3645_vm14, %v3633_v57, %v10613_v46  ;;  %v3675_v53 = vsel %vm3665_vm9, %v3655_v52, %v10618_v24 }
 0x68f   : >> { %v10668_v28 = vunpack.i.h.bf16 %v18149_v42  ;;  %v10667_v35 = vunpack.i.l.bf16 %v18149_v42  ;;  %v10682_v61 = vunpack.i.l.bf16 %v18150_v25  ;;  %v10693_v32 = vunpack.i.h.bf16 %v18151_v27 }
 0x690   : >> { %v14326_v19 = vpop.permute.xlu0 %10810  ;;  %v10692_v48 = vunpack.i.l.bf16 %v18151_v27  ;;  %v10672_v58 = vunpack.i.l.bf16 %v18152_v62  ;;  %v10683_v18 = vunpack.i.h.bf16 %v18150_v25  ;;  %v3659_v44 = vsel %vm3645_vm14, %v3639_v20, %v10678_v43  ;;  %v18157_v27 = vld [vmem:[#allocation65_spill] sm:$0xff] }
 0x691   : >> { %v3640_v24 = vsel %vm3625_vm8, %v3620_v7, %v10687_v59  ;;  %v10673_v15 = vunpack.i.h.bf16 %v18152_v62  ;;  %v10697_v51 = vunpack.i.l.bf16 %v18153_v10  ;;  %v3641_v29 = vsel %vm3625_vm8, %v3621_v26, %v10688_v40 }
 0x692   : >> { %v14336_v46 = vpop.permute.xlu1 %10795  ;;  %v10733_v23 = vunpack.i.h.bf16 %v14164_v1  ;;  %v10732_v16 = vunpack.i.l.bf16 %v14164_v1  ;;  %v14342_v8 = vsel %vm3685_vm4, %v3674_v13, %v10662_v37  ;;  %v3636_v20 = vsel %vm3625_vm8, %v14243_v12, %v10667_v35  ;;  %v18155_v13 = vld [vmem:[#allocation41_spill] sm:$0xff]  ;;  %v18156_v35 = vld [vmem:[#allocation68_spill] sm:$0xff] }
 0x693   : >> { %v3637_v7 = vsel %vm3625_vm8, %v14246_v56, %v10668_v28  ;;  %v3678_v11 = vsel %vm3665_vm9, %v3658_v63, %v10682_v61  ;;  %v14350_v31 = vsel %vm3685_vm4, %v3675_v53, %v10663_v49  ;;  %v14355_v26 = vsel %vm3645_vm14, %v3640_v24, %v10692_v48  ;;  %v18154_v49 = vld [vmem:[#allocation43_spill] sm:$0xff] }
 0x694   : >> { %v14352_v5 = vpop.permute.xlu0 %10835  ;;  %v14358_v1 = vsel %vm3645_vm14, %v3641_v29, %v10693_v32  ;;  %v3656_v30 = vsel %vm3645_vm14, %v3636_v20, %v10672_v58  ;;  %v3679_v12 = vsel %vm3665_vm9, %v3659_v44, %v10683_v18  ;;  %v3657_v57 = vsel %vm3645_vm14, %v3637_v7, %v10673_v15  ;;  %v18158_v18 = vld [vmem:[#allocation42_spill] sm:$0xff] }
 0x695   : >> { %v10698_v56 = vunpack.i.h.bf16 %v18153_v10  ;;  %v14366_v17 = vsel %vm3645_vm14, %v14257_v3, %v10697_v51  ;;  %v10702_v52 = vunpack.i.l.bf16 %v18154_v49  ;;  %v10722_v43 = vunpack.i.l.bf16 %v14121_v9 }
 0x696   : >> { %v10801_v37 = vpop.permute.xlu1 %10800  ;;  %v3709_v55 = vsel %vm1427_vm1, %v3690_v36, %v10732_v16  ;;  %v3710_v59 = vsel %vm1427_vm1, %v3691_v50, %v10733_v23  ;;  %v3698_v63 = vsel %vm3685_vm4, %v3678_v11, %v10622_v2  ;;  %v10708_v40 = vunpack.i.h.bf16 %v18155_v13 }
 0x697   : >> { %v10707_v53 = vunpack.i.l.bf16 %v18155_v13  ;;  %v10723_v42 = vunpack.i.h.bf16 %v14121_v9  ;;  %v3699_v3 = vsel %vm3685_vm4, %v3679_v12, %v10623_v45  ;;  %v10713_v25 = vunpack.i.h.bf16 %v18156_v35 }
 0x698   : >> { %v14377_v28 = vpop.permute.xlu0 %10840  ;;  %v10712_v61 = vunpack.i.l.bf16 %v18156_v35  ;;  %v10718_v36 = vunpack.i.h.bf16 %v18157_v27  ;;  %v10772_v50 = vunpack.i.l.bf16 %v14174_v54  ;;  %v3730_v32 = vsel %vm3724_vm5, %v3710_v59, %v10708_v40 }
 0x699   : >> { %v3729_v2 = vsel %vm3724_vm5, %v3709_v55, %v10707_v53  ;;  %v10803_v48 = vunpack.i.h.bf16 %v10801_v37  ;;  %v10802_v62 = vunpack.i.l.bf16 %v10801_v37  ;;  %v10717_v9 = vunpack.i.l.bf16 %v18157_v27 }
 0x69a   : >> { %v14385_v58 = vpop.permute.xlu1 %10805  ;;  %v14389_v45 = vsel %vm3665_vm9, %v3656_v30, %v10722_v43  ;;  %v10738_v44 = vunpack.i.h.bf16 %v18158_v18  ;;  %v10737_v24 = vunpack.i.l.bf16 %v18158_v18  ;;  %v14394_v15 = vsel %vm3665_vm9, %v3657_v57, %v10723_v42 }
 0x69b   : >> { %v10748_v51 = vunpack.i.h.bf16 %v14151_v41  ;;  %v10773_v29 = vunpack.i.h.bf16 %v14174_v54  ;;  %v10777_v23 = vunpack.i.l.bf16 %v14210_v47  ;;  %v3717_v20 = vsel %vm1427_vm1, %v3698_v63, %v10772_v50 }
 0x69c   : >> { %v14399_v16 = vpop.permute.xlu0 %10850  ;;  %v10778_v7 = vunpack.i.h.bf16 %v14210_v47  ;;  %v3749_v11 = vsel %vm3744_vm0, %v3729_v2, %v10737_v24  ;;  %v3750_v30 = vsel %vm3744_vm0, %v3730_v32, %v10738_v44  ;;  %v10753_v12 = vunpack.i.h.bf16 %v14224_v4 }
 0x69d   : >> { %v10752_v57 = vunpack.i.l.bf16 %v14224_v4  ;;  %v3672_v37 = vsel %vm3665_vm9, %v14314_v6, %v10802_v62  ;;  %v3673_v54 = vsel %vm3665_vm9, %v14320_v0, %v10803_v48  ;;  %v10743_v55 = vunpack.i.h.bf16 %v14194_v14 }
 0x69e   : >> { %v10816_v43 = vpop.permute.xlu1 %10815  ;;  %v10742_v59 = vunpack.i.l.bf16 %v14194_v14  ;;  %v10758_v47 = vunpack.i.h.bf16 %v14264_v22  ;;  %v10757_v63 = vunpack.i.l.bf16 %v14264_v22  ;;  %v10747_v13 = vunpack.i.l.bf16 %v14151_v41 }
 0x69f   : >> { %v3718_v40 = vsel %vm1427_vm1, %v3699_v3, %v10773_v29  ;;  %v14418_v4 = vsel %vm3724_vm5, %v3717_v20, %v10777_v23  ;;  %v8280_v6 = vpack.c.bf16 %v3750_v30, %v3749_v11  ;;  %v3693_v0 = vsel %vm3685_vm4, %v3673_v54, %v10743_v55 }
 0x6a0   : >> { %v3692_v53 = vsel %vm3685_vm4, %v3672_v37, %v10742_v59  ;;  %v10818_v42 = vunpack.i.h.bf16 %v10816_v43  ;;  %v10817_v50 = vunpack.i.l.bf16 %v10816_v43  ;;  %v10861_v2 = vpop.permute.xlu0 %10860  ;;  %v14423_v14 = vsel %vm3724_vm5, %v3718_v40, %v10778_v7 }
 0x6a1   : >> { %v3713_v22 = vsel %vm1427_vm1, %v14342_v8, %v10752_v57  ;;  %v3714_v41 = vsel %vm1427_vm1, %v14350_v31, %v10753_v12  ;;  %v10783_v3 = vunpack.i.h.bf16 %v14238_v39  ;;  %v3711_v23 = vsel %vm1427_vm1, %v3692_v53, %v10747_v13 }
 0x6a2   : >> { %v10821_v32 = vpop.permute.xlu1 %10820  ;;  %v3733_v48 = vsel %vm3724_vm5, %v3713_v22, %v10757_v63  ;;  %v3734_v62 = vsel %vm3724_vm5, %v3714_v41, %v10758_v47  ;;  %v3712_v20 = vsel %vm1427_vm1, %v3693_v0, %v10748_v51  ;;  %v10863_v7 = vunpack.i.h.bf16 %v10861_v2 }
 0x6a3   : >> { %v10823_v18 = vunpack.i.h.bf16 %v10821_v32  ;;  %v10822_v29 = vunpack.i.l.bf16 %v10821_v32  ;;  %v10862_v11 = vunpack.i.l.bf16 %v10861_v2  ;;  %v3731_v8 = vsel %vm3724_vm5, %v3711_v23, %v10817_v50 }
 0x6a4   : >> { %v3732_v30 = vsel %vm3724_vm5, %v3712_v20, %v10818_v42  ;;  %v10782_v57 = vunpack.i.l.bf16 %v14238_v39  ;;  %v3753_v43 = vsel %vm3744_vm0, %v3733_v48, %v10712_v61  ;;  %v3754_v51 = vsel %vm3744_vm0, %v3734_v62, %v10713_v25  ;;  %v14458_v22 = vpop.permute.xlu0 %3004 }
 0x6a5   : >> { %v3769_v31 = vsel %vm3764_vm15, %v10737_v24, %v10822_v29  ;;  %v3770_v12 = vsel %vm3764_vm15, %v10738_v44, %v10823_v18  ;;  %v10763_v55 = vunpack.i.h.bf16 %v14290_v38  ;;  %v10762_v59 = vunpack.i.l.bf16 %v14290_v38 }
 0x6a6   : >> { %v10826_v37 = vpop.permute.xlu1 %10825  ;;  %v8278_v54 = vpack.c.bf16 %v3770_v12, %v3769_v31  ;;  %v10768_v44 = vunpack.i.h.bf16 %v14311_v34  ;;  %v10767_v63 = vunpack.i.l.bf16 %v14311_v34  ;;  %v3751_v13 = vsel %vm3744_vm0, %v3731_v8, %v10862_v11 }
 0x6a7   : >> { %v10828_v47 = vunpack.i.h.bf16 %v10826_v37  ;;  %v10827_v24 = vunpack.i.l.bf16 %v10826_v37  ;;  %v3752_v40 = vsel %vm3744_vm0, %v3732_v30, %v10863_v7  ;;  %v10808_v53 = vunpack.i.h.bf16 %v14385_v58 }
 0x6a8   : >> { %8279 = vmatprep.subr.bf16.mxu1 %v8278_v54  ;;  %v10807_v0 = vunpack.i.l.bf16 %v14385_v58  ;;  %v10838_v50 = vunpack.i.h.bf16 %v14352_v5  ;;  %v10837_v2 = vunpack.i.l.bf16 %v14352_v5  ;;  %v10843_v34 = vunpack.i.h.bf16 %v14377_v28  ;;  %v14483_v54 = vpop.permute.xlu0 %3064 }
 0x6a9   : >> { %8281 = vmatpush1.bf16.msra.mxu1 %v8280_v6  ;;  %v3771_v42 = vsel %vm3764_vm15, %v10862_v11, %v10827_v24  ;;  %v3772_v38 = vsel %vm3764_vm15, %v10863_v7, %v10828_v47  ;;  %v10842_v48 = vunpack.i.l.bf16 %v14377_v28  ;;  %v8284_v58 = vpack.c.bf16 %v3752_v40, %v3751_v13 }
 0x6aa   : >> { %v10831_v41 = vpop.permute.xlu1 %10830  ;;  %v8282_v32 = vpack.c.bf16 %v3772_v38, %v3771_v42  ;;  %v3680_v6 = vsel %vm3665_vm9, %v14355_v26, %v10782_v57  ;;  %v3696_v29 = vsel %vm3685_vm4, %v14389_v45, %v10762_v59  ;;  %v3697_v5 = vsel %vm3685_vm4, %v14394_v15, %v10763_v55 }
 0x6ab   : >> { %v10833_v62 = vunpack.i.h.bf16 %v10831_v41  ;;  %v10832_v18 = vunpack.i.l.bf16 %v10831_v41  ;;  %v8288_v23 = vpack.c.bf16 %v3754_v51, %v3753_v43  ;;  %v3775_v7 = vsel %vm3764_vm15, %v10807_v0, %v10842_v48 }
 0x6ac   : >> { %8283 = vmatprep.subr.bf16.mxu1 %v8282_v32  ;;  %v3776_v26 = vsel %vm3764_vm15, %v10808_v53, %v10843_v34  ;;  %v3715_v45 = vsel %vm1427_vm1, %v3696_v29, %v10767_v63  ;;  %v3716_v11 = vsel %vm1427_vm1, %v3697_v5, %v10768_v44  ;;  %v10812_v15 = vunpack.i.l.bf16 %v14326_v19  ;;  %v10876_v34 = vpop.permute.xlu0 %10875 }
 0x6ad   : >> { %8285 = vmatpush1.bf16.msra.mxu1 %v8284_v58  ;;  %v3773_v20 = vsel %vm3764_vm15, %v10712_v61, %v10832_v18  ;;  %v3774_v28 = vsel %vm3764_vm15, %v10713_v25, %v10833_v62  ;;  %v3735_v31 = vsel %vm3724_vm5, %v3715_v45, %v10837_v2  ;;  %v3736_v61 = vsel %vm3724_vm5, %v3716_v11, %v10838_v50 }
 0x6ae   : >> { %v10846_v8 = vpop.permute.xlu1 %10845  ;;  %v8286_v30 = vpack.c.bf16 %v3774_v28, %v3773_v20  ;;  %v10813_v25 = vunpack.i.h.bf16 %v14326_v19  ;;  %v3755_v57 = vsel %vm3744_vm0, %v3735_v31, %v10807_v0  ;;  %v3756_v37 = vsel %vm3744_vm0, %v3736_v61, %v10808_v53 }
 0x6af   : >> { %v10848_v12 = vunpack.i.h.bf16 %v10846_v8  ;;  %v10847_v35 = vunpack.i.l.bf16 %v10846_v8  ;;  %v8290_v43 = vpack.c.bf16 %v3776_v26, %v3775_v7  ;;  %v3681_v51 = vsel %vm3665_vm9, %v14358_v1, %v10783_v3 }
 0x6b0   : >> { %8287 = vmatprep.subr.bf16.mxu1 %v8286_v30  ;;  %v10788_v55 = vunpack.i.h.bf16 %v14276_v60  ;;  %v10787_v59 = vunpack.i.l.bf16 %v14276_v60  ;;  %v10793_v47 = vunpack.i.h.bf16 %v14302_v33  ;;  %v10792_v24 = vunpack.i.l.bf16 %v14302_v33  ;;  %v3125_v45 = vpop.permute.xlu0 %3124 }
 0x6b1   : >> { %8289 = vmatpush1.bf16.msra.mxu1 %v8288_v23  ;;  %v3777_v19 = vsel %vm3764_vm15, %v10847_v35, %v10812_v15  ;;  %v10852_v44 = vunpack.i.l.bf16 %v14399_v16  ;;  %v3778_v39 = vsel %vm3764_vm15, %v10848_v12, %v10813_v25  ;;  %v10853_v13 = vunpack.i.h.bf16 %v14399_v16 }
 0x6b2   : >> { %v10856_v63 = vpop.permute.xlu1 %10855  ;;  %8291 = vmatprep.subr.bf16.mxu1 %v8290_v43  ;;  %v8292_v40 = vpack.c.bf16 %v3756_v37, %v3755_v57  ;;  %v3700_v60 = vsel %vm3685_vm4, %v3680_v6, %v10717_v9  ;;  %v3757_v53 = vsel %vm3744_vm0, %v14418_v4, %v10847_v35  ;;  %v3758_v33 = vsel %vm3744_vm0, %v14423_v14, %v10848_v12  ;;  %v18159_v12 = vld [vmem:[#allocation62_spill] sm:$0xff]  ;;  %v18160_v35 = vld [vmem:[#allocation52_spill] sm:$0xff] }
 0x6b3   : >> { %v10858_v1 = vunpack.i.h.bf16 %v10856_v63  ;;  %v10857_v3 = vunpack.i.l.bf16 %v10856_v63  ;;  %v8294_v0 = vpack.c.bf16 %v3778_v39, %v3777_v19  ;;  %v3701_v42 = vsel %vm3685_vm4, %v3681_v51, %v10718_v36 }
 0x6b4   : >> { %v3719_v16 = vsel %vm1427_vm1, %v3700_v60, %v10787_v59  ;;  %v10703_v9 = vunpack.i.h.bf16 %v18154_v49  ;;  %v3720_v2 = vsel %vm1427_vm1, %v3701_v42, %v10788_v55  ;;  %v10797_v4 = vunpack.i.l.bf16 %v14336_v46  ;;  %v3245_v51 = vpop.permute.xlu0 %3244  ;;  %v18162_v42 = vld [vmem:[#allocation8_spill] sm:$0xff] }
 0x6b5   : >> { %8293 = vmatpush1.bf16.msra.mxu1 %v8292_v40  ;;  %v3779_v38 = vsel %vm3764_vm15, %v10857_v3, %v10792_v24  ;;  %v3780_v50 = vsel %vm3764_vm15, %v10858_v1, %v10793_v47  ;;  %v3739_v14 = vsel %vm3724_vm5, %v3719_v16, %v10852_v44  ;;  %v10798_v27 = vunpack.i.h.bf16 %v14336_v46  ;;  %v18163_v16 = vld [vmem:[#allocation7_spill] sm:$0xff] }
 0x6b6   : >> { %v10866_v41 = vpop.permute.xlu1 %10865  ;;  %8295 = vmatprep.subr.bf16.mxu1 %v8294_v0  ;;  %v3740_v36 = vsel %vm3724_vm5, %v3720_v2, %v10853_v13  ;;  %v3759_v32 = vsel %vm3744_vm0, %v3739_v14, %v10857_v3  ;;  %v8296_v48 = vpack.c.bf16 %v3758_v33, %v3757_v53  ;;  %v8298_v6 = vpack.c.bf16 %v3780_v50, %v3779_v38  ;;  %v18161_v0 = vld [vmem:[#allocation5_spill] sm:$0xff] }
 0x6b7   : >> { %v3760_v62 = vsel %vm3744_vm0, %v3740_v36, %v10858_v1  ;;  %v10868_v18 = vunpack.i.h.bf16 %v10866_v41  ;;  %v10867_v58 = vunpack.i.l.bf16 %v10866_v41  ;;  %v3663_v29 = vsel %vm3645_vm14, %v14262_v21, %v10698_v56 }
 0x6b8   : >> { %v3682_v46 = vsel %vm3665_vm9, %v14366_v17, %v10702_v52  ;;  %v3683_v5 = vsel %vm3665_vm9, %v3663_v29, %v10703_v9  ;;  %v8300_v10 = vpack.c.bf16 %v3760_v62, %v3759_v32  ;;  %v10878_v52 = vunpack.i.h.bf16 %v10876_v34  ;;  %v3365_v39 = vpop.permute.xlu0 %3364 }
 0x6b9   : >> { %8297 = vmatpush1.bf16.msra.mxu1 %v8296_v48  ;;  %v3702_v23 = vsel %vm3685_vm4, %v3682_v46, %v10797_v4  ;;  %v3703_v28 = vsel %vm3685_vm4, %v3683_v5, %v10798_v27  ;;  %v10877_v11 = vunpack.i.l.bf16 %v10876_v34  ;;  %v3584_v25 = vsel %vm3565_vm2, %v18160_v35, %v18159_v12 }
 0x6ba   : >> { %v10871_v20 = vpop.permute.xlu1 %10870  ;;  %8299 = vmatprep.subr.bf16.mxu1 %v8298_v6  ;;  %v3721_v21 = vsel %vm1427_vm1, %v3702_v23, %v10867_v58  ;;  %v3722_v56 = vsel %vm1427_vm1, %v3703_v28, %v10868_v18  ;;  %v3604_v43 = vsel %vm3585_vm6, %v3584_v25, %v14458_v22  ;;  %v18166_v28 = vld [vmem:[#allocation34_spill] sm:$0xff]  ;;  %vm4752_vm6 = vcmask 253952  }
 0x6bb   : >> { %v10873_v7 = vunpack.i.h.bf16 %v10871_v20  ;;  %v10872_v26 = vunpack.i.l.bf16 %v10871_v20  ;;  %v3624_v19 = vsel %vm3605_vm7, %v3604_v43, %v14483_v54  ;;  %v18165_v20 = vmov 1.0  }
 0x6bc   : >> { %v3644_v24 = vsel %vm3625_vm8, %v3624_v19, %v3125_v45  ;;  %v3485_v60 = vpop.permute.xlu0 %3484 }
 0x6bd   : >> { %v3741_v49 = vsel %vm3724_vm5, %v3721_v21, %v10872_v26  ;;  %v3742_v17 = vsel %vm3724_vm5, %v3722_v56, %v10873_v7  ;;  %8301 = vmatpush1.bf16.msra.mxu1 %v8300_v10  ;;  %v8306_v7 = vpack.c.bf16 %v18166_v28, %v18165_v20 }
 0x6be   : >> { %v10881_v15 = vpop.permute.xlu1 %10880  ;;  %v3761_v31 = vsel %vm3744_vm0, %v3741_v49, %v10877_v11  ;;  %v3762_v61 = vsel %vm3744_vm0, %v3742_v17, %v10878_v52 }
 0x6bf   : >> { %v10883_v8 = vunpack.i.h.bf16 %v10881_v15  ;;  %v10882_v30 = vunpack.i.l.bf16 %v10881_v15  ;;  %v8304_v47 = vpack.c.bf16 %v3762_v61, %v3761_v31 }
 0x6c1   : >> { %v3781_v57 = vsel %vm3764_vm15, %v10877_v11, %v10882_v30  ;;  %v3782_v37 = vsel %vm3764_vm15, %v10878_v52, %v10883_v8 }
 0x6c2   : >> { %v3185_v55 = vpop.permute.xlu1 %3184  ;;  %v8302_v59 = vpack.c.bf16 %v3782_v37, %v3781_v57 }
 0x6c3   : >> { %v3664_v44 = vsel %vm3645_vm14, %v3644_v24, %v3185_v55 }
 0x6c4   : >> { %8303 = vmatprep.subr.bf16.mxu1 %v8302_v59  ;;  %v3684_v13 = vsel %vm3665_vm9, %v3664_v44, %v3245_v51 }
 0x6c5   : >> { %8305 = vmatpush1.bf16.msra.mxu1 %v8304_v47 }
 0x6c6   : >> { %v3305_v63 = vpop.permute.xlu1 %3304 }
 0x6c7   : >> { %v3704_v1 = vsel %vm3685_vm4, %v3684_v13, %v3305_v63  ;;  %vm18169_vm4 = vcmask 1042432  }
 0x6c8   : >> { %v3723_v3 = vsel %vm1427_vm1, %v3704_v1, %v3365_v39 }
 0x6ca   : >> { %v3425_v22 = vpop.permute.xlu1 %3424 }
 0x6cb   : >> { %v3743_v40 = vsel %vm3724_vm5, %v3723_v3, %v3425_v22  ;;  %vm8307_vm5 = vmpackc.low %vm18169_vm4, %vm480_vm3 }
 0x6cc   : >> { %v3763_v33 = vsel %vm3744_vm0, %v3743_v40, %v3485_v60  ;;  %8308 = vmatprep.subr.msk.bf16.mxu0 %vm8307_vm5, %v8306_v7  ;;  %vm18205_vm0 = vcmask 261120  }
 0x6cd   : >> { %v3787_v38 = vpop.permute.xlu0 %3786  ;;  %8311 = vmatpush3.bf16.msk.msra.mxu0 %vm8307_vm5, %v8306_v7  ;;  %vm18207_vm1 = vmmov %vm18205_vm0 }
 0x6ce   : >> { %v3545_v54 = vpop.permute.xlu1 %3544  ;;  %vm18208_vm2 = vmmov %vm18205_vm0 }
 0x6cf   : >> { %v3783_v53 = vsel %vm3764_vm15, %v3485_v60, %v3545_v54 }
 0x6d0   : >> { %7754 = vmatprep.subr.msk.mxu1 %vm609_vm11, %v3783_v53 }
 0x6d1   : >> { %7755 = vmatpush1.msk.msra.mxu1 %vm609_vm11, %v3763_v33  ;;  %vm4001_vm11 = vcmask 89088  }
 0x6d2   : >> { %3872 = vmatmul.mubr.f32.vlgmr.msra.gmra.mrb[2].mxu1 %v18161_v0 }
 0x6d3   : >> { %7757 = vmatprep.mubr.msk.f32.mxu1 %vm3794_vm12, %v18162_v42  ;;  %vm4464_vm12 = vcmask 15360  }
 0x6d6   : >> { %3878 = vmatmul.mubr.f32.gmra.mrb[4].mxu1 %v18163_v16 }
 0x6df   : >> { %v3792_v34 = vpop.permute.xlu1 %3791 }
 0x7a5   : >> { %v3873_v50 = vpop.f32.mrb[2].mxu1 }
 0x7a6   : >> { %v3874_v9 = vadd.f32 %v3873_v50, %v3787_v38  ;;  %v3875_v2 = vpop.f32.mrb[3].mxu1 }
 0x7a7   : >> { %v3876_v14 = vadd.f32 %v3875_v2, %v3787_v38  ;;  %v18170_v2 = vld [vmem:[#allocation13_spill] sm:$0xff] }
 0x7a8   : >> { %v3884_v4 = vmax.f32 %v3874_v9, 0.0 }
 0x7a9   : >> { %v3879_v41 = vpop.f32.mrb[4].mxu1  ;;  %v3885_v32 = vmax.f32 %v3876_v14, 0.0 }
 0x7aa   : >> { %v3880_v27 = vadd.f32 %v3879_v41, %v3792_v34  ;;  %v3881_v36 = vpop.f32.mrb[5].mxu1  ;;  %3890 = vrot.lane.b32.xlu1 %v3884_v4, %s11175_s26 }
 0x7ab   : >> { %v3882_v62 = vadd.f32 %v3881_v36, %v3792_v34 }
 0x7ac   : >> { %v3886_v48 = vmax.f32 %v3880_v27, 0.0 }
 0x7ad   : >> { %v3887_v18 = vmax.f32 %v3882_v62, 0.0 }
 0x7ae   : >> { %3892 = vrot.lane.b32.xlu0 %v3886_v48, %s11175_s26  ;;  %3900 = vrot.lane.b32.xlu1 %v3885_v32, %s11175_s26 }
 0x7b2   : >> { %3902 = vrot.lane.b32.xlu0 %v3887_v18, %s11175_s26 }
 0x81c   : >> { %v3891_v58 = vpop.permute.xlu1 %3890 }
 0x81d   : >> { %v3896_v6 = vmax.f32 %v3884_v4, %v3891_v58 }
 0x81f   : >> { %3912 = vrot.lane.b32.xlu1 %v3896_v6, %s11176_s23 }
 0x820   : >> { %v3901_v29 = vpop.permute.xlu1 %3900  ;;  %v3893_v5 = vpop.permute.xlu0 %3892 }
 0x821   : >> { %v3907_v46 = vmax.f32 %v3885_v32, %v3901_v29  ;;  %v3897_v23 = vmax.f32 %v3886_v48, %v3893_v5  ;;  %v3906_v45 = vmax.f32 %v3884_v4, %v3901_v29 }
 0x823   : >> { %3918 = vrot.lane.b32.xlu1 %v3896_v6, %s11177_s28  ;;  %3942 = vrot.lane.b32.xlu0 %v3907_v46, %s11178_s29 }
 0x824   : >> { %v3903_v21 = vpop.permute.xlu0 %3902 }
 0x825   : >> { %v3908_v56 = vmax.f32 %v3886_v48, %v3903_v21  ;;  %v3909_v49 = vmax.f32 %v3887_v18, %v3903_v21  ;;  %v11181_v21 = vmov 0.0|0.0  }
 0x826   : >> { %8344 = vmatprep.subr.bf16.mxu1 %v11181_v21 }
 0x827   : >> { %3924 = vrot.lane.b32.xlu1 %v3896_v6, %s11179_s16  ;;  %3914 = vrot.lane.b32.xlu0 %v3897_v23, %s11176_s23 }
 0x82b   : >> { %3930 = vrot.lane.b32.xlu1 %v3896_v6, %s18164_s17  ;;  %3920 = vrot.lane.b32.xlu0 %v3897_v23, %s11177_s28 }
 0x82f   : >> { %3926 = vrot.lane.b32.xlu0 %v3897_v23, %s11179_s16  ;;  %3940 = vrot.lane.b32.xlu1 %v3906_v45, %s11178_s29 }
 0x833   : >> { %3932 = vrot.lane.b32.xlu0 %v3897_v23, %s18164_s17  ;;  %3944 = vrot.lane.b32.xlu1 %v3908_v56, %s11178_s29 }
 0x837   : >> { %3946 = vrot.lane.b32.xlu0 %v3909_v49, %s11178_s29  ;;  %3953 = vrot.lane.b32.xlu1 %v3896_v6, %s11153_s27 }
 0x83b   : >> { %3955 = vrot.lane.b32.xlu0 %v3897_v23, %s11153_s27 }
 0x891   : >> { %v3913_v17 = vpop.permute.xlu1 %3912 }
 0x892   : >> { %3957 = vrot.lane.b32.xlu1 %v3913_v17, %s11153_s27 }
 0x895   : >> { %v3943_v52 = vpop.permute.xlu0 %3942  ;;  %v3919_v11 = vpop.permute.xlu1 %3918 }
 0x896   : >> { %3961 = vrot.lane.b32.xlu1 %v3919_v11, %s11153_s27 }
 0x899   : >> { %v3915_v15 = vpop.permute.xlu0 %3914  ;;  %v3925_v8 = vpop.permute.xlu1 %3924 }
 0x89a   : >> { %3959 = vrot.lane.b32.xlu0 %v3915_v15, %s11153_s27  ;;  %3965 = vrot.lane.b32.xlu1 %v3925_v8, %s11153_s27 }
 0x89d   : >> { %v3921_v30 = vpop.permute.xlu0 %3920  ;;  %v3931_v31 = vpop.permute.xlu1 %3930 }
 0x89e   : >> { %3963 = vrot.lane.b32.xlu0 %v3921_v30, %s11153_s27  ;;  %3969 = vrot.lane.b32.xlu1 %v3931_v31, %s11153_s27 }
 0x8a1   : >> { %v3927_v61 = vpop.permute.xlu0 %3926  ;;  %v3941_v12 = vpop.permute.xlu1 %3940 }
 0x8a2   : >> { %v3949_v35 = vsel %vm3948_vm10, %v3941_v12, %v3943_v52  ;;  %3967 = vrot.lane.b32.xlu0 %v3927_v61, %s11153_s27 }
 0x8a3   : >> { %3973 = vrot.lane.b32.xlu1 %v3949_v35, %s11153_s27 }
 0x8a5   : >> { %v3933_v25 = vpop.permute.xlu0 %3932  ;;  %v3945_v57 = vpop.permute.xlu1 %3944 }
 0x8a6   : >> { %3971 = vrot.lane.b32.xlu0 %v3933_v25, %s11153_s27 }
 0x8a9   : >> { %v3947_v37 = vpop.permute.xlu0 %3946  ;;  %v3954_v43 = vpop.permute.xlu1 %3953 }
 0x8aa   : >> { %v3950_v51 = vsel %vm3948_vm10, %v3945_v57, %v3947_v37  ;;  %v3989_v55 = vmax.f32 %v3896_v6, %v3954_v43 }
 0x8ab   : >> { %3975 = vrot.lane.b32.xlu0 %v3950_v51, %s11153_s27 }
 0x8ac   : >> { %8183 = vmatprep.mubr.msk.f32.mxu0 %vm4001_vm11, %v3989_v55 }
 0x8ad   : >> { %v3956_v59 = vpop.permute.xlu0 %3955 }
 0x8ae   : >> { %v3990_v19 = vmax.f32 %v3897_v23, %v3956_v59 }
 0x8b0   : >> { %8184 = vmatmul.mubr.msk.f32.vlgmr.msra.gmra.mrb[18].mxu0 %vm4001_vm11, %v3990_v19 }
 0x904   : >> { %v3958_v47 = vpop.permute.xlu1 %3957 }
 0x905   : >> { %v3991_v24 = vmax.f32 %v3913_v17, %v3958_v47 }
 0x907   : >> { %8186 = vmatprep.mubr.msk.f32.mxu0 %vm4001_vm11, %v3991_v24 }
 0x908   : >> { %v3962_v44 = vpop.permute.xlu1 %3961 }
 0x909   : >> { %v3993_v1 = vmax.f32 %v3919_v11, %v3962_v44 }
 0x90c   : >> { %v3960_v63 = vpop.permute.xlu0 %3959  ;;  %v3966_v39 = vpop.permute.xlu1 %3965 }
 0x90d   : >> { %v3992_v13 = vmax.f32 %v3915_v15, %v3960_v63  ;;  %v3995_v60 = vmax.f32 %v3925_v8, %v3966_v39 }
 0x90f   : >> { %8187 = vmatmul.mubr.msk.f32.gmra.mrb[20].mxu0 %vm4001_vm11, %v3992_v13 }
 0x910   : >> { %v3964_v22 = vpop.permute.xlu0 %3963  ;;  %8189 = vmatprep.mubr.msk.f32.mxu0 %vm4001_vm11, %v3993_v1  ;;  %v3970_v40 = vpop.permute.xlu1 %3969 }
 0x911   : >> { %v3994_v3 = vmax.f32 %v3921_v30, %v3964_v22  ;;  %v3997_v33 = vmax.f32 %v3931_v31, %v3970_v40 }
 0x913   : >> { %8190 = vmatmul.mubr.msk.f32.gmra.mrb[22].mxu0 %vm4001_vm11, %v3994_v3 }
 0x914   : >> { %v3968_v54 = vpop.permute.xlu0 %3967  ;;  %8192 = vmatprep.mubr.msk.f32.mxu0 %vm4001_vm11, %v3995_v60 }
 0x915   : >> { %v3996_v53 = vmax.f32 %v3927_v61, %v3968_v54  ;;  %v3974_v0 = vpop.permute.xlu1 %3973 }
 0x916   : >> { %v3999_v38 = vmax.f32 %v3949_v35, %v3974_v0 }
 0x917   : >> { %8193 = vmatmul.mubr.msk.f32.gmra.mrb[24].mxu0 %vm4001_vm11, %v3996_v53 }
 0x918   : >> { %v3972_v42 = vpop.permute.xlu0 %3971  ;;  %8195 = vmatprep.mubr.msk.f32.mxu0 %vm4001_vm11, %v3997_v33 }
 0x919   : >> { %v3998_v16 = vmax.f32 %v3933_v25, %v3972_v42 }
 0x91b   : >> { %8196 = vmatmul.mubr.msk.f32.gmra.mrb[26].mxu0 %vm4001_vm11, %v3998_v16 }
 0x91c   : >> { %8198 = vmatprep.mubr.msk.f32.mxu0 %vm4001_vm11, %v3999_v38 }
 0x91d   : >> { %v3976_v50 = vpop.permute.xlu0 %3975 }
 0x91e   : >> { %v4000_v9 = vmax.f32 %v3950_v51, %v3976_v50 }
 0x920   : >> { %8199 = vmatmul.mubr.msk.f32.gmra.mrb[28].mxu0 %vm4001_vm11, %v4000_v9 }
 0x921   : >> { %4612 = vmatprep.mubr.f32.mxu0 %v18170_v2 }
 0x983   : >> { %v14591_v4 = vpop.f32.mrb[18].mxu0 }
 0x984   : >> { %v14593_v14 = vpop.f32.mrb[19].mxu0 }
 0x985   : >> { %v14597_v34 = vpack.i.bf16 %v14591_v4, %v14593_v14 }
 0x9e2   : >> { %v14599_v41 = vpop.f32.mrb[20].mxu0 }
 0x9e3   : >> { %v14601_v27 = vpop.f32.mrb[21].mxu0 }
 0x9e4   : >> { %v10885_v36 = vpack.i.bf16 %v14599_v41, %v14601_v27 }
 0x9e6   : >> { %10886 = vrot.lane.b32.xlu1 %v10885_v36, %s11155_s19  ;;  %v14606_v32 = vpop.f32.mrb[22].mxu0 }
 0x9e7   : >> { %v14608_v48 = vpop.f32.mrb[23].mxu0 }
 0x9e8   : >> { %v10890_v62 = vpack.i.bf16 %v14606_v32, %v14608_v48 }
 0x9ea   : >> { %10891 = vrot.lane.b32.xlu0 %v10890_v62, %s18171_s20  ;;  %v14613_v18 = vpop.f32.mrb[24].mxu0 }
 0x9eb   : >> { %v14615_v58 = vpop.f32.mrb[25].mxu0 }
 0x9ec   : >> { %v10895_v6 = vpack.i.bf16 %v14613_v18, %v14615_v58 }
 0x9ee   : >> { %10896 = vrot.lane.b32.xlu0 %v10895_v6, %s18171_s20  ;;  %v14620_v29 = vpop.f32.mrb[26].mxu0 }
 0x9ef   : >> { %v14622_v46 = vpop.f32.mrb[27].mxu0 }
 0x9f0   : >> { %v10905_v5 = vpack.i.bf16 %v14620_v29, %v14622_v46 }
 0x9f2   : >> { %10906 = vrot.lane.b32.xlu0 %v10905_v5, %s18171_s20  ;;  %10901 = vrot.lane.b32.xlu1 %v10905_v5, %s11153_s27 }
 0x9f3   : >> { %v8200_v23 = vpop.f32.mrb[28].mxu0 }
 0x9f4   : >> { %v4157_v20 = vpop.f32.mrb[29].mxu0 }
 0x9f5   : >> { %v10910_v28 = vpack.i.bf16 %v8200_v23, %v4157_v20 }
 0x9f6   : >> { %10926 = vrot.lane.b32.xlu0 %v10885_v36, %s11156_s22 }
 0x9f7   : >> { %10911 = vrot.lane.b32.xlu1 %v10910_v28, %s11153_s27 }
 0x9fa   : >> { %10936 = vrot.lane.b32.xlu0 %v10910_v28, %s18171_s20 }
 0x9fb   : >> { %10916 = vrot.lane.b32.xlu1 %v10890_v62, %s11155_s19 }
 0x9fe   : >> { %10941 = vrot.lane.b32.xlu0 %v10885_v36, %s11153_s27 }
 0x9ff   : >> { %10921 = vrot.lane.b32.xlu1 %v10895_v6, %s11155_s19 }
 0xa02   : >> { %10956 = vrot.lane.b32.xlu0 %v10895_v6, %s11156_s22 }
 0xa03   : >> { %10931 = vrot.lane.b32.xlu1 %v10905_v5, %s11155_s19 }
 0xa06   : >> { %10966 = vrot.lane.b32.xlu0 %v10910_v28, %s11155_s19 }
 0xa07   : >> { %10946 = vrot.lane.b32.xlu1 %v10890_v62, %s11156_s22 }
 0xa0a   : >> { %10971 = vrot.lane.b32.xlu0 %v10895_v6, %s11153_s27 }
 0xa0b   : >> { %10951 = vrot.lane.b32.xlu1 %v10890_v62, %s11153_s27 }
 0xa0e   : >> { %10981 = vrot.lane.b32.xlu0 %v10910_v28, %s11156_s22 }
 0xa0f   : >> { %10961 = vrot.lane.b32.xlu1 %v10885_v36, %s18171_s20 }
 0xa12   : >> { %10986 = vrot.lane.b32.xlu0 %v10885_v36, %s11180_s21 }
 0xa13   : >> { %10976 = vrot.lane.b32.xlu1 %v10905_v5, %s11156_s22 }
 0xa16   : >> { %11006 = vrot.lane.b32.xlu0 %v10905_v5, %s11180_s21 }
 0xa17   : >> { %10991 = vrot.lane.b32.xlu1 %v10890_v62, %s11180_s21 }
 0xa1b   : >> { %10996 = vrot.lane.b32.xlu1 %v14597_v34, %s11155_s19 }
 0xa1f   : >> { %11001 = vrot.lane.b32.xlu1 %v10895_v6, %s11180_s21 }
 0xa58   : >> { %v14649_v7 = vpop.permute.xlu1 %10886 }
 0xa59   : >> { %v10889_v26 = vunpack.i.h.bf16 %v14649_v7  ;;  %v10888_v10 = vunpack.i.l.bf16 %v14649_v7  ;;  %11011 = vrot.lane.b32.xlu0 %v14649_v7, %s11180_s21 }
 0xa5c   : >> { %v14653_v45 = vpop.permute.xlu0 %10891 }
 0xa5d   : >> { %v10894_v56 = vunpack.i.h.bf16 %v14653_v45  ;;  %v10893_v49 = vunpack.i.l.bf16 %v14653_v45  ;;  %11016 = vrot.lane.b32.xlu1 %v14653_v45, %s11180_s21 }
 0xa60   : >> { %v14660_v17 = vpop.permute.xlu0 %10896 }
 0xa61   : >> { %v10899_v52 = vunpack.i.h.bf16 %v14660_v17  ;;  %v10898_v11 = vunpack.i.l.bf16 %v14660_v17  ;;  %11026 = vrot.lane.b32.xlu0 %v14660_v17, %s11180_s21 }
 0xa64   : >> { %v14666_v15 = vpop.permute.xlu0 %10906  ;;  %v14668_v8 = vpop.permute.xlu1 %10901 }
 0xa65   : >> { %v10904_v57 = vunpack.i.h.bf16 %v14668_v8  ;;  %v10903_v37 = vunpack.i.l.bf16 %v14668_v8  ;;  %v10909_v19 = vunpack.i.h.bf16 %v14666_v15  ;;  %v10908_v47 = vunpack.i.l.bf16 %v14666_v15 }
 0xa68   : >> { %v14672_v30 = vpop.permute.xlu0 %10926 }
 0xa69   : >> { %v10912_v31 = vpop.permute.xlu1 %10911  ;;  %v10929_v63 = vunpack.i.h.bf16 %v14672_v30  ;;  %v10928_v39 = vunpack.i.l.bf16 %v14672_v30 }
 0xa6c   : >> { %v10937_v61 = vpop.permute.xlu0 %10936 }
 0xa6d   : >> { %v14674_v12 = vpop.permute.xlu1 %10916 }
 0xa6e   : >> { %v10919_v35 = vunpack.i.h.bf16 %v14674_v12  ;;  %v10918_v25 = vunpack.i.l.bf16 %v14674_v12  ;;  %11021 = vrot.lane.b32.xlu1 %v14674_v12, %s11180_s21 }
 0xa70   : >> { %v14680_v43 = vpop.permute.xlu0 %10941 }
 0xa71   : >> { %v14682_v51 = vpop.permute.xlu1 %10921 }
 0xa72   : >> { %v10924_v55 = vunpack.i.h.bf16 %v14682_v51  ;;  %v10923_v59 = vunpack.i.l.bf16 %v14682_v51  ;;  %11036 = vrot.lane.b32.xlu1 %v14668_v8, %s11180_s21  ;;  %11031 = vrot.lane.b32.xlu0 %v14682_v51, %s11180_s21 }
 0xa74   : >> { %v14690_v24 = vpop.permute.xlu0 %10956 }
 0xa75   : >> { %v14692_v44 = vpop.permute.xlu1 %10931 }
 0xa76   : >> { %11041 = vrot.lane.b32.xlu1 %v10910_v28, %s11180_s21  ;;  %11046 = vrot.lane.b32.xlu0 %v14666_v15, %s11180_s21 }
 0xa78   : >> { %v10967_v13 = vpop.permute.xlu0 %10966 }
 0xa79   : >> { %v14700_v1 = vpop.permute.xlu1 %10946 }
 0xa7a   : >> { %11061 = vrot.lane.b32.xlu1 %v14672_v30, %s11180_s21  ;;  %11051 = vrot.lane.b32.xlu0 %v10912_v31, %s11180_s21 }
 0xa7c   : >> { %v14705_v22 = vpop.permute.xlu0 %10971 }
 0xa7d   : >> { %v14707_v3 = vpop.permute.xlu1 %10951 }
 0xa7e   : >> { %11071 = vrot.lane.b32.xlu1 %v14597_v34, %s11153_s27  ;;  %11056 = vrot.lane.b32.xlu0 %v14597_v34, %s11156_s22  ;;  %s4751_s27 = scalar_lea.vmem [#allocation2], %s11150_s18  ;;  %s509_s18 = sadd.s32 1, %s11150_s18  }
 0xa7f   : >> { %p506_p5 = scmp.ge.s32.totalorder %s509_s18, 8  }
 0xa80   : >> { %v10982_v54 = vpop.permute.xlu0 %10981  ;;  %vm18213_vm3 = vcmask (%p506_p5), 261120   ;;  %vm6321_vm11 = vcmask (%p506_p5), 654336  }
 0xa81   : >> { %v14714_v53 = vpop.permute.xlu1 %10961  ;;  %vm18214_vm7 = vmmov (%p506_p5), %vm18213_vm3 }
 0xa82   : >> { %11081 = vrot.lane.b32.xlu1 %v10937_v61, %s11180_s21  ;;  %11066 = vrot.lane.b32.xlu0 %v14692_v44, %s11180_s21  ;;  %vm18215_vm8 = vmmov (%p506_p5), %vm18213_vm3 }
 0xa83   : > { %vm18216_vm14 = vmmov (%p506_p5), %vm18213_vm3 }
 0xa84   : >> { %v10987_v38 = vpop.permute.xlu0 %10986  ;;  %vm18217_vm9 = vmmov (%p506_p5), %vm18213_vm3 }
 0xa85   : >> { %v10989_v50 = vunpack.i.h.bf16 %v10987_v38  ;;  %v10988_v9 = vunpack.i.l.bf16 %v10987_v38  ;;  %v14724_v2 = vpop.permute.xlu1 %10976  ;;  %vm18218_vm4 = vmmov (%p506_p5), %vm18213_vm3 }
 0xa86   : >> { %11086 = vrot.lane.b32.xlu1 %v14700_v1, %s11180_s21  ;;  %11076 = vrot.lane.b32.xlu0 %v14680_v43, %s11180_s21  ;;  %vm18219_vm5 = vmmov (%p506_p5), %vm18213_vm3 }
 0xa87   : >> { %v14733_v6 = vsel %vm4464_vm12, %v14591_v4, %v10989_v50  ;;  %v14737_v5 = vsel %vm4464_vm12, %v14593_v14, %v10988_v9  ;;  %vm18220_vm10 = vmmov (%p506_p5), %vm18213_vm3 }
 0xa88   : >> { %v8314_v28 = vpack.c.bf16 %v14733_v6, %v14737_v5  ;;  %v11007_v31 = vpop.permute.xlu0 %11006 }
 0xa89   : >> { %v11009_v61 = vunpack.i.h.bf16 %v11007_v31  ;;  %v11008_v38 = vunpack.i.l.bf16 %v11007_v31  ;;  %v10992_v62 = vpop.permute.xlu1 %10991 }
 0xa8a   : >> { %v10994_v36 = vunpack.i.h.bf16 %v10992_v62  ;;  %v10993_v40 = vunpack.i.l.bf16 %v10992_v62  ;;  %11091 = vrot.lane.b32.xlu1 %v14707_v3, %s11180_s21  ;;  %11096 = vrot.lane.b32.xlu0 %v14690_v24, %s11180_s21 }
 0xa8b   : >> { %v14749_v4 = vsel %vm4464_vm12, %v14613_v18, %v11009_v61  ;;  %v14753_v14 = vsel %vm4464_vm12, %v14615_v58, %v11008_v38  ;;  %v10974_v58 = vunpack.i.h.bf16 %v14705_v22 }
 0xa8c   : >> { %v8326_v50 = vpack.c.bf16 %v14749_v4, %v14753_v14  ;;  %v14759_v9 = vsel %vm4464_vm12, %v14599_v41, %v10994_v36  ;;  %v14763_v62 = vsel %vm4464_vm12, %v14601_v27, %v10993_v40  ;;  %v10973_v41 = vunpack.i.l.bf16 %v14705_v22 }
 0xa8d   : >> { %v8318_v31 = vpack.c.bf16 %v14759_v9, %v14763_v62  ;;  %v14767_v18 = vpop.permute.xlu1 %10996  ;;  %v10964_v36 = vunpack.i.h.bf16 %v14714_v53  ;;  %v10963_v27 = vunpack.i.l.bf16 %v14714_v53 }
 0xa8e   : >> { %11101 = vrot.lane.b32.xlu1 %v14597_v34, %s18171_s20  ;;  %11106 = vrot.lane.b32.xlu0 %v10967_v13, %s11180_s21  ;;  %v18172_v34 = vld [vmem:[#allocation15_spill] sm:$0xff]  ;;  %v18175_v13 = vld [vmem:[#allocation38_spill] sm:$0xff] }
 0xa8f   : >> { %7772 = vmatprep.mubr.msk.f32.mxu1 %vm4535_vm13, %v18172_v34 }
 0xa91   : >> { %v11002_v40 = vpop.permute.xlu1 %11001 }
 0xa92   : >> { %v11004_v61 = vunpack.i.h.bf16 %v11002_v40  ;;  %v11003_v38 = vunpack.i.l.bf16 %v11002_v40  ;;  %11116 = vrot.lane.b32.xlu1 %v14705_v22, %s11180_s21  ;;  %11111 = vrot.lane.b32.xlu0 %v14714_v53, %s11180_s21 }
 0xa94   : >> { %v14784_v60 = vsel %vm4464_vm12, %v14606_v32, %v11004_v61  ;;  %v14788_v16 = vsel %vm4464_vm12, %v14608_v48, %v11003_v38  ;;  %v18173_v32 = vld [vmem:[#allocation33_spill] sm:$0xff]  ;;  %v18174_v48 = vld [vmem:[#allocation32_spill] sm:$0xff] }
 0xa95   : >> { %v8322_v40 = vpack.c.bf16 %v14784_v60, %v14788_v16  ;;  %v18176_v61 = vld [vmem:[#allocation37_spill] sm:$0xff] }
 0xa96   : >> { %11126 = vrot.lane.b32.xlu1 %v10982_v54, %s11180_s21  ;;  %11121 = vrot.lane.b32.xlu0 %v14724_v2, %s11180_s21 }
 0xa9a   : >> { %4522 = vperm.xlu1 %9958, %v18173_v32   ;;  %4517 = vperm.xlu0 %10884, %v18174_v48  }
 0xa9e   : >> { %4532 = vperm.xlu1 %9958, %v18175_v13   ;;  %4527 = vperm.xlu0 %10884, %v18176_v61  }
 0xacb   : >> { %v11012_v22 = vpop.permute.xlu0 %11011 }
 0xacf   : >> { %v11017_v38 = vpop.permute.xlu1 %11016 }
 0xad0   : >> { %v11019_v53 = vunpack.i.h.bf16 %v11017_v38  ;;  %v11018_v23 = vunpack.i.l.bf16 %v11017_v38 }
 0xad2   : >> { %v4497_v20 = vsel %vm4464_vm12, %v10963_v27, %v11018_v23  ;;  %v4498_v34 = vsel %vm4464_vm12, %v10964_v36, %v11019_v53 }
 0xad3   : >> { %v8345_v54 = vpack.c.bf16 %v4498_v34, %v4497_v20  ;;  %v11027_v42 = vpop.permute.xlu0 %11026 }
 0xad4   : >> { %v11029_v0 = vunpack.i.h.bf16 %v11027_v42  ;;  %v11028_v33 = vunpack.i.l.bf16 %v11027_v42 }
 0xad5   : >> { %8346 = vmatpush1.bf16.msra.mxu1 %v8345_v54  ;;  %v11014_v54 = vunpack.i.h.bf16 %v11012_v22 }
 0xad6   : >> { %v4500_v32 = vsel %vm4464_vm12, %v10894_v56, %v11029_v0  ;;  %v4499_v48 = vsel %vm4464_vm12, %v10893_v49, %v11028_v33  ;;  %8347 = vmatprep.subr.bf16.mxu1 %v11181_v21 }
 0xad7   : >> { %v8348_v13 = vpack.c.bf16 %v4500_v32, %v4499_v48  ;;  %v11013_v32 = vunpack.i.l.bf16 %v11012_v22  ;;  %v10999_v22 = vunpack.i.h.bf16 %v14767_v18 }
 0xad9   : >> { %8349 = vmatpush1.bf16.msra.mxu1 %v8348_v13  ;;  %v4486_v6 = vsel %vm4464_vm12, %v10999_v22, %v11014_v54 }
 0xada   : >> { %8350 = vmatprep.subr.bf16.mxu1 %v11181_v21 }
 0xae0   : >> { %v11022_v23 = vpop.permute.xlu1 %11021 }
 0xae1   : >> { %v11023_v17 = vunpack.i.l.bf16 %v11022_v23 }
 0xae4   : >> { %v11037_v20 = vpop.permute.xlu1 %11036  ;;  %v11032_v36 = vpop.permute.xlu0 %11031 }
 0xae5   : >> { %v11039_v27 = vunpack.i.h.bf16 %v11037_v20  ;;  %v11038_v42 = vunpack.i.l.bf16 %v11037_v20 }
 0xae7   : >> { %v4481_v61 = vsel %vm4464_vm12, %v10973_v41, %v11038_v42  ;;  %v4482_v38 = vsel %vm4464_vm12, %v10974_v58, %v11039_v27 }
 0xae8   : >> { %v11042_v56 = vpop.permute.xlu1 %11041  ;;  %v11047_v0 = vpop.permute.xlu0 %11046  ;;  %v8312_v45 = vpack.c.bf16 %v4482_v38, %v4481_v61  ;;  %v11024_v38 = vunpack.i.h.bf16 %v11022_v23  ;;  %v11034_v23 = vunpack.i.h.bf16 %v11032_v36 }
 0xae9   : >> { %v11044_v53 = vunpack.i.h.bf16 %v11042_v56  ;;  %v11043_v49 = vunpack.i.l.bf16 %v11042_v56  ;;  %v11049_v33 = vunpack.i.h.bf16 %v11047_v0  ;;  %v11048_v34 = vunpack.i.l.bf16 %v11047_v0 }
 0xaea   : >> { %8313 = vmatprep.subr.bf16.mxu0 %v8312_v45 }
 0xaeb   : >> { %v14819_v48 = vsel %vm4464_vm12, %v14620_v29, %v11044_v53  ;;  %v14823_v13 = vsel %vm4464_vm12, %v14622_v46, %v11043_v49  ;;  %v4502_v58 = vsel %vm4464_vm12, %v10899_v52, %v11049_v33  ;;  %v4501_v41 = vsel %vm4464_vm12, %v10898_v11, %v11048_v34  ;;  %8315 = vmatpush3.bf16.msra.mxu0 %v8314_v28 }
 0xaec   : >> { %v10998_v29 = vunpack.i.l.bf16 %v14767_v18  ;;  %v8330_v46 = vpack.c.bf16 %v14819_v48, %v14823_v13  ;;  %v8351_v20 = vpack.c.bf16 %v4502_v58, %v4501_v41  ;;  %v11062_v27 = vpop.permute.xlu1 %11061  ;;  %v11052_v42 = vpop.permute.xlu0 %11051  ;;  %v11033_v53 = vunpack.i.l.bf16 %v11032_v36 }
 0xaed   : >> { %v11054_v61 = vunpack.i.h.bf16 %v11052_v42  ;;  %v11053_v52 = vunpack.i.l.bf16 %v11052_v42  ;;  %v4487_v49 = vsel %vm4464_vm12, %v10888_v10, %v11023_v17  ;;  %v11064_v58 = vunpack.i.h.bf16 %v11062_v27 }
 0xaee   : >> { %8352 = vmatpush1.bf16.msra.mxu1 %v8351_v20  ;;  %v4485_v11 = vsel %vm4464_vm12, %v10998_v29, %v11013_v32  ;;  %v11063_v41 = vunpack.i.l.bf16 %v11062_v27  ;;  %v4489_v7 = vsel %vm4464_vm12, %v10918_v25, %v11033_v53  ;;  %v18180_v48 = vunpack.i.l.bf16 %v14700_v1 }
 0xaef   : >> { %v4483_v5 = vsel %vm4464_vm12, %v10903_v37, %v11053_v52  ;;  %v4484_v28 = vsel %vm4464_vm12, %v10904_v57, %v11054_v61  ;;  %8353 = vmatprep.subr.bf16.mxu1 %v11181_v21  ;;  %v8320_v45 = vpack.c.bf16 %v4486_v6, %v4485_v11  ;;  %v4488_v37 = vsel %vm4464_vm12, %v10889_v26, %v11024_v38 }
 0xaf0   : >> { %v11072_v18 = vpop.permute.xlu1 %11071  ;;  %v11057_v56 = vpop.permute.xlu0 %11056  ;;  %v8316_v0 = vpack.c.bf16 %v4484_v28, %v4483_v5  ;;  %v8324_v32 = vpack.c.bf16 %v4488_v37, %v4487_v49  ;;  %v4490_v26 = vsel %vm4464_vm12, %v10919_v35, %v11034_v23  ;;  %v18178_v28 = vunpack.i.l.bf16 %v14680_v43 }
 0xaf1   : >> { %v11059_v8 = vunpack.i.h.bf16 %v11057_v56  ;;  %v11058_v57 = vunpack.i.l.bf16 %v11057_v56  ;;  %v11074_v42 = vunpack.i.h.bf16 %v11072_v18  ;;  %v8328_v61 = vpack.c.bf16 %v4490_v26, %v4489_v7 }
 0xaf2   : >> { %8317 = vmatprep.subr.bf16.mxu0 %v8316_v0 }
 0xaf3   : >> { %8319 = vmatpush3.bf16.msra.mxu0 %v8318_v31  ;;  %v4506_v25 = vsel %vm4464_vm12, %v11059_v8, %v11064_v58  ;;  %v4505_v12 = vsel %vm4464_vm12, %v11058_v57, %v11063_v41  ;;  %v18182_v8 = vunpack.i.h.bf16 %v14692_v44 }
 0xaf4   : >> { %v11082_v33 = vpop.permute.xlu1 %11081  ;;  %v11067_v34 = vpop.permute.xlu0 %11066  ;;  %8321 = vmatprep.subr.bf16.mxu0 %v8320_v45  ;;  %v8357_v52 = vpack.c.bf16 %v4506_v25, %v4505_v12  ;;  %v18179_v45 = vunpack.i.h.bf16 %v14700_v1 }
 0xaf5   : >> { %v11084_v54 = vunpack.i.h.bf16 %v11082_v33  ;;  %v11083_v36 = vunpack.i.l.bf16 %v11082_v33  ;;  %v11069_v62 = vunpack.i.h.bf16 %v11067_v34  ;;  %v11068_v31 = vunpack.i.l.bf16 %v11067_v34 }
 0xaf7   : >> { %v4504_v10 = vsel %vm4464_vm12, %v10909_v19, %v11084_v54  ;;  %v4503_v9 = vsel %vm4464_vm12, %v10908_v47, %v11083_v36  ;;  %8323 = vmatpush3.bf16.msra.mxu0 %v8322_v40  ;;  %v11073_v47 = vunpack.i.l.bf16 %v11072_v18  ;;  %v4491_v16 = vsel %vm4464_vm12, %v10923_v59, %v11068_v31 }
 0xaf8   : >> { %v8354_v22 = vpack.c.bf16 %v4504_v10, %v4503_v9  ;;  %v11087_v35 = vpop.permute.xlu1 %11086  ;;  %v11077_v29 = vpop.permute.xlu0 %11076  ;;  %8325 = vmatprep.subr.bf16.mxu0 %v8324_v32  ;;  %v4492_v40 = vsel %vm4464_vm12, %v10924_v55, %v11069_v62  ;;  %v18183_v10 = vunpack.i.h.bf16 %v14707_v3 }
 0xaf9   : >> { %v11089_v20 = vunpack.i.h.bf16 %v11087_v35  ;;  %v11088_v19 = vunpack.i.l.bf16 %v11087_v35  ;;  %v11079_v27 = vunpack.i.h.bf16 %v11077_v29  ;;  %v11078_v15 = vunpack.i.l.bf16 %v11077_v29 }
 0xafa   : >> { %8355 = vmatpush1.bf16.msra.mxu1 %v8354_v22  ;;  %v8332_v51 = vpack.c.bf16 %v4492_v40, %v4491_v16  ;;  %v18188_v40 = vunpack.i.l.bf16 %v14724_v2 }
 0xafb   : >> { %v4508_v60 = vsel %vm4464_vm12, %v10929_v63, %v11089_v20  ;;  %8327 = vmatpush3.bf16.msra.mxu0 %v8326_v50  ;;  %v4507_v38 = vsel %vm4464_vm12, %v10928_v39, %v11088_v19  ;;  %v4476_v17 = vsel %vm4464_vm12, %v11074_v42, %v11079_v27  ;;  %v4475_v63 = vsel %vm4464_vm12, %v11073_v47, %v11078_v15 }
 0xafc   : >> { %v11092_v11 = vpop.permute.xlu1 %11091  ;;  %v11097_v6 = vpop.permute.xlu0 %11096  ;;  %8329 = vmatprep.subr.bf16.mxu0 %v8328_v61  ;;  %8356 = vmatprep.subr.bf16.mxu1 %v11181_v21  ;;  %v8360_v55 = vpack.c.bf16 %v4508_v60, %v4507_v38  ;;  %v8334_v30 = vpack.c.bf16 %v4476_v17, %v4475_v63  ;;  %v18177_v39 = vunpack.i.h.bf16 %v14680_v43  ;;  %v18181_v43 = vunpack.i.l.bf16 %v14692_v44  ;;  %v18189_v17 = vld [vmem:[#allocation12_spill] sm:$0xff]  ;;  %v18190_v63 = vld [vmem:[#allocation17_spill] sm:$0xff] }
 0xafd   : >> { %v11094_v4 = vunpack.i.h.bf16 %v11092_v11  ;;  %v11093_v14 = vunpack.i.l.bf16 %v11092_v11  ;;  %v11099_v59 = vunpack.i.h.bf16 %v11097_v6  ;;  %v11098_v50 = vunpack.i.l.bf16 %v11097_v6  ;;  %v18191_v11 = vld [vmem:[#allocation16_spill] sm:$0xff] }
 0xafe   : >> { %8358 = vmatpush1.bf16.msra.mxu1 %v8357_v52  ;;  %v18184_v44 = vunpack.i.l.bf16 %v14707_v3  ;;  %v18185_v3 = vunpack.i.h.bf16 %v14690_v24  ;;  %v18186_v47 = vunpack.i.l.bf16 %v14690_v24  ;;  %v18187_v60 = vunpack.i.h.bf16 %v14724_v2  ;;  %v18192_v6 = vld [vmem:[#allocation24_spill] sm:$0xff]  ;;  %v18195_v2 = vld [vmem:[#allocation21_spill] sm:$0xff] }
 0xaff   : >> { %8331 = vmatpush3.bf16.msra.mxu0 %v8330_v46  ;;  %v4478_v5 = vsel %vm4464_vm12, %v18177_v39, %v11094_v4  ;;  %v4477_v18 = vsel %vm4464_vm12, %v18178_v28, %v11093_v14  ;;  %8359 = vmatprep.subr.bf16.mxu1 %v11181_v21  ;;  %v4510_v23 = vsel %vm4464_vm12, %v18179_v45, %v11099_v59  ;;  %v18193_v4 = vld [vmem:[#allocation14_spill] sm:$0xff]  ;;  %v18196_v59 = vld [vmem:[#allocation29_spill] sm:$0xff] }
 0xb00   : >> { %v11102_v56 = vpop.permute.xlu1 %11101  ;;  %v11107_v0 = vpop.permute.xlu0 %11106  ;;  %8333 = vmatprep.subr.bf16.mxu0 %v8332_v51  ;;  %v4509_v13 = vsel %vm4464_vm12, %v18180_v48, %v11098_v50  ;;  %v8338_v49 = vpack.c.bf16 %v4478_v5, %v4477_v18  ;;  %v18194_v14 = vld [vmem:[#allocation22_spill] sm:$0xff]  ;;  %v18197_v50 = vld [vmem:[#allocation20_spill] sm:$0xff] }
 0xb01   : >> { %v11109_v46 = vunpack.i.h.bf16 %v11107_v0  ;;  %v11108_v53 = vunpack.i.l.bf16 %v11107_v0  ;;  %v8363_v33 = vpack.c.bf16 %v4510_v23, %v4509_v13  ;;  %v11104_v34 = vunpack.i.h.bf16 %v11102_v56  ;;  %v18198_v51 = vld [vmem:[#allocation28_spill] sm:$0xff]  ;;  %v18202_v39 = vld [vmem:[#allocation30_spill] sm:$0xff] }
 0xb02   : >> { %8361 = vmatpush1.bf16.msra.mxu1 %v8360_v55  ;;  %v11103_v1 = vunpack.i.l.bf16 %v11102_v56  ;;  %v18200_v55 = vld [vmem:[#allocation25_spill] sm:$0xff] }
 0xb03   : >> { %8335 = vmatpush3.bf16.msra.mxu0 %v8334_v30  ;;  %8362 = vmatprep.subr.bf16.mxu1 %v11181_v21  ;;  %v4493_v37 = vsel %vm4464_vm12, %v18181_v43, %v11108_v53  ;;  %v4494_v57 = vsel %vm4464_vm12, %v18182_v8, %v11109_v46  ;;  %v18201_v30 = vld [vmem:[#allocation31_spill] sm:$0xff] }
 0xb04   : >> { %v11117_v54 = vpop.permute.xlu1 %11116  ;;  %v11112_v36 = vpop.permute.xlu0 %11111  ;;  %v8336_v32 = vpack.c.bf16 %v4494_v57, %v4493_v37 }
 0xb05   : >> { %v11119_v58 = vunpack.i.h.bf16 %v11117_v54  ;;  %v11118_v41 = vunpack.i.l.bf16 %v11117_v54  ;;  %v11114_v7 = vunpack.i.h.bf16 %v11112_v36  ;;  %v11113_v26 = vunpack.i.l.bf16 %v11112_v36 }
 0xb06   : >> { %8337 = vmatprep.subr.bf16.mxu0 %v8336_v32  ;;  %8364 = vmatpush1.bf16.msra.mxu1 %v8363_v33 }
 0xb07   : >> { %v4480_v9 = vsel %vm4464_vm12, %v18183_v10, %v11119_v58  ;;  %v4479_v62 = vsel %vm4464_vm12, %v18184_v44, %v11118_v41  ;;  %8339 = vmatpush3.bf16.msra.mxu0 %v8338_v49  ;;  %v4495_v31 = vsel %vm4464_vm12, %v11103_v1, %v11113_v26  ;;  %v4496_v25 = vsel %vm4464_vm12, %v11104_v34, %v11114_v7 }
 0xb08   : >> { %v8342_v12 = vpack.c.bf16 %v4480_v9, %v4479_v62  ;;  %v11127_v22 = vpop.permute.xlu1 %11126  ;;  %v11122_v35 = vpop.permute.xlu0 %11121  ;;  %v8340_v29 = vpack.c.bf16 %v4496_v25, %v4495_v31  ;;  %8365 = vmatprep.subr.bf16.mxu1 %v11181_v21 }
 0xb09   : >> { %v11129_v20 = vunpack.i.h.bf16 %v11127_v22  ;;  %v11128_v19 = vunpack.i.l.bf16 %v11127_v22  ;;  %v11124_v27 = vunpack.i.h.bf16 %v11122_v35  ;;  %v11123_v15 = vunpack.i.l.bf16 %v11122_v35 }
 0xb0a   : >> { %8341 = vmatprep.subr.bf16.mxu0 %v8340_v29 }
 0xb0b   : >> { %v4512_v42 = vsel %vm4464_vm12, %v18185_v3, %v11124_v27  ;;  %v4511_v61 = vsel %vm4464_vm12, %v18186_v47, %v11123_v15  ;;  %8343 = vmatpush3.bf16.msra.mxu0 %v8342_v12  ;;  %v4514_v16 = vsel %vm4464_vm12, %v18187_v60, %v11129_v20  ;;  %v4513_v38 = vsel %vm4464_vm12, %v18188_v40, %v11128_v19  ;;  %v18203_v47 = vld [vmem:[#allocation36_spill] sm:$0xff] }
 0xb0c   : >> { %v8366_v52 = vpack.c.bf16 %v4512_v42, %v4511_v61  ;;  %v8369_v24 = vpack.c.bf16 %v4514_v16, %v4513_v38  ;;  %v18206_v38 = vld [vmem:[#allocation39_spill] sm:$0xff]  ;;  %vm11184_vm12 = vmmov (%p506_p5), 0  }
 0xb0e   : >> { %4613 = vmatmul.mubr.f32.vlgmr.msra.gmra.mrb[30].mxu0 %v18189_v17  ;;  %8367 = vmatpush1.bf16.msra.mxu1 %v8366_v52  ;;  %v18204_v52 = vld [vmem:[#allocation27_spill] sm:$0xff] }
 0xb0f   : >> { %4617 = vmatprep.mubr.f32.mxu0 %v18190_v63  ;;  %8368 = vmatprep.subr.bf16.mxu1 %v11181_v21  ;;  %v18199_v21 = vld [vmem:[#allocation26_spill] sm:$0xff] }
 0xb12   : >> { %4618 = vmatmul.mubr.f32.gmra.mrb[32].mxu0 %v18191_v11  ;;  %8370 = vmatpush1.bf16.msra.mxu1 %v8369_v24 }
 0xb13   : >> { %4622 = vmatprep.mubr.f32.mxu0 %v18192_v6 }
 0xb15   : >> { %4698 = vmatmul.mubr.f32.vlgmr.msra.gmra.mrb[6].mxu1 %v18193_v4  ;;  %v18209_v4 = vld [vmem:[#allocation40_spill] sm:$0xff] }
 0xb16   : >> { %4623 = vmatmul.mubr.f32.gmra.mrb[34].mxu0 %v18194_v14  ;;  %7773 = vmatprep.mubr.msk.f32.mxu1 %vm4535_vm13, %v18195_v2 }
 0xb17   : >> { %4627 = vmatprep.mubr.f32.mxu0 %v18196_v59 }
 0xb19   : >> { %4703 = vmatmul.mubr.f32.gmra.mrb[8].mxu1 %v18197_v50  ;;  %v4518_v0 = vpop.permute.xlu0 %4517  ;;  %v4523_v43 = vpop.permute.xlu1 %4522 }
 0xb1a   : >> { %4628 = vmatmul.mubr.f32.gmra.mrb[36].mxu0 %v18198_v51  ;;  %7774 = vmatprep.mubr.msk.f32.mxu1 %vm4535_vm13, %v18199_v21 }
 0xb1d   : >> { %4708 = vmatmul.mubr.f32.gmra.mrb[10].mxu1 %v18200_v55  ;;  %v4528_v58 = vpop.permute.xlu0 %4527  ;;  %v4533_v25 = vpop.permute.xlu1 %4532 }
 0xb1e   : >> { %7775 = vmatprep.mubr.msk.f32.mxu1 %vm4535_vm13, %v18201_v30  ;;  %vm18221_vm13 = vcmask (%p506_p5), 523264  }
 0xb21   : >> { %4713 = vmatmul.mubr.f32.gmra.mrb[12].mxu1 %v18202_v39 }
 0xbe1   : >> { %v7852_v5 = vpop.f32.mrb[30].mxu0 }
 0xbe2   : >> { %v7853_v28 = vpop.f32.mrb[31].mxu0 }
 0xbe3   : >> { %v7854_v18 = vadd.f32 %v7853_v28, %v7852_v5  ;;  %v4763_v28 = vld [vmem:[%s17816_s7 + $0x8] sm:$0xff] (%p506_p5) }
 0xbe5   : >> { %v7855_v56 = vpop.f32.mrb[32].mxu0  ;;  %v4615_v48 = vadd.f32 %v7854_v18, %v4518_v0  ;;  %v4779_v18 = vld [vmem:[%s17816_s7 + $0x88] sm:$0xff] (%p506_p5)  ;;  %v18211_v0 = vmov (%p506_p5), 0.0  }
 0xbe6   : >> { %v7856_v45 = vpop.f32.mrb[33].mxu0  ;;  %5034 = vmatprep.mubr.f32.mxu1 (%p506_p5), %v18211_v0  ;;  %5460 = vmatprep.mubr.f32.mxu0 (%p506_p5), %v18211_v0 }
 0xbe7   : >> { %v7857_v23 = vadd.f32 %v7856_v45, %v7855_v56  ;;  %v4762_v56 = vld [vmem:[%s17816_s7] sm:$0xff] (%p506_p5)  ;;  %v8371_v45 = vpack.c.bf16 (%p506_p5), %v4779_v18, %v4763_v28 }
 0xbe8   : >> { %v4699_v13 = vpop.f32.mrb[6].mxu1  ;;  %v4774_v18 = vld [vmem:[%s17816_s7 + $0x60] sm:$0xff] (%p506_p5) }
 0xbe9   : >> { %v4700_v46 = vadd.f32 %v4699_v13, %v4615_v48  ;;  %v7858_v53 = vpop.f32.mrb[34].mxu0  ;;  %v4701_v49 = vpop.f32.mrb[7].mxu1  ;;  %v4620_v33 = vadd.f32 %v7857_v23, %v4523_v43  ;;  %v4778_v23 = vld [vmem:[%s17816_s7 + $0x80] sm:$0xff] (%p506_p5)  ;;  %v4795_v48 = vld [vmem:[%s17816_s7 + $0x108] sm:$0xff] (%p506_p5)  ;;  %8372 = vmatprep.subr.bf16.mxu1 (%p506_p5), %v8371_v45  ;;  %v4769_v45 = vld [vmem:[%s17816_s7 + $0x38] sm:$0xff] (%p506_p5) }
 0xbea   : >> { %v7859_v37 = vpop.f32.mrb[35].mxu0  ;;  %v4811_v13 = vld [vmem:[%s17816_s7 + $0x188] sm:$0xff] (%p506_p5)  ;;  %v8373_v49 = vpack.c.bf16 (%p506_p5), %v4778_v23, %v4762_v56  ;;  %v4790_v56 = vld [vmem:[%s17816_s7 + $0xe0] sm:$0xff] (%p506_p5)  ;;  %v4785_v23 = vld [vmem:[%s17816_s7 + $0xb8] sm:$0xff] (%p506_p5) }
 0xbeb   : >> { %v4718_v8 = vmax.f32 %v4700_v46, 0.0  ;;  %v7860_v57 = vadd.f32 %v7859_v37, %v7858_v53  ;;  %v11182_v46 = vmov (%p506_p5), 1966171168   ;;  %v8375_v43 = vpack.c.bf16 (%p506_p5), %v4811_v13, %v4795_v48  ;;  %v4794_v37 = vld [vmem:[%s17816_s7 + $0x100] sm:$0xff] (%p506_p5)  ;;  %v4807_v13 = vld [vmem:[%s17816_s7 + $0x168] sm:$0xff] (%p506_p5) }
 0xbec   : >> { %v4704_v34 = vpop.f32.mrb[8].mxu1  ;;  %v4923_v53 = vunpack.c.l.s4 (%p506_p5), %v11182_v46  ;;  %8374 = vmatpush1.bf16.msra.mxu1 (%p506_p5), %v8373_v49  ;;  %v8421_v48 = vpack.c.bf16 (%p506_p5), %v4790_v56, %v4774_v18  ;;  %v4823_v46 = vld [vmem:[%s17816_s7 + $0x1e8] sm:$0xff] (%p506_p5)  ;;  %v4772_v56 = vld [vmem:[%s17816_s7 + $0x50] sm:$0xff] (%p506_p5) }
 0xbed   : >> { %v4705_v1 = vadd.f32 %v4704_v34, %v4620_v33  ;;  %v7861_v54 = vpop.f32.mrb[36].mxu0  ;;  %v4706_v36 = vpop.f32.mrb[9].mxu1  ;;  %v4722_v32 = vsel %vm3764_vm15, %v4718_v8, -inf  ;;  %v4625_v10 = vadd.f32 %v7860_v57, %v4528_v58  ;;  %v4810_v8 = vld [vmem:[%s17816_s7 + $0x180] sm:$0xff] (%p506_p5)  ;;  %v4765_v57 = vld [vmem:[%s17816_s7 + $0x18] sm:$0xff] (%p506_p5)  ;;  %8376 = vmatprep.subr.bf16.mxu1 (%p506_p5), %v8375_v43  ;;  %v8423_v43 = vpack.c.bf16 (%p506_p5), %v4823_v46, %v4807_v13 }
 0xbee   : >> { %v7862_v41 = vpop.f32.mrb[37].mxu0  ;;  %4723 = vmax.xlane.f32.xlu0 %v4722_v32  ;;  %v4781_v33 = vld [vmem:[%s17816_s7 + $0x98] sm:$0xff] (%p506_p5)  ;;  %v8377_v36 = vpack.c.bf16 (%p506_p5), %v4810_v8, %v4794_v37  ;;  %v4822_v37 = vld [vmem:[%s17816_s7 + $0x1e0] sm:$0xff] (%p506_p5)  ;;  %v8395_v8 = vpack.c.bf16 (%p506_p5), %v4785_v23, %v4769_v45  ;;  %v4788_v45 = vld [vmem:[%s17816_s7 + $0xd0] sm:$0xff] (%p506_p5) }
 0xbef   : >> { %v4719_v7 = vmax.f32 %v4705_v1, 0.0  ;;  %v7863_v26 = vadd.f32 %v7862_v41, %v7861_v54  ;;  %v4924_v54 = vunpack.c.0.s8 (%p506_p5), %v4923_v53  ;;  %v4806_v53 = vld [vmem:[%s17816_s7 + $0x160] sm:$0xff] (%p506_p5)  ;;  %v4805_v23 = vld [vmem:[%s17816_s7 + $0x158] sm:$0xff] (%p506_p5) }
 0xbf0   : >> { %v4709_v9 = vpop.f32.mrb[10].mxu1  ;;  %8378 = vmatpush1.bf16.msra.mxu1 (%p506_p5), %v8377_v36  ;;  %v4817_v36 = vld [vmem:[%s17816_s7 + $0x1b8] sm:$0xff] (%p506_p5) }
 0xbf1   : >> { %v4710_v44 = vadd.f32 %v4709_v9, %v4625_v10  ;;  %v4711_v62 = vpop.f32.mrb[11].mxu1  ;;  %v4725_v31 = vsel %vm3764_vm15, %v4719_v7, -inf  ;;  %v4630_v22 = vadd.f32 %v7863_v26, %v4533_v25  ;;  %v8379_v26 = vpack.c.bf16 (%p506_p5), %v4781_v33, %v4765_v57  ;;  %v4768_v57 = vld [vmem:[%s17816_s7 + $0x30] sm:$0xff] (%p506_p5) }
 0xbf2   : >> { %4726 = vmax.xlane.f32.xlu1 %v4725_v31  ;;  %v18212_v31 = vld [vmem:[#allocation11_spill] sm:$0xff] (%p506_p5)  ;;  %v4784_v33 = vld [vmem:[%s17816_s7 + $0xb0] sm:$0xff] (%p506_p5) }
 0xbf3   : >> { %v4720_v12 = vmax.f32 %v4710_v44, 0.0  ;;  %v4927_v25 = vsub.s32 (%p506_p5), %v4924_v54, %v18212_v31  ;;  %8380 = vmatprep.subr.bf16.mxu1 (%p506_p5), %v8379_v26  ;;  %v4801_v54 = vld [vmem:[%s17816_s7 + $0x138] sm:$0xff] (%p506_p5)  ;;  %v8397_v26 = vpack.c.bf16 (%p506_p5), %v4784_v33, %v4768_v57  ;;  %v4804_v33 = vld [vmem:[%s17816_s7 + $0x150] sm:$0xff] (%p506_p5) }
 0xbf4   : >> { %v4714_v35 = vpop.f32.mrb[12].mxu1 }
 0xbf5   : >> { %v4715_v29 = vadd.f32 %v4714_v35, %v4630_v22  ;;  %v4716_v20 = vpop.f32.mrb[13].mxu1  ;;  %v4728_v19 = vsel %vm3764_vm15, %v4720_v12, -inf }
 0xbf6   : >> { %4729 = vmax.xlane.f32.xlu0 %v4728_v19 }
 0xbf7   : >> { %v4721_v27 = vmax.f32 %v4715_v29, 0.0 }
 0xbf9   : >> { %v4731_v15 = vsel %vm3764_vm15, %v4721_v27, -inf  ;;  %vm18210_vm15 = vmmov %vm18205_vm0 }
 0xbfa   : >> { %4732 = vmax.xlane.f32.xlu0 %v4731_v15 }
 0xc7b   : >> { %v4724_v3 = vpop.xlane.xlu0 %4723 }
 0xc7c   : >> { %v4734_v60 = vmul.f32 %v18204_v52, %v4724_v3  ;;  %v4764_v3 = vld [vmem:[%s17816_s7 + $0x10] sm:$0xff] (%p506_p5)  ;;  %v4813_v52 = vld [vmem:[%s17816_s7 + $0x198] sm:$0xff] (%p506_p5) }
 0xc7e   : >> { %v4738_v63 = vsel %vm18207_vm1, %v4734_v60, 0.0 }
 0xc7f   : >> { %v4727_v42 = vpop.xlane.xlu1 %4726 }
 0xc80   : >> { %v4735_v61 = vmul.f32 %v18203_v47, %v4727_v42  ;;  %v4780_v42 = vld [vmem:[%s17816_s7 + $0x90] sm:$0xff] (%p506_p5) }
 0xc82   : >> { %v4739_v40 = vsel %vm18205_vm0, %v4735_v61, 0.0  ;;  %v4797_v61 = vld [vmem:[%s17816_s7 + $0x118] sm:$0xff] (%p506_p5)  ;;  %vm7647_vm0 = vcmask (%p506_p5), 23552  }
 0xc83   : >> { %v4730_v16 = vpop.xlane.xlu0 %4729  ;;  %v4740_v11 = vadd.f32 %v4739_v40, %v4738_v63  ;;  %v4812_v63 = vld [vmem:[%s17816_s7 + $0x190] sm:$0xff] (%p506_p5) }
 0xc84   : >> { %v4736_v17 = vmul.f32 %v18206_v38, %v4730_v16  ;;  %v8381_v16 = vpack.c.bf16 (%p506_p5), %v4780_v42, %v4764_v3  ;;  %v8383_v38 = vpack.c.bf16 (%p506_p5), %v4813_v52, %v4797_v61  ;;  %v5666_v3 = vld [vmem:[%s17818_s9 + $0x380] sm:$0xff] (%p506_p5)  ;;  %v4803_v52 = vld [vmem:[%s17816_s7 + $0x148] sm:$0xff] (%p506_p5) }
 0xc85   : > { %v4786_v61 = vld [vmem:[%s17816_s7 + $0xc0] sm:$0xff] (%p506_p5) }
 0xc86   : >> { %v4741_v24 = vsel %vm18208_vm2, %v4736_v17, 0.0  ;;  %v4796_v17 = vld [vmem:[%s17816_s7 + $0x110] sm:$0xff] (%p506_p5) }
 0xc87   : >> { %v4733_v6 = vpop.xlane.xlu0 %4732  ;;  %v4742_v2 = vadd.f32 %v4741_v24, %v4740_v11  ;;  %v4767_v24 = vld [vmem:[%s17816_s7 + $0x28] sm:$0xff] (%p506_p5) }
 0xc88   : >> { %v4737_v14 = vmul.f32 %v18209_v4, %v4733_v6  ;;  %v4783_v11 = vld [vmem:[%s17816_s7 + $0xa8] sm:$0xff] (%p506_p5)  ;;  %v8385_v6 = vpack.c.bf16 (%p506_p5), %v4812_v63, %v4796_v17  ;;  %v5662_v17 = vld [vmem:[%s17818_s9 + $0x360] sm:$0xff] (%p506_p5)  ;;  %v5665_v63 = vld [vmem:[%s17818_s9 + $0x378] sm:$0xff] (%p506_p5) }
 0xc89   : > { %v8387_v4 = vpack.c.bf16 (%p506_p5), %v4783_v11, %v4767_v24  ;;  %v5669_v11 = vld [vmem:[%s17818_s9 + $0x398] sm:$0xff] (%p506_p5) }
 0xc8a   : >> { %v4743_v59 = vsel %vm18210_vm15, %v4737_v14, 0.0  ;;  %v4766_v14 = vld [vmem:[%s17816_s7 + $0x20] sm:$0xff] (%p506_p5) }
 0xc8b   : >> { %v4744_v50 = vadd.f32 %v4743_v59, %v4742_v2  ;;  %v4782_v2 = vld [vmem:[%s17816_s7 + $0xa0] sm:$0xff] (%p506_p5)  ;;  %v4799_v59 = vld [vmem:[%s17816_s7 + $0x128] sm:$0xff] (%p506_p5) }
 0xc8d   : >> { %v4745_v51 = vrot.slane %v4744_v50, 4 }
 0xc8f   : >> { %v4746_v21 = vadd.f32 %v4745_v51, %v4744_v50  ;;  %v4815_v50 = vld [vmem:[%s17816_s7 + $0x1a8] sm:$0xff] (%p506_p5)  ;;  %v8389_v51 = vpack.c.bf16 (%p506_p5), %v4782_v2, %v4766_v14  ;;  %v4802_v14 = vld [vmem:[%s17816_s7 + $0x140] sm:$0xff] (%p506_p5) }
 0xc90   : > { %v4818_v2 = vld [vmem:[%s17816_s7 + $0x1c0] sm:$0xff] (%p506_p5) }
 0xc91   : >> { %v4747_v55 = vrot.slane %v4746_v21, 2 }
 0xc93   : >> { %v4748_v30 = vadd.f32 %v4747_v55, %v4746_v21  ;;  %508 = sbr.rel (!%p506_p5) target bundleno = 33 (0x21), region = 111  ;;  %v4798_v21 = vld [vmem:[%s17816_s7 + $0x120] sm:$0xff] (%p506_p5)  ;;  %v4775_v55 = vld [vmem:[%s17816_s7 + $0x68] sm:$0xff] (%p506_p5) }
 0xc95   : >> { %v4749_v39 = vrot.slane %v4748_v30, 1 }
 0xc97   : >> { %v4750_v5 = vadd.f32 %v4749_v39, %v4748_v30  ;;  %v4791_v30 = vld [vmem:[%s17816_s7 + $0xe8] sm:$0xff] (%p506_p5)  ;;  %v8391_v39 = vpack.c.bf16 (%p506_p5), %v4815_v50, %v4799_v59  ;;  %v4773_v59 = vld [vmem:[%s17816_s7 + $0x58] sm:$0xff] (%p506_p5) }
 0xc98   : > { %v8419_v28 = vpack.c.bf16 (%p506_p5), %v4791_v30, %v4775_v55  ;;  %v4789_v50 = vld [vmem:[%s17816_s7 + $0xd8] sm:$0xff] (%p506_p5)  ;;  %v5668_v55 = vld [vmem:[%s17818_s9 + $0x390] sm:$0xff] (%p506_p5)  ;;  %v5671_v30 = vld [vmem:[%s17818_s9 + $0x3a8] sm:$0xff] (%p506_p5) }
 0xc99   : >> { %4753 = vst.msk [vmem:[%s4751_s27] sm:$0x1] %vm4752_vm6, %v4750_v5  ;;  %v4814_v5 = vld [vmem:[%s17816_s7 + $0x1a0] sm:$0xff] (%p506_p5)  ;;  %v8411_v18 = vpack.c.bf16 (%p506_p5), %v4789_v50, %v4773_v59  ;;  %v8513_v13 = vpack.c.bf16 (%p506_p5), %v5671_v30, %v5668_v55  ;;  %v5564_v59 = vld [vmem:[%s17818_s9 + $0x50] sm:$0xff] (%p506_p5)  ;;  %v5701_v55 = vld [vmem:[%s17818_s9 + $0x498] sm:$0xff] (%p506_p5) }
 0xc9a   : > { %8420 = vmatprep.subr.bf16.mxu0 %v8419_v28  ;;  %v8393_v49 = vpack.c.bf16 %v4814_v5, %v4798_v21  ;;  %v5675_v5 = vld [vmem:[%s17818_s9 + $0x3c8] sm:$0xff]  ;;  %v5678_v28 = vld [vmem:[%s17818_s9 + $0x3e0] sm:$0xff] }
 0xc9b   : > { %8422 = vmatpush1.bf16.msra.mxu0 %v8421_v48  ;;  %v4821_v48 = vld [vmem:[%s17816_s7 + $0x1d8] sm:$0xff]  ;;  %v8515_v46 = vpack.c.bf16 %v5678_v28, %v5675_v5  ;;  %v5708_v5 = vld [vmem:[%s17818_s9 + $0x4d0] sm:$0xff] }
 0xc9c   : > { %8424 = vmatprep.subr.bf16.mxu0 %v8423_v43  ;;  %v8413_v43 = vpack.c.bf16 %v4788_v45, %v4772_v56  ;;  %v8415_v57 = vpack.c.bf16 %v4821_v48, %v4805_v23  ;;  %v5563_v56 = vld [vmem:[%s17818_s9 + $0x48] sm:$0xff]  ;;  %v5570_v23 = vld [vmem:[%s17818_s9 + $0x80] sm:$0xff] }
 0xc9d   : > { %v5567_v45 = vld [vmem:[%s17818_s9 + $0x68] sm:$0xff] }
 0xca0   : > { %v4754_v34 = vld [vmem:[#allocation2] sm:$0x1]  ;;  %v4755_v1 = vld [vmem:[#allocation2 + $0x1] sm:$0x1]  ;;  %v4756_v32 = vld [vmem:[#allocation2 + $0x2] sm:$0x1] }
 0xca1   : > { %v4757_v58 = vld [vmem:[#allocation2 + $0x3] sm:$0x1]  ;;  %v4758_v41 = vld [vmem:[#allocation2 + $0x4] sm:$0x1]  ;;  %v4918_v7 = vcombine.low %v4754_v34, %v4755_v1  ;;  %v4759_v10 = vld [vmem:[#allocation2 + $0x5] sm:$0x1]  ;;  %v8425_v34 = vpack.c.bf16 %v4822_v37, %v4806_v53 }
 0xca2   : > { %v4760_v9 = vld [vmem:[#allocation2 + $0x6] sm:$0x1]  ;;  %v4761_v44 = vld [vmem:[#allocation2 + $0x7] sm:$0x1]  ;;  %v4919_v62 = vcombine.low %v4756_v32, %v4757_v58  ;;  %v4920_v12 = vcombine.low %v4758_v41, %v4759_v10  ;;  %v5651_v1 = vld [vmem:[%s17818_s9 + $0x308] sm:$0xff] }
 0xca3   : > { %v4921_v22 = vcombine.low %v4760_v9, %v4761_v44  ;;  %v4928_v35 = vrot.slane %v4918_v7, %v4927_v25  ;;  %v5654_v32 = vld [vmem:[%s17818_s9 + $0x320] sm:$0xff]  ;;  %v5653_v7 = vld [vmem:[%s17818_s9 + $0x318] sm:$0xff]  ;;  %v5660_v9 = vld [vmem:[%s17818_s9 + $0x350] sm:$0xff]  ;;  %v8399_v44 = vpack.c.bf16 %v4817_v36, %v4801_v54  ;;  %8426 = vmatpush1.bf16.msra.mxu0 %v8425_v34 }
 0xca4   : > { %v4935_v29 = vrot.slane %v4919_v62, %v4927_v25  ;;  %v4942_v20 = vrot.slane %v4920_v12, %v4927_v25  ;;  %v8499_v58 = vpack.c.bf16 %v5654_v32, %v5651_v1  ;;  %v5650_v41 = vld [vmem:[%s17818_s9 + $0x300] sm:$0xff]  ;;  %v5657_v10 = vld [vmem:[%s17818_s9 + $0x338] sm:$0xff]  ;;  %v4800_v62 = vld [vmem:[%s17816_s7 + $0x130] sm:$0xff] }
 0xca5   : > { %v4949_v19 = vrot.slane %v4921_v22, %v4927_v25  ;;  %v4771_v12 = vld [vmem:[%s17816_s7 + $0x48] sm:$0xff]  ;;  %v5674_v53 = vld [vmem:[%s17818_s9 + $0x3c0] sm:$0xff]  ;;  %v5681_v37 = vld [vmem:[%s17818_s9 + $0x3f8] sm:$0xff] }
 0xca6   : > { %v4950_v27 = vcombine.low %v4928_v35, %v4935_v29  ;;  %v4787_v22 = vld [vmem:[%s17816_s7 + $0xc8] sm:$0xff]  ;;  %8500 = vmatprep.subr.bf16.mxu0 %v8499_v58  ;;  %v8501_v35 = vpack.c.bf16 %v5653_v7, %v5650_v41  ;;  %v8503_v29 = vpack.c.bf16 %v5660_v9, %v5657_v10  ;;  %v4820_v34 = vld [vmem:[%s17816_s7 + $0x1d0] sm:$0xff]  ;;  %v4777_v1 = vld [vmem:[%s17816_s7 + $0x78] sm:$0xff] }
 0xca7   : > { %v4951_v15 = vcombine.low %v4942_v20, %v4949_v19  ;;  %v5656_v20 = vld [vmem:[%s17818_s9 + $0x330] sm:$0xff]  ;;  %v5659_v19 = vld [vmem:[%s17818_s9 + $0x348] sm:$0xff]  ;;  %v8403_v42 = vpack.c.bf16 %v4787_v22, %v4771_v12  ;;  %v4793_v54 = vld [vmem:[%s17816_s7 + $0xf8] sm:$0xff]  ;;  %v8417_v7 = vpack.c.bf16 %v4820_v34, %v4804_v33 }
 0xca8   : > { %v4958_v47 = vrot.slane %v4950_v27, %v4927_v25  ;;  %v5680_v58 = vld [vmem:[%s17818_s9 + $0x3f0] sm:$0xff]  ;;  %v5683_v41 = vld [vmem:[%s17818_s9 + $0x408] sm:$0xff]  ;;  %v5690_v10 = vld [vmem:[%s17818_s9 + $0x440] sm:$0xff]  ;;  %v8427_v9 = vpack.c.bf16 %v4793_v54, %v4777_v1 }
 0xca9   : > { %v4965_v60 = vrot.slane %v4951_v15, %v4927_v25  ;;  %v4816_v25 = vld [vmem:[%s17816_s7 + $0x1b0] sm:$0xff]  ;;  %v5663_v15 = vld [vmem:[%s17818_s9 + $0x368] sm:$0xff]  ;;  %v4825_v12 = vld [vmem:[%s17816_s7 + $0x1f8] sm:$0xff]  ;;  %v8521_v22 = vpack.c.bf16 %v5683_v41, %v5680_v58 }
 0xcaa   : > { %v8401_v27 = vpack.c.bf16 %v4816_v25, %v4800_v62  ;;  %v4792_v62 = vld [vmem:[%s17816_s7 + $0xf0] sm:$0xff]  ;;  %v4809_v25 = vld [vmem:[%s17816_s7 + $0x178] sm:$0xff] }
 0xcab   : > { %v15014_v40 = vcombine.low %v4958_v47, %v4965_v60  ;;  %v4770_v47 = vld [vmem:[%s17816_s7 + $0x40] sm:$0xff]  ;;  %v4819_v60 = vld [vmem:[%s17816_s7 + $0x1c8] sm:$0xff]  ;;  %v5573_v33 = vld [vmem:[%s17818_s9 + $0x98] sm:$0xff] }
 0xcac   : > { %v8405_v24 = vpack.c.bf16 %v4786_v61, %v4770_v47  ;;  %v4824_v47 = vld [vmem:[%s17816_s7 + $0x1f0] sm:$0xff]  ;;  %v5555_v61 = vld [vmem:[%s17818_s9 + $0x8] sm:$0xff]  ;;  %v5717_v41 = vld [vmem:[%s17818_s9 + $0x518] sm:$0xff] }
 0xcad   : > { %7776 = vmatmul.mubr.msk.f32.vlgmr.msra.gmra.mrb[0].mxu1 %vm18213_vm3, %v15014_v40  ;;  %7782 = vmatmul.mubr.msk.f32.vlgmr.msra.gmra.mrb[0].mxu0 %vm18216_vm14, %v15014_v40  ;;  %v5576_v34 = vld [vmem:[%s17818_s9 + $0xb0] sm:$0xff] }
 0xcae   : > { %8382 = vmatpush1.bf16.msra.mxu1 %v8381_v16  ;;  %5105 = vmatprep.mubr.f32.mxu1 %v18211_v0  ;;  %v8505_v16 = vpack.c.bf16 %v5659_v19, %v5656_v20  ;;  %v5689_v20 = vld [vmem:[%s17818_s9 + $0x438] sm:$0xff] }
 0xcaf   : > { %8384 = vmatprep.subr.bf16.mxu1 %v8383_v38  ;;  %8502 = vmatpush1.bf16.msra.mxu0 %v8501_v35  ;;  %v8507_v38 = vpack.c.bf16 %v5666_v3, %v5663_v15  ;;  %v5696_v15 = vld [vmem:[%s17818_s9 + $0x470] sm:$0xff]  ;;  %v8431_v3 = vpack.c.bf16 %v4825_v12, %v4809_v25 }
 0xcb0   : > { %8504 = vmatprep.subr.bf16.mxu0 %v8503_v29  ;;  %v5686_v29 = vld [vmem:[%s17818_s9 + $0x420] sm:$0xff] }
 0xcb2   : > { %8386 = vmatpush1.bf16.msra.mxu1 %v8385_v6  ;;  %v5672_v6 = vld [vmem:[%s17818_s9 + $0x3b0] sm:$0xff] }
 0xcb3   : > { %8388 = vmatprep.subr.bf16.mxu1 %v8387_v4  ;;  %v8407_v4 = vpack.c.bf16 %v4819_v60, %v4803_v52  ;;  %8506 = vmatpush1.bf16.msra.mxu0 %v8505_v16  ;;  %v8511_v21 = vpack.c.bf16 %v5672_v6, %v5669_v11  ;;  %v5558_v52 = vld [vmem:[%s17818_s9 + $0x20] sm:$0xff]  ;;  %v8525_v60 = vpack.c.bf16 %v5689_v20, %v5686_v29  ;;  %v5723_v20 = vld [vmem:[%s17818_s9 + $0x548] sm:$0xff] }
 0xcb4   : > { %8508 = vmatprep.subr.bf16.mxu0 %v8507_v38  ;;  %v5692_v38 = vld [vmem:[%s17818_s9 + $0x450] sm:$0xff]  ;;  %v5702_v11 = vld [vmem:[%s17818_s9 + $0x4a0] sm:$0xff]  ;;  %v8435_v6 = vpack.c.bf16 %v5558_v52, %v5555_v61 }
 0xcb5   : > { %7777 = vmatmul.mubr.msk.f32.vlgmr.msra.gmra.mrb[2].mxu1 %vm18214_vm7, %v15014_v40 }
 0xcb6   : > { %8390 = vmatpush1.bf16.msra.mxu1 %v8389_v51  ;;  %5176 = vmatprep.mubr.f32.mxu1 %v18211_v0  ;;  %v8509_v51 = vpack.c.bf16 %v5665_v63, %v5662_v17  ;;  %v5695_v17 = vld [vmem:[%s17818_s9 + $0x468] sm:$0xff] }
 0xcb7   : > { %8392 = vmatprep.subr.bf16.mxu1 %v8391_v39  ;;  %v8409_v39 = vpack.c.bf16 %v4818_v2, %v4802_v14  ;;  %v5557_v14 = vld [vmem:[%s17818_s9 + $0x18] sm:$0xff]  ;;  %v8529_v50 = vpack.c.bf16 %v5695_v17, %v5692_v38 }
 0xcb8   : > { %8510 = vmatpush1.bf16.msra.mxu0 %v8509_v51  ;;  %v5561_v2 = vld [vmem:[%s17818_s9 + $0x38] sm:$0xff] }
 0xcb9   : > { %8512 = vmatprep.subr.bf16.mxu0 %v8511_v21  ;;  %v5698_v21 = vld [vmem:[%s17818_s9 + $0x480] sm:$0xff]  ;;  %v8439_v28 = vpack.c.bf16 %v5564_v59, %v5561_v2 }
 0xcba   : > { %8394 = vmatpush1.bf16.msra.mxu1 %v8393_v49  ;;  %v5677_v49 = vld [vmem:[%s17818_s9 + $0x3d8] sm:$0xff]  ;;  %v8533_v48 = vpack.c.bf16 %v5701_v55, %v5698_v21  ;;  %v5590_v59 = vld [vmem:[%s17818_s9 + $0x120] sm:$0xff]  ;;  %v5600_v21 = vld [vmem:[%s17818_s9 + $0x170] sm:$0xff] }
 0xcbb   : > { %8396 = vmatprep.subr.bf16.mxu1 %v8395_v8  ;;  %v5684_v8 = vld [vmem:[%s17818_s9 + $0x410] sm:$0xff]  ;;  %v8517_v36 = vpack.c.bf16 %v5677_v49, %v5674_v53  ;;  %v5707_v53 = vld [vmem:[%s17818_s9 + $0x4c8] sm:$0xff] }
 0xcbc   : > { %8514 = vmatpush1.bf16.msra.mxu0 %v8513_v13  ;;  %v8519_v32 = vpack.c.bf16 %v5684_v8, %v5681_v37  ;;  %v8443_v37 = vpack.c.bf16 %v5570_v23, %v5567_v45  ;;  %v5566_v8 = vld [vmem:[%s17818_s9 + $0x60] sm:$0xff] }
 0xcbd   : > { %7778 = vmatmul.mubr.msk.f32.vlgmr.msra.gmra.mrb[4].mxu1 %vm18215_vm8, %v15014_v40  ;;  %8516 = vmatprep.subr.bf16.mxu0 %v8515_v46  ;;  %v5704_v46 = vld [vmem:[%s17818_s9 + $0x4b0] sm:$0xff]  ;;  %v5602_v23 = vld [vmem:[%s17818_s9 + $0x180] sm:$0xff] }
 0xcbe   : > { %8398 = vmatpush1.bf16.msra.mxu1 %v8397_v26  ;;  %5247 = vmatprep.mubr.f32.mxu1 %v18211_v0  ;;  %v5687_v26 = vld [vmem:[%s17818_s9 + $0x428] sm:$0xff]  ;;  %v8537_v1 = vpack.c.bf16 %v5707_v53, %v5704_v46  ;;  %v5612_v46 = vld [vmem:[%s17818_s9 + $0x1d0] sm:$0xff] }
 0xcbf   : > { %8400 = vmatprep.subr.bf16.mxu1 %v8399_v44  ;;  %v4776_v44 = vld [vmem:[%s17816_s7 + $0x70] sm:$0xff]  ;;  %v8523_v35 = vpack.c.bf16 %v5690_v10, %v5687_v26  ;;  %v8447_v26 = vpack.c.bf16 %v5576_v34, %v5573_v33  ;;  %v5614_v33 = vld [vmem:[%s17818_s9 + $0x1e0] sm:$0xff] }
 0xcc0   : > { %8518 = vmatpush1.bf16.msra.mxu0 %v8517_v36  ;;  %v8429_v19 = vpack.c.bf16 %v4792_v62, %v4776_v44  ;;  %v5710_v36 = vld [vmem:[%s17818_s9 + $0x4e0] sm:$0xff]  ;;  %v5572_v10 = vld [vmem:[%s17818_s9 + $0x90] sm:$0xff]  ;;  %v5579_v44 = vld [vmem:[%s17818_s9 + $0xc8] sm:$0xff] }
 0xcc1   : > { %8520 = vmatprep.subr.bf16.mxu0 %v8519_v32  ;;  %v5713_v32 = vld [vmem:[%s17818_s9 + $0x4f8] sm:$0xff]  ;;  %v5582_v62 = vld [vmem:[%s17818_s9 + $0xe0] sm:$0xff] }
 0xcc2   : > { %8402 = vmatpush1.bf16.msra.mxu1 %v8401_v27  ;;  %v5693_v27 = vld [vmem:[%s17818_s9 + $0x458] sm:$0xff]  ;;  %v8541_v25 = vpack.c.bf16 %v5713_v32, %v5710_v36  ;;  %v5732_v36 = vld [vmem:[%s17818_s9 + $0x590] sm:$0xff] }
 0xcc3   : > { %8404 = vmatprep.subr.bf16.mxu1 %v8403_v42  ;;  %v4808_v42 = vld [vmem:[%s17816_s7 + $0x170] sm:$0xff]  ;;  %v8527_v16 = vpack.c.bf16 %v5696_v15, %v5693_v27  ;;  %v8451_v27 = vpack.c.bf16 %v5582_v62, %v5579_v44  ;;  %v5578_v15 = vld [vmem:[%s17818_s9 + $0xc0] sm:$0xff]  ;;  %v5621_v32 = vld [vmem:[%s17818_s9 + $0x218] sm:$0xff] }
 0xcc4   : > { %8522 = vmatpush1.bf16.msra.mxu0 %v8521_v22  ;;  %v8433_v63 = vpack.c.bf16 %v4824_v47, %v4808_v42  ;;  %v5716_v22 = vld [vmem:[%s17818_s9 + $0x510] sm:$0xff]  ;;  %v5585_v42 = vld [vmem:[%s17818_s9 + $0xf8] sm:$0xff]  ;;  %v5623_v44 = vld [vmem:[%s17818_s9 + $0x228] sm:$0xff] }
 0xcc5   : > { %7779 = vmatmul.mubr.msk.f32.vlgmr.msra.gmra.mrb[6].mxu1 %vm18217_vm9, %v15014_v40  ;;  %8524 = vmatprep.subr.bf16.mxu0 %v8523_v35  ;;  %v5719_v35 = vld [vmem:[%s17818_s9 + $0x528] sm:$0xff]  ;;  %v5588_v47 = vld [vmem:[%s17818_s9 + $0x110] sm:$0xff] }
 0xcc6   : > { %8406 = vmatpush1.bf16.msra.mxu1 %v8405_v24  ;;  %5318 = vmatprep.mubr.f32.mxu1 %v18211_v0  ;;  %v5699_v24 = vld [vmem:[%s17818_s9 + $0x488] sm:$0xff]  ;;  %v8545_v61 = vpack.c.bf16 %v5719_v35, %v5716_v22  ;;  %v8455_v17 = vpack.c.bf16 %v5588_v47, %v5585_v42  ;;  %v5738_v35 = vld [vmem:[%s17818_s9 + $0x5c0] sm:$0xff]  ;;  %v5629_v47 = vld [vmem:[%s17818_s9 + $0x258] sm:$0xff] }
 0xcc7   : > { %8408 = vmatprep.subr.bf16.mxu1 %v8407_v4  ;;  %v5554_v4 = vld [vmem:[%s17818_s9] sm:$0xff]  ;;  %v8531_v51 = vpack.c.bf16 %v5702_v11, %v5699_v24  ;;  %v5587_v24 = vld [vmem:[%s17818_s9 + $0x108] sm:$0xff] }
 0xcc8   : > { %8526 = vmatpush1.bf16.msra.mxu0 %v8525_v60  ;;  %v8437_v30 = vpack.c.bf16 %v5557_v14, %v5554_v4  ;;  %v5722_v60 = vld [vmem:[%s17818_s9 + $0x540] sm:$0xff]  ;;  %v5591_v11 = vld [vmem:[%s17818_s9 + $0x128] sm:$0xff] }
 0xcc9   : > { %8528 = vmatprep.subr.bf16.mxu0 %v8527_v16  ;;  %v5725_v16 = vld [vmem:[%s17818_s9 + $0x558] sm:$0xff]  ;;  %v5735_v22 = vld [vmem:[%s17818_s9 + $0x5a8] sm:$0xff]  ;;  %v5626_v42 = vld [vmem:[%s17818_s9 + $0x240] sm:$0xff] }
 0xcca   : > { %8410 = vmatpush1.bf16.msra.mxu1 %v8409_v39  ;;  %v5705_v39 = vld [vmem:[%s17818_s9 + $0x4b8] sm:$0xff]  ;;  %v8549_v4 = vpack.c.bf16 %v5725_v16, %v5722_v60  ;;  %v5744_v16 = vld [vmem:[%s17818_s9 + $0x5f0] sm:$0xff] }
 0xccb   : > { %8412 = vmatprep.subr.bf16.mxu1 %v8411_v18  ;;  %v5560_v18 = vld [vmem:[%s17818_s9 + $0x30] sm:$0xff]  ;;  %v8535_v13 = vpack.c.bf16 %v5708_v5, %v5705_v39  ;;  %v5599_v5 = vld [vmem:[%s17818_s9 + $0x168] sm:$0xff]  ;;  %v5741_v60 = vld [vmem:[%s17818_s9 + $0x5d8] sm:$0xff] }
 0xccc   : > { %8530 = vmatpush1.bf16.msra.mxu0 %v8529_v50  ;;  %v8441_v49 = vpack.c.bf16 %v5563_v56, %v5560_v18  ;;  %v5593_v50 = vld [vmem:[%s17818_s9 + $0x138] sm:$0xff]  ;;  %v5596_v39 = vld [vmem:[%s17818_s9 + $0x150] sm:$0xff]  ;;  %v5606_v18 = vld [vmem:[%s17818_s9 + $0x1a0] sm:$0xff] }
 0xccd   : > { %7780 = vmatmul.mubr.msk.f32.vlgmr.msra.gmra.mrb[8].mxu1 %vm18218_vm4, %v15014_v40  ;;  %8532 = vmatprep.subr.bf16.mxu0 %v8531_v51  ;;  %v5597_v51 = vld [vmem:[%s17818_s9 + $0x158] sm:$0xff]  ;;  %v8461_v55 = vpack.c.bf16 %v5593_v50, %v5590_v59  ;;  %v8465_v56 = vpack.c.bf16 %v5599_v5, %v5596_v39  ;;  %v5747_v59 = vld [vmem:[%s17818_s9 + $0x608] sm:$0xff]  ;;  %v5750_v50 = vld [vmem:[%s17818_s9 + $0x620] sm:$0xff] }
 0xcce   : > { %8414 = vmatpush1.bf16.msra.mxu1 %v8413_v43  ;;  %5389 = vmatprep.mubr.f32.mxu1 %v18211_v0  ;;  %v5711_v43 = vld [vmem:[%s17818_s9 + $0x4e8] sm:$0xff]  ;;  %v5638_v5 = vld [vmem:[%s17818_s9 + $0x2a0] sm:$0xff] }
 0xccf   : > { %8416 = vmatprep.subr.bf16.mxu1 %v8415_v57  ;;  %v5569_v57 = vld [vmem:[%s17818_s9 + $0x78] sm:$0xff] }
 0xcd0   : > { %8534 = vmatpush1.bf16.msra.mxu0 %v8533_v48  ;;  %v8445_v58 = vpack.c.bf16 %v5569_v57, %v5566_v8  ;;  %v5605_v48 = vld [vmem:[%s17818_s9 + $0x198] sm:$0xff]  ;;  %v5618_v8 = vld [vmem:[%s17818_s9 + $0x200] sm:$0xff] }
 0xcd1   : > { %8536 = vmatprep.subr.bf16.mxu0 %v8535_v13  ;;  %v5609_v13 = vld [vmem:[%s17818_s9 + $0x1b8] sm:$0xff]  ;;  %v8469_v53 = vpack.c.bf16 %v5605_v48, %v5602_v23  ;;  %v5644_v48 = vld [vmem:[%s17818_s9 + $0x2d0] sm:$0xff] }
 0xcd2   : > { %8418 = vmatpush1.bf16.msra.mxu1 %v8417_v7  ;;  %v5720_v7 = vld [vmem:[%s17818_s9 + $0x530] sm:$0xff] }
 0xcd3   : > { %8428 = vmatprep.subr.bf16.mxu1 %v8427_v9  ;;  %v5575_v9 = vld [vmem:[%s17818_s9 + $0xa8] sm:$0xff]  ;;  %v8543_v12 = vpack.c.bf16 %v5720_v7, %v5717_v41  ;;  %v5728_v7 = vld [vmem:[%s17818_s9 + $0x570] sm:$0xff] }
 0xcd4   : > { %8538 = vmatpush1.bf16.msra.mxu0 %v8537_v1  ;;  %v8449_v29 = vpack.c.bf16 %v5575_v9, %v5572_v10  ;;  %v5617_v1 = vld [vmem:[%s17818_s9 + $0x1f8] sm:$0xff]  ;;  %v5620_v9 = vld [vmem:[%s17818_s9 + $0x210] sm:$0xff] }
 0xcd5   : > { %7781 = vmatmul.mubr.msk.f32.vlgmr.msra.gmra.mrb[10].mxu1 %vm18219_vm5, %v15014_v40  ;;  %v8477_v10 = vpack.c.bf16 %v5617_v1, %v5614_v33 }
 0xcd6   : > { %8430 = vmatpush1.bf16.msra.mxu1 %v8429_v19  ;;  %5531 = vmatprep.mubr.f32.mxu1 %v18211_v0  ;;  %v5726_v19 = vld [vmem:[%s17818_s9 + $0x560] sm:$0xff] }
 0xcd7   : > { %8432 = vmatprep.subr.bf16.mxu1 %v8431_v3  ;;  %v5581_v3 = vld [vmem:[%s17818_s9 + $0xd8] sm:$0xff]  ;;  %v8547_v52 = vpack.c.bf16 %v5726_v19, %v5723_v20  ;;  %v8555_v20 = vpack.c.bf16 %v5738_v35, %v5735_v22  ;;  %v5734_v19 = vld [vmem:[%s17818_s9 + $0x5a0] sm:$0xff] }
 0xcd8   : > { %v8453_v38 = vpack.c.bf16 %v5581_v3, %v5578_v15  ;;  %v8481_v3 = vpack.c.bf16 %v5623_v44, %v5620_v9  ;;  %v5562_v22 = vld [vmem:[%s17818_s9 + $0x40] sm:$0xff]  ;;  %v5565_v35 = vld [vmem:[%s17818_s9 + $0x58] sm:$0xff] }
 0xcda   : > { %8434 = vmatpush1.bf16.msra.mxu1 %v8433_v63  ;;  %v5584_v63 = vld [vmem:[%s17818_s9 + $0xf0] sm:$0xff] }
 0xcdb   : > { %8436 = vmatprep.subr.bf16.mxu1 %v8435_v6  ;;  %v5594_v6 = vld [vmem:[%s17818_s9 + $0x140] sm:$0xff]  ;;  %v8457_v14 = vpack.c.bf16 %v5587_v24, %v5584_v63  ;;  %v5740_v63 = vld [vmem:[%s17818_s9 + $0x5d0] sm:$0xff]  ;;  %v5743_v24 = vld [vmem:[%s17818_s9 + $0x5e8] sm:$0xff] }
 0xcdc   : > { %v8459_v2 = vpack.c.bf16 %v5594_v6, %v5591_v11  ;;  %v8561_v11 = vpack.c.bf16 %v5743_v24, %v5740_v63  ;;  %v8485_v6 = vpack.c.bf16 %v5629_v47, %v5626_v42  ;;  %v5749_v42 = vld [vmem:[%s17818_s9 + $0x618] sm:$0xff]  ;;  %v5756_v63 = vld [vmem:[%s17818_s9 + $0x650] sm:$0xff]  ;;  %v5622_v24 = vld [vmem:[%s17818_s9 + $0x220] sm:$0xff] }
 0xcdd   : > { %7783 = vmatmul.mubr.msk.f32.vlgmr.msra.gmra.mrb[12].mxu1 %vm18220_vm10, %v15014_v40  ;;  %v5714_v40 = vld [vmem:[%s17818_s9 + $0x500] sm:$0xff] }
 0xcde   : > { %8438 = vmatpush1.bf16.msra.mxu1 %v8437_v30  ;;  %v8539_v54 = vpack.c.bf16 %v5714_v40, %v5711_v43  ;;  %v8463_v30 = vpack.c.bf16 %v5600_v21, %v5597_v51  ;;  %v5608_v43 = vld [vmem:[%s17818_s9 + $0x1b0] sm:$0xff]  ;;  %v5611_v40 = vld [vmem:[%s17818_s9 + $0x1c8] sm:$0xff]  ;;  %v5642_v21 = vld [vmem:[%s17818_s9 + $0x2c0] sm:$0xff] }
 0xcdf   : > { %8440 = vmatprep.subr.bf16.mxu1 %v8439_v28  ;;  %v5603_v28 = vld [vmem:[%s17818_s9 + $0x188] sm:$0xff]  ;;  %v8473_v57 = vpack.c.bf16 %v5611_v40, %v5608_v43  ;;  %v15585_v40 = vsub.s32 0, %v18212_v31 }
 0xce0   : > { %8540 = vmatprep.subr.bf16.mxu0 %v8539_v54  ;;  %v8467_v45 = vpack.c.bf16 %v5606_v18, %v5603_v28  ;;  %v5729_v54 = vld [vmem:[%s17818_s9 + $0x578] sm:$0xff]  ;;  %v5639_v51 = vld [vmem:[%s17818_s9 + $0x2a8] sm:$0xff] }
 0xce1   : > { %8542 = vmatpush1.bf16.msra.mxu0 %v8541_v25  ;;  %v8551_v41 = vpack.c.bf16 %v5732_v36, %v5729_v54  ;;  %v8491_v39 = vpack.c.bf16 %v5642_v21, %v5639_v51  ;;  %v5641_v28 = vld [vmem:[%s17818_s9 + $0x2b8] sm:$0xff]  ;;  %v15602_v36 = vsub.s32 2, %v18212_v31 }
 0xce2   : > { %8442 = vmatpush1.bf16.msra.mxu1 %v8441_v49  ;;  %8544 = vmatprep.subr.bf16.mxu0 %v8543_v12  ;;  %v8471_v49 = vpack.c.bf16 %v5612_v46, %v5609_v13  ;;  %v5627_v12 = vld [vmem:[%s17818_s9 + $0x248] sm:$0xff]  ;;  %v5645_v18 = vld [vmem:[%s17818_s9 + $0x2d8] sm:$0xff]  ;;  %v5604_v46 = vld [vmem:[%s17818_s9 + $0x190] sm:$0xff] }
 0xce3   : > { %8444 = vmatprep.subr.bf16.mxu1 %v8443_v37  ;;  %v5615_v37 = vld [vmem:[%s17818_s9 + $0x1e8] sm:$0xff] }
 0xce4   : > { %v8475_v34 = vpack.c.bf16 %v5618_v8, %v5615_v37  ;;  %v5647_v13 = vld [vmem:[%s17818_s9 + $0x2e8] sm:$0xff]  ;;  %v15590_v37 = vld [vmem:[%s17817_s8] sm:$0xff]  ;;  %v15593_v8 = vsub.s32 1, %v18212_v31 }
 0xce5   : > { %8546 = vmatpush1.bf16.msra.mxu0 %v8545_v61 }
 0xce6   : > { %8446 = vmatpush1.bf16.msra.mxu1 %v8445_v58  ;;  %8548 = vmatprep.subr.bf16.mxu0 %v8547_v52  ;;  %v5624_v58 = vld [vmem:[%s17818_s9 + $0x230] sm:$0xff]  ;;  %v5633_v52 = vld [vmem:[%s17818_s9 + $0x278] sm:$0xff]  ;;  %v4837_v33 = vrot.slane %v15590_v37, %v15593_v8 }
 0xce7   : > { %8448 = vmatprep.subr.bf16.mxu1 %v8447_v26  ;;  %v5731_v26 = vld [vmem:[%s17818_s9 + $0x588] sm:$0xff]  ;;  %v8479_v25 = vpack.c.bf16 %v5624_v58, %v5621_v32  ;;  %v5556_v32 = vld [vmem:[%s17818_s9 + $0x10] sm:$0xff] }
 0xce8   : > { %v8553_v62 = vpack.c.bf16 %v5731_v26, %v5728_v7  ;;  %v5559_v58 = vld [vmem:[%s17818_s9 + $0x28] sm:$0xff]  ;;  %v4844_v7 = vsub.s32 3, %v18212_v31  ;;  %v5610_v26 = vld [vmem:[%s17818_s9 + $0x1c0] sm:$0xff] }
 0xce9   : > { %8550 = vmatpush1.bf16.msra.mxu0 %v8549_v4  ;;  %v5632_v4 = vld [vmem:[%s17818_s9 + $0x270] sm:$0xff]  ;;  %v8937_v44 = vpack.c.bf16 %v5559_v58, %v5556_v32  ;;  %v5634_v58 = vld [vmem:[%s17818_s9 + $0x280] sm:$0xff] }
 0xcea   : > { %8450 = vmatpush1.bf16.msra.mxu1 %v8449_v29  ;;  %8552 = vmatprep.subr.bf16.mxu0 %v8551_v41  ;;  %v5630_v29 = vld [vmem:[%s17818_s9 + $0x260] sm:$0xff]  ;;  %v5768_v32 = vld [vmem:[%s17818_s9 + $0x6b0] sm:$0xff] }
 0xceb   : > { %8452 = vmatprep.subr.bf16.mxu1 %v8451_v27  ;;  %v5737_v27 = vld [vmem:[%s17818_s9 + $0x5b8] sm:$0xff]  ;;  %v8483_v61 = vpack.c.bf16 %v5630_v29, %v5627_v12  ;;  %v4845_v29 = vrot.slane %v15590_v37, %v4844_v7 }
 0xcec   : > { %v8557_v15 = vpack.c.bf16 %v5737_v27, %v5734_v19  ;;  %v5619_v19 = vld [vmem:[%s17818_s9 + $0x208] sm:$0xff] }
 0xced   : > { %8554 = vmatpush1.bf16.msra.mxu0 %v8553_v62 }
 0xcee   : > { %8454 = vmatpush1.bf16.msra.mxu1 %v8453_v38  ;;  %8556 = vmatprep.subr.bf16.mxu0 %v8555_v20  ;;  %v5636_v38 = vld [vmem:[%s17818_s9 + $0x290] sm:$0xff] }
 0xcef   : > { %8456 = vmatprep.subr.bf16.mxu1 %v8455_v17  ;;  %v8559_v17 = vpack.c.bf16 %v5744_v16, %v5741_v60  ;;  %v5616_v20 = vld [vmem:[%s17818_s9 + $0x1f0] sm:$0xff]  ;;  %v5571_v16 = vld [vmem:[%s17818_s9 + $0x88] sm:$0xff] }
 0xcf0   : > { %v5568_v60 = vld [vmem:[%s17818_s9 + $0x70] sm:$0xff] }
 0xcf1   : > { %8558 = vmatpush1.bf16.msra.mxu0 %v8557_v15  ;;  %v8941_v15 = vpack.c.bf16 %v5565_v35, %v5562_v22 }
 0xcf2   : > { %8458 = vmatpush1.bf16.msra.mxu1 %v8457_v14  ;;  %8560 = vmatprep.subr.bf16.mxu0 %v8559_v17  ;;  %v8487_v14 = vpack.c.bf16 %v5636_v38, %v5633_v52  ;;  %v8943_v52 = vpack.c.bf16 %v5619_v19, %v5616_v20  ;;  %v5753_v38 = vld [vmem:[%s17818_s9 + $0x638] sm:$0xff]  ;;  %v5771_v19 = vld [vmem:[%s17818_s9 + $0x6c8] sm:$0xff] }
 0xcf3   : > { %8460 = vmatprep.subr.bf16.mxu1 %v8459_v2  ;;  %v5635_v2 = vld [vmem:[%s17818_s9 + $0x288] sm:$0xff]  ;;  %v8567_v21 = vpack.c.bf16 %v5756_v63, %v5753_v38  ;;  %v5589_v20 = vld [vmem:[%s17818_s9 + $0x118] sm:$0xff] }
 0xcf5   : > { %8562 = vmatpush1.bf16.msra.mxu0 %v8561_v11  ;;  %v5625_v11 = vld [vmem:[%s17818_s9 + $0x238] sm:$0xff] }
 0xcf6   : > { %8462 = vmatpush1.bf16.msra.mxu1 %v8461_v55  ;;  %v8563_v55 = vpack.c.bf16 %v5750_v50, %v5747_v59  ;;  %v5752_v59 = vld [vmem:[%s17818_s9 + $0x630] sm:$0xff]  ;;  %v5755_v50 = vld [vmem:[%s17818_s9 + $0x648] sm:$0xff] }
 0xcf7   : > { %8464 = vmatprep.subr.bf16.mxu1 %v8463_v30  ;;  %v8489_v30 = vpack.c.bf16 %v5635_v2, %v5632_v4  ;;  %v8945_v2 = vpack.c.bf16 %v5571_v16, %v5568_v60  ;;  %v5773_v60 = vld [vmem:[%s17818_s9 + $0x6d8] sm:$0xff] }
 0xcf8   : > { %8564 = vmatprep.subr.bf16.mxu0 %v8563_v55  ;;  %v8947_v55 = vpack.c.bf16 %v5625_v11, %v5622_v24  ;;  %v5592_v24 = vld [vmem:[%s17818_s9 + $0x130] sm:$0xff]  ;;  %v5595_v11 = vld [vmem:[%s17818_s9 + $0x148] sm:$0xff] }
 0xcfa   : > { %8466 = vmatpush1.bf16.msra.mxu1 %v8465_v56  ;;  %v5648_v56 = vld [vmem:[%s17818_s9 + $0x2f0] sm:$0xff] }
 0xcfb   : > { %8468 = vmatprep.subr.bf16.mxu1 %v8467_v45  ;;  %v8493_v45 = vpack.c.bf16 %v5641_v28, %v5638_v5  ;;  %v8495_v23 = vpack.c.bf16 %v5648_v56, %v5645_v18  ;;  %v5759_v5 = vld [vmem:[%s17818_s9 + $0x668] sm:$0xff]  ;;  %v5762_v28 = vld [vmem:[%s17818_s9 + $0x680] sm:$0xff]  ;;  %v5628_v18 = vld [vmem:[%s17818_s9 + $0x250] sm:$0xff] }
 0xcfc   : > { %v5631_v56 = vld [vmem:[%s17818_s9 + $0x268] sm:$0xff] }
 0xcfe   : > { %8470 = vmatpush1.bf16.msra.mxu1 %v8469_v53  ;;  %v5607_v53 = vld [vmem:[%s17818_s9 + $0x1a8] sm:$0xff] }
 0xcff   : > { %8472 = vmatprep.subr.bf16.mxu1 %v8471_v49  ;;  %v8497_v49 = vpack.c.bf16 %v5647_v13, %v5644_v48  ;;  %v8935_v43 = vpack.c.bf16 %v5607_v53, %v5604_v46  ;;  %v5758_v13 = vld [vmem:[%s17818_s9 + $0x660] sm:$0xff]  ;;  %v5761_v46 = vld [vmem:[%s17818_s9 + $0x678] sm:$0xff] }
 0xd02   : > { %8474 = vmatpush1.bf16.msra.mxu1 %v8473_v57  ;;  %v4833_v57 = vrot.slane %v15590_v37, %v15585_v40 }
 0xd03   : > { %8476 = vmatprep.subr.bf16.mxu1 %v8475_v34 }
 0xd06   : > { %8478 = vmatpush1.bf16.msra.mxu1 %v8477_v10  ;;  %v5613_v10 = vld [vmem:[%s17818_s9 + $0x1d8] sm:$0xff] }
 0xd07   : > { %8480 = vmatprep.subr.bf16.mxu1 %v8479_v25  ;;  %v4841_v25 = vrot.slane %v15590_v37, %v15602_v36  ;;  %v8939_v12 = vpack.c.bf16 %v5613_v10, %v5610_v26  ;;  %v8573_v10 = vpack.c.bf16 %v5761_v46, %v5758_v13  ;;  %v5700_v13 = vld [vmem:[%s17818_s9 + $0x490] sm:$0xff]  ;;  %v5703_v46 = vld [vmem:[%s17818_s9 + $0x4a8] sm:$0xff] }
 0xd0a   : > { %8482 = vmatpush1.bf16.msra.mxu1 %v8481_v3  ;;  %v5746_v3 = vld [vmem:[%s17818_s9 + $0x600] sm:$0xff] }
 0xd0b   : > { %8484 = vmatprep.subr.bf16.mxu1 %v8483_v61 }
 0xd0e   : > { %8486 = vmatpush1.bf16.msra.mxu1 %v8485_v6  ;;  %v4852_v6 = vsub.s32 5, %v18212_v31 }
 0xd0f   : > { %8488 = vmatprep.subr.bf16.mxu1 %v8487_v14  ;;  %v8565_v14 = vpack.c.bf16 %v5749_v42, %v5746_v3  ;;  %v5643_v3 = vld [vmem:[%s17818_s9 + $0x2c8] sm:$0xff] }
 0xd12   : > { %8490 = vmatpush1.bf16.msra.mxu1 %v8489_v30  ;;  %v5574_v30 = vld [vmem:[%s17818_s9 + $0xa0] sm:$0xff] }
 0xd13   : > { %8492 = vmatprep.subr.bf16.mxu1 %v8491_v39  ;;  %v5577_v39 = vld [vmem:[%s17818_s9 + $0xb8] sm:$0xff] }
 0xd14   : > { %v8949_v48 = vpack.c.bf16 %v5577_v39, %v5574_v30  ;;  %v8961_v30 = vpack.c.bf16 %v5595_v11, %v5592_v24  ;;  %v5776_v39 = vld [vmem:[%s17818_s9 + $0x6f0] sm:$0xff]  ;;  %v5795_v24 = vld [vmem:[%s17818_s9 + $0x788] sm:$0xff] }
 0xd16   : > { %8494 = vmatpush1.bf16.msra.mxu1 %v8493_v45  ;;  %v4853_v45 = vrot.slane %v15590_v37, %v4852_v6 }
 0xd17   : > { %8496 = vmatprep.subr.bf16.mxu1 %v8495_v23  ;;  %v8569_v23 = vpack.c.bf16 %v5755_v50, %v5752_v59  ;;  %v5780_v59 = vld [vmem:[%s17818_s9 + $0x710] sm:$0xff]  ;;  %v5646_v50 = vld [vmem:[%s17818_s9 + $0x2e0] sm:$0xff] }
 0xd1a   : > { %8498 = vmatpush1.bf16.msra.mxu1 %v8497_v49  ;;  %v8571_v49 = vpack.c.bf16 %v5762_v28, %v5759_v5  ;;  %v5779_v5 = vld [vmem:[%s17818_s9 + $0x708] sm:$0xff] }
 0xd1b   : > { %8936 = vmatprep.subr.bf16.mxu1 %v8935_v43  ;;  %v8951_v43 = vpack.c.bf16 %v5631_v56, %v5628_v18  ;;  %v5598_v56 = vld [vmem:[%s17818_s9 + $0x160] sm:$0xff] }
 0xd80   : > { %v5036_v34 = vpop.f32.mrb[0].mxu1 }
 0xd81   : > { %v15599_v1 = vadd.f32 %v5036_v34, %v4833_v57  ;;  %v5038_v54 = vpop.f32.mrb[1].mxu1  ;;  %v5580_v57 = vld [vmem:[%s17818_s9 + $0xd0] sm:$0xff]  ;;  %v5765_v34 = vld [vmem:[%s17818_s9 + $0x698] sm:$0xff] }
 0xd82   : > { %v5039_v41 = vadd.f32 %v5038_v54, %v4837_v33  ;;  %v5583_v33 = vld [vmem:[%s17818_s9 + $0xe8] sm:$0xff]  ;;  %v8575_v22 = vpack.c.bf16 %v5768_v32, %v5765_v34  ;;  %v5462_v32 = vpop.f32.mrb[0].mxu0 }
 0xd83   : > { %v5538_v62 = vmax.f32 %v15599_v1, 0.0  ;;  %v15813_v34 = vld [vmem:[%s17817_s8 + $0x8] sm:$0xff]  ;;  %v5664_v1 = vld [vmem:[%s17818_s9 + $0x370] sm:$0xff] }
 0xd84   : > { %v5539_v9 = vmax.f32 %v5039_v41, 0.0  ;;  %v5637_v41 = vld [vmem:[%s17818_s9 + $0x298] sm:$0xff] }
 0xd85   : > { %v8955_v35 = vpack.c.bf16 %v5637_v41, %v5634_v58  ;;  %v5785_v41 = vld [vmem:[%s17818_s9 + $0x738] sm:$0xff] }
 0xd86   : > { %6389 = vmatprep.mubr.f32.mxu1 %v5539_v9 }
 0xd87   : > { %6390 = vmatmul.mubr.f32.vlgmr.msra.gmra.mrb[14].mxu1 %v5538_v62 }
 0xd88   : > { %v5107_v27 = vpop.f32.mrb[2].mxu1  ;;  %8938 = vmatpush3.bf16.msra.mxu1 %v8937_v44  ;;  %6957 = vmatprep.mubr.f32.mxu1 %v5539_v9  ;;  %v8953_v9 = vpack.c.bf16 %v5583_v33, %v5580_v57  ;;  %v5764_v44 = vld [vmem:[%s17818_s9 + $0x690] sm:$0xff]  ;;  %v5782_v33 = vld [vmem:[%s17818_s9 + $0x720] sm:$0xff] }
 0xd89   : > { %v15643_v47 = vadd.f32 %v5107_v27, %v4841_v25  ;;  %v5109_v61 = vpop.f32.mrb[3].mxu1  ;;  %8940 = vmatprep.subr.bf16.mxu1 %v8939_v12  ;;  %v5767_v25 = vld [vmem:[%s17818_s9 + $0x6a8] sm:$0xff]  ;;  %v5774_v27 = vld [vmem:[%s17818_s9 + $0x6e0] sm:$0xff] }
 0xd8a   : > { %v15654_v17 = vadd.f32 %v5109_v61, %v4845_v29  ;;  %v5586_v29 = vld [vmem:[%s17818_s9 + $0x100] sm:$0xff]  ;;  %v8577_v42 = vpack.c.bf16 %v5767_v25, %v5764_v44  ;;  %v8579_v38 = vpack.c.bf16 %v5774_v27, %v5771_v19  ;;  %v5655_v44 = vld [vmem:[%s17818_s9 + $0x328] sm:$0xff]  ;;  %v5709_v27 = vld [vmem:[%s17818_s9 + $0x4d8] sm:$0xff] }
 0xd8b   : > { %v5540_v51 = vmax.f32 %v15643_v47, 0.0  ;;  %v8957_v61 = vpack.c.bf16 %v5589_v20, %v5586_v29  ;;  %v5789_v29 = vld [vmem:[%s17818_s9 + $0x758] sm:$0xff]  ;;  %v5792_v20 = vld [vmem:[%s17818_s9 + $0x770] sm:$0xff]  ;;  %v5706_v19 = vld [vmem:[%s17818_s9 + $0x4c0] sm:$0xff] }
 0xd8c   : > { %v5541_v4 = vmax.f32 %v15654_v17, 0.0  ;;  %8942 = vmatpush3.bf16.msra.mxu1 %v8941_v15  ;;  %v5640_v15 = vld [vmem:[%s17818_s9 + $0x2b0] sm:$0xff]  ;;  %v8971_v11 = vpack.c.bf16 %v5709_v27, %v5706_v19 }
 0xd8d   : > { %8944 = vmatprep.subr.bf16.mxu1 %v8943_v52  ;;  %v5770_v52 = vld [vmem:[%s17818_s9 + $0x6c0] sm:$0xff]  ;;  %v8959_v63 = vpack.c.bf16 %v5643_v3, %v5640_v15  ;;  %v8589_v3 = vpack.c.bf16 %v5785_v41, %v5782_v33  ;;  %v5804_v17 = vld [vmem:[%s17818_s9 + $0x7d0] sm:$0xff]  ;;  %v5673_v33 = vld [vmem:[%s17818_s9 + $0x3b8] sm:$0xff] }
 0xd8e   : > { %6460 = vmatprep.mubr.f32.mxu0 %v5541_v4  ;;  %v5724_v41 = vld [vmem:[%s17818_s9 + $0x550] sm:$0xff] }
 0xd8f   : > { %6461 = vmatmul.mubr.f32.vlgmr.msra.gmra.mrb[2].mxu0 %v5540_v51  ;;  %v5676_v27 = vld [vmem:[%s17818_s9 + $0x3d0] sm:$0xff] }
 0xd90   : > { %8566 = vmatpush1.bf16.msra.mxu0 %v8565_v14  ;;  %8946 = vmatpush3.bf16.msra.mxu1 %v8945_v2  ;;  %v15705_v53 = vpop.f32.mrb[4].mxu1  ;;  %v5777_v14 = vld [vmem:[%s17818_s9 + $0x6f8] sm:$0xff] }
 0xd91   : > { %8568 = vmatprep.subr.bf16.mxu0 %v8567_v21  ;;  %8948 = vmatprep.subr.bf16.mxu1 %v8947_v55  ;;  %v5180_v54 = vpop.f32.mrb[5].mxu1  ;;  %v5649_v21 = vld [vmem:[%s17818_s9 + $0x2f8] sm:$0xff]  ;;  %v8581_v55 = vpack.c.bf16 %v5773_v60, %v5770_v52  ;;  %v8583_v28 = vpack.c.bf16 %v5780_v59, %v5777_v14  ;;  %v5791_v52 = vld [vmem:[%s17818_s9 + $0x768] sm:$0xff]  ;;  %v8591_v60 = vpack.c.bf16 %v5792_v20, %v5789_v29  ;;  %v5798_v14 = vld [vmem:[%s17818_s9 + $0x7a0] sm:$0xff] }
 0xd92   : > { %v15725_v26 = vadd.f32 %v5180_v54, %v4853_v45  ;;  %v8963_v18 = vpack.c.bf16 %v5649_v21, %v5646_v50  ;;  %v5601_v45 = vld [vmem:[%s17818_s9 + $0x178] sm:$0xff]  ;;  %v5712_v59 = vld [vmem:[%s17818_s9 + $0x4f0] sm:$0xff]  ;;  %v5715_v50 = vld [vmem:[%s17818_s9 + $0x508] sm:$0xff] }
 0xd93   : > { %v8965_v57 = vpack.c.bf16 %v5601_v45, %v5598_v56  ;;  %v5721_v56 = vld [vmem:[%s17818_s9 + $0x538] sm:$0xff] }
 0xd94   : > { %8570 = vmatpush1.bf16.msra.mxu0 %v8569_v23  ;;  %8950 = vmatpush3.bf16.msra.mxu1 %v8949_v48  ;;  %v5543_v12 = vmax.f32 %v15725_v26, 0.0  ;;  %v5783_v23 = vld [vmem:[%s17818_s9 + $0x728] sm:$0xff]  ;;  %v5786_v48 = vld [vmem:[%s17818_s9 + $0x740] sm:$0xff]  ;;  %v5809_v29 = vld [vmem:[%s17818_s9 + $0x7f8] sm:$0xff] }
 0xd95   : > { %8572 = vmatprep.subr.bf16.mxu0 %v8571_v49  ;;  %8952 = vmatprep.subr.bf16.mxu1 %v8951_v43  ;;  %v4848_v49 = vsub.s32 4, %v18212_v31  ;;  %v8585_v43 = vpack.c.bf16 %v5779_v5, %v5776_v39  ;;  %v8587_v58 = vpack.c.bf16 %v5786_v48, %v5783_v23  ;;  %v5797_v39 = vld [vmem:[%s17818_s9 + $0x798] sm:$0xff]  ;;  %v8595_v5 = vpack.c.bf16 %v5798_v14, %v5795_v24  ;;  %v5800_v48 = vld [vmem:[%s17818_s9 + $0x7b0] sm:$0xff] }
 0xd96   : > { %6531 = vmatprep.mubr.f32.mxu0 %v5543_v12  ;;  %v5812_v24 = vld [vmem:[%s17818_s9 + $0x810] sm:$0xff] }
 0xd97   : > { %v5848_v26 = vld [vmem:[%s17818_s9 + $0x930] sm:$0xff] }
 0xd98   : > { %8574 = vmatpush1.bf16.msra.mxu0 %v8573_v10  ;;  %8954 = vmatpush3.bf16.msra.mxu1 %v8953_v9  ;;  %v15760_v16 = vpop.f32.mrb[6].mxu1  ;;  %v8967_v10 = vpack.c.bf16 %v5703_v46, %v5700_v13  ;;  %v5652_v9 = vld [vmem:[%s17818_s9 + $0x310] sm:$0xff]  ;;  %v5803_v13 = vld [vmem:[%s17818_s9 + $0x7c8] sm:$0xff] }
 0xd99   : > { %8576 = vmatprep.subr.bf16.mxu0 %v8575_v22  ;;  %8956 = vmatprep.subr.bf16.mxu1 %v8955_v35  ;;  %v15771_v2 = vpop.f32.mrb[7].mxu1  ;;  %v4881_v22 = vrot.slane %v15813_v34, %v4848_v49  ;;  %v15831_v35 = vpop.f32.mrb[1].mxu0 }
 0xd9b   : > { %v15845_v15 = vadd.f32 %v5462_v32, %v4881_v22  ;;  %v5807_v32 = vld [vmem:[%s17818_s9 + $0x7e8] sm:$0xff]  ;;  %v5806_v22 = vld [vmem:[%s17818_s9 + $0x7e0] sm:$0xff] }
 0xd9c   : > { %8578 = vmatpush1.bf16.msra.mxu0 %v8577_v42  ;;  %8958 = vmatpush3.bf16.msra.mxu1 %v8957_v61  ;;  %v8969_v42 = vpack.c.bf16 %v5655_v44, %v5652_v9  ;;  %v5788_v61 = vld [vmem:[%s17818_s9 + $0x750] sm:$0xff]  ;;  %v8601_v9 = vpack.c.bf16 %v5803_v13, %v5800_v48  ;;  %v5742_v13 = vld [vmem:[%s17818_s9 + $0x5e0] sm:$0xff] }
 0xd9d   : > { %8580 = vmatprep.subr.bf16.mxu0 %v8579_v38  ;;  %8960 = vmatprep.subr.bf16.mxu1 %v8959_v63  ;;  %v5658_v38 = vld [vmem:[%s17818_s9 + $0x340] sm:$0xff]  ;;  %v5661_v63 = vld [vmem:[%s17818_s9 + $0x358] sm:$0xff]  ;;  %v8593_v21 = vpack.c.bf16 %v5791_v52, %v5788_v61  ;;  %v5816_v61 = vld [vmem:[%s17818_s9 + $0x830] sm:$0xff] }
 0xd9e   : > { %v5730_v52 = vld [vmem:[%s17818_s9 + $0x580] sm:$0xff]  ;;  %v5828_v48 = vld [vmem:[%s17818_s9 + $0x890] sm:$0xff] }
 0xda0   : > { %8582 = vmatpush1.bf16.msra.mxu0 %v8581_v55  ;;  %8962 = vmatpush3.bf16.msra.mxu1 %v8961_v30  ;;  %v15815_v54 = vpop.f32.mrb[8].mxu1  ;;  %v8973_v55 = vpack.c.bf16 %v5661_v63, %v5658_v38  ;;  %v5794_v30 = vld [vmem:[%s17818_s9 + $0x780] sm:$0xff]  ;;  %v8605_v38 = vpack.c.bf16 %v5809_v29, %v5806_v22  ;;  %v5796_v29 = vld [vmem:[%s17818_s9 + $0x790] sm:$0xff] }
 0xda1   : > { %8584 = vmatprep.subr.bf16.mxu0 %v8583_v28  ;;  %8964 = vmatprep.subr.bf16.mxu1 %v8963_v18  ;;  %v15826_v25 = vpop.f32.mrb[9].mxu1  ;;  %v8975_v28 = vpack.c.bf16 %v5715_v50, %v5712_v59  ;;  %v5801_v18 = vld [vmem:[%s17818_s9 + $0x7b8] sm:$0xff]  ;;  %v8597_v45 = vpack.c.bf16 %v5797_v39, %v5794_v30  ;;  %v5682_v50 = vld [vmem:[%s17818_s9 + $0x400] sm:$0xff]  ;;  %v5736_v39 = vld [vmem:[%s17818_s9 + $0x5b0] sm:$0xff] }
 0xda2   : > { %v8599_v46 = vpack.c.bf16 %v5804_v17, %v5801_v18  ;;  %v5822_v30 = vld [vmem:[%s17818_s9 + $0x860] sm:$0xff]  ;;  %v5821_v18 = vld [vmem:[%s17818_s9 + $0x858] sm:$0xff] }
 0xda3   : > { %v5834_v22 = vld [vmem:[%s17818_s9 + $0x8c0] sm:$0xff] }
 0xda4   : > { %8586 = vmatpush1.bf16.msra.mxu0 %v8585_v43  ;;  %8966 = vmatpush3.bf16.msra.mxu1 %v8965_v57  ;;  %v5670_v57 = vld [vmem:[%s17818_s9 + $0x3a0] sm:$0xff] }
 0xda5   : > { %8588 = vmatprep.subr.bf16.mxu0 %v8587_v58  ;;  %8968 = vmatprep.subr.bf16.mxu1 %v8967_v10  ;;  %v5810_v58 = vld [vmem:[%s17818_s9 + $0x800] sm:$0xff]  ;;  %v5727_v10 = vld [vmem:[%s17818_s9 + $0x568] sm:$0xff]  ;;  %v8981_v44 = vpack.c.bf16 %v5673_v33, %v5670_v57  ;;  %v5824_v33 = vld [vmem:[%s17818_s9 + $0x870] sm:$0xff] }
 0xda6   : > { %v8603_v20 = vpack.c.bf16 %v5810_v58, %v5807_v32  ;;  %v8983_v19 = vpack.c.bf16 %v5727_v10, %v5724_v41  ;;  %v5827_v32 = vld [vmem:[%s17818_s9 + $0x888] sm:$0xff]  ;;  %v5694_v10 = vld [vmem:[%s17818_s9 + $0x460] sm:$0xff] }
 0xda7   : > { %6958 = vmatmul.mubr.f32.vlgmr.msra.gmra.mrb[16].mxu1 %v5538_v62  ;;  %v5667_v62 = vld [vmem:[%s17818_s9 + $0x388] sm:$0xff] }
 0xda8   : > { %8590 = vmatpush1.bf16.msra.mxu0 %v8589_v3  ;;  %8970 = vmatpush3.bf16.msra.mxu1 %v8969_v42  ;;  %v8977_v23 = vpack.c.bf16 %v5667_v62, %v5664_v1  ;;  %v5679_v3 = vld [vmem:[%s17818_s9 + $0x3e8] sm:$0xff]  ;;  %v5813_v42 = vld [vmem:[%s17818_s9 + $0x818] sm:$0xff]  ;;  %v5818_v62 = vld [vmem:[%s17818_s9 + $0x840] sm:$0xff] }
 0xda9   : > { %7027 = vmatprep.mubr.f32.mxu1 %v5541_v4  ;;  %8592 = vmatprep.subr.bf16.mxu0 %v8591_v60  ;;  %v5718_v4 = vld [vmem:[%s17818_s9 + $0x520] sm:$0xff]  ;;  %v5733_v60 = vld [vmem:[%s17818_s9 + $0x598] sm:$0xff]  ;;  %v8985_v63 = vpack.c.bf16 %v5679_v3, %v5676_v27  ;;  %v8607_v14 = vpack.c.bf16 %v5816_v61, %v5813_v42  ;;  %v16025_v61 = vpop.f32.mrb[10].mxu1 }
 0xdaa   : > { %8972 = vmatprep.subr.bf16.mxu1 %v8971_v11  ;;  %v8979_v43 = vpack.c.bf16 %v5721_v56, %v5718_v4  ;;  %v5815_v11 = vld [vmem:[%s17818_s9 + $0x828] sm:$0xff]  ;;  %v8987_v59 = vpack.c.bf16 %v5733_v60, %v5730_v52  ;;  %v5688_v56 = vld [vmem:[%s17818_s9 + $0x430] sm:$0xff]  ;;  %v5830_v3 = vld [vmem:[%s17818_s9 + $0x8a0] sm:$0xff] }
 0xdab   : > { %v5833_v42 = vld [vmem:[%s17818_s9 + $0x8b8] sm:$0xff] }
 0xdac   : > { %8594 = vmatpush1.bf16.msra.mxu0 %v8593_v21  ;;  %8974 = vmatpush3.bf16.msra.mxu1 %v8973_v55  ;;  %v5685_v21 = vld [vmem:[%s17818_s9 + $0x418] sm:$0xff]  ;;  %v5819_v55 = vld [vmem:[%s17818_s9 + $0x848] sm:$0xff] }
 0xdad   : > { %8596 = vmatprep.subr.bf16.mxu0 %v8595_v5  ;;  %8976 = vmatprep.subr.bf16.mxu1 %v8975_v28  ;;  %v5739_v5 = vld [vmem:[%s17818_s9 + $0x5c8] sm:$0xff]  ;;  %v8609_v28 = vpack.c.bf16 %v5815_v11, %v5812_v24  ;;  %v8989_v1 = vpack.c.bf16 %v5685_v21, %v5682_v50  ;;  %v8611_v17 = vpack.c.bf16 %v5822_v30, %v5819_v55  ;;  %v5837_v24 = vld [vmem:[%s17818_s9 + $0x8d8] sm:$0xff]  ;;  %v16036_v11 = vpop.f32.mrb[11].mxu1 }
 0xdae   : > { %v8991_v4 = vpack.c.bf16 %v5739_v5, %v5736_v39  ;;  %v5805_v50 = vld [vmem:[%s17818_s9 + $0x7d8] sm:$0xff]  ;;  %v4849_v21 = vrot.slane %v15590_v37, %v4848_v49  ;;  %v8621_v55 = vpack.c.bf16 %v5833_v42, %v5830_v3  ;;  %v5836_v39 = vld [vmem:[%s17818_s9 + $0x8d0] sm:$0xff]  ;;  %v5839_v5 = vld [vmem:[%s17818_s9 + $0x8e8] sm:$0xff] }
 0xdaf   : > { %v5754_v49 = vld [vmem:[%s17818_s9 + $0x640] sm:$0xff]  ;;  %v5855_v3 = vld [vmem:[%s17818_s9 + $0x968] sm:$0xff]  ;;  %v5820_v42 = vld [vmem:[%s17818_s9 + $0x850] sm:$0xff] }
 0xdb0   : > { %8598 = vmatpush1.bf16.msra.mxu0 %v8597_v45  ;;  %8978 = vmatpush3.bf16.msra.mxu1 %v8977_v23  ;;  %v5691_v45 = vld [vmem:[%s17818_s9 + $0x448] sm:$0xff]  ;;  %v5825_v23 = vld [vmem:[%s17818_s9 + $0x878] sm:$0xff] }
 0xdb1   : > { %8600 = vmatprep.subr.bf16.mxu0 %v8599_v46  ;;  %8980 = vmatprep.subr.bf16.mxu1 %v8979_v43  ;;  %v5745_v46 = vld [vmem:[%s17818_s9 + $0x5f8] sm:$0xff]  ;;  %v8613_v43 = vpack.c.bf16 %v5821_v18, %v5818_v62  ;;  %v8993_v57 = vpack.c.bf16 %v5691_v45, %v5688_v56  ;;  %v8615_v58 = vpack.c.bf16 %v5828_v48, %v5825_v23  ;;  %v5808_v56 = vld [vmem:[%s17818_s9 + $0x7f0] sm:$0xff]  ;;  %v5811_v45 = vld [vmem:[%s17818_s9 + $0x808] sm:$0xff] }
 0xdb2   : > { %v8995_v41 = vpack.c.bf16 %v5745_v46, %v5742_v13  ;;  %v5757_v18 = vld [vmem:[%s17818_s9 + $0x658] sm:$0xff]  ;;  %v16076_v23 = vadd.f32 %v15705_v53, %v4849_v21  ;;  %v8625_v48 = vpack.c.bf16 %v5839_v5, %v5836_v39  ;;  %v5842_v46 = vld [vmem:[%s17818_s9 + $0x900] sm:$0xff]  ;;  %v5772_v21 = vld [vmem:[%s17818_s9 + $0x6d0] sm:$0xff] }
 0xdb3   : > { %v9005_v13 = vpack.c.bf16 %v5757_v18, %v5754_v49  ;;  %v5864_v39 = vld [vmem:[%s17818_s9 + $0x9b0] sm:$0xff]  ;;  %v5826_v5 = vld [vmem:[%s17818_s9 + $0x880] sm:$0xff] }
 0xdb4   : > { %8602 = vmatpush1.bf16.msra.mxu0 %v8601_v9  ;;  %8982 = vmatpush3.bf16.msra.mxu1 %v8981_v44  ;;  %v5697_v9 = vld [vmem:[%s17818_s9 + $0x478] sm:$0xff]  ;;  %v5831_v44 = vld [vmem:[%s17818_s9 + $0x8a8] sm:$0xff]  ;;  %v5860_v18 = vld [vmem:[%s17818_s9 + $0x990] sm:$0xff] }
 0xdb5   : > { %8604 = vmatprep.subr.bf16.mxu0 %v8603_v20  ;;  %8984 = vmatprep.subr.bf16.mxu1 %v8983_v19  ;;  %v5799_v20 = vld [vmem:[%s17818_s9 + $0x7a8] sm:$0xff]  ;;  %v8617_v19 = vpack.c.bf16 %v5827_v32, %v5824_v33  ;;  %v8997_v27 = vpack.c.bf16 %v5697_v9, %v5694_v10  ;;  %v8619_v52 = vpack.c.bf16 %v5834_v22, %v5831_v44  ;;  %v5849_v32 = vld [vmem:[%s17818_s9 + $0x938] sm:$0xff]  ;;  %v5542_v10 = vmax.f32 %v16076_v23, 0.0  ;;  %v5856_v23 = vld [vmem:[%s17818_s9 + $0x970] sm:$0xff] }
 0xdb6   : > { %v8999_v60 = vpack.c.bf16 %v5799_v20, %v5796_v29  ;;  %v5763_v33 = vld [vmem:[%s17818_s9 + $0x688] sm:$0xff] }
 0xdb8   : > { %8606 = vmatpush1.bf16.msra.mxu0 %v8605_v38  ;;  %8986 = vmatpush3.bf16.msra.mxu1 %v8985_v63  ;;  %v5748_v38 = vld [vmem:[%s17818_s9 + $0x610] sm:$0xff]  ;;  %v5751_v63 = vld [vmem:[%s17818_s9 + $0x628] sm:$0xff] }
 0xdb9   : > { %8608 = vmatprep.subr.bf16.mxu0 %v8607_v14  ;;  %8988 = vmatprep.subr.bf16.mxu1 %v8987_v59  ;;  %v5840_v14 = vld [vmem:[%s17818_s9 + $0x8f0] sm:$0xff]  ;;  %v5802_v59 = vld [vmem:[%s17818_s9 + $0x7c0] sm:$0xff]  ;;  %v9001_v30 = vpack.c.bf16 %v5751_v63, %v5748_v38 }
 0xdba   : > { %v9003_v62 = vpack.c.bf16 %v5805_v50, %v5802_v59  ;;  %v5854_v63 = vld [vmem:[%s17818_s9 + $0x960] sm:$0xff] }
 0xdbc   : > { %8610 = vmatpush1.bf16.msra.mxu0 %v8609_v28  ;;  %8990 = vmatpush3.bf16.msra.mxu1 %v8989_v1  ;;  %v4860_v28 = vsub.s32 7, %v18212_v31  ;;  %v8623_v1 = vpack.c.bf16 %v5840_v14, %v5837_v24  ;;  %v5857_v24 = vld [vmem:[%s17818_s9 + $0x978] sm:$0xff] }
 0xdbd   : > { %8612 = vmatprep.subr.bf16.mxu0 %v8611_v17  ;;  %8992 = vmatprep.subr.bf16.mxu1 %v8991_v4  ;;  %v5843_v17 = vld [vmem:[%s17818_s9 + $0x908] sm:$0xff]  ;;  %v5846_v4 = vld [vmem:[%s17818_s9 + $0x920] sm:$0xff] }
 0xdbe   : > { %v4861_v53 = vrot.slane %v15590_v37, %v4860_v28  ;;  %v8627_v47 = vpack.c.bf16 %v5846_v4, %v5843_v17  ;;  %v5852_v37 = vld [vmem:[%s17818_s9 + $0x950] sm:$0xff]  ;;  %v5863_v17 = vld [vmem:[%s17818_s9 + $0x9a8] sm:$0xff] }
 0xdbf   : > { %v8631_v29 = vpack.c.bf16 %v5852_v37, %v5849_v32  ;;  %v5869_v32 = vld [vmem:[%s17818_s9 + $0x9d8] sm:$0xff] }
 0xdc0   : > { %8614 = vmatpush1.bf16.msra.mxu0 %v8613_v43  ;;  %8994 = vmatpush3.bf16.msra.mxu1 %v8993_v57  ;;  %v5845_v43 = vld [vmem:[%s17818_s9 + $0x918] sm:$0xff]  ;;  %v5760_v57 = vld [vmem:[%s17818_s9 + $0x670] sm:$0xff]  ;;  %v16117_v22 = vadd.f32 %v15771_v2, %v4861_v53  ;;  %v5858_v2 = vld [vmem:[%s17818_s9 + $0x980] sm:$0xff] }
 0xdc1   : > { %8616 = vmatprep.subr.bf16.mxu0 %v8615_v58  ;;  %8996 = vmatprep.subr.bf16.mxu1 %v8995_v41  ;;  %v5814_v58 = vld [vmem:[%s17818_s9 + $0x820] sm:$0xff]  ;;  %v5817_v41 = vld [vmem:[%s17818_s9 + $0x838] sm:$0xff]  ;;  %v8629_v9 = vpack.c.bf16 %v5845_v43, %v5842_v46  ;;  %v9009_v44 = vpack.c.bf16 %v5763_v33, %v5760_v57  ;;  %v8635_v59 = vpack.c.bf16 %v5858_v2, %v5855_v3  ;;  %v5832_v43 = vld [vmem:[%s17818_s9 + $0x8b0] sm:$0xff] }
 0xdc2   : > { %v9011_v20 = vpack.c.bf16 %v5817_v41, %v5814_v58  ;;  %v5545_v14 = vmax.f32 %v16117_v22, 0.0  ;;  %v5870_v46 = vld [vmem:[%s17818_s9 + $0x9e0] sm:$0xff]  ;;  %v5835_v53 = vld [vmem:[%s17818_s9 + $0x8c8] sm:$0xff]  ;;  %v5533_v58 = vpop.f32.mrb[12].mxu1  ;;  %v4893_v41 = vrot.slane %v15813_v34, %v4860_v28  ;;  %v5876_v28 = vld [vmem:[%s17818_s9 + $0xa10] sm:$0xff] }
 0xdc3   : > { %v5866_v33 = vld [vmem:[%s17818_s9 + $0x9c0] sm:$0xff] }
 0xdc4   : > { %8618 = vmatpush1.bf16.msra.mxu0 %v8617_v19  ;;  %8998 = vmatpush3.bf16.msra.mxu1 %v8997_v27  ;;  %v5766_v19 = vld [vmem:[%s17818_s9 + $0x6a0] sm:$0xff]  ;;  %v5769_v27 = vld [vmem:[%s17818_s9 + $0x6b8] sm:$0xff] }
 0xdc5   : > { %8620 = vmatprep.subr.bf16.mxu0 %v8619_v52  ;;  %9000 = vmatprep.subr.bf16.mxu1 %v8999_v60  ;;  %v5823_v52 = vld [vmem:[%s17818_s9 + $0x868] sm:$0xff]  ;;  %v9013_v38 = vpack.c.bf16 %v5769_v27, %v5766_v19  ;;  %v5838_v19 = vld [vmem:[%s17818_s9 + $0x8e0] sm:$0xff]  ;;  %v5841_v27 = vld [vmem:[%s17818_s9 + $0x8f8] sm:$0xff] }
 0xdc6   : > { %v9015_v50 = vpack.c.bf16 %v5823_v52, %v5820_v42  ;;  %v8645_v42 = vpack.c.bf16 %v5869_v32, %v5866_v33  ;;  %v5862_v22 = vld [vmem:[%s17818_s9 + $0x9a0] sm:$0xff] }
 0xdc7   : > { %7028 = vmatmul.mubr.f32.vlgmr.msra.gmra.mrb[18].mxu1 %v5540_v51  ;;  %v9007_v51 = vpack.c.bf16 %v5811_v45, %v5808_v56  ;;  %v5778_v45 = vld [vmem:[%s17818_s9 + $0x700] sm:$0xff] }
 0xdc8   : > { %8622 = vmatpush1.bf16.msra.mxu0 %v8621_v55  ;;  %9002 = vmatpush3.bf16.msra.mxu1 %v9001_v30  ;;  %v5775_v55 = vld [vmem:[%s17818_s9 + $0x6e8] sm:$0xff]  ;;  %v5861_v30 = vld [vmem:[%s17818_s9 + $0x998] sm:$0xff] }
 0xdc9   : > { %8624 = vmatprep.subr.bf16.mxu0 %v8623_v1  ;;  %9004 = vmatprep.subr.bf16.mxu1 %v9003_v62  ;;  %v5829_v1 = vld [vmem:[%s17818_s9 + $0x898] sm:$0xff]  ;;  %v8637_v62 = vpack.c.bf16 %v5857_v24, %v5854_v63  ;;  %v9017_v49 = vpack.c.bf16 %v5775_v55, %v5772_v21  ;;  %v8639_v4 = vpack.c.bf16 %v5864_v39, %v5861_v30  ;;  %v5879_v21 = vld [vmem:[%s17818_s9 + $0xa28] sm:$0xff]  ;;  %v5882_v55 = vld [vmem:[%s17818_s9 + $0xa40] sm:$0xff] }
 0xdca   : > { %7097 = vmatprep.mubr.f32.mxu1 %v5543_v12  ;;  %v5851_v12 = vld [vmem:[%s17818_s9 + $0x948] sm:$0xff]  ;;  %v9019_v56 = vpack.c.bf16 %v5829_v1, %v5826_v5  ;;  %v9027_v24 = vpack.c.bf16 %v5841_v27, %v5838_v19  ;;  %v5892_v30 = vld [vmem:[%s17818_s9 + $0xa90] sm:$0xff] }
 0xdcb   : > { %v8633_v60 = vpack.c.bf16 %v5851_v12, %v5848_v26  ;;  %v5784_v26 = vld [vmem:[%s17818_s9 + $0x730] sm:$0xff]  ;;  %v5787_v12 = vld [vmem:[%s17818_s9 + $0x748] sm:$0xff] }
 0xdcc   : > { %8626 = vmatpush1.bf16.msra.mxu0 %v8625_v48  ;;  %9006 = vmatpush3.bf16.msra.mxu1 %v9005_v13  ;;  %v5781_v48 = vld [vmem:[%s17818_s9 + $0x718] sm:$0xff]  ;;  %v5867_v13 = vld [vmem:[%s17818_s9 + $0x9c8] sm:$0xff]  ;;  %v9025_v52 = vpack.c.bf16 %v5787_v12, %v5784_v26 }
 0xdcd   : > { %8628 = vmatprep.subr.bf16.mxu0 %v8627_v47  ;;  %9008 = vmatprep.subr.bf16.mxu1 %v9007_v51  ;;  %v4856_v47 = vsub.s32 6, %v18212_v31  ;;  %v8641_v51 = vpack.c.bf16 %v5863_v17, %v5860_v18  ;;  %v9021_v57 = vpack.c.bf16 %v5781_v48, %v5778_v45  ;;  %v5895_v39 = vld [vmem:[%s17818_s9 + $0xaa8] sm:$0xff]  ;;  %v8651_v18 = vpack.c.bf16 %v5882_v55, %v5879_v21  ;;  %v5885_v45 = vld [vmem:[%s17818_s9 + $0xa58] sm:$0xff]  ;;  %v5888_v48 = vld [vmem:[%s17818_s9 + $0xa70] sm:$0xff] }
 0xdce   : > { %v9031_v17 = vpack.c.bf16 %v5895_v39, %v5892_v30  ;;  %v8655_v33 = vpack.c.bf16 %v5888_v48, %v5885_v45  ;;  %v5907_v26 = vld [vmem:[%s17818_s9 + $0xb08] sm:$0xff]  ;;  %v5906_v39 = vld [vmem:[%s17818_s9 + $0xb00] sm:$0xff]  ;;  %v5868_v45 = vld [vmem:[%s17818_s9 + $0x9d0] sm:$0xff] }
 0xdcf   : > { %6532 = vmatmul.mubr.f32.vlgmr.msra.gmra.mrb[2].mxu0 %v5542_v10  ;;  %v4889_v37 = vrot.slane %v15813_v34, %v4856_v47  ;;  %v5903_v30 = vld [vmem:[%s17818_s9 + $0xae8] sm:$0xff]  ;;  %v6025_v31 = vld [vmem:[%s17818_s9 + $0xeb8] sm:$0xff] }
 0xdd0   : > { %8630 = vmatpush1.bf16.msra.mxu0 %v8629_v9  ;;  %9010 = vmatpush3.bf16.msra.mxu1 %v9009_v44  ;;  %v8643_v9 = vpack.c.bf16 %v5870_v46, %v5867_v13  ;;  %v9023_v44 = vpack.c.bf16 %v5835_v53, %v5832_v43  ;;  %v5898_v13 = vld [vmem:[%s17818_s9 + $0xac0] sm:$0xff]  ;;  %v5901_v46 = vld [vmem:[%s17818_s9 + $0xad8] sm:$0xff]  ;;  %v5871_v48 = vld [vmem:[%s17818_s9 + $0x9e8] sm:$0xff] }
 0xdd1   : > { %8632 = vmatprep.subr.bf16.mxu0 %v8631_v29  ;;  %9012 = vmatprep.subr.bf16.mxu1 %v9011_v20  ;;  %v5873_v29 = vld [vmem:[%s17818_s9 + $0x9f8] sm:$0xff]  ;;  %v5535_v20 = vpop.f32.mrb[13].mxu1  ;;  %v16221_v3 = vadd.f32 %v5533_v58, %v4889_v37  ;;  %v9035_v32 = vpack.c.bf16 %v5901_v46, %v5898_v13  ;;  %v5850_v37 = vld [vmem:[%s17818_s9 + $0x940] sm:$0xff]  ;;  %v5912_v46 = vld [vmem:[%s17818_s9 + $0xb30] sm:$0xff] }
 0xdd2   : > { %6602 = vmatprep.mubr.f32.mxu0 %v5545_v14  ;;  %v16223_v2 = vadd.f32 %v5535_v20, %v4893_v41  ;;  %v8647_v63 = vpack.c.bf16 %v5876_v28, %v5873_v29  ;;  %v5853_v58 = vld [vmem:[%s17818_s9 + $0x958] sm:$0xff]  ;;  %v5891_v41 = vld [vmem:[%s17818_s9 + $0xa88] sm:$0xff]  ;;  %v5890_v20 = vld [vmem:[%s17818_s9 + $0xa80] sm:$0xff] }
 0xdd3   : > { %v9037_v29 = vpack.c.bf16 %v5853_v58, %v5850_v37  ;;  %v5893_v28 = vld [vmem:[%s17818_s9 + $0xa98] sm:$0xff] }
 0xdd4   : > { %8634 = vmatpush1.bf16.msra.mxu0 %v8633_v60  ;;  %9014 = vmatpush3.bf16.msra.mxu1 %v9013_v38  ;;  %v5872_v60 = vld [vmem:[%s17818_s9 + $0x9f0] sm:$0xff]  ;;  %v5875_v38 = vld [vmem:[%s17818_s9 + $0xa08] sm:$0xff]  ;;  %v5909_v13 = vld [vmem:[%s17818_s9 + $0xb18] sm:$0xff] }
 0xdd5   : > { %8636 = vmatprep.subr.bf16.mxu0 %v8635_v59  ;;  %9016 = vmatprep.subr.bf16.mxu1 %v9015_v50  ;;  %v5790_v59 = vld [vmem:[%s17818_s9 + $0x760] sm:$0xff]  ;;  %v5793_v50 = vld [vmem:[%s17818_s9 + $0x778] sm:$0xff]  ;;  %v8649_v5 = vpack.c.bf16 %v5875_v38, %v5872_v60  ;;  %v8671_v37 = vpack.c.bf16 %v5912_v46, %v5909_v13 }
 0xdd6   : > { %v9029_v1 = vpack.c.bf16 %v5793_v50, %v5790_v59  ;;  %v5910_v60 = vld [vmem:[%s17818_s9 + $0xb20] sm:$0xff]  ;;  %v5913_v38 = vld [vmem:[%s17818_s9 + $0xb38] sm:$0xff]  ;;  %v5896_v59 = vld [vmem:[%s17818_s9 + $0xab0] sm:$0xff] }
 0xdd7   : > { %v5899_v50 = vld [vmem:[%s17818_s9 + $0xac8] sm:$0xff]  ;;  %v9043_v55 = vpack.c.bf16 %v5913_v38, %v5910_v60  ;;  %v5921_v60 = vld [vmem:[%s17818_s9 + $0xb78] sm:$0xff]  ;;  %v5924_v38 = vld [vmem:[%s17818_s9 + $0xb90] sm:$0xff] }
 0xdd8   : > { %8638 = vmatpush1.bf16.msra.mxu0 %v8637_v62  ;;  %9018 = vmatpush3.bf16.msra.mxu1 %v9017_v49  ;;  %v5878_v62 = vld [vmem:[%s17818_s9 + $0xa20] sm:$0xff]  ;;  %v5881_v49 = vld [vmem:[%s17818_s9 + $0xa38] sm:$0xff] }
 0xdd9   : > { %8640 = vmatprep.subr.bf16.mxu0 %v8639_v4  ;;  %9020 = vmatprep.subr.bf16.mxu1 %v9019_v56  ;;  %v5844_v4 = vld [vmem:[%s17818_s9 + $0x910] sm:$0xff]  ;;  %v5847_v56 = vld [vmem:[%s17818_s9 + $0x928] sm:$0xff]  ;;  %v8653_v43 = vpack.c.bf16 %v5881_v49, %v5878_v62  ;;  %v8665_v62 = vpack.c.bf16 %v5899_v50, %v5896_v59  ;;  %v11134_v59 = vld [vmem:[%s17817_s8] sm:$0xff] }
 0xdda   : > { %v9033_v53 = vpack.c.bf16 %v5847_v56, %v5844_v4  ;;  %v8667_v4 = vpack.c.bf16 %v5906_v39, %v5903_v30  ;;  %v4857_v50 = vrot.slane %v11134_v59, %v4856_v47  ;;  %v8679_v30 = vpack.c.bf16 %v5924_v38, %v5921_v60  ;;  %v5886_v47 = vld [vmem:[%s17818_s9 + $0xa60] sm:$0xff]  ;;  %v5929_v13 = vld [vmem:[%s17818_s9 + $0xbb8] sm:$0xff]  ;;  %v5955_v59 = vld [vmem:[%s17818_s9 + $0xc88] sm:$0xff] }
 0xddb   : > { %v5941_v60 = vld [vmem:[%s17818_s9 + $0xc18] sm:$0xff] }
 0xddc   : > { %8642 = vmatpush1.bf16.msra.mxu0 %v8641_v51  ;;  %9022 = vmatpush3.bf16.msra.mxu1 %v9021_v57  ;;  %v5884_v51 = vld [vmem:[%s17818_s9 + $0xa50] sm:$0xff]  ;;  %v5887_v57 = vld [vmem:[%s17818_s9 + $0xa68] sm:$0xff] }
 0xddd   : > { %8644 = vmatprep.subr.bf16.mxu0 %v8643_v9  ;;  %9024 = vmatprep.subr.bf16.mxu1 %v9023_v44  ;;  %v5894_v9 = vld [vmem:[%s17818_s9 + $0xaa0] sm:$0xff]  ;;  %v5904_v44 = vld [vmem:[%s17818_s9 + $0xaf0] sm:$0xff]  ;;  %v8657_v12 = vpack.c.bf16 %v5887_v57, %v5884_v51  ;;  %v9049_v57 = vpack.c.bf16 %v5871_v48, %v5868_v45 }
 0xdde   : > { %v8659_v19 = vpack.c.bf16 %v5894_v9, %v5891_v41  ;;  %v9039_v27 = vpack.c.bf16 %v5907_v26, %v5904_v44  ;;  %v5874_v41 = vld [vmem:[%s17818_s9 + $0xa00] sm:$0xff]  ;;  %v5877_v9 = vld [vmem:[%s17818_s9 + $0xa18] sm:$0xff]  ;;  %v5915_v44 = vld [vmem:[%s17818_s9 + $0xb48] sm:$0xff] }
 0xddf   : > { %v5918_v26 = vld [vmem:[%s17818_s9 + $0xb60] sm:$0xff] }
 0xde0   : > { %8646 = vmatpush1.bf16.msra.mxu0 %v8645_v42  ;;  %9026 = vmatpush3.bf16.msra.mxu1 %v9025_v52  ;;  %v5897_v42 = vld [vmem:[%s17818_s9 + $0xab8] sm:$0xff]  ;;  %v5900_v52 = vld [vmem:[%s17818_s9 + $0xad0] sm:$0xff]  ;;  %v5926_v48 = vld [vmem:[%s17818_s9 + $0xba0] sm:$0xff] }
 0xde1   : > { %8648 = vmatprep.subr.bf16.mxu0 %v8647_v63  ;;  %9028 = vmatprep.subr.bf16.mxu1 %v9027_v24  ;;  %v8661_v63 = vpack.c.bf16 %v5893_v28, %v5890_v20  ;;  %v8663_v21 = vpack.c.bf16 %v5900_v52, %v5897_v42  ;;  %v9053_v28 = vpack.c.bf16 %v5877_v9, %v5874_v41  ;;  %v5880_v42 = vld [vmem:[%s17818_s9 + $0xa30] sm:$0xff]  ;;  %v5883_v52 = vld [vmem:[%s17818_s9 + $0xa48] sm:$0xff] }
 0xde2   : > { %v5932_v9 = vld [vmem:[%s17818_s9 + $0xbd0] sm:$0xff] }
 0xde4   : > { %8650 = vmatpush1.bf16.msra.mxu0 %v8649_v5  ;;  %9030 = vmatpush3.bf16.msra.mxu1 %v9029_v1  ;;  %v5916_v5 = vld [vmem:[%s17818_s9 + $0xb50] sm:$0xff]  ;;  %v5919_v1 = vld [vmem:[%s17818_s9 + $0xb68] sm:$0xff] }
 0xde5   : > { %8652 = vmatprep.subr.bf16.mxu0 %v8651_v18  ;;  %9032 = vmatprep.subr.bf16.mxu1 %v9031_v17  ;;  %v5902_v18 = vld [vmem:[%s17818_s9 + $0xae0] sm:$0xff]  ;;  %v5905_v17 = vld [vmem:[%s17818_s9 + $0xaf8] sm:$0xff]  ;;  %v9047_v56 = vpack.c.bf16 %v5919_v1, %v5916_v5  ;;  %v5927_v1 = vld [vmem:[%s17818_s9 + $0xba8] sm:$0xff] }
 0xde6   : > { %v8669_v51 = vpack.c.bf16 %v5905_v17, %v5902_v18  ;;  %v5889_v5 = vld [vmem:[%s17818_s9 + $0xa78] sm:$0xff]  ;;  %v5991_v18 = vld [vmem:[%s17818_s9 + $0xda8] sm:$0xff]  ;;  %v4869_v17 = vrot.slane %v15813_v34, %v15593_v8 }
 0xde7   : > { %7098 = vmatmul.mubr.f32.vlgmr.msra.gmra.mrb[20].mxu1 %v5542_v10  ;;  %v5859_v10 = vld [vmem:[%s17818_s9 + $0x988] sm:$0xff]  ;;  %v9061_v45 = vpack.c.bf16 %v5889_v5, %v5886_v47 }
 0xde8   : > { %8654 = vmatpush1.bf16.msra.mxu0 %v8653_v43  ;;  %9034 = vmatpush3.bf16.msra.mxu1 %v9033_v53  ;;  %v9041_v24 = vpack.c.bf16 %v5859_v10, %v5856_v23  ;;  %v5922_v43 = vld [vmem:[%s17818_s9 + $0xb80] sm:$0xff]  ;;  %v5925_v53 = vld [vmem:[%s17818_s9 + $0xb98] sm:$0xff]  ;;  %v8675_v23 = vpack.c.bf16 %v5918_v26, %v5915_v44  ;;  %v5943_v34 = vld [vmem:[%s17818_s9 + $0xc28] sm:$0xff] }
 0xde9   : > { %8656 = vmatprep.subr.bf16.mxu0 %v8655_v33  ;;  %9036 = vmatprep.subr.bf16.mxu1 %v9035_v32  ;;  %v5908_v33 = vld [vmem:[%s17818_s9 + $0xb10] sm:$0xff]  ;;  %v5911_v32 = vld [vmem:[%s17818_s9 + $0xb28] sm:$0xff]  ;;  %v9051_v58 = vpack.c.bf16 %v5925_v53, %v5922_v43  ;;  %v5933_v53 = vld [vmem:[%s17818_s9 + $0xbd8] sm:$0xff] }
 0xdea   : > { %7167 = vmatprep.mubr.f32.mxu1 %v5545_v14  ;;  %v5865_v14 = vld [vmem:[%s17818_s9 + $0x9b8] sm:$0xff]  ;;  %v8673_v20 = vpack.c.bf16 %v5911_v32, %v5908_v33  ;;  %v16480_v32 = vadd.f32 %v15826_v25, %v4869_v17  ;;  %v5935_v44 = vld [vmem:[%s17818_s9 + $0xbe8] sm:$0xff]  ;;  %v5946_v25 = vld [vmem:[%s17818_s9 + $0xc40] sm:$0xff] }
 0xdeb   : > { %v9045_v49 = vpack.c.bf16 %v5865_v14, %v5862_v22  ;;  %v5920_v22 = vld [vmem:[%s17818_s9 + $0xb70] sm:$0xff]  ;;  %v5923_v14 = vld [vmem:[%s17818_s9 + $0xb88] sm:$0xff]  ;;  %v5997_v33 = vld [vmem:[%s17818_s9 + $0xdd8] sm:$0xff] }
 0xdec   : > { %8658 = vmatpush1.bf16.msra.mxu0 %v8657_v12  ;;  %9038 = vmatpush3.bf16.msra.mxu1 %v9037_v29  ;;  %v5928_v12 = vld [vmem:[%s17818_s9 + $0xbb0] sm:$0xff]  ;;  %v5931_v29 = vld [vmem:[%s17818_s9 + $0xbc8] sm:$0xff]  ;;  %v5954_v17 = vld [vmem:[%s17818_s9 + $0xc80] sm:$0xff] }
 0xded   : > { %8660 = vmatprep.subr.bf16.mxu0 %v8659_v19  ;;  %9040 = vmatprep.subr.bf16.mxu1 %v9039_v27  ;;  %v5914_v19 = vld [vmem:[%s17818_s9 + $0xb40] sm:$0xff]  ;;  %v5917_v27 = vld [vmem:[%s17818_s9 + $0xb58] sm:$0xff]  ;;  %v9055_v10 = vpack.c.bf16 %v5931_v29, %v5928_v12  ;;  %v5947_v47 = vld [vmem:[%s17818_s9 + $0xc48] sm:$0xff] }
 0xdee   : > { %v5949_v29 = vld [vmem:[%s17818_s9 + $0xc58] sm:$0xff] }
 0xdf0   : > { %8662 = vmatpush1.bf16.msra.mxu0 %v8661_v63  ;;  %9042 = vmatpush3.bf16.msra.mxu1 %v9041_v24  ;;  %v5934_v63 = vld [vmem:[%s17818_s9 + $0xbe0] sm:$0xff]  ;;  %v5937_v24 = vld [vmem:[%s17818_s9 + $0xbf8] sm:$0xff] }
 0xdf1   : > { %8664 = vmatprep.subr.bf16.mxu0 %v8663_v21  ;;  %9044 = vmatprep.subr.bf16.mxu1 %v9043_v55  ;;  %v8677_v21 = vpack.c.bf16 %v5917_v27, %v5914_v19  ;;  %v9057_v55 = vpack.c.bf16 %v5883_v52, %v5880_v42  ;;  %v9059_v39 = vpack.c.bf16 %v5937_v24, %v5934_v63  ;;  %v6000_v19 = vld [vmem:[%s17818_s9 + $0xdf0] sm:$0xff]  ;;  %v6003_v27 = vld [vmem:[%s17818_s9 + $0xe08] sm:$0xff]  ;;  %v5938_v52 = vld [vmem:[%s17818_s9 + $0xc00] sm:$0xff] }
 0xdf2   : > { %v9069_v42 = vpack.c.bf16 %v5949_v29, %v5946_v25  ;;  %v9071_v63 = vpack.c.bf16 %v6003_v27, %v6000_v19  ;;  %v5952_v24 = vld [vmem:[%s17818_s9 + $0xc70] sm:$0xff]  ;;  %v5973_v25 = vld [vmem:[%s17818_s9 + $0xd18] sm:$0xff]  ;;  %v5963_v29 = vld [vmem:[%s17818_s9 + $0xcc8] sm:$0xff] }
 0xdf3   : > { %v6027_v19 = vld [vmem:[%s17818_s9 + $0xec8] sm:$0xff] }
 0xdf4   : > { %8666 = vmatpush1.bf16.msra.mxu0 %v8665_v62  ;;  %9046 = vmatpush3.bf16.msra.mxu1 %v9045_v49  ;;  %v5930_v62 = vld [vmem:[%s17818_s9 + $0xbc0] sm:$0xff]  ;;  %v5988_v49 = vld [vmem:[%s17818_s9 + $0xd90] sm:$0xff] }
 0xdf5   : > { %8668 = vmatprep.subr.bf16.mxu0 %v8667_v4  ;;  %9048 = vmatprep.subr.bf16.mxu1 %v9047_v56  ;;  %v16453_v4 = vadd.f32 %v15760_v16, %v4857_v50  ;;  %v8681_v56 = vpack.c.bf16 %v5923_v14, %v5920_v22  ;;  %v8683_v46 = vpack.c.bf16 %v5930_v62, %v5927_v1  ;;  %v5940_v16 = vld [vmem:[%s17818_s9 + $0xc10] sm:$0xff]  ;;  %v5945_v50 = vld [vmem:[%s17818_s9 + $0xc38] sm:$0xff]  ;;  %v5958_v62 = vld [vmem:[%s17818_s9 + $0xca0] sm:$0xff] }
 0xdf6   : > { %v9063_v43 = vpack.c.bf16 %v5991_v18, %v5988_v49  ;;  %v9065_v41 = vpack.c.bf16 %v5943_v34, %v5940_v16  ;;  %v6009_v22 = vld [vmem:[%s17818_s9 + $0xe38] sm:$0xff]  ;;  %v8693_v14 = vpack.c.bf16 %v5941_v60, %v5938_v52  ;;  %v5951_v18 = vld [vmem:[%s17818_s9 + $0xc68] sm:$0xff]  ;;  %v5964_v34 = vld [vmem:[%s17818_s9 + $0xcd0] sm:$0xff] }
 0xdf7   : > { %v5961_v49 = vld [vmem:[%s17818_s9 + $0xcb8] sm:$0xff] }
 0xdf8   : > { %8670 = vmatpush1.bf16.msra.mxu0 %v8669_v51  ;;  %9050 = vmatpush3.bf16.msra.mxu1 %v9049_v57  ;;  %v5936_v51 = vld [vmem:[%s17818_s9 + $0xbf0] sm:$0xff]  ;;  %v5994_v57 = vld [vmem:[%s17818_s9 + $0xdc0] sm:$0xff] }
 0xdf9   : > { %8672 = vmatprep.subr.bf16.mxu0 %v8671_v37  ;;  %9052 = vmatprep.subr.bf16.mxu1 %v9051_v58  ;;  %v5544_v37 = vmax.f32 %v16453_v4, 0.0  ;;  %v8685_v58 = vpack.c.bf16 %v5929_v13, %v5926_v48  ;;  %v8687_v26 = vpack.c.bf16 %v5936_v51, %v5933_v53  ;;  %v9067_v12 = vpack.c.bf16 %v5997_v33, %v5994_v57  ;;  %v6012_v4 = vld [vmem:[%s17818_s9 + $0xe50] sm:$0xff]  ;;  %v5950_v13 = vld [vmem:[%s17818_s9 + $0xc60] sm:$0xff]  ;;  %v5967_v53 = vld [vmem:[%s17818_s9 + $0xce8] sm:$0xff] }
 0xdfa   : > { %v9077_v48 = vpack.c.bf16 %v5961_v49, %v5958_v62  ;;  %v5957_v51 = vld [vmem:[%s17818_s9 + $0xc98] sm:$0xff]  ;;  %v5960_v57 = vld [vmem:[%s17818_s9 + $0xcb0] sm:$0xff]  ;;  %v6018_v33 = vld [vmem:[%s17818_s9 + $0xe80] sm:$0xff] }
 0xdfb   : > { %v5982_v62 = vld [vmem:[%s17818_s9 + $0xd60] sm:$0xff]  ;;  %v5985_v49 = vld [vmem:[%s17818_s9 + $0xd78] sm:$0xff] }
 0xdfc   : > { %8674 = vmatpush1.bf16.msra.mxu0 %v8673_v20  ;;  %9054 = vmatpush3.bf16.msra.mxu1 %v9053_v28  ;;  %v5939_v20 = vld [vmem:[%s17818_s9 + $0xc08] sm:$0xff]  ;;  %v5942_v28 = vld [vmem:[%s17818_s9 + $0xc20] sm:$0xff] }
 0xdfd   : > { %8676 = vmatprep.subr.bf16.mxu0 %v8675_v23  ;;  %9056 = vmatprep.subr.bf16.mxu1 %v9055_v10  ;;  %v5547_v23 = vmax.f32 %v16480_v32, 0.0  ;;  %v8689_v10 = vpack.c.bf16 %v5935_v44, %v5932_v9  ;;  %v8691_v38 = vpack.c.bf16 %v5942_v28, %v5939_v20  ;;  %v6021_v32 = vld [vmem:[%s17818_s9 + $0xe98] sm:$0xff]  ;;  %v5959_v9 = vld [vmem:[%s17818_s9 + $0xca8] sm:$0xff]  ;;  %v8703_v44 = vpack.c.bf16 %v5960_v57, %v5957_v51  ;;  %v5966_v20 = vld [vmem:[%s17818_s9 + $0xce0] sm:$0xff] }
 0xdfe   : > { %v6024_v28 = vld [vmem:[%s17818_s9 + $0xeb0] sm:$0xff]  ;;  %v8707_v52 = vpack.c.bf16 %v5966_v20, %v5963_v29  ;;  %v5981_v51 = vld [vmem:[%s17818_s9 + $0xd58] sm:$0xff]  ;;  %v5987_v20 = vld [vmem:[%s17818_s9 + $0xd88] sm:$0xff] }
 0xdff   : > { %v9087_v60 = vpack.c.bf16 %v6027_v19, %v6024_v28  ;;  %v5984_v57 = vld [vmem:[%s17818_s9 + $0xd70] sm:$0xff]  ;;  %v6045_v29 = vld [vmem:[%s17818_s9 + $0xf58] sm:$0xff]  ;;  %v5990_v28 = vld [vmem:[%s17818_s9 + $0xda0] sm:$0xff] }
 0xe00   : > { %8678 = vmatpush1.bf16.msra.mxu0 %v8677_v21  ;;  %9058 = vmatpush3.bf16.msra.mxu1 %v9057_v55  ;;  %v5948_v21 = vld [vmem:[%s17818_s9 + $0xc50] sm:$0xff]  ;;  %v6006_v55 = vld [vmem:[%s17818_s9 + $0xe20] sm:$0xff] }
 0xe01   : > { %8680 = vmatprep.subr.bf16.mxu0 %v8679_v30  ;;  %9060 = vmatprep.subr.bf16.mxu1 %v9059_v39  ;;  %v9073_v30 = vpack.c.bf16 %v5955_v59, %v5952_v24  ;;  %v5944_v39 = vld [vmem:[%s17818_s9 + $0xc30] sm:$0xff]  ;;  %v8695_v5 = vpack.c.bf16 %v5948_v21, %v5945_v50  ;;  %v9075_v1 = vpack.c.bf16 %v6009_v22, %v6006_v55  ;;  %v5969_v24 = vld [vmem:[%s17818_s9 + $0xcf8] sm:$0xff]  ;;  %v6030_v50 = vld [vmem:[%s17818_s9 + $0xee0] sm:$0xff] }
 0xe02   : > { %v5972_v59 = vld [vmem:[%s17818_s9 + $0xd10] sm:$0xff]  ;;  %v6033_v21 = vld [vmem:[%s17818_s9 + $0xef8] sm:$0xff]  ;;  %v16631_v55 = vld [vmem:[%s17817_s8 + $0x8] sm:$0xff] }
 0xe03   : > { %v4865_v22 = vrot.slane %v16631_v55, %v15585_v40  ;;  %v6096_v19 = vld [vmem:[%s17818_s9 + $0x10f0] sm:$0xff] }
 0xe04   : > { %8682 = vmatpush1.bf16.msra.mxu0 %v8681_v56  ;;  %9062 = vmatpush3.bf16.msra.mxu1 %v9061_v45  ;;  %v6015_v56 = vld [vmem:[%s17818_s9 + $0xe68] sm:$0xff]  ;;  %v8697_v45 = vpack.c.bf16 %v5947_v47, %v5944_v39  ;;  %v5968_v39 = vld [vmem:[%s17818_s9 + $0xcf0] sm:$0xff] }
 0xe05   : > { %8684 = vmatprep.subr.bf16.mxu0 %v8683_v46  ;;  %9064 = vmatprep.subr.bf16.mxu1 %v9063_v43  ;;  %v5953_v46 = vld [vmem:[%s17818_s9 + $0xc78] sm:$0xff]  ;;  %v8699_v43 = vpack.c.bf16 %v5954_v17, %v5951_v18  ;;  %v9079_v16 = vpack.c.bf16 %v6015_v56, %v6012_v4  ;;  %v5971_v47 = vld [vmem:[%s17818_s9 + $0xd08] sm:$0xff]  ;;  %v5978_v17 = vld [vmem:[%s17818_s9 + $0xd40] sm:$0xff] }
 0xe06   : > { %v5975_v18 = vld [vmem:[%s17818_s9 + $0xd28] sm:$0xff]  ;;  %v6084_v4 = vld [vmem:[%s17818_s9 + $0x1090] sm:$0xff] }
 0xe07   : > { %7168 = vmatmul.mubr.f32.vlgmr.msra.gmra.mrb[22].mxu1 %v5544_v37  ;;  %v6087_v56 = vld [vmem:[%s17818_s9 + $0x10a8] sm:$0xff] }
 0xe08   : > { %8686 = vmatpush1.bf16.msra.mxu0 %v8685_v58  ;;  %9066 = vmatpush3.bf16.msra.mxu1 %v9065_v41  ;;  %v9081_v58 = vpack.c.bf16 %v5967_v53, %v5964_v34  ;;  %v5956_v41 = vld [vmem:[%s17818_s9 + $0xc90] sm:$0xff]  ;;  %v8715_v34 = vpack.c.bf16 %v5978_v17, %v5975_v18  ;;  %v9095_v53 = vpack.c.bf16 %v6087_v56, %v6084_v4  ;;  %v6057_v18 = vld [vmem:[%s17818_s9 + $0xfb8] sm:$0xff]  ;;  %v5999_v17 = vld [vmem:[%s17818_s9 + $0xde8] sm:$0xff] }
 0xe09   : > { %8688 = vmatprep.subr.bf16.mxu0 %v8687_v26  ;;  %9068 = vmatprep.subr.bf16.mxu1 %v9067_v12  ;;  %v9083_v26 = vpack.c.bf16 %v6021_v32, %v6018_v33  ;;  %v5970_v12 = vld [vmem:[%s17818_s9 + $0xd00] sm:$0xff]  ;;  %v8705_v27 = vpack.c.bf16 %v5959_v9, %v5956_v41  ;;  %v6093_v32 = vld [vmem:[%s17818_s9 + $0x10d8] sm:$0xff]  ;;  %v6108_v56 = vld [vmem:[%s17818_s9 + $0x1150] sm:$0xff] }
 0xe0a   : > { %7237 = vmatprep.mubr.f32.mxu1 %v5547_v23  ;;  %v6090_v33 = vld [vmem:[%s17818_s9 + $0x10c0] sm:$0xff] }
 0xe0b   : > { %v6002_v4 = vld [vmem:[%s17818_s9 + $0xe00] sm:$0xff] }
 0xe0c   : > { %8690 = vmatpush1.bf16.msra.mxu0 %v8689_v10  ;;  %9070 = vmatpush3.bf16.msra.mxu1 %v9069_v42  ;;  %v5962_v10 = vld [vmem:[%s17818_s9 + $0xcc0] sm:$0xff]  ;;  %v5965_v42 = vld [vmem:[%s17818_s9 + $0xcd8] sm:$0xff] }
 0xe0d   : > { %8692 = vmatprep.subr.bf16.mxu0 %v8691_v38  ;;  %9072 = vmatprep.subr.bf16.mxu1 %v9071_v63  ;;  %v5976_v38 = vld [vmem:[%s17818_s9 + $0xd30] sm:$0xff]  ;;  %v5979_v63 = vld [vmem:[%s17818_s9 + $0xd48] sm:$0xff] }
 0xe0f   : > { %6603 = vmatmul.mubr.f32.vlgmr.msra.gmra.mrb[2].mxu0 %v5544_v37  ;;  %v8701_v37 = vpack.c.bf16 %v5953_v46, %v5950_v13  ;;  %v8713_v13 = vpack.c.bf16 %v5971_v47, %v5968_v39  ;;  %v9093_v46 = vpack.c.bf16 %v5985_v49, %v5982_v62  ;;  %v5992_v47 = vld [vmem:[%s17818_s9 + $0xdb0] sm:$0xff]  ;;  %v6054_v49 = vld [vmem:[%s17818_s9 + $0xfa0] sm:$0xff] }
 0xe10   : > { %8694 = vmatpush1.bf16.msra.mxu0 %v8693_v14  ;;  %9074 = vmatpush3.bf16.msra.mxu1 %v9073_v30  ;;  %v8709_v14 = vpack.c.bf16 %v5965_v42, %v5962_v10  ;;  %v9089_v30 = vpack.c.bf16 %v5979_v63, %v5976_v38  ;;  %v8723_v38 = vpack.c.bf16 %v5990_v28, %v5987_v20  ;;  %v6011_v20 = vld [vmem:[%s17818_s9 + $0xe48] sm:$0xff]  ;;  %v6014_v28 = vld [vmem:[%s17818_s9 + $0xe60] sm:$0xff] }
 0xe11   : > { %8696 = vmatprep.subr.bf16.mxu0 %v8695_v5  ;;  %9076 = vmatprep.subr.bf16.mxu1 %v9075_v1  ;;  %v8711_v5 = vpack.c.bf16 %v5972_v59, %v5969_v24  ;;  %v9091_v1 = vpack.c.bf16 %v6033_v21, %v6030_v50  ;;  %v6048_v24 = vld [vmem:[%s17818_s9 + $0xf70] sm:$0xff]  ;;  %v6051_v59 = vld [vmem:[%s17818_s9 + $0xf88] sm:$0xff]  ;;  %v5993_v50 = vld [vmem:[%s17818_s9 + $0xdb8] sm:$0xff] }
 0xe12   : > { %6673 = vmatprep.mubr.f32.mxu0 %v5547_v23  ;;  %v9085_v23 = vpack.c.bf16 %v5973_v25, %v5970_v12  ;;  %v8719_v12 = vpack.c.bf16 %v5984_v57, %v5981_v51  ;;  %v9099_v25 = vpack.c.bf16 %v6093_v32, %v6090_v33  ;;  %v5996_v21 = vld [vmem:[%s17818_s9 + $0xdd0] sm:$0xff]  ;;  %v9105_v39 = vpack.c.bf16 %v6051_v59, %v6048_v24  ;;  %v6005_v51 = vld [vmem:[%s17818_s9 + $0xe18] sm:$0xff]  ;;  %v6114_v33 = vld [vmem:[%s17818_s9 + $0x1180] sm:$0xff] }
 0xe13   : > { %v6008_v57 = vld [vmem:[%s17818_s9 + $0xe30] sm:$0xff]  ;;  %v6117_v32 = vld [vmem:[%s17818_s9 + $0x1198] sm:$0xff]  ;;  %v6075_v59 = vld [vmem:[%s17818_s9 + $0x1048] sm:$0xff] }
 0xe14   : > { %8698 = vmatpush1.bf16.msra.mxu0 %v8697_v45  ;;  %9078 = vmatpush3.bf16.msra.mxu1 %v9077_v48  ;;  %v4877_v45 = vrot.slane %v16631_v55, %v4844_v7  ;;  %v16663_v48 = vadd.f32 %v15815_v54, %v4865_v22  ;;  %v6036_v7 = vld [vmem:[%s17818_s9 + $0xf10] sm:$0xff]  ;;  %v6039_v54 = vld [vmem:[%s17818_s9 + $0xf28] sm:$0xff]  ;;  %v6102_v22 = vld [vmem:[%s17818_s9 + $0x1120] sm:$0xff] }
 0xe15   : > { %8700 = vmatprep.subr.bf16.mxu0 %v8699_v43  ;;  %9080 = vmatprep.subr.bf16.mxu1 %v9079_v16  ;;  %v5974_v43 = vld [vmem:[%s17818_s9 + $0xd20] sm:$0xff]  ;;  %v5977_v16 = vld [vmem:[%s17818_s9 + $0xd38] sm:$0xff]  ;;  %v9097_v9 = vpack.c.bf16 %v6039_v54, %v6036_v7  ;;  %v6060_v7 = vld [vmem:[%s17818_s9 + $0xfd0] sm:$0xff] }
 0xe16   : > { %v8717_v41 = vpack.c.bf16 %v5977_v16, %v5974_v43  ;;  %v5998_v43 = vld [vmem:[%s17818_s9 + $0xde0] sm:$0xff]  ;;  %v6001_v16 = vld [vmem:[%s17818_s9 + $0xdf8] sm:$0xff]  ;;  %v6063_v54 = vld [vmem:[%s17818_s9 + $0xfe8] sm:$0xff] }
 0xe17   : > { %v6072_v24 = vld [vmem:[%s17818_s9 + $0x1030] sm:$0xff] }
 0xe18   : > { %8702 = vmatpush1.bf16.msra.mxu0 %v8701_v37  ;;  %9082 = vmatpush3.bf16.msra.mxu1 %v9081_v58  ;;  %v16690_v37 = vadd.f32 %v16036_v11, %v4877_v45  ;;  %v5546_v58 = vmax.f32 %v16663_v48, 0.0  ;;  %v6042_v11 = vld [vmem:[%s17818_s9 + $0xf40] sm:$0xff]  ;;  %v6111_v45 = vld [vmem:[%s17818_s9 + $0x1168] sm:$0xff]  ;;  %v6156_v48 = vld [vmem:[%s17818_s9 + $0x12d0] sm:$0xff] }
 0xe19   : > { %8704 = vmatprep.subr.bf16.mxu0 %v8703_v44  ;;  %9084 = vmatprep.subr.bf16.mxu1 %v9083_v26  ;;  %v5980_v44 = vld [vmem:[%s17818_s9 + $0xd50] sm:$0xff]  ;;  %v5983_v26 = vld [vmem:[%s17818_s9 + $0xd68] sm:$0xff]  ;;  %v9101_v42 = vpack.c.bf16 %v6045_v29, %v6042_v11  ;;  %v6066_v11 = vld [vmem:[%s17818_s9 + $0x1000] sm:$0xff] }
 0xe1a   : > { %v8721_v10 = vpack.c.bf16 %v5983_v26, %v5980_v44  ;;  %v6004_v44 = vld [vmem:[%s17818_s9 + $0xe10] sm:$0xff]  ;;  %v6007_v26 = vld [vmem:[%s17818_s9 + $0xe28] sm:$0xff]  ;;  %v6069_v29 = vld [vmem:[%s17818_s9 + $0x1018] sm:$0xff] }
 0xe1c   : > { %8706 = vmatpush1.bf16.msra.mxu0 %v8705_v27  ;;  %9086 = vmatpush3.bf16.msra.mxu1 %v9085_v23  ;;  %v6099_v27 = vld [vmem:[%s17818_s9 + $0x1108] sm:$0xff]  ;;  %v5549_v23 = vmax.f32 %v16690_v37, 0.0  ;;  %v6162_v37 = vld [vmem:[%s17818_s9 + $0x1300] sm:$0xff] }
 0xe1d   : > { %8708 = vmatprep.subr.bf16.mxu0 %v8707_v52  ;;  %9088 = vmatprep.subr.bf16.mxu1 %v9087_v60  ;;  %v5986_v52 = vld [vmem:[%s17818_s9 + $0xd80] sm:$0xff]  ;;  %v5989_v60 = vld [vmem:[%s17818_s9 + $0xd98] sm:$0xff]  ;;  %v9103_v63 = vpack.c.bf16 %v6099_v27, %v6096_v19  ;;  %v6120_v19 = vld [vmem:[%s17818_s9 + $0x11b0] sm:$0xff] }
 0xe1e   : > { %v6123_v27 = vld [vmem:[%s17818_s9 + $0x11c8] sm:$0xff] }
 0xe20   : > { %8710 = vmatpush1.bf16.msra.mxu0 %v8709_v14  ;;  %9090 = vmatpush3.bf16.msra.mxu1 %v9089_v30  ;;  %v6105_v14 = vld [vmem:[%s17818_s9 + $0x1138] sm:$0xff]  ;;  %v8725_v30 = vpack.c.bf16 %v5989_v60, %v5986_v52  ;;  %v6010_v52 = vld [vmem:[%s17818_s9 + $0xe40] sm:$0xff] }
 0xe21   : > { %8712 = vmatprep.subr.bf16.mxu0 %v8711_v5  ;;  %9092 = vmatprep.subr.bf16.mxu1 %v9091_v1  ;;  %v5995_v5 = vld [vmem:[%s17818_s9 + $0xdc8] sm:$0xff]  ;;  %v8727_v1 = vpack.c.bf16 %v5996_v21, %v5993_v50  ;;  %v9107_v62 = vpack.c.bf16 %v6105_v14, %v6102_v22  ;;  %v6013_v60 = vld [vmem:[%s17818_s9 + $0xe58] sm:$0xff]  ;;  %v6020_v21 = vld [vmem:[%s17818_s9 + $0xe90] sm:$0xff] }
 0xe22   : > { %v6017_v50 = vld [vmem:[%s17818_s9 + $0xe78] sm:$0xff]  ;;  %v6126_v22 = vld [vmem:[%s17818_s9 + $0x11e0] sm:$0xff] }
 0xe23   : > { %v6129_v14 = vld [vmem:[%s17818_s9 + $0x11f8] sm:$0xff] }
 0xe24   : > { %8714 = vmatpush1.bf16.msra.mxu0 %v8713_v13  ;;  %9094 = vmatpush3.bf16.msra.mxu1 %v9093_v46  ;;  %v8729_v13 = vpack.c.bf16 %v5995_v5, %v5992_v47  ;;  %v9109_v46 = vpack.c.bf16 %v6057_v18, %v6054_v49  ;;  %v9121_v47 = vpack.c.bf16 %v6075_v59, %v6072_v24  ;;  %v6016_v5 = vld [vmem:[%s17818_s9 + $0xe70] sm:$0xff]  ;;  %v6078_v18 = vld [vmem:[%s17818_s9 + $0x1060] sm:$0xff] }
 0xe25   : > { %8716 = vmatprep.subr.bf16.mxu0 %v8715_v34  ;;  %9096 = vmatprep.subr.bf16.mxu1 %v9095_v53  ;;  %v8731_v34 = vpack.c.bf16 %v6002_v4, %v5999_v17  ;;  %v9111_v53 = vpack.c.bf16 %v6111_v45, %v6108_v56  ;;  %v9123_v49 = vpack.c.bf16 %v6129_v14, %v6126_v22  ;;  %v6081_v17 = vld [vmem:[%s17818_s9 + $0x1078] sm:$0xff]  ;;  %v6023_v4 = vld [vmem:[%s17818_s9 + $0xea8] sm:$0xff]  ;;  %v6026_v56 = vld [vmem:[%s17818_s9 + $0xec0] sm:$0xff] }
 0xe26   : > { %v6180_v45 = vld [vmem:[%s17818_s9 + $0x1390] sm:$0xff]  ;;  %v6198_v14 = vld [vmem:[%s17818_s9 + $0x1420] sm:$0xff] }
 0xe27   : > { %7238 = vmatmul.mubr.f32.vlgmr.msra.gmra.mrb[24].mxu1 %v5546_v58  ;;  %v6144_v59 = vld [vmem:[%s17818_s9 + $0x1270] sm:$0xff] }
 0xe28   : > { %8718 = vmatpush1.bf16.msra.mxu0 %v8717_v41  ;;  %9098 = vmatpush3.bf16.msra.mxu1 %v9097_v9  ;;  %v8733_v41 = vpack.c.bf16 %v6001_v16, %v5998_v43  ;;  %v9113_v9 = vpack.c.bf16 %v6063_v54, %v6060_v7  ;;  %v8747_v7 = vpack.c.bf16 %v6026_v56, %v6023_v4  ;;  %v6044_v22 = vld [vmem:[%s17818_s9 + $0xf50] sm:$0xff]  ;;  %v6047_v4 = vld [vmem:[%s17818_s9 + $0xf68] sm:$0xff]  ;;  %v6050_v56 = vld [vmem:[%s17818_s9 + $0xf80] sm:$0xff] }
 0xe29   : > { %8720 = vmatprep.subr.bf16.mxu0 %v8719_v12  ;;  %9100 = vmatprep.subr.bf16.mxu1 %v9099_v25  ;;  %v8735_v12 = vpack.c.bf16 %v6008_v57, %v6005_v51  ;;  %v9115_v25 = vpack.c.bf16 %v6117_v32, %v6114_v33  ;;  %v6032_v51 = vld [vmem:[%s17818_s9 + $0xef0] sm:$0xff]  ;;  %v6186_v32 = vld [vmem:[%s17818_s9 + $0x13c0] sm:$0xff] }
 0xe2a   : > { %7307 = vmatprep.mubr.f32.mxu1 %v5549_v23 }
 0xe2c   : > { %8722 = vmatpush1.bf16.msra.mxu0 %v8721_v10  ;;  %9102 = vmatpush3.bf16.msra.mxu1 %v9101_v42  ;;  %v8737_v10 = vpack.c.bf16 %v6007_v26, %v6004_v44  ;;  %v9117_v42 = vpack.c.bf16 %v6069_v29, %v6066_v11  ;;  %v6028_v26 = vld [vmem:[%s17818_s9 + $0xed0] sm:$0xff]  ;;  %v6141_v11 = vld [vmem:[%s17818_s9 + $0x1258] sm:$0xff]  ;;  %v6035_v29 = vld [vmem:[%s17818_s9 + $0xf08] sm:$0xff] }
 0xe2d   : > { %8724 = vmatprep.subr.bf16.mxu0 %v8723_v38  ;;  %9104 = vmatprep.subr.bf16.mxu1 %v9103_v63  ;;  %v8739_v38 = vpack.c.bf16 %v6014_v28, %v6011_v20  ;;  %v9119_v63 = vpack.c.bf16 %v6123_v27, %v6120_v19  ;;  %v6038_v28 = vld [vmem:[%s17818_s9 + $0xf20] sm:$0xff]  ;;  %v6192_v19 = vld [vmem:[%s17818_s9 + $0x13f0] sm:$0xff]  ;;  %v6195_v27 = vld [vmem:[%s17818_s9 + $0x1408] sm:$0xff] }
 0xe2e   : > { %v9135_v24 = vpack.c.bf16 %v6195_v27, %v6192_v19  ;;  %v6061_v19 = vld [vmem:[%s17818_s9 + $0xfd8] sm:$0xff] }
 0xe30   : > { %8726 = vmatpush1.bf16.msra.mxu0 %v8725_v30  ;;  %9106 = vmatpush3.bf16.msra.mxu1 %v9105_v39  ;;  %v4873_v30 = vrot.slane %v16631_v55, %v15602_v36  ;;  %v8741_v39 = vpack.c.bf16 %v6013_v60, %v6010_v52  ;;  %v6034_v60 = vld [vmem:[%s17818_s9 + $0xf00] sm:$0xff] }
 0xe31   : > { %8728 = vmatprep.subr.bf16.mxu0 %v8727_v1  ;;  %9108 = vmatprep.subr.bf16.mxu1 %v9107_v62  ;;  %v6019_v1 = vld [vmem:[%s17818_s9 + $0xe88] sm:$0xff]  ;;  %v8743_v62 = vpack.c.bf16 %v6020_v21, %v6017_v50  ;;  %v6041_v21 = vld [vmem:[%s17818_s9 + $0xf38] sm:$0xff] }
 0xe32   : > { %v16872_v43 = vadd.f32 %v16025_v61, %v4873_v30  ;;  %v8745_v16 = vpack.c.bf16 %v6019_v1, %v6016_v5  ;;  %v6135_v61 = vld [vmem:[%s17818_s9 + $0x1228] sm:$0xff]  ;;  %v6201_v30 = vld [vmem:[%s17818_s9 + $0x1438] sm:$0xff]  ;;  %v6040_v5 = vld [vmem:[%s17818_s9 + $0xf30] sm:$0xff] }
 0xe33   : > { %v6147_v50 = vld [vmem:[%s17818_s9 + $0x1288] sm:$0xff] }
 0xe34   : > { %8730 = vmatpush1.bf16.msra.mxu0 %v8729_v13  ;;  %9110 = vmatpush3.bf16.msra.mxu1 %v9109_v46  ;;  %v6183_v13 = vld [vmem:[%s17818_s9 + $0x13a8] sm:$0xff]  ;;  %v4885_v46 = vrot.slane %v16631_v55, %v4852_v6  ;;  %v6132_v6 = vld [vmem:[%s17818_s9 + $0x1210] sm:$0xff]  ;;  %v6029_v55 = vld [vmem:[%s17818_s9 + $0xed8] sm:$0xff]  ;;  %v5548_v33 = vmax.f32 %v16872_v43, 0.0 }
 0xe35   : > { %8732 = vmatprep.subr.bf16.mxu0 %v8731_v34  ;;  %9112 = vmatprep.subr.bf16.mxu1 %v9111_v53  ;;  %v9125_v34 = vpack.c.bf16 %v6081_v17, %v6078_v18  ;;  %v6022_v53 = vld [vmem:[%s17818_s9 + $0xea0] sm:$0xff]  ;;  %v9127_v54 = vpack.c.bf16 %v6183_v13, %v6180_v45  ;;  %v9129_v44 = vpack.c.bf16 %v6135_v61, %v6132_v6  ;;  %v6043_v1 = vld [vmem:[%s17818_s9 + $0xf48] sm:$0xff]  ;;  %v6153_v17 = vld [vmem:[%s17818_s9 + $0x12b8] sm:$0xff] }
 0xe36   : > { %v16893_v57 = vadd.f32 %v15831_v35, %v4885_v46  ;;  %v6031_v35 = vld [vmem:[%s17818_s9 + $0xee8] sm:$0xff]  ;;  %v6150_v18 = vld [vmem:[%s17818_s9 + $0x12a0] sm:$0xff]  ;;  %v6204_v45 = vld [vmem:[%s17818_s9 + $0x1450] sm:$0xff]  ;;  %v8761_v46 = vpack.c.bf16 %v6043_v1, %v6040_v5 }
 0xe37   : > { %v6207_v13 = vld [vmem:[%s17818_s9 + $0x1468] sm:$0xff]  ;;  %v6056_v6 = vld [vmem:[%s17818_s9 + $0xfb0] sm:$0xff]  ;;  %v6210_v61 = vld [vmem:[%s17818_s9 + $0x1480] sm:$0xff] }
 0xe38   : > { %8734 = vmatpush1.bf16.msra.mxu0 %v8733_v41  ;;  %9114 = vmatpush3.bf16.msra.mxu1 %v9113_v9  ;;  %v6189_v41 = vld [vmem:[%s17818_s9 + $0x13d8] sm:$0xff]  ;;  %v8749_v9 = vpack.c.bf16 %v6025_v31, %v6022_v53  ;;  %v9143_v31 = vpack.c.bf16 %v6207_v13, %v6204_v45  ;;  %v6174_v1 = vld [vmem:[%s17818_s9 + $0x1360] sm:$0xff]  ;;  %v6300_v43 = vld [vmem:[%s17818_s9 + $0x1750] sm:$0xff] }
 0xe39   : > { %8736 = vmatprep.subr.bf16.mxu0 %v8735_v12  ;;  %9116 = vmatprep.subr.bf16.mxu1 %v9115_v25  ;;  %v8751_v12 = vpack.c.bf16 %v6032_v51, %v6029_v55  ;;  %v6138_v25 = vld [vmem:[%s17818_s9 + $0x1240] sm:$0xff]  ;;  %v9131_v20 = vpack.c.bf16 %v6189_v41, %v6186_v32  ;;  %v6049_v53 = vld [vmem:[%s17818_s9 + $0xf78] sm:$0xff]  ;;  %v6052_v41 = vld [vmem:[%s17818_s9 + $0xf90] sm:$0xff] }
 0xe3a   : > { %v9133_v52 = vpack.c.bf16 %v6141_v11, %v6138_v25  ;;  %v6213_v55 = vld [vmem:[%s17818_s9 + $0x1498] sm:$0xff]  ;;  %v6216_v25 = vld [vmem:[%s17818_s9 + $0x14b0] sm:$0xff]  ;;  %v6219_v11 = vld [vmem:[%s17818_s9 + $0x14c8] sm:$0xff] }
 0xe3b   : > { %v6073_v13 = vld [vmem:[%s17818_s9 + $0x1038] sm:$0xff] }
 0xe3c   : > { %8738 = vmatpush1.bf16.msra.mxu0 %v8737_v10  ;;  %9118 = vmatpush3.bf16.msra.mxu1 %v9117_v42  ;;  %v5551_v10 = vmax.f32 %v16893_v57, 0.0  ;;  %v8753_v42 = vpack.c.bf16 %v6031_v35, %v6028_v26  ;;  %v9147_v26 = vpack.c.bf16 %v6213_v55, %v6210_v61  ;;  %v6059_v35 = vld [vmem:[%s17818_s9 + $0xfc8] sm:$0xff]  ;;  %v6234_v55 = vld [vmem:[%s17818_s9 + $0x1540] sm:$0xff] }
 0xe3d   : > { %8740 = vmatprep.subr.bf16.mxu0 %v8739_v38  ;;  %9120 = vmatprep.subr.bf16.mxu1 %v9119_v63  ;;  %v6037_v38 = vld [vmem:[%s17818_s9 + $0xf18] sm:$0xff]  ;;  %v8755_v63 = vpack.c.bf16 %v6038_v28, %v6035_v29  ;;  %v6058_v28 = vld [vmem:[%s17818_s9 + $0xfc0] sm:$0xff]  ;;  %v6079_v61 = vld [vmem:[%s17818_s9 + $0x1068] sm:$0xff] }
 0xe3e   : > { %v6303_v57 = vld [vmem:[%s17818_s9 + $0x1768] sm:$0xff] }
 0xe40   : > { %8742 = vmatpush1.bf16.msra.mxu0 %v8741_v39  ;;  %9122 = vmatpush3.bf16.msra.mxu1 %v9121_v47  ;;  %v8757_v39 = vpack.c.bf16 %v6037_v38, %v6034_v60  ;;  %v9137_v47 = vpack.c.bf16 %v6147_v50, %v6144_v59  ;;  %v6171_v60 = vld [vmem:[%s17818_s9 + $0x1348] sm:$0xff]  ;;  %v6065_v38 = vld [vmem:[%s17818_s9 + $0xff8] sm:$0xff]  ;;  %v6222_v59 = vld [vmem:[%s17818_s9 + $0x14e0] sm:$0xff] }
 0xe41   : > { %8744 = vmatprep.subr.bf16.mxu0 %v8743_v62  ;;  %9124 = vmatprep.subr.bf16.mxu1 %v9123_v49  ;;  %v8759_v62 = vpack.c.bf16 %v6044_v22, %v6041_v21  ;;  %v9139_v49 = vpack.c.bf16 %v6201_v30, %v6198_v14  ;;  %v6225_v50 = vld [vmem:[%s17818_s9 + $0x14f8] sm:$0xff]  ;;  %v8773_v22 = vpack.c.bf16 %v6061_v19, %v6058_v28  ;;  %v6064_v30 = vld [vmem:[%s17818_s9 + $0xff0] sm:$0xff] }
 0xe42   : > { %v9155_v5 = vpack.c.bf16 %v6225_v50, %v6222_v59  ;;  %v6088_v19 = vld [vmem:[%s17818_s9 + $0x10b0] sm:$0xff] }
 0xe44   : > { %8746 = vmatpush1.bf16.msra.mxu0 %v8745_v16  ;;  %9126 = vmatpush3.bf16.msra.mxu1 %v9125_v34  ;;  %v9141_v16 = vpack.c.bf16 %v6153_v17, %v6150_v18  ;;  %v6046_v34 = vld [vmem:[%s17818_s9 + $0xf60] sm:$0xff] }
 0xe45   : > { %8748 = vmatprep.subr.bf16.mxu0 %v8747_v7  ;;  %9128 = vmatprep.subr.bf16.mxu1 %v9127_v54  ;;  %v8763_v7 = vpack.c.bf16 %v6050_v56, %v6047_v4  ;;  %v6053_v54 = vld [vmem:[%s17818_s9 + $0xf98] sm:$0xff]  ;;  %v8765_v51 = vpack.c.bf16 %v6049_v53, %v6046_v34  ;;  %v6074_v18 = vld [vmem:[%s17818_s9 + $0x1040] sm:$0xff]  ;;  %v6080_v53 = vld [vmem:[%s17818_s9 + $0x1070] sm:$0xff] }
 0xe46   : > { %v6070_v56 = vld [vmem:[%s17818_s9 + $0x1020] sm:$0xff]  ;;  %v6077_v34 = vld [vmem:[%s17818_s9 + $0x1058] sm:$0xff] }
 0xe47   : > { %7308 = vmatmul.mubr.f32.vlgmr.msra.gmra.mrb[26].mxu1 %v5548_v33 }
 0xe48   : > { %8750 = vmatpush1.bf16.msra.mxu0 %v8749_v9  ;;  %9130 = vmatpush3.bf16.msra.mxu1 %v9129_v44  ;;  %v6055_v9 = vld [vmem:[%s17818_s9 + $0xfa8] sm:$0xff]  ;;  %v8767_v44 = vpack.c.bf16 %v6056_v6, %v6053_v54  ;;  %v11183_v54 = vmov 0.0|0.0   ;;  %v8783_v6 = vpack.c.bf16 %v6080_v53, %v6077_v34  ;;  %v6106_v53 = vld [vmem:[%s17818_s9 + $0x1140] sm:$0xff] }
 0xe49   : > { %7377 = vmatprep.mubr.f32.mxu1 %v5551_v10  ;;  %8752 = vmatprep.subr.bf16.mxu0 %v8751_v12  ;;  %v6062_v12 = vld [vmem:[%s17818_s9 + $0xfe0] sm:$0xff]  ;;  %v8769_v29 = vpack.c.bf16 %v6055_v9, %v6052_v41  ;;  %v6083_v41 = vld [vmem:[%s17818_s9 + $0x1088] sm:$0xff] }
 0xe4a   : > { %9132 = vmatprep.subr.bf16.mxu1 %v9131_v20  ;;  %v8771_v27 = vpack.c.bf16 %v6062_v12, %v6059_v35  ;;  %v6086_v9 = vld [vmem:[%s17818_s9 + $0x10a0] sm:$0xff]  ;;  %v6085_v35 = vld [vmem:[%s17818_s9 + $0x1098] sm:$0xff]  ;;  %v6240_v12 = vld [vmem:[%s17818_s9 + $0x1570] sm:$0xff] }
 0xe4c   : > { %8754 = vmatpush1.bf16.msra.mxu0 %v8753_v42  ;;  %9134 = vmatpush3.bf16.msra.mxu1 %v9133_v52  ;;  %v9151_v42 = vpack.c.bf16 %v6219_v11, %v6216_v25  ;;  %v6168_v52 = vld [vmem:[%s17818_s9 + $0x1330] sm:$0xff]  ;;  %v6243_v25 = vld [vmem:[%s17818_s9 + $0x1588] sm:$0xff]  ;;  %v6089_v11 = vld [vmem:[%s17818_s9 + $0x10b8] sm:$0xff] }
 0xe4d   : > { %8756 = vmatprep.subr.bf16.mxu0 %v8755_v63  ;;  %9136 = vmatprep.subr.bf16.mxu1 %v9135_v24  ;;  %v6068_v24 = vld [vmem:[%s17818_s9 + $0x1010] sm:$0xff]  ;;  %v9153_v14 = vpack.c.bf16 %v6171_v60, %v6168_v52  ;;  %v9166_v28 = vpack.c.bf16 %v6243_v25, %v6240_v12  ;;  %v6246_v52 = vld [vmem:[%s17818_s9 + $0x15a0] sm:$0xff]  ;;  %v6249_v60 = vld [vmem:[%s17818_s9 + $0x15b8] sm:$0xff] }
 0xe4e   : > { %v9169_v50 = vpack.c.bf16 %v6249_v60, %v6246_v52  ;;  %v6270_v12 = vld [vmem:[%s17818_s9 + $0x1660] sm:$0xff]  ;;  %v6273_v25 = vld [vmem:[%s17818_s9 + $0x1678] sm:$0xff]  ;;  %v6276_v52 = vld [vmem:[%s17818_s9 + $0x1690] sm:$0xff] }
 0xe4f   : > { %6674 = vmatmul.mubr.f32.vlgmr.msra.gmra.mrb[2].mxu0 %v5546_v58  ;;  %v6159_v58 = vld [vmem:[%s17818_s9 + $0x12e8] sm:$0xff] }
 0xe50   : > { %8758 = vmatpush1.bf16.msra.mxu0 %v8757_v39  ;;  %9138 = vmatpush3.bf16.msra.mxu1 %v9137_v47  ;;  %v9145_v32 = vpack.c.bf16 %v6159_v58, %v6156_v48  ;;  %v8775_v39 = vpack.c.bf16 %v6068_v24, %v6065_v38  ;;  %v6067_v47 = vld [vmem:[%s17818_s9 + $0x1008] sm:$0xff]  ;;  %v6076_v48 = vld [vmem:[%s17818_s9 + $0x1050] sm:$0xff]  ;;  %v5550_v58 = vmax.f32 %v15845_v15, 0.0  ;;  %v6098_v24 = vld [vmem:[%s17818_s9 + $0x1100] sm:$0xff] }
 0xe51   : > { %8760 = vmatprep.subr.bf16.mxu0 %v8759_v62  ;;  %9140 = vmatprep.subr.bf16.mxu1 %v9139_v49  ;;  %v6177_v62 = vld [vmem:[%s17818_s9 + $0x1378] sm:$0xff]  ;;  %v6071_v49 = vld [vmem:[%s17818_s9 + $0x1028] sm:$0xff]  ;;  %v8777_v17 = vpack.c.bf16 %v6067_v47, %v6064_v30 }
 0xe52   : > { %6744 = vmatprep.mubr.f32.mxu0 %v5549_v23  ;;  %v6165_v23 = vld [vmem:[%s17818_s9 + $0x1318] sm:$0xff]  ;;  %v9157_v4 = vpack.c.bf16 %v6177_v62, %v6174_v1  ;;  %v8779_v45 = vpack.c.bf16 %v6074_v18, %v6071_v49  ;;  %v6095_v38 = vld [vmem:[%s17818_s9 + $0x10e8] sm:$0xff]  ;;  %v6104_v1 = vld [vmem:[%s17818_s9 + $0x1130] sm:$0xff] }
 0xe53   : > { %v9149_v20 = vpack.c.bf16 %v6165_v23, %v6162_v37  ;;  %v6082_v37 = vld [vmem:[%s17818_s9 + $0x1080] sm:$0xff]  ;;  %v8787_v23 = vpack.c.bf16 %v6086_v9, %v6083_v41  ;;  %v6097_v30 = vld [vmem:[%s17818_s9 + $0x10f8] sm:$0xff]  ;;  %v6255_v47 = vld [vmem:[%s17818_s9 + $0x15e8] sm:$0xff] }
 0xe54   : > { %8762 = vmatpush1.bf16.msra.mxu0 %v8761_v46  ;;  %9142 = vmatpush3.bf16.msra.mxu1 %v9141_v16  ;;  %v6228_v46 = vld [vmem:[%s17818_s9 + $0x1510] sm:$0xff]  ;;  %v6231_v16 = vld [vmem:[%s17818_s9 + $0x1528] sm:$0xff]  ;;  %v6245_v15 = vld [vmem:[%s17818_s9 + $0x1598] sm:$0xff] }
 0xe55   : > { %8764 = vmatprep.subr.bf16.mxu0 %v8763_v7  ;;  %9144 = vmatprep.subr.bf16.mxu1 %v9143_v31  ;;  %v8781_v7 = vpack.c.bf16 %v6073_v13, %v6070_v56  ;;  %v9160_v31 = vpack.c.bf16 %v6231_v16, %v6228_v46  ;;  %v6100_v18 = vld [vmem:[%s17818_s9 + $0x1110] sm:$0xff]  ;;  %v6258_v56 = vld [vmem:[%s17818_s9 + $0x1600] sm:$0xff]  ;;  %v6107_v13 = vld [vmem:[%s17818_s9 + $0x1148] sm:$0xff] }
 0xe56   : > { %v6110_v46 = vld [vmem:[%s17818_s9 + $0x1160] sm:$0xff]  ;;  %v6279_v60 = vld [vmem:[%s17818_s9 + $0x16a8] sm:$0xff] }
 0xe58   : > { %8766 = vmatpush1.bf16.msra.mxu0 %v8765_v51  ;;  %9146 = vmatpush3.bf16.msra.mxu1 %v9145_v32  ;;  %v6237_v51 = vld [vmem:[%s17818_s9 + $0x1558] sm:$0xff]  ;;  %v5553_v32 = vmax.f32 %v16223_v2, 0.0  ;;  %v6248_v2 = vld [vmem:[%s17818_s9 + $0x15b0] sm:$0xff] }
 0xe59   : > { %8768 = vmatprep.subr.bf16.mxu0 %v8767_v44  ;;  %9148 = vmatprep.subr.bf16.mxu1 %v9147_v26  ;;  %v8785_v44 = vpack.c.bf16 %v6079_v61, %v6076_v48  ;;  %v9163_v26 = vpack.c.bf16 %v6237_v51, %v6234_v55  ;;  %v6264_v48 = vld [vmem:[%s17818_s9 + $0x1630] sm:$0xff]  ;;  %v6113_v55 = vld [vmem:[%s17818_s9 + $0x1178] sm:$0xff] }
 0xe5a   : > { %v17046_v63 = vpop.f32.mrb[14].mxu1  ;;  %v6116_v51 = vld [vmem:[%s17818_s9 + $0x1190] sm:$0xff] }
 0xe5b   : > { %v17057_v21 = vpop.f32.mrb[15].mxu1 }
 0xe5c   : > { %8770 = vmatpush1.bf16.msra.mxu0 %v8769_v29  ;;  %9150 = vmatpush3.bf16.msra.mxu1 %v9149_v20  ;;  %v6092_v29 = vld [vmem:[%s17818_s9 + $0x10d0] sm:$0xff]  ;;  %v8789_v20 = vpack.c.bf16 %v6085_v35, %v6082_v37  ;;  %v6115_v35 = vld [vmem:[%s17818_s9 + $0x1188] sm:$0xff] }
 0xe5d   : > { %8772 = vmatprep.subr.bf16.mxu0 %v8771_v27  ;;  %9152 = vmatprep.subr.bf16.mxu1 %v9151_v42  ;;  %v8791_v27 = vpack.c.bf16 %v6092_v29, %v6089_v11  ;;  %v6091_v42 = vld [vmem:[%s17818_s9 + $0x10c8] sm:$0xff]  ;;  %v6112_v37 = vld [vmem:[%s17818_s9 + $0x1170] sm:$0xff]  ;;  %v6122_v29 = vld [vmem:[%s17818_s9 + $0x11c0] sm:$0xff] }
 0xe5e   : > { %v8793_v59 = vpack.c.bf16 %v6091_v42, %v6088_v19  ;;  %v6119_v11 = vld [vmem:[%s17818_s9 + $0x11a8] sm:$0xff]  ;;  %v6118_v19 = vld [vmem:[%s17818_s9 + $0x11a0] sm:$0xff]  ;;  %v6121_v42 = vld [vmem:[%s17818_s9 + $0x11b8] sm:$0xff] }
 0xe60   : > { %8774 = vmatpush1.bf16.msra.mxu0 %v8773_v22  ;;  %9154 = vmatpush3.bf16.msra.mxu1 %v9153_v14  ;;  %v6094_v22 = vld [vmem:[%s17818_s9 + $0x10e0] sm:$0xff]  ;;  %v8795_v14 = vpack.c.bf16 %v6098_v24, %v6095_v38  ;;  %v6125_v38 = vld [vmem:[%s17818_s9 + $0x11d8] sm:$0xff]  ;;  %v6128_v24 = vld [vmem:[%s17818_s9 + $0x11f0] sm:$0xff] }
 0xe61   : > { %8776 = vmatprep.subr.bf16.mxu0 %v8775_v39  ;;  %9156 = vmatprep.subr.bf16.mxu1 %v9155_v5  ;;  %v6252_v39 = vld [vmem:[%s17818_s9 + $0x15d0] sm:$0xff]  ;;  %v6101_v5 = vld [vmem:[%s17818_s9 + $0x1118] sm:$0xff]  ;;  %v8797_v62 = vpack.c.bf16 %v6097_v30, %v6094_v22  ;;  %v6127_v30 = vld [vmem:[%s17818_s9 + $0x11e8] sm:$0xff] }
 0xe62   : > { %v9172_v49 = vpack.c.bf16 %v6255_v47, %v6252_v39  ;;  %v6124_v22 = vld [vmem:[%s17818_s9 + $0x11d0] sm:$0xff]  ;;  %v6282_v39 = vld [vmem:[%s17818_s9 + $0x16c0] sm:$0xff]  ;;  %v6285_v47 = vld [vmem:[%s17818_s9 + $0x16d8] sm:$0xff] }
 0xe64   : > { %8778 = vmatpush1.bf16.msra.mxu0 %v8777_v17  ;;  %9158 = vmatpush3.bf16.msra.mxu1 %v9157_v4  ;;  %v8799_v17 = vpack.c.bf16 %v6104_v1, %v6101_v5  ;;  %v6103_v4 = vld [vmem:[%s17818_s9 + $0x1128] sm:$0xff]  ;;  %v6134_v1 = vld [vmem:[%s17818_s9 + $0x1220] sm:$0xff] }
 0xe65   : > { %8780 = vmatprep.subr.bf16.mxu0 %v8779_v45  ;;  %9159 = vmatprep.subr.bf16.mxu1 %v11183_v54  ;;  %v6261_v45 = vld [vmem:[%s17818_s9 + $0x1618] sm:$0xff]  ;;  %v8801_v16 = vpack.c.bf16 %v6103_v4, %v6100_v18  ;;  %v6131_v5 = vld [vmem:[%s17818_s9 + $0x1208] sm:$0xff] }
 0xe66   : > { %v9175_v34 = vpack.c.bf16 %v6261_v45, %v6258_v56  ;;  %v8819_v18 = vpack.c.bf16 %v6134_v1, %v6131_v5  ;;  %v6133_v4 = vld [vmem:[%s17818_s9 + $0x1218] sm:$0xff]  ;;  %v6288_v56 = vld [vmem:[%s17818_s9 + $0x16f0] sm:$0xff]  ;;  %v6291_v45 = vld [vmem:[%s17818_s9 + $0x1708] sm:$0xff] }
 0xe67   : > { %7378 = vmatmul.mubr.f32.vlgmr.msra.gmra.mrb[28].mxu1 %v5550_v58  ;;  %v6163_v5 = vld [vmem:[%s17818_s9 + $0x1308] sm:$0xff] }
 0xe68   : > { %8782 = vmatpush1.bf16.msra.mxu0 %v8781_v7  ;;  %9161 = vmatpush1.bf16.msra.mxu1 %v9160_v31  ;;  %v8803_v7 = vpack.c.bf16 %v6110_v46, %v6107_v13  ;;  %v6109_v31 = vld [vmem:[%s17818_s9 + $0x1158] sm:$0xff]  ;;  %v6140_v46 = vld [vmem:[%s17818_s9 + $0x1250] sm:$0xff] }
 0xe69   : > { %8784 = vmatprep.subr.bf16.mxu0 %v8783_v6  ;;  %9162 = vmatprep.subr.bf16.mxu1 %v11183_v54  ;;  %v6267_v6 = vld [vmem:[%s17818_s9 + $0x1648] sm:$0xff]  ;;  %v6137_v13 = vld [vmem:[%s17818_s9 + $0x1238] sm:$0xff] }
 0xe6a   : > { %7785 = vmatprep.mubr.msk.f32.mxu1 %vm6321_vm11, %v5553_v32 }
 0xe6c   : > { %8786 = vmatpush1.bf16.msra.mxu0 %v8785_v44  ;;  %9164 = vmatpush1.bf16.msra.mxu1 %v9163_v26  ;;  %v8805_v44 = vpack.c.bf16 %v6109_v31, %v6106_v53  ;;  %v9178_v26 = vpack.c.bf16 %v6267_v6, %v6264_v48  ;;  %v8823_v53 = vpack.c.bf16 %v6140_v46, %v6137_v13  ;;  %v6139_v31 = vld [vmem:[%s17818_s9 + $0x1248] sm:$0xff]  ;;  %v6294_v48 = vld [vmem:[%s17818_s9 + $0x1720] sm:$0xff]  ;;  %v6297_v6 = vld [vmem:[%s17818_s9 + $0x1738] sm:$0xff] }
 0xe6d   : > { %8788 = vmatprep.subr.bf16.mxu0 %v8787_v23  ;;  %9165 = vmatprep.subr.bf16.mxu1 %v11183_v54  ;;  %v8807_v23 = vpack.c.bf16 %v6116_v51, %v6113_v55  ;;  %v6146_v55 = vld [vmem:[%s17818_s9 + $0x1280] sm:$0xff] }
 0xe70   : > { %8790 = vmatpush1.bf16.msra.mxu0 %v8789_v20  ;;  %9167 = vmatpush1.bf16.msra.mxu1 %v9166_v28  ;;  %v8809_v20 = vpack.c.bf16 %v6115_v35, %v6112_v37  ;;  %v9181_v28 = vpack.c.bf16 %v6273_v25, %v6270_v12  ;;  %v6145_v37 = vld [vmem:[%s17818_s9 + $0x1278] sm:$0xff]  ;;  %v9196_v35 = vpack.c.bf16 %v6303_v57, %v6300_v43  ;;  %v6148_v25 = vld [vmem:[%s17818_s9 + $0x1290] sm:$0xff]  ;;  %v6191_v43 = vld [vmem:[%s17818_s9 + $0x13e8] sm:$0xff] }
 0xe71   : > { %8792 = vmatprep.subr.bf16.mxu0 %v8791_v27  ;;  %9168 = vmatprep.subr.bf16.mxu1 %v11183_v54  ;;  %v8811_v27 = vpack.c.bf16 %v6122_v29, %v6119_v11  ;;  %v6151_v11 = vld [vmem:[%s17818_s9 + $0x12a8] sm:$0xff]  ;;  %v6194_v57 = vld [vmem:[%s17818_s9 + $0x1400] sm:$0xff] }
 0xe72   : > { %v6155_v29 = vld [vmem:[%s17818_s9 + $0x12c8] sm:$0xff] }
 0xe74   : > { %8794 = vmatpush1.bf16.msra.mxu0 %v8793_v59  ;;  %9170 = vmatpush1.bf16.msra.mxu1 %v9169_v50  ;;  %v8813_v59 = vpack.c.bf16 %v6121_v42, %v6118_v19  ;;  %v9184_v50 = vpack.c.bf16 %v6279_v60, %v6276_v52  ;;  %v6154_v52 = vld [vmem:[%s17818_s9 + $0x12c0] sm:$0xff]  ;;  %v6157_v60 = vld [vmem:[%s17818_s9 + $0x12d8] sm:$0xff] }
 0xe75   : > { %8796 = vmatprep.subr.bf16.mxu0 %v8795_v14  ;;  %9171 = vmatprep.subr.bf16.mxu1 %v11183_v54  ;;  %v8815_v14 = vpack.c.bf16 %v6128_v24, %v6125_v38  ;;  %v5552_v38 = vmax.f32 %v16221_v3, 0.0 }
 0xe78   : > { %8798 = vmatpush1.bf16.msra.mxu0 %v8797_v62  ;;  %9173 = vmatpush1.bf16.msra.mxu1 %v9172_v49  ;;  %v8817_v62 = vpack.c.bf16 %v6127_v30, %v6124_v22  ;;  %v9187_v49 = vpack.c.bf16 %v6285_v47, %v6282_v39  ;;  %v8837_v30 = vpack.c.bf16 %v6157_v60, %v6154_v52  ;;  %v6160_v47 = vld [vmem:[%s17818_s9 + $0x12f0] sm:$0xff] }
 0xe79   : > { %8800 = vmatprep.subr.bf16.mxu0 %v8799_v17  ;;  %9174 = vmatprep.subr.bf16.mxu1 %v11183_v54  ;;  %v6130_v17 = vld [vmem:[%s17818_s9 + $0x1200] sm:$0xff] }
 0xe7a   : > { %v7896_v61 = vpop.f32.mrb[16].mxu1 }
 0xe7b   : > { %v7897_v41 = vpop.f32.mrb[17].mxu1 }
 0xe7c   : > { %8802 = vmatpush1.bf16.msra.mxu0 %v8801_v16  ;;  %v17216_v9 = vadd.f32 %v7897_v41, %v7896_v61  ;;  %9176 = vmatpush1.bf16.msra.mxu1 %v9175_v34  ;;  %v8821_v16 = vpack.c.bf16 %v6133_v4, %v6130_v17  ;;  %v9190_v34 = vpack.c.bf16 %v6291_v45, %v6288_v56  ;;  %v6143_v61 = vld [vmem:[%s17818_s9 + $0x1268] sm:$0xff]  ;;  %v6166_v17 = vld [vmem:[%s17818_s9 + $0x1320] sm:$0xff]  ;;  %v6169_v4 = vld [vmem:[%s17818_s9 + $0x1338] sm:$0xff] }
 0xe7d   : > { %8804 = vmatprep.subr.bf16.mxu0 %v8803_v7  ;;  %9177 = vmatprep.subr.bf16.mxu1 %v11183_v54  ;;  %v6136_v7 = vld [vmem:[%s17818_s9 + $0x1230] sm:$0xff]  ;;  %v9193_v41 = vpack.c.bf16 %v6297_v6, %v6294_v48  ;;  %v6173_v56 = vld [vmem:[%s17818_s9 + $0x1358] sm:$0xff]  ;;  %v8845_v13 = vpack.c.bf16 %v6169_v4, %v6166_v17  ;;  %v6178_v6 = vld [vmem:[%s17818_s9 + $0x1380] sm:$0xff] }
 0xe7e   : > { %v8825_v51 = vpack.c.bf16 %v6139_v31, %v6136_v7  ;;  %v6176_v45 = vld [vmem:[%s17818_s9 + $0x1370] sm:$0xff]  ;;  %v6182_v7 = vld [vmem:[%s17818_s9 + $0x13a0] sm:$0xff] }
 0xe7f   : > { %v8847_v46 = vpack.c.bf16 %v6176_v45, %v6173_v56  ;;  %v6214_v56 = vld [vmem:[%s17818_s9 + $0x14a0] sm:$0xff]  ;;  %v6221_v45 = vld [vmem:[%s17818_s9 + $0x14d8] sm:$0xff] }
 0xe80   : > { %8806 = vmatpush1.bf16.msra.mxu0 %v8805_v44  ;;  %9179 = vmatpush1.bf16.msra.mxu1 %v9178_v26  ;;  %v8827_v44 = vpack.c.bf16 %v6146_v55, %v6143_v61  ;;  %v6142_v26 = vld [vmem:[%s17818_s9 + $0x1260] sm:$0xff]  ;;  %v6181_v61 = vld [vmem:[%s17818_s9 + $0x1398] sm:$0xff] }
 0xe81   : > { %8808 = vmatprep.subr.bf16.mxu0 %v8807_v23  ;;  %9180 = vmatprep.subr.bf16.mxu1 %v11183_v54  ;;  %v8829_v23 = vpack.c.bf16 %v6145_v37, %v6142_v26  ;;  %v6185_v55 = vld [vmem:[%s17818_s9 + $0x13b8] sm:$0xff]  ;;  %v6184_v26 = vld [vmem:[%s17818_s9 + $0x13b0] sm:$0xff]  ;;  %v6187_v37 = vld [vmem:[%s17818_s9 + $0x13c8] sm:$0xff] }
 0xe84   : > { %8810 = vmatpush1.bf16.msra.mxu0 %v8809_v20  ;;  %9182 = vmatpush1.bf16.msra.mxu1 %v9181_v28  ;;  %v6158_v20 = vld [vmem:[%s17818_s9 + $0x12e0] sm:$0xff] }
 0xe85   : > { %8812 = vmatprep.subr.bf16.mxu0 %v8811_v27  ;;  %9183 = vmatprep.subr.bf16.mxu1 %v11183_v54  ;;  %v17352_v28 = vld [vmem:[%s17819_s10] sm:$0x7]  ;;  %v8833_v27 = vpack.c.bf16 %v6151_v11, %v6148_v25  ;;  %v8835_v42 = vpack.c.bf16 %v6158_v20, %v6155_v29  ;;  %v6200_v25 = vld [vmem:[%s17818_s9 + $0x1430] sm:$0xff] }
 0xe86   : > { %v6317_v19 = vrot.slane %v17352_v28, %v15602_v36  ;;  %v6161_v36 = vld [vmem:[%s17818_s9 + $0x12f8] sm:$0xff]  ;;  %v6196_v20 = vld [vmem:[%s17818_s9 + $0x1410] sm:$0xff] }
 0xe88   : > { %8814 = vmatpush1.bf16.msra.mxu0 %v8813_v59  ;;  %9185 = vmatpush1.bf16.msra.mxu1 %v9184_v50  ;;  %v6164_v59 = vld [vmem:[%s17818_s9 + $0x1310] sm:$0xff]  ;;  %v6960_v22 = vadd.f32 %v17216_v9, %v6317_v19  ;;  %v6167_v9 = vld [vmem:[%s17818_s9 + $0x1328] sm:$0xff] }
 0xe89   : > { %8816 = vmatprep.subr.bf16.mxu0 %v8815_v14  ;;  %9186 = vmatprep.subr.bf16.mxu1 %v11183_v54  ;;  %v8839_v39 = vpack.c.bf16 %v6164_v59, %v6161_v36  ;;  %v6199_v19 = vld [vmem:[%s17818_s9 + $0x1428] sm:$0xff]  ;;  %v6205_v36 = vld [vmem:[%s17818_s9 + $0x1458] sm:$0xff] }
 0xe8a   : > { %v8865_v52 = vpack.c.bf16 %v6199_v19, %v6196_v20  ;;  %v6254_v20 = vld [vmem:[%s17818_s9 + $0x15e0] sm:$0xff] }
 0xe8c   : > { %8818 = vmatpush1.bf16.msra.mxu0 %v8817_v62  ;;  %9188 = vmatpush1.bf16.msra.mxu1 %v9187_v49  ;;  %v6170_v62 = vld [vmem:[%s17818_s9 + $0x1340] sm:$0xff]  ;;  %v8841_v49 = vpack.c.bf16 %v6163_v5, %v6160_v47  ;;  %v6208_v5 = vld [vmem:[%s17818_s9 + $0x1470] sm:$0xff] }
 0xe8d   : > { %8820 = vmatprep.subr.bf16.mxu0 %v8819_v18  ;;  %9189 = vmatprep.subr.bf16.mxu1 %v11183_v54  ;;  %v8843_v18 = vpack.c.bf16 %v6170_v62, %v6167_v9  ;;  %v6211_v9 = vld [vmem:[%s17818_s9 + $0x1488] sm:$0xff] }
 0xe8e   : > { %v8873_v17 = vpack.c.bf16 %v6211_v9, %v6208_v5  ;;  %v6263_v5 = vld [vmem:[%s17818_s9 + $0x1628] sm:$0xff]  ;;  %v6266_v9 = vld [vmem:[%s17818_s9 + $0x1640] sm:$0xff] }
 0xe8f   : > { %6745 = vmatmul.mubr.f32.vlgmr.msra.gmra.mrb[2].mxu0 %v5548_v33  ;;  %v6149_v33 = vld [vmem:[%s17818_s9 + $0x1298] sm:$0xff] }
 0xe90   : > { %8822 = vmatpush1.bf16.msra.mxu0 %v8821_v16  ;;  %6815 = vmatprep.mubr.f32.mxu0 %v5551_v10  ;;  %v6152_v10 = vld [vmem:[%s17818_s9 + $0x12b0] sm:$0xff] }
 0xe91   : > { %9191 = vmatpush1.bf16.msra.mxu1 %v9190_v34  ;;  %8824 = vmatprep.subr.bf16.mxu0 %v8823_v53  ;;  %v8831_v12 = vpack.c.bf16 %v6152_v10, %v6149_v33  ;;  %v6172_v16 = vld [vmem:[%s17818_s9 + $0x1350] sm:$0xff]  ;;  %v6175_v34 = vld [vmem:[%s17818_s9 + $0x1368] sm:$0xff]  ;;  %v8857_v33 = vpack.c.bf16 %v6187_v37, %v6184_v26  ;;  %v8859_v10 = vpack.c.bf16 %v6194_v57, %v6191_v43 }
 0xe92   : > { %9192 = vmatprep.subr.bf16.mxu1 %v11183_v54  ;;  %v6179_v53 = vld [vmem:[%s17818_s9 + $0x1388] sm:$0xff]  ;;  %v8849_v31 = vpack.c.bf16 %v6175_v34, %v6172_v16  ;;  %v6220_v34 = vld [vmem:[%s17818_s9 + $0x14d0] sm:$0xff] }
 0xe93   : > { %v8851_v48 = vpack.c.bf16 %v6182_v7, %v6179_v53  ;;  %v6223_v53 = vld [vmem:[%s17818_s9 + $0x14e8] sm:$0xff]  ;;  %v6232_v37 = vld [vmem:[%s17818_s9 + $0x1530] sm:$0xff] }
 0xe94   : > { %8826 = vmatpush1.bf16.msra.mxu0 %v8825_v51  ;;  %v6188_v51 = vld [vmem:[%s17818_s9 + $0x13d0] sm:$0xff]  ;;  %v6227_v7 = vld [vmem:[%s17818_s9 + $0x1508] sm:$0xff] }
 0xe95   : > { %9194 = vmatpush1.bf16.msra.mxu1 %v9193_v41  ;;  %8828 = vmatprep.subr.bf16.mxu0 %v8827_v44  ;;  %v8853_v41 = vpack.c.bf16 %v6181_v61, %v6178_v6  ;;  %v8855_v44 = vpack.c.bf16 %v6188_v51, %v6185_v55  ;;  %v6226_v61 = vld [vmem:[%s17818_s9 + $0x1500] sm:$0xff]  ;;  %v6229_v55 = vld [vmem:[%s17818_s9 + $0x1518] sm:$0xff]  ;;  %v6235_v43 = vld [vmem:[%s17818_s9 + $0x1548] sm:$0xff] }
 0xe96   : > { %9195 = vmatprep.subr.bf16.mxu1 %v11183_v54  ;;  %v6233_v51 = vld [vmem:[%s17818_s9 + $0x1538] sm:$0xff]  ;;  %v6239_v57 = vld [vmem:[%s17818_s9 + $0x1568] sm:$0xff] }
 0xe98   : > { %8830 = vmatpush1.bf16.msra.mxu0 %v8829_v23  ;;  %v6190_v23 = vld [vmem:[%s17818_s9 + $0x13e0] sm:$0xff] }
 0xe99   : > { %9197 = vmatpush1.bf16.msra.mxu1 %v9196_v35  ;;  %8832 = vmatprep.subr.bf16.mxu0 %v8831_v12  ;;  %v6193_v35 = vld [vmem:[%s17818_s9 + $0x13f8] sm:$0xff] }
 0xe9a   : > { %v7931_v24 = vpop.f32.mrb[18].mxu1  ;;  %v6197_v12 = vld [vmem:[%s17818_s9 + $0x1418] sm:$0xff]  ;;  %v8861_v11 = vpack.c.bf16 %v6193_v35, %v6190_v23  ;;  %v6238_v35 = vld [vmem:[%s17818_s9 + $0x1560] sm:$0xff] }
 0xe9b   : > { %v7932_v50 = vpop.f32.mrb[19].mxu1  ;;  %v8863_v29 = vpack.c.bf16 %v6200_v25, %v6197_v12  ;;  %v6241_v12 = vld [vmem:[%s17818_s9 + $0x1578] sm:$0xff]  ;;  %v6244_v25 = vld [vmem:[%s17818_s9 + $0x1590] sm:$0xff] }
 0xe9c   : > { %8834 = vmatpush1.bf16.msra.mxu0 %v8833_v27  ;;  %v7933_v14 = vadd.f32 %v7932_v50, %v7931_v24  ;;  %7448 = vmatmul.mubr.f32.vlgmr.msra.gmra.mrb[30].mxu1 %v5552_v38  ;;  %v6203_v27 = vld [vmem:[%s17818_s9 + $0x1448] sm:$0xff]  ;;  %v6202_v24 = vld [vmem:[%s17818_s9 + $0x1440] sm:$0xff]  ;;  %v6209_v50 = vld [vmem:[%s17818_s9 + $0x1478] sm:$0xff] }
 0xe9d   : > { %8836 = vmatprep.subr.bf16.mxu0 %v8835_v42  ;;  %v6206_v42 = vld [vmem:[%s17818_s9 + $0x1460] sm:$0xff] }
 0xe9e   : > { %v17378_v1 = vadd.f32 %v7933_v14, %v6960_v22  ;;  %v8867_v60 = vpack.c.bf16 %v6206_v42, %v6203_v27  ;;  %v6212_v22 = vld [vmem:[%s17818_s9 + $0x1490] sm:$0xff]  ;;  %v6250_v42 = vld [vmem:[%s17818_s9 + $0x15c0] sm:$0xff] }
 0xe9f   : > { %v8871_v47 = vpack.c.bf16 %v6212_v22, %v6209_v50 }
 0xea0   : > { %8838 = vmatpush1.bf16.msra.mxu0 %v8837_v30 }
 0xea1   : > { %8840 = vmatprep.subr.bf16.mxu0 %v8839_v39  ;;  %v8869_v39 = vpack.c.bf16 %v6205_v36, %v6202_v24  ;;  %v6257_v24 = vld [vmem:[%s17818_s9 + $0x15f8] sm:$0xff]  ;;  %v6260_v36 = vld [vmem:[%s17818_s9 + $0x1610] sm:$0xff] }
 0xea4   : > { %8842 = vmatpush1.bf16.msra.mxu0 %v8841_v49  ;;  %v6215_v49 = vld [vmem:[%s17818_s9 + $0x14a8] sm:$0xff] }
 0xea5   : > { %8844 = vmatprep.subr.bf16.mxu0 %v8843_v18  ;;  %v6218_v18 = vld [vmem:[%s17818_s9 + $0x14c0] sm:$0xff] }
 0xea6   : > { %v8875_v4 = vpack.c.bf16 %v6218_v18, %v6215_v49  ;;  %v8907_v18 = vpack.c.bf16 %v6266_v9, %v6263_v5  ;;  %v7461_v5 = vld [vmem:[%s17820_s11 + $0x28] sm:$0xff] }
 0xea8   : > { %8846 = vmatpush1.bf16.msra.mxu0 %v8845_v13  ;;  %v6224_v13 = vld [vmem:[%s17818_s9 + $0x14f0] sm:$0xff] }
 0xea9   : > { %8848 = vmatprep.subr.bf16.mxu0 %v8847_v46  ;;  %v8879_v16 = vpack.c.bf16 %v6224_v13, %v6221_v45  ;;  %v6268_v13 = vld [vmem:[%s17818_s9 + $0x1650] sm:$0xff] }
 0xeac   : > { %8850 = vmatpush1.bf16.msra.mxu0 %v8849_v31  ;;  %v6230_v31 = vld [vmem:[%s17818_s9 + $0x1520] sm:$0xff] }
 0xead   : > { %8852 = vmatprep.subr.bf16.mxu0 %v8851_v48  ;;  %v8881_v48 = vpack.c.bf16 %v6223_v53, %v6220_v34  ;;  %v8883_v6 = vpack.c.bf16 %v6230_v31, %v6227_v7  ;;  %v6278_v34 = vld [vmem:[%s17818_s9 + $0x16a0] sm:$0xff] }
 0xeae   : > { %v6274_v31 = vld [vmem:[%s17818_s9 + $0x1680] sm:$0xff] }
 0xeb0   : > { %8854 = vmatpush1.bf16.msra.mxu0 %v8853_v41  ;;  %v6236_v41 = vld [vmem:[%s17818_s9 + $0x1550] sm:$0xff] }
 0xeb1   : > { %8856 = vmatprep.subr.bf16.mxu0 %v8855_v44  ;;  %v8885_v44 = vpack.c.bf16 %v6229_v55, %v6226_v61  ;;  %v8887_v26 = vpack.c.bf16 %v6236_v41, %v6233_v51  ;;  %v6284_v61 = vld [vmem:[%s17818_s9 + $0x16d0] sm:$0xff] }
 0xeb2   : > { %v6280_v41 = vld [vmem:[%s17818_s9 + $0x16b0] sm:$0xff] }
 0xeb4   : > { %8858 = vmatpush1.bf16.msra.mxu0 %v8857_v33  ;;  %v6242_v33 = vld [vmem:[%s17818_s9 + $0x1580] sm:$0xff] }
 0xeb5   : > { %8860 = vmatprep.subr.bf16.mxu0 %v8859_v10  ;;  %v8889_v10 = vpack.c.bf16 %v6235_v43, %v6232_v37  ;;  %v8891_v23 = vpack.c.bf16 %v6242_v33, %v6239_v57  ;;  %v6290_v37 = vld [vmem:[%s17818_s9 + $0x1700] sm:$0xff] }
 0xeb6   : > { %v6286_v57 = vld [vmem:[%s17818_s9 + $0x16e0] sm:$0xff] }
 0xeb8   : > { %8862 = vmatpush1.bf16.msra.mxu0 %v8861_v11  ;;  %v6247_v11 = vld [vmem:[%s17818_s9 + $0x15a8] sm:$0xff] }
 0xeb9   : > { %8864 = vmatprep.subr.bf16.mxu0 %v8863_v29  ;;  %v6251_v29 = vld [vmem:[%s17818_s9 + $0x15c8] sm:$0xff]  ;;  %v8897_v19 = vpack.c.bf16 %v6247_v11, %v6244_v25  ;;  %v7474_v25 = vld [vmem:[%s17820_s11 + $0x90] sm:$0xff]  ;;  %v7475_v11 = vld [vmem:[%s17820_s11 + $0x98] sm:$0xff] }
 0xeba   : > { %v7966_v59 = vpop.f32.mrb[20].mxu1  ;;  %v8899_v27 = vpack.c.bf16 %v6254_v20, %v6251_v29 }
 0xebb   : > { %v7967_v14 = vpop.f32.mrb[21].mxu1 }
 0xebc   : > { %8866 = vmatpush1.bf16.msra.mxu0 %v8865_v52  ;;  %v7968_v30 = vadd.f32 %v7967_v14, %v7966_v59  ;;  %v6253_v52 = vld [vmem:[%s17818_s9 + $0x15d8] sm:$0xff]  ;;  %v8903_v14 = vpack.c.bf16 %v6260_v36, %v6257_v24  ;;  %v6292_v24 = vld [vmem:[%s17818_s9 + $0x1710] sm:$0xff]  ;;  %v6295_v36 = vld [vmem:[%s17818_s9 + $0x1728] sm:$0xff] }
 0xebd   : > { %8868 = vmatprep.subr.bf16.mxu0 %v8867_v60  ;;  %v8901_v22 = vpack.c.bf16 %v6253_v52, %v6250_v42  ;;  %v7459_v42 = vld [vmem:[%s17820_s11 + $0x18] sm:$0xff]  ;;  %v7476_v52 = vld [vmem:[%s17820_s11 + $0xa0] sm:$0xff]  ;;  %v8929_v9 = vpack.c.bf16 %v6295_v36, %v6292_v24 }
 0xebe   : > { %v17477_v62 = vadd.f32 %v7968_v30, %v17378_v1  ;;  %v6217_v1 = vld [vmem:[%s17818_s9 + $0x14b8] sm:$0xff]  ;;  %v6256_v30 = vld [vmem:[%s17818_s9 + $0x15f0] sm:$0xff] }
 0xebf   : > { %v8877_v46 = vpack.c.bf16 %v6217_v1, %v6214_v56  ;;  %v6272_v56 = vld [vmem:[%s17818_s9 + $0x1670] sm:$0xff] }
 0xec0   : > { %8870 = vmatpush1.bf16.msra.mxu0 %v8869_v39  ;;  %v6259_v39 = vld [vmem:[%s17818_s9 + $0x1608] sm:$0xff] }
 0xec1   : > { %8872 = vmatprep.subr.bf16.mxu0 %v8871_v47  ;;  %v8905_v49 = vpack.c.bf16 %v6259_v39, %v6256_v30  ;;  %v7460_v39 = vld [vmem:[%s17820_s11 + $0x20] sm:$0xff] }
 0xec4   : > { %8874 = vmatpush1.bf16.msra.mxu0 %v8873_v17  ;;  %v6262_v17 = vld [vmem:[%s17818_s9 + $0x1620] sm:$0xff] }
 0xec5   : > { %8876 = vmatprep.subr.bf16.mxu0 %v8875_v4  ;;  %v6269_v4 = vld [vmem:[%s17818_s9 + $0x1658] sm:$0xff] }
 0xec6   : > { %v8911_v45 = vpack.c.bf16 %v6272_v56, %v6269_v4  ;;  %v6301_v4 = vld [vmem:[%s17818_s9 + $0x1758] sm:$0xff] }
 0xec8   : > { %8878 = vmatpush1.bf16.msra.mxu0 %v8877_v46  ;;  %v6271_v46 = vld [vmem:[%s17818_s9 + $0x1668] sm:$0xff] }
 0xec9   : > { %8880 = vmatprep.subr.bf16.mxu0 %v8879_v16  ;;  %v6275_v16 = vld [vmem:[%s17818_s9 + $0x1688] sm:$0xff]  ;;  %v8913_v53 = vpack.c.bf16 %v6271_v46, %v6268_v13  ;;  %v7462_v46 = vld [vmem:[%s17820_s11 + $0x30] sm:$0xff] }
 0xeca   : > { %v8915_v7 = vpack.c.bf16 %v6278_v34, %v6275_v16  ;;  %v7463_v16 = vld [vmem:[%s17820_s11 + $0x38] sm:$0xff] }
 0xecc   : > { %8882 = vmatpush1.bf16.msra.mxu0 %v8881_v48  ;;  %v6277_v48 = vld [vmem:[%s17818_s9 + $0x1698] sm:$0xff] }
 0xecd   : > { %8884 = vmatprep.subr.bf16.mxu0 %v8883_v6  ;;  %v6281_v6 = vld [vmem:[%s17818_s9 + $0x16b8] sm:$0xff]  ;;  %v8917_v55 = vpack.c.bf16 %v6277_v48, %v6274_v31  ;;  %v7481_v31 = vld [vmem:[%s17820_s11 + $0xc8] sm:$0xff] }
 0xece   : > { %v8919_v51 = vpack.c.bf16 %v6284_v61, %v6281_v6  ;;  %v9212_v6 = vpack.c.bf16 %v7463_v16, %v7462_v46 }
 0xecf   : > { %6816 = vmatmul.mubr.f32.vlgmr.msra.gmra.mrb[2].mxu0 %v5550_v58  ;;  %v8893_v58 = vpack.c.bf16 %v6241_v12, %v6238_v35  ;;  %v6296_v35 = vld [vmem:[%s17818_s9 + $0x1730] sm:$0xff]  ;;  %v7472_v12 = vld [vmem:[%s17820_s11 + $0x80] sm:$0xff] }
 0xed0   : > { %8886 = vmatpush1.bf16.msra.mxu0 %v8885_v44  ;;  %7784 = vmatprep.mubr.msk.f32.mxu0 %vm6321_vm11, %v5553_v32  ;;  %v8895_v32 = vpack.c.bf16 %v6248_v2, %v6245_v15  ;;  %v6283_v44 = vld [vmem:[%s17818_s9 + $0x16c8] sm:$0xff]  ;;  %v7456_v2 = vld [vmem:[%s17820_s11] sm:$0xff] }
 0xed1   : > { %8888 = vmatprep.subr.bf16.mxu0 %v8887_v26  ;;  %v6287_v26 = vld [vmem:[%s17818_s9 + $0x16e8] sm:$0xff]  ;;  %v8921_v43 = vpack.c.bf16 %v6283_v44, %v6280_v41  ;;  %v7482_v41 = vld [vmem:[%s17820_s11 + $0xd0] sm:$0xff] }
 0xed2   : > { %v8923_v33 = vpack.c.bf16 %v6290_v37, %v6287_v26  ;;  %v7473_v15 = vld [vmem:[%s17820_s11 + $0x88] sm:$0xff]  ;;  %v7466_v37 = vld [vmem:[%s17820_s11 + $0x50] sm:$0xff] }
 0xed4   : > { %8890 = vmatpush1.bf16.msra.mxu0 %v8889_v10  ;;  %v6289_v10 = vld [vmem:[%s17818_s9 + $0x16f8] sm:$0xff] }
 0xed5   : > { %8892 = vmatprep.subr.bf16.mxu0 %v8891_v23  ;;  %v6293_v23 = vld [vmem:[%s17818_s9 + $0x1718] sm:$0xff]  ;;  %v8925_v29 = vpack.c.bf16 %v6289_v10, %v6286_v57  ;;  %v7484_v57 = vld [vmem:[%s17820_s11 + $0xe0] sm:$0xff] }
 0xed6   : > { %v7468_v10 = vld [vmem:[%s17820_s11 + $0x60] sm:$0xff] }
 0xed8   : > { %8894 = vmatpush1.bf16.msra.mxu0 %v8893_v58  ;;  %v9198_v58 = vpack.c.bf16 %v7473_v15, %v7472_v12 }
 0xed9   : > { %8896 = vmatprep.subr.bf16.mxu0 %v8895_v32  ;;  %v7457_v32 = vld [vmem:[%s17820_s11 + $0x8] sm:$0xff] }
 0xeda   : > { %v8001_v60 = vpop.f32.mrb[22].mxu1  ;;  %v9200_v20 = vpack.c.bf16 %v7457_v32, %v7456_v2  ;;  %9199 = vmatprep.subr.bf16.mxu1 %v9198_v58 }
 0xedb   : > { %v8002_v59 = vpop.f32.mrb[23].mxu1 }
 0xedc   : > { %8898 = vmatpush1.bf16.msra.mxu0 %v8897_v19  ;;  %v8003_v50 = vadd.f32 %v8002_v59, %v8001_v60  ;;  %v9202_v19 = vpack.c.bf16 %v7475_v11, %v7474_v25  ;;  %v8927_v60 = vpack.c.bf16 %v6296_v35, %v6293_v23  ;;  %v7477_v59 = vld [vmem:[%s17820_s11 + $0xa8] sm:$0xff]  ;;  %9201 = vmatpush3.bf16.msra.mxu1 %v9200_v20  ;;  %v7486_v20 = vld [vmem:[%s17820_s11 + $0xf0] sm:$0xff] }
 0xedd   : > { %8900 = vmatprep.subr.bf16.mxu0 %v8899_v27  ;;  %v7458_v27 = vld [vmem:[%s17820_s11 + $0x10] sm:$0xff]  ;;  %v9206_v30 = vpack.c.bf16 %v7477_v59, %v7476_v52  ;;  %v7469_v23 = vld [vmem:[%s17820_s11 + $0x68] sm:$0xff]  ;;  %v7471_v52 = vld [vmem:[%s17820_s11 + $0x78] sm:$0xff] }
 0xede   : > { %v17581_v47 = vadd.f32 %v8003_v50, %v17477_v62  ;;  %v6265_v62 = vld [vmem:[%s17818_s9 + $0x1638] sm:$0xff]  ;;  %v6299_v50 = vld [vmem:[%s17818_s9 + $0x1748] sm:$0xff]  ;;  %9203 = vmatprep.subr.bf16.mxu1 %v9202_v19  ;;  %v9224_v35 = vpack.c.bf16 %v7469_v23, %v7468_v10 }
 0xedf   : > { %v8909_v1 = vpack.c.bf16 %v6265_v62, %v6262_v17  ;;  %v6298_v62 = vld [vmem:[%s17818_s9 + $0x1740] sm:$0xff]  ;;  %v7487_v19 = vld [vmem:[%s17820_s11 + $0xf8] sm:$0xff] }
 0xee0   : > { %8902 = vmatpush1.bf16.msra.mxu0 %v8901_v22  ;;  %v6302_v22 = vld [vmem:[%s17818_s9 + $0x1760] sm:$0xff] }
 0xee1   : > { %8904 = vmatprep.subr.bf16.mxu0 %v8903_v14  ;;  %v9204_v14 = vpack.c.bf16 %v7459_v42, %v7458_v27  ;;  %v8931_v17 = vpack.c.bf16 %v6302_v22, %v6299_v50  ;;  %v9226_v27 = vpack.c.bf16 %v7487_v19, %v7486_v20  ;;  %v7470_v42 = vld [vmem:[%s17820_s11 + $0x70] sm:$0xff]  ;;  %v6309_v50 = vrot.slane %v17352_v28, %v15585_v40 }
 0xee2   : > { %v6313_v22 = vrot.slane %v17352_v28, %v15593_v8  ;;  %v7490_v8 = vld [vmem:[%s17820_s11 + $0x110] sm:$0xff]  ;;  %v7492_v28 = vld [vmem:[%s17820_s11 + $0x120] sm:$0xff] }
 0xee3   : > { %9205 = vmatpush3.bf16.msra.mxu1 %v9204_v14  ;;  %v6392_v14 = vadd.f32 %v17046_v63, %v6309_v50  ;;  %v7491_v63 = vld [vmem:[%s17820_s11 + $0x118] sm:$0xff] }
 0xee4   : > { %8906 = vmatpush1.bf16.msra.mxu0 %v8905_v49  ;;  %v7478_v49 = vld [vmem:[%s17820_s11 + $0xb0] sm:$0xff]  ;;  %9207 = vmatprep.subr.bf16.mxu1 %v9206_v30  ;;  %v6394_v30 = vadd.f32 %v17057_v21, %v6313_v22  ;;  %v9234_v21 = vpack.c.bf16 %v7491_v63, %v7490_v8 }
 0xee5   : > { %8908 = vmatprep.subr.bf16.mxu0 %v8907_v18  ;;  %v7479_v18 = vld [vmem:[%s17820_s11 + $0xb8] sm:$0xff] }
 0xee6   : > { %v9210_v13 = vpack.c.bf16 %v7479_v18, %v7478_v49  ;;  %v7488_v49 = vld [vmem:[%s17820_s11 + $0x100] sm:$0xff]  ;;  %v7489_v18 = vld [vmem:[%s17820_s11 + $0x108] sm:$0xff] }
 0xee8   : > { %8910 = vmatpush1.bf16.msra.mxu0 %v8909_v1  ;;  %v9208_v1 = vpack.c.bf16 %v7461_v5, %v7460_v39 }
 0xee9   : > { %8912 = vmatprep.subr.bf16.mxu0 %v8911_v45 }
 0xeea   : > { %9209 = vmatpush3.bf16.msra.mxu1 %v9208_v1 }
 0xeeb   : > { %9211 = vmatprep.subr.bf16.mxu1 %v9210_v13 }
 0xeec   : > { %8914 = vmatpush1.bf16.msra.mxu0 %v8913_v53  ;;  %v8933_v53 = vpack.c.bf16 %v6301_v4, %v6298_v62  ;;  %v9231_v62 = vpack.c.bf16 %v7489_v18, %v7488_v49 }
 0xeed   : > { %8916 = vmatprep.subr.bf16.mxu0 %v8915_v7  ;;  %v7480_v7 = vld [vmem:[%s17820_s11 + $0xc0] sm:$0xff] }
 0xeee   : > { %v9214_v61 = vpack.c.bf16 %v7481_v31, %v7480_v7  ;;  %9213 = vmatpush3.bf16.msra.mxu1 %v9212_v6  ;;  %v7786_v7 = vld [vmem:[%s17821_s12] ss:$0 sm:$0xff] }
 0xef0   : > { %8918 = vmatpush1.bf16.msra.mxu0 %v8917_v55  ;;  %v7464_v55 = vld [vmem:[%s17820_s11 + $0x40] sm:$0xff]  ;;  %9215 = vmatprep.subr.bf16.mxu1 %v9214_v61 }
 0xef1   : > { %8920 = vmatprep.subr.bf16.mxu0 %v8919_v51  ;;  %v7465_v51 = vld [vmem:[%s17820_s11 + $0x48] sm:$0xff] }
 0xef2   : > { %v9216_v44 = vpack.c.bf16 %v7465_v51, %v7464_v55 }
 0xef4   : > { %8922 = vmatpush1.bf16.msra.mxu0 %v8921_v43  ;;  %v7467_v43 = vld [vmem:[%s17820_s11 + $0x58] sm:$0xff]  ;;  %9217 = vmatpush3.bf16.msra.mxu1 %v9216_v44 }
 0xef5   : > { %8924 = vmatprep.subr.bf16.mxu0 %v8923_v33  ;;  %v7485_v33 = vld [vmem:[%s17820_s11 + $0xe8] sm:$0xff]  ;;  %v9220_v3 = vpack.c.bf16 %v7467_v43, %v7466_v37 }
 0xef8   : > { %8926 = vmatpush1.bf16.msra.mxu0 %v8925_v29 }
 0xef9   : > { %8928 = vmatprep.subr.bf16.mxu0 %v8927_v60  ;;  %v9228_v60 = vpack.c.bf16 %v7471_v52, %v7470_v42 }
 0xefa   : > { %v8036_v56 = vpop.f32.mrb[24].mxu1 }
 0xefb   : > { %v8037_v45 = vpop.f32.mrb[25].mxu1 }
 0xefc   : > { %8930 = vmatpush1.bf16.msra.mxu0 %v8929_v9  ;;  %v8038_v34 = vadd.f32 %v8037_v45, %v8036_v56  ;;  %v7493_v56 = vld [vmem:[%s17820_s11 + $0x128] sm:$0xff]  ;;  %v7494_v45 = vld [vmem:[%s17820_s11 + $0x130] sm:$0xff] }
 0xefd   : > { %8932 = vmatprep.subr.bf16.mxu0 %v8931_v17  ;;  %v9237_v1 = vpack.c.bf16 %v7493_v56, %v7492_v28 }
 0xefe   : > { %v7240_v48 = vadd.f32 %v8038_v34, %v17581_v47  ;;  %v7483_v47 = vld [vmem:[%s17820_s11 + $0xd8] sm:$0xff] }
 0xeff   : > { %v9218_v26 = vpack.c.bf16 %v7483_v47, %v7482_v41 }
 0xf00   : > { %8934 = vmatpush1.bf16.msra.mxu0 %v8933_v53 }
 0xf01   : > { %9219 = vmatprep.subr.bf16.mxu1 %v9218_v26 }
 0xf02   : > { %9221 = vmatpush3.bf16.msra.mxu1 %v9220_v3 }
 0xf03   : > { %6887 = vmatmul.mubr.f32.vlgmr.msra.gmra.mrb[2].mxu0 %v5552_v38  ;;  %v9222_v38 = vpack.c.bf16 %v7485_v33, %v7484_v57 }
 0xf05   : > { %9223 = vmatprep.subr.bf16.mxu1 %v9222_v38 }
 0xf06   : > { %9225 = vmatpush3.bf16.msra.mxu1 %v9224_v35 }
 0xf07   : > { %9227 = vmatprep.subr.bf16.mxu1 %v9226_v27 }
 0xf0a   : > { %9229 = vmatpush3.bf16.msra.mxu1 %v9228_v60 }
 0xf0b   : > { %9230 = vmatprep.subr.bf16.mxu1 %v11183_v54 }
 0xf1a   : > { %v8071_v12 = vpop.f32.mrb[26].mxu1 }
 0xf1b   : > { %v8072_v15 = vpop.f32.mrb[27].mxu1 }
 0xf1c   : > { %v8073_v2 = vadd.f32 %v8072_v15, %v8071_v12 }
 0xf1e   : > { %v7310_v58 = vadd.f32 %v8073_v2, %v7240_v48 }
 0xf3a   : > { %v8106_v32 = vpop.f32.mrb[28].mxu1 }
 0xf3b   : > { %v8107_v25 = vpop.f32.mrb[29].mxu1 }
 0xf3c   : > { %v8108_v11 = vadd.f32 %v8107_v25, %v8106_v32 }
 0xf3e   : > { %v7380_v29 = vadd.f32 %v8108_v11, %v7310_v58 }
 0xf6f   : > { %v7449_v24 = vpop.f32.mrb[30].mxu1 }
 0xf70   : > { %v7450_v36 = vadd.f32 %v7449_v24, %v7380_v29  ;;  %v7451_v59 = vpop.f32.mrb[31].mxu1 }
 0xf72   : > { %v7455_v46 = vmax.f32 %v7450_v36, 0.0 }
 0xfd6   : > { %v6888_v39 = vpop.f32.mrb[2].mxu0 }
 0xfd7   : > { %v9243_v5 = vadd.f32 %v6888_v39, %v6392_v14  ;;  %v6890_v9 = vpop.f32.mrb[3].mxu0 }
 0xfd8   : > { %v9245_v17 = vadd.f32 %v6890_v9, %v6394_v30 }
 0xfd9   : > { %v7453_v4 = vmax.f32 %v9243_v5, 0.0 }
 0xfda   : > { %v7454_v40 = vmax.f32 %v9245_v17, 0.0 }
 0xfdc   : > { %7571 = vmatprep.mubr.f32.mxu1 %v7454_v40 }
 0xfdd   : > { %7572 = vmatmul.mubr.f32.vlgmr.msra.gmra.mrb[32].mxu1 %v7453_v4 }
 0xfde   : > { %9232 = vmatpush3.bf16.msra.mxu1 %v9231_v62  ;;  %8217 = vmatprep.mubr.msk.f32.mxu1 %vm11184_vm12, %v18211_v0  ;;  %v7495_v0 = vld [vmem:[%s17820_s11 + $0x138] sm:$0xff] }
 0xfdf   : > { %9233 = vmatprep.subr.bf16.mxu1 %v11183_v54  ;;  %v9240_v13 = vpack.c.bf16 %v7495_v0, %v7494_v45 }
 0xfe2   : > { %9235 = vmatpush3.bf16.msra.mxu1 %v9234_v21 }
 0xfe3   : > { %9236 = vmatprep.subr.bf16.mxu1 %v11183_v54 }
 0xfe6   : > { %9238 = vmatpush3.bf16.msra.mxu1 %v9237_v1 }
 0xfe7   : > { %9239 = vmatprep.subr.bf16.mxu1 %v11183_v54 }
 0xfea   : > { %9241 = vmatpush3.bf16.msra.mxu1 %v9240_v13 }
 0xfed   : > { %8218 = vmatmul.mubr.msk.f32.vlgmr.msra.gmra.mrb[34].mxu1 %vm18221_vm13, %v7455_v46 }
0x10b0   : > { %v8141_v16 = vpop.f32.mrb[32].mxu1 }
0x10b1   : > { %v8142_v34 = vpop.f32.mrb[33].mxu1 }
0x10b2   : > { %v8143_v53 = vadd.f32 %v8142_v34, %v8141_v16 }
0x10b4   : > { %v7574_v31 = vadd.f32 %v8143_v53, %v7786_v7 }
0x10c0   : > { %v7643_v48 = vpop.f32.mrb[34].mxu1 }
0x10c1   : > { %v7644_v6 = vadd.f32 %v7643_v48, %v7574_v31  ;;  %v8219_v61 = vpop.f32.mrb[35].mxu1 }
0x10c3   : > { %7648 = vst.msk [vmem:[%s11345_s14] sm:$0xff] %vm7647_vm0, %v7644_v6 }
0x10c4 PF: > { %s23_s25 = sadd.s32 1, %s11146_s25  }
0x10c5   : > { %p20_p6 = scmp.ge.s32.totalorder %s23_s25, 4  }
0x10c7   :  { %22 = sbr.rel (!%p20_p6) target bundleno = 1 (0x1), region = 122 }

</bundles_post_ra>
